<compile_context>
chip_gen: v7x
topology: tpu7x:2x2x1
jax: 0.10.0
libtpu: 0.0.40
codegen_flags: <defaults>
</compile_context>

<pallas_src>
import math

import jax
import jax.numpy as jnp
from jax import lax
from jax.experimental import pallas as pl
from jax.experimental.pallas import tpu as pltpu

# ---- model hyper-parameters (small, consistent with the module) -------------
BATCH = 2
CHANNELS = 128          # `channels`
NUM_GROUPS = 8          # `groups`
HEADS = 4               # `heads`  (CHANNELS % HEADS == 0 -> head_dim = 32)
H, W, L = 4, 4, 8       # spatial dims -> S = 128
EPS = 1e-6
HEAD_DIM = CHANNELS // HEADS
SEQ = H * W * L


def _make_kernel(heads, num_groups, eps):
    """Builds the kernel; block/shape constants are derived from the refs."""

    def kernel(x_ref, g_ref, gt_ref, gamma_ref, beta_ref,
               wqkv_ref, bqkv_ref, wo_ref, bo_ref, o_ref,
               qkv_ref, ohead_ref):
        # x_ref    : (BB, C, S) f32   input block, native (channel, position) layout
        # g_ref    : (C, G)  f32      one-hot channel->group matrix
        # gt_ref   : (G, C)  f32      its transpose (group->channel broadcast)
        # gamma/beta : (1, C) f32     GroupNorm affine
        # wqkv_ref : (C, 3C) bf16     [Wq^T * scale | Wk^T | Wv^T]
        # bqkv_ref : (1, 3C) f32      [bq * scale | bk | bv]
        # wo_ref   : (C, C)  bf16     Wo in PyTorch (out, in) orientation
        # bo_ref   : (C, 1)  f32      output bias as a column
        # o_ref    : (BB, C, S) f32   output block, (channel, position) layout
        # qkv_ref  : (S, 3C) bf16     VMEM scratch (per-batch fused QKV)
        # ohead_ref: (S, C)  bf16     VMEM scratch (concatenated head outputs)
        BB, C, S = x_ref.shape
        hd = C // heads
        inv_n = 1.0 / float((C // num_groups) * S)

        gamma = gamma_ref[...]                           # (1, C)
        beta = beta_ref[...]                             # (1, C)

        for b in range(BB):                              # static, tiny; all large
            # ---- in-kernel layout change + GroupNorm ----------------------- # intermediates land
            xb = jnp.transpose(x_ref[b])                 # (S, C) f32            # in VMEM scratch
            stat2 = jnp.concatenate(
                [jnp.sum(xb, axis=0, keepdims=True),
                 jnp.sum(xb * xb, axis=0, keepdims=True)], axis=0)          # (2, C)
            grp = jnp.dot(stat2, g_ref[...],
                          preferred_element_type=jnp.float32)               # (2, G)
            mean_g = grp[0:1] * inv_n                                        # (1, G)
            # single-pass variance, clamped against cancellation.
            # TODO(synk): switch to two-pass variance for non-zero-mean activations.
            var_g = jnp.maximum(grp[1:2] * inv_n - mean_g * mean_g, 0.0)
            inv_g = lax.rsqrt(var_g + eps)                                   # (1, G)
            stats_g = jnp.concatenate([inv_g, mean_g * inv_g], axis=0)       # (2, G)
            bcast = jnp.dot(stats_g, gt_ref[...],
                            preferred_element_type=jnp.float32)              # (2, C)
            scale_c = gamma * bcast[0:1]                 # (1, C) = gamma / sigma
            shift_c = beta - gamma * bcast[1:2]          # (1, C) = beta - gamma*mu/sigma
            xn_bf = (xb * scale_c + shift_c).astype(jnp.bfloat16)            # (S, C)

            # ---- fused QKV projection -> VMEM scratch (bounds live range) ---
            qkv = jnp.dot(xn_bf, wqkv_ref[...],
                          preferred_element_type=jnp.float32) + bqkv_ref[...]
            qkv_ref[...] = qkv.astype(jnp.bfloat16)                          # (S, 3C)

            # ---- per-head attention; head outputs collected for one K=C Wo matmul
            for h in range(heads):                       # static, unrolled
                c0 = h * hd
                qh = qkv_ref[:, c0:c0 + hd]                      # (S, hd) bf16
                kh = qkv_ref[:, C + c0:C + c0 + hd]              # (S, hd)
                vh = qkv_ref[:, 2 * C + c0:2 * C + c0 + hd]      # (S, hd)
                # contract over head_dim of both operands (trans_b form)
                sc = lax.dot_general(
                    qh, kh, (((1,), (1,)), ((), ())),
                    preferred_element_type=jnp.float32)          # (S, S)
                m = jnp.max(sc, axis=-1, keepdims=True)
                p = jnp.exp(sc - m)
                inv = pl.reciprocal(jnp.sum(p, axis=-1, keepdims=True),
                                    approx=True)
                p = (p * inv).astype(jnp.bfloat16)
                oh = jnp.dot(p, vh,
                             preferred_element_type=jnp.float32)  # (S, hd)
                ohead_ref[:, c0:c0 + hd] = oh.astype(jnp.bfloat16)

            # ---- output projection: one K=C matmul, result directly in (C, S)
            out_t = lax.dot_general(
                wo_ref[...], ohead_ref[...], (((1,), (1,)), ((), ())),
                preferred_element_type=jnp.float32)              # (C, S)
            o_ref[b] = (out_t + bo_ref[...]).astype(o_ref.dtype)

    return kernel


def attention_forward(x, params, *, heads, batch_block=None):
    """x: (B, C, H, W, L) f32 -> (B, C, H, W, L) f32."""
    B, C, h, w, l = x.shape
    S = h * w * l
    x_seq = x.reshape(B, C, S)                  # free reshape, no transpose

    (G, GT, gamma, beta, wqkv, bqkv, wo, bo) = params
    num_groups = G.shape[1]
    three_c = wqkv.shape[1]

    BB = B if batch_block is None else batch_block
    assert B % BB == 0

    kernel = _make_kernel(heads=heads, num_groups=num_groups, eps=EPS)
    const = lambda b: (0, 0)   # constant index_map -> fetched once, no re-DMA

    out_seq = pl.pallas_call(
        kernel,
        out_shape=jax.ShapeDtypeStruct((B, C, S), jnp.float32),
        grid_spec=pltpu.PrefetchScalarGridSpec(
            num_scalar_prefetch=0,
            grid=(B // BB,),
            in_specs=[
                pl.BlockSpec((BB, C, S), lambda b: (b, 0, 0)),      # x (B,C,S)
                pl.BlockSpec((C, num_groups), const),               # G
                pl.BlockSpec((num_groups, C), const),               # G^T
                pl.BlockSpec((1, C), const),                        # gamma
                pl.BlockSpec((1, C), const),                        # beta
                pl.BlockSpec((C, three_c), const),                  # Wqkv (bf16)
                pl.BlockSpec((1, three_c), const),                  # bqkv
                pl.BlockSpec((C, C), const),                        # Wo (bf16)
                pl.BlockSpec((C, 1), const),                        # bo column
            ],
            out_specs=pl.BlockSpec((BB, C, S), lambda b: (b, 0, 0)),
            scratch_shapes=[
                pltpu.VMEM((S, three_c), jnp.bfloat16),             # qkv scratch
                pltpu.VMEM((S, C), jnp.bfloat16),                   # head-output scratch
            ],
        ),
        compiler_params=pltpu.CompilerParams(
            dimension_semantics=("parallel",)),
    )(x_seq, G, GT, gamma, beta, wqkv, bqkv, wo, bo)

    return out_seq.reshape(B, C, h, w, l)       # free reshape, no transpose


# ---------------- pure-JAX reference (mirrors the PyTorch forward) -----------
def reference_forward(x, raw):
    gamma, beta, Wq, bq, Wk, bk, Wv, bv, Wo, bo = raw
    B, C, h, w, l = x.shape
    S = h * w * l
    hs = x.reshape(B, C, S)                                     # (B, C, S)
    hsg = hs.reshape(B, NUM_GROUPS, (C // NUM_GROUPS) * S)
    mean = hsg.mean(-1, keepdims=True)
    var = hsg.var(-1, keepdims=True)
    hsn = ((hsg - mean) / jnp.sqrt(var + EPS)).reshape(B, C, S)
    hsn = hsn * gamma[None, :, None] + beta[None, :, None]
    hseq = jnp.transpose(hsn, (0, 2, 1))                        # (B, S, C)
    q = hseq @ Wq.T + bq
    k = hseq @ Wk.T + bk
    v = hseq @ Wv.T + bv

    def split(t):
        return jnp.transpose(t.reshape(B, S, HEADS, HEAD_DIM), (0, 2, 1, 3))

    q, k, v = split(q), split(k), split(v)
    s = jnp.einsum("bhqd,bhkd->bhqk", q, k) / math.sqrt(HEAD_DIM)
    p = jax.nn.softmax(s, axis=-1)
    o = jnp.einsum("bhqk,bhkd->bhqd", p, v)
    o = jnp.transpose(o, (0, 2, 1, 3)).reshape(B, S, C)
    o = o @ Wo.T + bo
    return jnp.transpose(o, (0, 2, 1)).reshape(B, C, h, w, l)


if __name__ == "__main__":
    key = jax.random.PRNGKey(0)
    keys = jax.random.split(key, 11)

    # deterministic synthetic parameters (PyTorch Linear convention: W is (out, in))
    gamma = jax.random.normal(keys[0], (CHANNELS,), jnp.float32) * 0.1 + 1.0
    beta = jax.random.normal(keys[1], (CHANNELS,), jnp.float32) * 0.1
    Wq = jax.random.normal(keys[2], (CHANNELS, CHANNELS), jnp.float32) * 0.05
    bq = jax.random.normal(keys[3], (CHANNELS,), jnp.float32) * 0.05
    Wk = jax.random.normal(keys[4], (CHANNELS, CHANNELS), jnp.float32) * 0.05
    bk = jax.random.normal(keys[5], (CHANNELS,), jnp.float32) * 0.05
    Wv = jax.random.normal(keys[6], (CHANNELS, CHANNELS), jnp.float32) * 0.05
    bv = jax.random.normal(keys[7], (CHANNELS,), jnp.float32) * 0.05
    Wo = jax.random.normal(keys[8], (CHANNELS, CHANNELS), jnp.float32) * 0.05
    bo = jax.random.normal(keys[9], (CHANNELS,), jnp.float32) * 0.05

    # channel -> group one-hot matrix used for in-kernel group reductions
    cg = CHANNELS // NUM_GROUPS
    Gmat = (jnp.arange(CHANNELS)[:, None] // cg ==
            jnp.arange(NUM_GROUPS)[None, :]).astype(jnp.float32)

    # fused QKV weights (bf16), with the 1/sqrt(head_dim) scale folded into Q
    scale = 1.0 / math.sqrt(HEAD_DIM)
    wqkv = jnp.concatenate([Wq.T * scale, Wk.T, Wv.T], axis=1).astype(jnp.bfloat16)
    bqkv = jnp.concatenate([bq * scale, bk, bv]).reshape(1, 3 * CHANNELS)
    bqkv = bqkv.astype(jnp.float32)

    kernel_params = (
        Gmat, Gmat.T,
        gamma.reshape(1, CHANNELS), beta.reshape(1, CHANNELS),
        wqkv, bqkv,
        Wo.astype(jnp.bfloat16),                 # PyTorch (out, in) orientation
        bo.reshape(CHANNELS, 1).astype(jnp.float32),
    )
    raw_params = (gamma, beta, Wq, bq, Wk, bk, Wv, bv, Wo, bo)

    x = jax.random.normal(keys[10], (BATCH, CHANNELS, H, W, L), jnp.float32)

    out = attention_forward(x, kernel_params, heads=HEADS)   # grid=(1,)
    out = jax.block_until_ready(out)

    ref = reference_forward(x, raw_params)
    assert out.shape == (BATCH, CHANNELS, H, W, L)
    max_err = float(jnp.max(jnp.abs(out - ref)))
    # matmuls run with bf16 operands (f32 accumulation) -> relaxed tolerance.
    assert jnp.allclose(out, ref, atol=2e-2, rtol=2e-2), max_err

    print("KERNEL_OK")
</pallas_src>

<mosaic_0001>
module attributes {stable_mosaic.version = 11 : i64} {
  func.func @kernel(%arg0: i32, %arg1: memref<2x128x128xf32, #tpu.memory_space<vmem>>, %arg2: memref<128x8xf32, #tpu.memory_space<vmem>>, %arg3: memref<8x128xf32, #tpu.memory_space<vmem>>, %arg4: memref<1x128xf32, #tpu.memory_space<vmem>>, %arg5: memref<1x128xf32, #tpu.memory_space<vmem>>, %arg6: memref<128x384xbf16, #tpu.memory_space<vmem>>, %arg7: memref<1x384xf32, #tpu.memory_space<vmem>>, %arg8: memref<128x128xbf16, #tpu.memory_space<vmem>>, %arg9: memref<128x1xf32, #tpu.memory_space<vmem>>, %arg10: memref<2x128x128xf32, #tpu.memory_space<vmem>>, %arg11: memref<128x384xbf16, #tpu.memory_space<vmem>>, %arg12: memref<128x128xbf16, #tpu.memory_space<vmem>>) attributes {dimension_semantics = [#tpu.dimension_semantics<parallel>], iteration_bounds = array<i64: 1>, scalar_prefetch = 0 : i64, scratch_operands = 2 : i64, tpu.core_type = #tpu.core_type<tc>, window_params = [{transform_indices = @transform_0, window_bounds = array<i64: 2, 128, 128>}, {pipeline_mode = #tpu.pipeline_mode<synchronous>, transform_indices = @transform_1, window_bounds = array<i64: 128, 8>}, {pipeline_mode = #tpu.pipeline_mode<synchronous>, transform_indices = @transform_2, window_bounds = array<i64: 8, 128>}, {pipeline_mode = #tpu.pipeline_mode<synchronous>, transform_indices = @transform_3, window_bounds = array<i64: 1, 128>}, {pipeline_mode = #tpu.pipeline_mode<synchronous>, transform_indices = @transform_4, window_bounds = array<i64: 1, 128>}, {pipeline_mode = #tpu.pipeline_mode<synchronous>, transform_indices = @transform_5, window_bounds = array<i64: 128, 384>}, {pipeline_mode = #tpu.pipeline_mode<synchronous>, transform_indices = @transform_6, window_bounds = array<i64: 1, 384>}, {pipeline_mode = #tpu.pipeline_mode<synchronous>, transform_indices = @transform_7, window_bounds = array<i64: 128, 128>}, {pipeline_mode = #tpu.pipeline_mode<synchronous>, transform_indices = @transform_8, window_bounds = array<i64: 128, 1>}, {transform_indices = @transform_9, window_bounds = array<i64: 2, 128, 128>}]} {
    %c0 = arith.constant 0 : index
    %c0_0 = arith.constant 0 : index
    %0 = vector.load %arg4[%c0, %c0_0] : memref<1x128xf32, #tpu.memory_space<vmem>>, vector<1x128xf32>
    %c0_1 = arith.constant 0 : index
    %c0_2 = arith.constant 0 : index
    %1 = vector.load %arg5[%c0_1, %c0_2] : memref<1x128xf32, #tpu.memory_space<vmem>>, vector<1x128xf32>
    %c0_3 = arith.constant 0 : index
    %c0_4 = arith.constant 0 : index
    %c0_5 = arith.constant 0 : index
    %2 = vector.load %arg1[%c0_3, %c0_4, %c0_5] : memref<2x128x128xf32, #tpu.memory_space<vmem>>, vector<1x128x128xf32>
    %3 = vector.shape_cast %2 : vector<1x128x128xf32> to vector<128x128xf32>
    %4 = tpu.transpose %3, [1, 0] : vector<128x128xf32> -> vector<128x128xf32>
    %cst = arith.constant dense<0.000000e+00> : vector<128xf32>
    %5 = vector.multi_reduction <add>, %4, %cst [0] : vector<128x128xf32> to vector<128xf32>
    %6 = vector.shape_cast %5 : vector<128xf32> to vector<1x128xf32>
    %7 = arith.mulf %4, %4 : vector<128x128xf32>
    %cst_6 = arith.constant dense<0.000000e+00> : vector<128xf32>
    %8 = vector.multi_reduction <add>, %7, %cst_6 [0] : vector<128x128xf32> to vector<128xf32>
    %9 = vector.shape_cast %8 : vector<128xf32> to vector<1x128xf32>
    %10 = tpu.concatenate %6, %9 in 0 : vector<1x128xf32>, vector<1x128xf32> -> vector<2x128xf32>
    %c0_7 = arith.constant 0 : index
    %c0_8 = arith.constant 0 : index
    %11 = vector.load %arg2[%c0_7, %c0_8] : memref<128x8xf32, #tpu.memory_space<vmem>>, vector<128x8xf32>
    %cst_9 = arith.constant dense<0.000000e+00> : vector<2x8xf32>
    %12 = tpu.matmul %10, %11, %cst_9 {dimension_numbers = #tpu.dot_dimension_numbers<[1], [0], [0], [1], [0, 0, 1, 1], [], []>} : vector<2x128xf32>, vector<128x8xf32>, vector<2x8xf32> -> vector<2x8xf32>
    %13 = vector.extract_strided_slice %12 {offsets = [0, 0], sizes = [1, 8], strides = [1, 1]} : vector<2x8xf32> to vector<1x8xf32>
    %cst_10 = arith.constant 4.8828125E-4 : f32
    %14 = vector.broadcast %cst_10 : f32 to vector<1x8xf32>
    %15 = arith.mulf %13, %14 : vector<1x8xf32>
    %16 = vector.extract_strided_slice %12 {offsets = [1, 0], sizes = [1, 8], strides = [1, 1]} : vector<2x8xf32> to vector<1x8xf32>
    %cst_11 = arith.constant 4.8828125E-4 : f32
    %17 = vector.broadcast %cst_11 : f32 to vector<1x8xf32>
    %18 = arith.mulf %16, %17 : vector<1x8xf32>
    %19 = arith.mulf %15, %15 : vector<1x8xf32>
    %20 = arith.subf %18, %19 : vector<1x8xf32>
    %cst_12 = arith.constant 0.000000e+00 : f32
    %21 = vector.broadcast %cst_12 : f32 to vector<1x8xf32>
    %22 = arith.maximumf %20, %21 : vector<1x8xf32>
    %cst_13 = arith.constant 9.99999997E-7 : f32
    %23 = vector.broadcast %cst_13 : f32 to vector<1x8xf32>
    %24 = arith.addf %22, %23 : vector<1x8xf32>
    %25 = math.rsqrt %24 : vector<1x8xf32>
    %26 = arith.mulf %15, %25 : vector<1x8xf32>
    %27 = tpu.concatenate %25, %26 in 0 : vector<1x8xf32>, vector<1x8xf32> -> vector<2x8xf32>
    %c0_14 = arith.constant 0 : index
    %c0_15 = arith.constant 0 : index
    %28 = vector.load %arg3[%c0_14, %c0_15] : memref<8x128xf32, #tpu.memory_space<vmem>>, vector<8x128xf32>
    %cst_16 = arith.constant dense<0.000000e+00> : vector<2x128xf32>
    %29 = tpu.matmul %27, %28, %cst_16 {dimension_numbers = #tpu.dot_dimension_numbers<[1], [0], [0], [1], [0, 0, 1, 1], [], []>} : vector<2x8xf32>, vector<8x128xf32>, vector<2x128xf32> -> vector<2x128xf32>
    %30 = vector.extract_strided_slice %29 {offsets = [0, 0], sizes = [1, 128], strides = [1, 1]} : vector<2x128xf32> to vector<1x128xf32>
    %31 = arith.mulf %0, %30 : vector<1x128xf32>
    %32 = vector.extract_strided_slice %29 {offsets = [1, 0], sizes = [1, 128], strides = [1, 1]} : vector<2x128xf32> to vector<1x128xf32>
    %33 = arith.mulf %0, %32 : vector<1x128xf32>
    %34 = arith.subf %1, %33 : vector<1x128xf32>
    %35 = vector.broadcast %31 : vector<1x128xf32> to vector<128x128xf32>
    %36 = arith.mulf %4, %35 : vector<128x128xf32>
    %37 = vector.broadcast %34 : vector<1x128xf32> to vector<128x128xf32>
    %38 = arith.addf %36, %37 : vector<128x128xf32>
    %39 = arith.truncf %38 : vector<128x128xf32> to vector<128x128xbf16>
    %c0_17 = arith.constant 0 : index
    %c0_18 = arith.constant 0 : index
    %40 = vector.load %arg6[%c0_17, %c0_18] : memref<128x384xbf16, #tpu.memory_space<vmem>>, vector<128x384xbf16>
    %cst_19 = arith.constant dense<0.000000e+00> : vector<128x384xf32>
    %41 = tpu.matmul %39, %40, %cst_19 {dimension_numbers = #tpu.dot_dimension_numbers<[1], [0], [0], [1], [0, 0, 1, 1], [], []>} : vector<128x128xbf16>, vector<128x384xbf16>, vector<128x384xf32> -> vector<128x384xf32>
    %c0_20 = arith.constant 0 : index
    %c0_21 = arith.constant 0 : index
    %42 = vector.load %arg7[%c0_20, %c0_21] : memref<1x384xf32, #tpu.memory_space<vmem>>, vector<1x384xf32>
    %43 = vector.broadcast %42 : vector<1x384xf32> to vector<128x384xf32>
    %44 = arith.addf %41, %43 : vector<128x384xf32>
    %45 = arith.truncf %44 : vector<128x384xf32> to vector<128x384xbf16>
    %c0_22 = arith.constant 0 : index
    %c0_23 = arith.constant 0 : index
    %46 = vector.load %arg11[%c0_22, %c0_23] : memref<128x384xbf16, #tpu.memory_space<vmem>>, vector<128x384xbf16>
    tpu.vector_store %arg11[%c0_22, %c0_23], %45 {strides = array<i32>} : memref<128x384xbf16, #tpu.memory_space<vmem>>, vector<128x384xbf16>,
    %c0_24 = arith.constant 0 : index
    %c0_25 = arith.constant 0 : index
    %47 = vector.load %arg11[%c0_24, %c0_25] : memref<128x384xbf16, #tpu.memory_space<vmem>>, vector<128x32xbf16>
    %c0_26 = arith.constant 0 : index
    %c128 = arith.constant 128 : index
    %48 = vector.load %arg11[%c0_26, %c128] : memref<128x384xbf16, #tpu.memory_space<vmem>>, vector<128x32xbf16>
    %c0_27 = arith.constant 0 : index
    %c256 = arith.constant 256 : index
    %49 = vector.load %arg11[%c0_27, %c256] : memref<128x384xbf16, #tpu.memory_space<vmem>>, vector<128x32xbf16>
    %cst_28 = arith.constant dense<0.000000e+00> : vector<128x128xf32>
    %50 = tpu.matmul %47, %48, %cst_28 {dimension_numbers = #tpu.dot_dimension_numbers<[1], [1], [0], [0], [0, 0, 1, 0], [], []>} : vector<128x32xbf16>, vector<128x32xbf16>, vector<128x128xf32> -> vector<128x128xf32>
    %cst_29 = arith.constant dense<0xFF800000> : vector<128xf32>
    %51 = vector.multi_reduction <maximumf>, %50, %cst_29 [1] : vector<128x128xf32> to vector<128xf32>
    %52 = vector.shape_cast %51 : vector<128xf32> to vector<128x1xf32>
    %53 = vector.broadcast %52 : vector<128x1xf32> to vector<128x128xf32>
    %54 = arith.subf %50, %53 : vector<128x128xf32>
    %55 = math.exp %54 : vector<128x128xf32>
    %cst_30 = arith.constant dense<0.000000e+00> : vector<128xf32>
    %56 = vector.multi_reduction <add>, %55, %cst_30 [1] : vector<128x128xf32> to vector<128xf32>
    %57 = vector.shape_cast %56 : vector<128xf32> to vector<128x1xf32>
    %58 = tpu.reciprocal %57 {approx = true} : vector<128x1xf32> -> vector<128x1xf32>
    %59 = vector.broadcast %58 : vector<128x1xf32> to vector<128x128xf32>
    %60 = arith.mulf %55, %59 : vector<128x128xf32>
    %61 = arith.truncf %60 : vector<128x128xf32> to vector<128x128xbf16>
    %cst_31 = arith.constant dense<0.000000e+00> : vector<128x32xf32>
    %62 = tpu.matmul %61, %49, %cst_31 {dimension_numbers = #tpu.dot_dimension_numbers<[1], [0], [0], [1], [0, 0, 1, 1], [], []>} : vector<128x128xbf16>, vector<128x32xbf16>, vector<128x32xf32> -> vector<128x32xf32>
    %63 = arith.truncf %62 : vector<128x32xf32> to vector<128x32xbf16>
    %c0_32 = arith.constant 0 : index
    %c0_33 = arith.constant 0 : index
    %64 = vector.load %arg12[%c0_32, %c0_33] : memref<128x128xbf16, #tpu.memory_space<vmem>>, vector<128x32xbf16>
    tpu.vector_store %arg12[%c0_32, %c0_33], %63 {strides = array<i32>} : memref<128x128xbf16, #tpu.memory_space<vmem>>, vector<128x32xbf16>,
    %c0_34 = arith.constant 0 : index
    %c32 = arith.constant 32 : index
    %65 = vector.load %arg11[%c0_34, %c32] : memref<128x384xbf16, #tpu.memory_space<vmem>>, vector<128x32xbf16>
    %c0_35 = arith.constant 0 : index
    %c160 = arith.constant 160 : index
    %66 = vector.load %arg11[%c0_35, %c160] : memref<128x384xbf16, #tpu.memory_space<vmem>>, vector<128x32xbf16>
    %c0_36 = arith.constant 0 : index
    %c288 = arith.constant 288 : index
    %67 = vector.load %arg11[%c0_36, %c288] : memref<128x384xbf16, #tpu.memory_space<vmem>>, vector<128x32xbf16>
    %cst_37 = arith.constant dense<0.000000e+00> : vector<128x128xf32>
    %68 = tpu.matmul %65, %66, %cst_37 {dimension_numbers = #tpu.dot_dimension_numbers<[1], [1], [0], [0], [0, 0, 1, 0], [], []>} : vector<128x32xbf16>, vector<128x32xbf16>, vector<128x128xf32> -> vector<128x128xf32>
    %cst_38 = arith.constant dense<0xFF800000> : vector<128xf32>
    %69 = vector.multi_reduction <maximumf>, %68, %cst_38 [1] : vector<128x128xf32> to vector<128xf32>
    %70 = vector.shape_cast %69 : vector<128xf32> to vector<128x1xf32>
    %71 = vector.broadcast %70 : vector<128x1xf32> to vector<128x128xf32>
    %72 = arith.subf %68, %71 : vector<128x128xf32>
    %73 = math.exp %72 : vector<128x128xf32>
    %cst_39 = arith.constant dense<0.000000e+00> : vector<128xf32>
    %74 = vector.multi_reduction <add>, %73, %cst_39 [1] : vector<128x128xf32> to vector<128xf32>
    %75 = vector.shape_cast %74 : vector<128xf32> to vector<128x1xf32>
    %76 = tpu.reciprocal %75 {approx = true} : vector<128x1xf32> -> vector<128x1xf32>
    %77 = vector.broadcast %76 : vector<128x1xf32> to vector<128x128xf32>
    %78 = arith.mulf %73, %77 : vector<128x128xf32>
    %79 = arith.truncf %78 : vector<128x128xf32> to vector<128x128xbf16>
    %cst_40 = arith.constant dense<0.000000e+00> : vector<128x32xf32>
    %80 = tpu.matmul %79, %67, %cst_40 {dimension_numbers = #tpu.dot_dimension_numbers<[1], [0], [0], [1], [0, 0, 1, 1], [], []>} : vector<128x128xbf16>, vector<128x32xbf16>, vector<128x32xf32> -> vector<128x32xf32>
    %81 = arith.truncf %80 : vector<128x32xf32> to vector<128x32xbf16>
    %c0_41 = arith.constant 0 : index
    %c32_42 = arith.constant 32 : index
    %82 = vector.load %arg12[%c0_41, %c32_42] : memref<128x128xbf16, #tpu.memory_space<vmem>>, vector<128x32xbf16>
    tpu.vector_store %arg12[%c0_41, %c32_42], %81 {strides = array<i32>} : memref<128x128xbf16, #tpu.memory_space<vmem>>, vector<128x32xbf16>,
    %c0_43 = arith.constant 0 : index
    %c64 = arith.constant 64 : index
    %83 = vector.load %arg11[%c0_43, %c64] : memref<128x384xbf16, #tpu.memory_space<vmem>>, vector<128x32xbf16>
    %c0_44 = arith.constant 0 : index
    %c192 = arith.constant 192 : index
    %84 = vector.load %arg11[%c0_44, %c192] : memref<128x384xbf16, #tpu.memory_space<vmem>>, vector<128x32xbf16>
    %c0_45 = arith.constant 0 : index
    %c320 = arith.constant 320 : index
    %85 = vector.load %arg11[%c0_45, %c320] : memref<128x384xbf16, #tpu.memory_space<vmem>>, vector<128x32xbf16>
    %cst_46 = arith.constant dense<0.000000e+00> : vector<128x128xf32>
    %86 = tpu.matmul %83, %84, %cst_46 {dimension_numbers = #tpu.dot_dimension_numbers<[1], [1], [0], [0], [0, 0, 1, 0], [], []>} : vector<128x32xbf16>, vector<128x32xbf16>, vector<128x128xf32> -> vector<128x128xf32>
    %cst_47 = arith.constant dense<0xFF800000> : vector<128xf32>
    %87 = vector.multi_reduction <maximumf>, %86, %cst_47 [1] : vector<128x128xf32> to vector<128xf32>
    %88 = vector.shape_cast %87 : vector<128xf32> to vector<128x1xf32>
    %89 = vector.broadcast %88 : vector<128x1xf32> to vector<128x128xf32>
    %90 = arith.subf %86, %89 : vector<128x128xf32>
    %91 = math.exp %90 : vector<128x128xf32>
    %cst_48 = arith.constant dense<0.000000e+00> : vector<128xf32>
    %92 = vector.multi_reduction <add>, %91, %cst_48 [1] : vector<128x128xf32> to vector<128xf32>
    %93 = vector.shape_cast %92 : vector<128xf32> to vector<128x1xf32>
    %94 = tpu.reciprocal %93 {approx = true} : vector<128x1xf32> -> vector<128x1xf32>
    %95 = vector.broadcast %94 : vector<128x1xf32> to vector<128x128xf32>
    %96 = arith.mulf %91, %95 : vector<128x128xf32>
    %97 = arith.truncf %96 : vector<128x128xf32> to vector<128x128xbf16>
    %cst_49 = arith.constant dense<0.000000e+00> : vector<128x32xf32>
    %98 = tpu.matmul %97, %85, %cst_49 {dimension_numbers = #tpu.dot_dimension_numbers<[1], [0], [0], [1], [0, 0, 1, 1], [], []>} : vector<128x128xbf16>, vector<128x32xbf16>, vector<128x32xf32> -> vector<128x32xf32>
    %99 = arith.truncf %98 : vector<128x32xf32> to vector<128x32xbf16>
    %c0_50 = arith.constant 0 : index
    %c64_51 = arith.constant 64 : index
    %100 = vector.load %arg12[%c0_50, %c64_51] : memref<128x128xbf16, #tpu.memory_space<vmem>>, vector<128x32xbf16>
    tpu.vector_store %arg12[%c0_50, %c64_51], %99 {strides = array<i32>} : memref<128x128xbf16, #tpu.memory_space<vmem>>, vector<128x32xbf16>,
    %c0_52 = arith.constant 0 : index
    %c96 = arith.constant 96 : index
    %101 = vector.load %arg11[%c0_52, %c96] : memref<128x384xbf16, #tpu.memory_space<vmem>>, vector<128x32xbf16>
    %c0_53 = arith.constant 0 : index
    %c224 = arith.constant 224 : index
    %102 = vector.load %arg11[%c0_53, %c224] : memref<128x384xbf16, #tpu.memory_space<vmem>>, vector<128x32xbf16>
    %c0_54 = arith.constant 0 : index
    %c352 = arith.constant 352 : index
    %103 = vector.load %arg11[%c0_54, %c352] : memref<128x384xbf16, #tpu.memory_space<vmem>>, vector<128x32xbf16>
    %cst_55 = arith.constant dense<0.000000e+00> : vector<128x128xf32>
    %104 = tpu.matmul %101, %102, %cst_55 {dimension_numbers = #tpu.dot_dimension_numbers<[1], [1], [0], [0], [0, 0, 1, 0], [], []>} : vector<128x32xbf16>, vector<128x32xbf16>, vector<128x128xf32> -> vector<128x128xf32>
    %cst_56 = arith.constant dense<0xFF800000> : vector<128xf32>
    %105 = vector.multi_reduction <maximumf>, %104, %cst_56 [1] : vector<128x128xf32> to vector<128xf32>
    %106 = vector.shape_cast %105 : vector<128xf32> to vector<128x1xf32>
    %107 = vector.broadcast %106 : vector<128x1xf32> to vector<128x128xf32>
    %108 = arith.subf %104, %107 : vector<128x128xf32>
    %109 = math.exp %108 : vector<128x128xf32>
    %cst_57 = arith.constant dense<0.000000e+00> : vector<128xf32>
    %110 = vector.multi_reduction <add>, %109, %cst_57 [1] : vector<128x128xf32> to vector<128xf32>
    %111 = vector.shape_cast %110 : vector<128xf32> to vector<128x1xf32>
    %112 = tpu.reciprocal %111 {approx = true} : vector<128x1xf32> -> vector<128x1xf32>
    %113 = vector.broadcast %112 : vector<128x1xf32> to vector<128x128xf32>
    %114 = arith.mulf %109, %113 : vector<128x128xf32>
    %115 = arith.truncf %114 : vector<128x128xf32> to vector<128x128xbf16>
    %cst_58 = arith.constant dense<0.000000e+00> : vector<128x32xf32>
    %116 = tpu.matmul %115, %103, %cst_58 {dimension_numbers = #tpu.dot_dimension_numbers<[1], [0], [0], [1], [0, 0, 1, 1], [], []>} : vector<128x128xbf16>, vector<128x32xbf16>, vector<128x32xf32> -> vector<128x32xf32>
    %117 = arith.truncf %116 : vector<128x32xf32> to vector<128x32xbf16>
    %c0_59 = arith.constant 0 : index
    %c96_60 = arith.constant 96 : index
    %118 = vector.load %arg12[%c0_59, %c96_60] : memref<128x128xbf16, #tpu.memory_space<vmem>>, vector<128x32xbf16>
    tpu.vector_store %arg12[%c0_59, %c96_60], %117 {strides = array<i32>} : memref<128x128xbf16, #tpu.memory_space<vmem>>, vector<128x32xbf16>,
    %c0_61 = arith.constant 0 : index
    %c0_62 = arith.constant 0 : index
    %119 = vector.load %arg8[%c0_61, %c0_62] : memref<128x128xbf16, #tpu.memory_space<vmem>>, vector<128x128xbf16>
    %c0_63 = arith.constant 0 : index
    %c0_64 = arith.constant 0 : index
    %120 = vector.load %arg12[%c0_63, %c0_64] : memref<128x128xbf16, #tpu.memory_space<vmem>>, vector<128x128xbf16>
    %cst_65 = arith.constant dense<0.000000e+00> : vector<128x128xf32>
    %121 = tpu.matmul %119, %120, %cst_65 {dimension_numbers = #tpu.dot_dimension_numbers<[1], [1], [0], [0], [0, 0, 1, 0], [], []>} : vector<128x128xbf16>, vector<128x128xbf16>, vector<128x128xf32> -> vector<128x128xf32>
    %c0_66 = arith.constant 0 : index
    %c0_67 = arith.constant 0 : index
    %122 = vector.load %arg9[%c0_66, %c0_67] : memref<128x1xf32, #tpu.memory_space<vmem>>, vector<128x1xf32>
    %123 = vector.broadcast %122 : vector<128x1xf32> to vector<128x128xf32>
    %124 = arith.addf %121, %123 : vector<128x128xf32>
    %c0_68 = arith.constant 0 : index
    %c0_69 = arith.constant 0 : index
    %c0_70 = arith.constant 0 : index
    %125 = vector.load %arg10[%c0_68, %c0_69, %c0_70] : memref<2x128x128xf32, #tpu.memory_space<vmem>>, vector<1x128x128xf32>
    %126 = vector.shape_cast %125 : vector<1x128x128xf32> to vector<128x128xf32>
    %127 = vector.shape_cast %124 : vector<128x128xf32> to vector<1x128x128xf32>
    tpu.vector_store %arg10[%c0_68, %c0_69, %c0_70], %127 {strides = array<i32>} : memref<2x128x128xf32, #tpu.memory_space<vmem>>, vector<1x128x128xf32>,
    %c1 = arith.constant 1 : index
    %c0_71 = arith.constant 0 : index
    %c0_72 = arith.constant 0 : index
    %128 = vector.load %arg1[%c1, %c0_71, %c0_72] : memref<2x128x128xf32, #tpu.memory_space<vmem>>, vector<1x128x128xf32>
    %129 = vector.shape_cast %128 : vector<1x128x128xf32> to vector<128x128xf32>
    %130 = tpu.transpose %129, [1, 0] : vector<128x128xf32> -> vector<128x128xf32>
    %cst_73 = arith.constant dense<0.000000e+00> : vector<128xf32>
    %131 = vector.multi_reduction <add>, %130, %cst_73 [0] : vector<128x128xf32> to vector<128xf32>
    %132 = vector.shape_cast %131 : vector<128xf32> to vector<1x128xf32>
    %133 = arith.mulf %130, %130 : vector<128x128xf32>
    %cst_74 = arith.constant dense<0.000000e+00> : vector<128xf32>
    %134 = vector.multi_reduction <add>, %133, %cst_74 [0] : vector<128x128xf32> to vector<128xf32>
    %135 = vector.shape_cast %134 : vector<128xf32> to vector<1x128xf32>
    %136 = tpu.concatenate %132, %135 in 0 : vector<1x128xf32>, vector<1x128xf32> -> vector<2x128xf32>
    %c0_75 = arith.constant 0 : index
    %c0_76 = arith.constant 0 : index
    %137 = vector.load %arg2[%c0_75, %c0_76] : memref<128x8xf32, #tpu.memory_space<vmem>>, vector<128x8xf32>
    %cst_77 = arith.constant dense<0.000000e+00> : vector<2x8xf32>
    %138 = tpu.matmul %136, %137, %cst_77 {dimension_numbers = #tpu.dot_dimension_numbers<[1], [0], [0], [1], [0, 0, 1, 1], [], []>} : vector<2x128xf32>, vector<128x8xf32>, vector<2x8xf32> -> vector<2x8xf32>
    %139 = vector.extract_strided_slice %138 {offsets = [0, 0], sizes = [1, 8], strides = [1, 1]} : vector<2x8xf32> to vector<1x8xf32>
    %cst_78 = arith.constant 4.8828125E-4 : f32
    %140 = vector.broadcast %cst_78 : f32 to vector<1x8xf32>
    %141 = arith.mulf %139, %140 : vector<1x8xf32>
    %142 = vector.extract_strided_slice %138 {offsets = [1, 0], sizes = [1, 8], strides = [1, 1]} : vector<2x8xf32> to vector<1x8xf32>
    %cst_79 = arith.constant 4.8828125E-4 : f32
    %143 = vector.broadcast %cst_79 : f32 to vector<1x8xf32>
    %144 = arith.mulf %142, %143 : vector<1x8xf32>
    %145 = arith.mulf %141, %141 : vector<1x8xf32>
    %146 = arith.subf %144, %145 : vector<1x8xf32>
    %cst_80 = arith.constant 0.000000e+00 : f32
    %147 = vector.broadcast %cst_80 : f32 to vector<1x8xf32>
    %148 = arith.maximumf %146, %147 : vector<1x8xf32>
    %cst_81 = arith.constant 9.99999997E-7 : f32
    %149 = vector.broadcast %cst_81 : f32 to vector<1x8xf32>
    %150 = arith.addf %148, %149 : vector<1x8xf32>
    %151 = math.rsqrt %150 : vector<1x8xf32>
    %152 = arith.mulf %141, %151 : vector<1x8xf32>
    %153 = tpu.concatenate %151, %152 in 0 : vector<1x8xf32>, vector<1x8xf32> -> vector<2x8xf32>
    %c0_82 = arith.constant 0 : index
    %c0_83 = arith.constant 0 : index
    %154 = vector.load %arg3[%c0_82, %c0_83] : memref<8x128xf32, #tpu.memory_space<vmem>>, vector<8x128xf32>
    %cst_84 = arith.constant dense<0.000000e+00> : vector<2x128xf32>
    %155 = tpu.matmul %153, %154, %cst_84 {dimension_numbers = #tpu.dot_dimension_numbers<[1], [0], [0], [1], [0, 0, 1, 1], [], []>} : vector<2x8xf32>, vector<8x128xf32>, vector<2x128xf32> -> vector<2x128xf32>
    %156 = vector.extract_strided_slice %155 {offsets = [0, 0], sizes = [1, 128], strides = [1, 1]} : vector<2x128xf32> to vector<1x128xf32>
    %157 = arith.mulf %0, %156 : vector<1x128xf32>
    %158 = vector.extract_strided_slice %155 {offsets = [1, 0], sizes = [1, 128], strides = [1, 1]} : vector<2x128xf32> to vector<1x128xf32>
    %159 = arith.mulf %0, %158 : vector<1x128xf32>
    %160 = arith.subf %1, %159 : vector<1x128xf32>
    %161 = vector.broadcast %157 : vector<1x128xf32> to vector<128x128xf32>
    %162 = arith.mulf %130, %161 : vector<128x128xf32>
    %163 = vector.broadcast %160 : vector<1x128xf32> to vector<128x128xf32>
    %164 = arith.addf %162, %163 : vector<128x128xf32>
    %165 = arith.truncf %164 : vector<128x128xf32> to vector<128x128xbf16>
    %c0_85 = arith.constant 0 : index
    %c0_86 = arith.constant 0 : index
    %166 = vector.load %arg6[%c0_85, %c0_86] : memref<128x384xbf16, #tpu.memory_space<vmem>>, vector<128x384xbf16>
    %cst_87 = arith.constant dense<0.000000e+00> : vector<128x384xf32>
    %167 = tpu.matmul %165, %166, %cst_87 {dimension_numbers = #tpu.dot_dimension_numbers<[1], [0], [0], [1], [0, 0, 1, 1], [], []>} : vector<128x128xbf16>, vector<128x384xbf16>, vector<128x384xf32> -> vector<128x384xf32>
    %c0_88 = arith.constant 0 : index
    %c0_89 = arith.constant 0 : index
    %168 = vector.load %arg7[%c0_88, %c0_89] : memref<1x384xf32, #tpu.memory_space<vmem>>, vector<1x384xf32>
    %169 = vector.broadcast %168 : vector<1x384xf32> to vector<128x384xf32>
    %170 = arith.addf %167, %169 : vector<128x384xf32>
    %171 = arith.truncf %170 : vector<128x384xf32> to vector<128x384xbf16>
    %c0_90 = arith.constant 0 : index
    %c0_91 = arith.constant 0 : index
    %172 = vector.load %arg11[%c0_90, %c0_91] : memref<128x384xbf16, #tpu.memory_space<vmem>>, vector<128x384xbf16>
    tpu.vector_store %arg11[%c0_90, %c0_91], %171 {strides = array<i32>} : memref<128x384xbf16, #tpu.memory_space<vmem>>, vector<128x384xbf16>,
    %c0_92 = arith.constant 0 : index
    %c0_93 = arith.constant 0 : index
    %173 = vector.load %arg11[%c0_92, %c0_93] : memref<128x384xbf16, #tpu.memory_space<vmem>>, vector<128x32xbf16>
    %c0_94 = arith.constant 0 : index
    %c128_95 = arith.constant 128 : index
    %174 = vector.load %arg11[%c0_94, %c128_95] : memref<128x384xbf16, #tpu.memory_space<vmem>>, vector<128x32xbf16>
    %c0_96 = arith.constant 0 : index
    %c256_97 = arith.constant 256 : index
    %175 = vector.load %arg11[%c0_96, %c256_97] : memref<128x384xbf16, #tpu.memory_space<vmem>>, vector<128x32xbf16>
    %cst_98 = arith.constant dense<0.000000e+00> : vector<128x128xf32>
    %176 = tpu.matmul %173, %174, %cst_98 {dimension_numbers = #tpu.dot_dimension_numbers<[1], [1], [0], [0], [0, 0, 1, 0], [], []>} : vector<128x32xbf16>, vector<128x32xbf16>, vector<128x128xf32> -> vector<128x128xf32>
    %cst_99 = arith.constant dense<0xFF800000> : vector<128xf32>
    %177 = vector.multi_reduction <maximumf>, %176, %cst_99 [1] : vector<128x128xf32> to vector<128xf32>
    %178 = vector.shape_cast %177 : vector<128xf32> to vector<128x1xf32>
    %179 = vector.broadcast %178 : vector<128x1xf32> to vector<128x128xf32>
    %180 = arith.subf %176, %179 : vector<128x128xf32>
    %181 = math.exp %180 : vector<128x128xf32>
    %cst_100 = arith.constant dense<0.000000e+00> : vector<128xf32>
    %182 = vector.multi_reduction <add>, %181, %cst_100 [1] : vector<128x128xf32> to vector<128xf32>
    %183 = vector.shape_cast %182 : vector<128xf32> to vector<128x1xf32>
    %184 = tpu.reciprocal %183 {approx = true} : vector<128x1xf32> -> vector<128x1xf32>
    %185 = vector.broadcast %184 : vector<128x1xf32> to vector<128x128xf32>
    %186 = arith.mulf %181, %185 : vector<128x128xf32>
    %187 = arith.truncf %186 : vector<128x128xf32> to vector<128x128xbf16>
    %cst_101 = arith.constant dense<0.000000e+00> : vector<128x32xf32>
    %188 = tpu.matmul %187, %175, %cst_101 {dimension_numbers = #tpu.dot_dimension_numbers<[1], [0], [0], [1], [0, 0, 1, 1], [], []>} : vector<128x128xbf16>, vector<128x32xbf16>, vector<128x32xf32> -> vector<128x32xf32>
    %189 = arith.truncf %188 : vector<128x32xf32> to vector<128x32xbf16>
    %c0_102 = arith.constant 0 : index
    %c0_103 = arith.constant 0 : index
    %190 = vector.load %arg12[%c0_102, %c0_103] : memref<128x128xbf16, #tpu.memory_space<vmem>>, vector<128x32xbf16>
    tpu.vector_store %arg12[%c0_102, %c0_103], %189 {strides = array<i32>} : memref<128x128xbf16, #tpu.memory_space<vmem>>, vector<128x32xbf16>,
    %c0_104 = arith.constant 0 : index
    %c32_105 = arith.constant 32 : index
    %191 = vector.load %arg11[%c0_104, %c32_105] : memref<128x384xbf16, #tpu.memory_space<vmem>>, vector<128x32xbf16>
    %c0_106 = arith.constant 0 : index
    %c160_107 = arith.constant 160 : index
    %192 = vector.load %arg11[%c0_106, %c160_107] : memref<128x384xbf16, #tpu.memory_space<vmem>>, vector<128x32xbf16>
    %c0_108 = arith.constant 0 : index
    %c288_109 = arith.constant 288 : index
    %193 = vector.load %arg11[%c0_108, %c288_109] : memref<128x384xbf16, #tpu.memory_space<vmem>>, vector<128x32xbf16>
    %cst_110 = arith.constant dense<0.000000e+00> : vector<128x128xf32>
    %194 = tpu.matmul %191, %192, %cst_110 {dimension_numbers = #tpu.dot_dimension_numbers<[1], [1], [0], [0], [0, 0, 1, 0], [], []>} : vector<128x32xbf16>, vector<128x32xbf16>, vector<128x128xf32> -> vector<128x128xf32>
    %cst_111 = arith.constant dense<0xFF800000> : vector<128xf32>
    %195 = vector.multi_reduction <maximumf>, %194, %cst_111 [1] : vector<128x128xf32> to vector<128xf32>
    %196 = vector.shape_cast %195 : vector<128xf32> to vector<128x1xf32>
    %197 = vector.broadcast %196 : vector<128x1xf32> to vector<128x128xf32>
    %198 = arith.subf %194, %197 : vector<128x128xf32>
    %199 = math.exp %198 : vector<128x128xf32>
    %cst_112 = arith.constant dense<0.000000e+00> : vector<128xf32>
    %200 = vector.multi_reduction <add>, %199, %cst_112 [1] : vector<128x128xf32> to vector<128xf32>
    %201 = vector.shape_cast %200 : vector<128xf32> to vector<128x1xf32>
    %202 = tpu.reciprocal %201 {approx = true} : vector<128x1xf32> -> vector<128x1xf32>
    %203 = vector.broadcast %202 : vector<128x1xf32> to vector<128x128xf32>
    %204 = arith.mulf %199, %203 : vector<128x128xf32>
    %205 = arith.truncf %204 : vector<128x128xf32> to vector<128x128xbf16>
    %cst_113 = arith.constant dense<0.000000e+00> : vector<128x32xf32>
    %206 = tpu.matmul %205, %193, %cst_113 {dimension_numbers = #tpu.dot_dimension_numbers<[1], [0], [0], [1], [0, 0, 1, 1], [], []>} : vector<128x128xbf16>, vector<128x32xbf16>, vector<128x32xf32> -> vector<128x32xf32>
    %207 = arith.truncf %206 : vector<128x32xf32> to vector<128x32xbf16>
    %c0_114 = arith.constant 0 : index
    %c32_115 = arith.constant 32 : index
    %208 = vector.load %arg12[%c0_114, %c32_115] : memref<128x128xbf16, #tpu.memory_space<vmem>>, vector<128x32xbf16>
    tpu.vector_store %arg12[%c0_114, %c32_115], %207 {strides = array<i32>} : memref<128x128xbf16, #tpu.memory_space<vmem>>, vector<128x32xbf16>,
    %c0_116 = arith.constant 0 : index
    %c64_117 = arith.constant 64 : index
    %209 = vector.load %arg11[%c0_116, %c64_117] : memref<128x384xbf16, #tpu.memory_space<vmem>>, vector<128x32xbf16>
    %c0_118 = arith.constant 0 : index
    %c192_119 = arith.constant 192 : index
    %210 = vector.load %arg11[%c0_118, %c192_119] : memref<128x384xbf16, #tpu.memory_space<vmem>>, vector<128x32xbf16>
    %c0_120 = arith.constant 0 : index
    %c320_121 = arith.constant 320 : index
    %211 = vector.load %arg11[%c0_120, %c320_121] : memref<128x384xbf16, #tpu.memory_space<vmem>>, vector<128x32xbf16>
    %cst_122 = arith.constant dense<0.000000e+00> : vector<128x128xf32>
    %212 = tpu.matmul %209, %210, %cst_122 {dimension_numbers = #tpu.dot_dimension_numbers<[1], [1], [0], [0], [0, 0, 1, 0], [], []>} : vector<128x32xbf16>, vector<128x32xbf16>, vector<128x128xf32> -> vector<128x128xf32>
    %cst_123 = arith.constant dense<0xFF800000> : vector<128xf32>
    %213 = vector.multi_reduction <maximumf>, %212, %cst_123 [1] : vector<128x128xf32> to vector<128xf32>
    %214 = vector.shape_cast %213 : vector<128xf32> to vector<128x1xf32>
    %215 = vector.broadcast %214 : vector<128x1xf32> to vector<128x128xf32>
    %216 = arith.subf %212, %215 : vector<128x128xf32>
    %217 = math.exp %216 : vector<128x128xf32>
    %cst_124 = arith.constant dense<0.000000e+00> : vector<128xf32>
    %218 = vector.multi_reduction <add>, %217, %cst_124 [1] : vector<128x128xf32> to vector<128xf32>
    %219 = vector.shape_cast %218 : vector<128xf32> to vector<128x1xf32>
    %220 = tpu.reciprocal %219 {approx = true} : vector<128x1xf32> -> vector<128x1xf32>
    %221 = vector.broadcast %220 : vector<128x1xf32> to vector<128x128xf32>
    %222 = arith.mulf %217, %221 : vector<128x128xf32>
    %223 = arith.truncf %222 : vector<128x128xf32> to vector<128x128xbf16>
    %cst_125 = arith.constant dense<0.000000e+00> : vector<128x32xf32>
    %224 = tpu.matmul %223, %211, %cst_125 {dimension_numbers = #tpu.dot_dimension_numbers<[1], [0], [0], [1], [0, 0, 1, 1], [], []>} : vector<128x128xbf16>, vector<128x32xbf16>, vector<128x32xf32> -> vector<128x32xf32>
    %225 = arith.truncf %224 : vector<128x32xf32> to vector<128x32xbf16>
    %c0_126 = arith.constant 0 : index
    %c64_127 = arith.constant 64 : index
    %226 = vector.load %arg12[%c0_126, %c64_127] : memref<128x128xbf16, #tpu.memory_space<vmem>>, vector<128x32xbf16>
    tpu.vector_store %arg12[%c0_126, %c64_127], %225 {strides = array<i32>} : memref<128x128xbf16, #tpu.memory_space<vmem>>, vector<128x32xbf16>,
    %c0_128 = arith.constant 0 : index
    %c96_129 = arith.constant 96 : index
    %227 = vector.load %arg11[%c0_128, %c96_129] : memref<128x384xbf16, #tpu.memory_space<vmem>>, vector<128x32xbf16>
    %c0_130 = arith.constant 0 : index
    %c224_131 = arith.constant 224 : index
    %228 = vector.load %arg11[%c0_130, %c224_131] : memref<128x384xbf16, #tpu.memory_space<vmem>>, vector<128x32xbf16>
    %c0_132 = arith.constant 0 : index
    %c352_133 = arith.constant 352 : index
    %229 = vector.load %arg11[%c0_132, %c352_133] : memref<128x384xbf16, #tpu.memory_space<vmem>>, vector<128x32xbf16>
    %cst_134 = arith.constant dense<0.000000e+00> : vector<128x128xf32>
    %230 = tpu.matmul %227, %228, %cst_134 {dimension_numbers = #tpu.dot_dimension_numbers<[1], [1], [0], [0], [0, 0, 1, 0], [], []>} : vector<128x32xbf16>, vector<128x32xbf16>, vector<128x128xf32> -> vector<128x128xf32>
    %cst_135 = arith.constant dense<0xFF800000> : vector<128xf32>
    %231 = vector.multi_reduction <maximumf>, %230, %cst_135 [1] : vector<128x128xf32> to vector<128xf32>
    %232 = vector.shape_cast %231 : vector<128xf32> to vector<128x1xf32>
    %233 = vector.broadcast %232 : vector<128x1xf32> to vector<128x128xf32>
    %234 = arith.subf %230, %233 : vector<128x128xf32>
    %235 = math.exp %234 : vector<128x128xf32>
    %cst_136 = arith.constant dense<0.000000e+00> : vector<128xf32>
    %236 = vector.multi_reduction <add>, %235, %cst_136 [1] : vector<128x128xf32> to vector<128xf32>
    %237 = vector.shape_cast %236 : vector<128xf32> to vector<128x1xf32>
    %238 = tpu.reciprocal %237 {approx = true} : vector<128x1xf32> -> vector<128x1xf32>
    %239 = vector.broadcast %238 : vector<128x1xf32> to vector<128x128xf32>
    %240 = arith.mulf %235, %239 : vector<128x128xf32>
    %241 = arith.truncf %240 : vector<128x128xf32> to vector<128x128xbf16>
    %cst_137 = arith.constant dense<0.000000e+00> : vector<128x32xf32>
    %242 = tpu.matmul %241, %229, %cst_137 {dimension_numbers = #tpu.dot_dimension_numbers<[1], [0], [0], [1], [0, 0, 1, 1], [], []>} : vector<128x128xbf16>, vector<128x32xbf16>, vector<128x32xf32> -> vector<128x32xf32>
    %243 = arith.truncf %242 : vector<128x32xf32> to vector<128x32xbf16>
    %c0_138 = arith.constant 0 : index
    %c96_139 = arith.constant 96 : index
    %244 = vector.load %arg12[%c0_138, %c96_139] : memref<128x128xbf16, #tpu.memory_space<vmem>>, vector<128x32xbf16>
    tpu.vector_store %arg12[%c0_138, %c96_139], %243 {strides = array<i32>} : memref<128x128xbf16, #tpu.memory_space<vmem>>, vector<128x32xbf16>,
    %c0_140 = arith.constant 0 : index
    %c0_141 = arith.constant 0 : index
    %245 = vector.load %arg8[%c0_140, %c0_141] : memref<128x128xbf16, #tpu.memory_space<vmem>>, vector<128x128xbf16>
    %c0_142 = arith.constant 0 : index
    %c0_143 = arith.constant 0 : index
    %246 = vector.load %arg12[%c0_142, %c0_143] : memref<128x128xbf16, #tpu.memory_space<vmem>>, vector<128x128xbf16>
    %cst_144 = arith.constant dense<0.000000e+00> : vector<128x128xf32>
    %247 = tpu.matmul %245, %246, %cst_144 {dimension_numbers = #tpu.dot_dimension_numbers<[1], [1], [0], [0], [0, 0, 1, 0], [], []>} : vector<128x128xbf16>, vector<128x128xbf16>, vector<128x128xf32> -> vector<128x128xf32>
    %c0_145 = arith.constant 0 : index
    %c0_146 = arith.constant 0 : index
    %248 = vector.load %arg9[%c0_145, %c0_146] : memref<128x1xf32, #tpu.memory_space<vmem>>, vector<128x1xf32>
    %249 = vector.broadcast %248 : vector<128x1xf32> to vector<128x128xf32>
    %250 = arith.addf %247, %249 : vector<128x128xf32>
    %c1_147 = arith.constant 1 : index
    %c0_148 = arith.constant 0 : index
    %c0_149 = arith.constant 0 : index
    %251 = vector.load %arg10[%c1_147, %c0_148, %c0_149] : memref<2x128x128xf32, #tpu.memory_space<vmem>>, vector<1x128x128xf32>
    %252 = vector.shape_cast %251 : vector<1x128x128xf32> to vector<128x128xf32>
    %253 = vector.shape_cast %250 : vector<128x128xf32> to vector<1x128x128xf32>
    tpu.vector_store %arg10[%c1_147, %c0_148, %c0_149], %253 {strides = array<i32>} : memref<2x128x128xf32, #tpu.memory_space<vmem>>, vector<1x128x128xf32>,
    return
  }
  func.func @transform_0(%arg0: i32) -> (i32, i32, i32) {
    %c0_i32 = arith.constant 0 : i32
    %c0_i32_0 = arith.constant 0 : i32
    %c0_i32_1 = arith.constant 0 : i32
    return %arg0, %c0_i32, %c0_i32_0 : i32, i32, i32
  }
  func.func @transform_1(%arg0: i32) -> (i32, i32) {
    %c0_i32 = arith.constant 0 : i32
    %c0_i32_0 = arith.constant 0 : i32
    %c0_i32_1 = arith.constant 0 : i32
    return %c0_i32, %c0_i32_0 : i32, i32
  }
  func.func @transform_2(%arg0: i32) -> (i32, i32) {
    %c0_i32 = arith.constant 0 : i32
    %c0_i32_0 = arith.constant 0 : i32
    %c0_i32_1 = arith.constant 0 : i32
    return %c0_i32, %c0_i32_0 : i32, i32
  }
  func.func @transform_3(%arg0: i32) -> (i32, i32) {
    %c0_i32 = arith.constant 0 : i32
    %c0_i32_0 = arith.constant 0 : i32
    %c0_i32_1 = arith.constant 0 : i32
    return %c0_i32, %c0_i32_0 : i32, i32
  }
  func.func @transform_4(%arg0: i32) -> (i32, i32) {
    %c0_i32 = arith.constant 0 : i32
    %c0_i32_0 = arith.constant 0 : i32
    %c0_i32_1 = arith.constant 0 : i32
    return %c0_i32, %c0_i32_0 : i32, i32
  }
  func.func @transform_5(%arg0: i32) -> (i32, i32) {
    %c0_i32 = arith.constant 0 : i32
    %c0_i32_0 = arith.constant 0 : i32
    %c0_i32_1 = arith.constant 0 : i32
    return %c0_i32, %c0_i32_0 : i32, i32
  }
  func.func @transform_6(%arg0: i32) -> (i32, i32) {
    %c0_i32 = arith.constant 0 : i32
    %c0_i32_0 = arith.constant 0 : i32
    %c0_i32_1 = arith.constant 0 : i32
    return %c0_i32, %c0_i32_0 : i32, i32
  }
  func.func @transform_7(%arg0: i32) -> (i32, i32) {
    %c0_i32 = arith.constant 0 : i32
    %c0_i32_0 = arith.constant 0 : i32
    %c0_i32_1 = arith.constant 0 : i32
    return %c0_i32, %c0_i32_0 : i32, i32
  }
  func.func @transform_8(%arg0: i32) -> (i32, i32) {
    %c0_i32 = arith.constant 0 : i32
    %c0_i32_0 = arith.constant 0 : i32
    %c0_i32_1 = arith.constant 0 : i32
    return %c0_i32, %c0_i32_0 : i32, i32
  }
  func.func @transform_9(%arg0: i32) -> (i32, i32, i32) {
    %c0_i32 = arith.constant 0 : i32
    %c0_i32_0 = arith.constant 0 : i32
    %c0_i32_1 = arith.constant 0 : i32
    return %arg0, %c0_i32, %c0_i32_0 : i32, i32, i32
  }
}

</mosaic_0001>

<bundles_post_ra>
// kernel: tpu_custom_call.1
= control target key start
LH: loop header
LB: loop body
LE: loop exit
PB: predicated region body
PF: predicated region fallthrough
CT: control target
= control target key end

     0   :  { %14 = vsyncpa [#allocation5], 0  ;;  %s11343_s0 = inlined_call_operand.vmem [shape: f32[2,128,128], index: 0, kind: input, shape index: {}]   ;;  %s11344_s1 = inlined_call_operand.vmem [shape: f32[128,8], index: 1, kind: input, shape index: {}]   ;;  %s11345_s2 = inlined_call_operand.vmem [shape: f32[8,128], index: 2, kind: input, shape index: {}]   ;;  %s11346_s3 = inlined_call_operand.vmem [shape: f32[1,128], index: 3, kind: input, shape index: {}]   ;;  %s11347_s4 = inlined_call_operand.vmem [shape: f32[1,128], index: 4, kind: input, shape index: {}]   ;;  %s11348_s5 = inlined_call_operand.hbm [shape: bf16[128,384], index: 5, kind: input, shape index: {}]   ;;  %s11349_s6 = inlined_call_operand.vmem [shape: f32[1,384], index: 6, kind: input, shape index: {}]   ;;  %s11350_s7 = inlined_call_operand.hbm [shape: bf16[128,128], index: 7, kind: input, shape index: {}]   ;;  %s11351_s8 = inlined_call_operand.vmem [shape: f32[128,1], index: 8, kind: input, shape index: {}]   ;;  %s11352_s9 = inlined_call_operand.hbm [shape: f32[2,128,128], index: 9, kind: output, shape index: {}]  }
   0x1   :  { %15 = vsyncpa [#allocation8], 0 }
   0x2   :  { %16 = vsyncpa [#allocation6], 0  ;;  %s8403_s30 = smov [#allocation4]   ;;  %s8331_s13 = scalar_lea.hbm %s11348_s5, 3072 }
   0x3   :  { %s32_s10 = sshll.u32 %s8403_s30, 4  ;;  %p8332_p0 = scmp.ne.s32.totalorder %s11348_s5, %s8331_s13  ;;  %s33_s10 = int_to_ptr.vmem [resolvable:$true] %s32_s10 }
   0x4   :  { %p8335_p1 = scmp.lt.u32.totalorder %s8331_s13, %s11348_s5 }
   0x6   :  { %p8337_p2 = pnand %p8335_p1, %p8332_p0 }
   0x8   :  { %8340 = shalt.err (!%p8337_p2)
}
   0x9   :  { %s8341_s18 = scalar_lea.vmem %s33_s10, 3072  ;;  %p8346_p4 = scmp.lt.s32.totalorder %s33_s10, %s33_s10 }
   0xa   :  { %p8342_p3 = scmp.ne.s32.totalorder %s33_s10, %s8341_s18  ;;  %p8347_p5 = scmp.lt.s32.totalorder %s8341_s18, %s8341_s18 }
   0xc   :  { %p8348_p6 = por %p8347_p5, %p8346_p4 }
   0xe   :  { %p8349_p7 = pnand %p8348_p6, %p8342_p3 }
  0x10   :  { %8352 = shalt.err (!%p8349_p7)
}
  0x11   :  { %s8404_s19 = smov 192   ;;  %s8405_s20 = smov 12  }
  0x12   :  { %38 = dma.hbm_to_vmem [thread:$0]  %s11348_s5, 3072, %s33_s10, [#allocation5], %s8404_s19, %s8404_s19, %s8405_s20  }
  0x13   :  { %s8406_s23 = smov [#allocation7]   ;;  %s8353_s27 = scalar_lea.hbm %s11350_s7, 1024 }
  0x14   :  { %s46_s24 = sshll.u32 %s8406_s23, 4  ;;  %p8354_p8 = scmp.ne.s32.totalorder %s11350_s7, %s8353_s27  ;;  %s47_s24 = int_to_ptr.vmem [resolvable:$true] %s46_s24 }
  0x15   :  { %p8357_p9 = scmp.lt.u32.totalorder %s8353_s27, %s11350_s7 }
  0x17   :  { %p8359_p10 = pnand %p8357_p9, %p8354_p8 }
  0x19   :  { %8362 = shalt.err (!%p8359_p10)
}
  0x1a   :  { %s8363_s12 = scalar_lea.vmem %s47_s24, 1024  ;;  %p8368_p12 = scmp.lt.s32.totalorder %s47_s24, %s47_s24 }
  0x1b   :  { %p8364_p11 = scmp.ne.s32.totalorder %s47_s24, %s8363_s12  ;;  %p8369_p13 = scmp.lt.s32.totalorder %s8363_s12, %s8363_s12 }
  0x1d   :  { %p8370_p0 = por %p8369_p13, %p8368_p12 }
  0x1f   :  { %p8371_p1 = pnand %p8370_p0, %p8364_p11 }
  0x21   :  { %8374 = shalt.err (!%p8371_p1)
}
  0x22   :  { %s8407_s5 = smov 64   ;;  %s8408_s10 = smov 4  }
  0x23   :  { %52 = dma.hbm_to_vmem [thread:$0]  %s11350_s7, 1024, %s47_s24, [#allocation8], %s8407_s5, %s8407_s5, %s8408_s10  }
  0x24   :  { %8397 = dma.done.wait [#allocation5], 3072  }
  0x25   :  { %8398 = vsyncadd [#allocation5], 4294964224 }
  0x26   :  { %8399 = dma.done.wait [#allocation8], 1024  }
  0x27   :  { %8400 = vsyncadd [#allocation8], 4294966272  ;;  %v64_v0 = vld [vmem:[%s11343_s0] sm:$0xff]  ;;  %v65_v1 = vld [vmem:[%s11343_s0 + $0x8] sm:$0xff]  ;;  %v11358_v16 = vmov 0.0|0.0   ;;  %vm8410_vm0 = vmmov 0  }
  0x28   :  { %80 = vxpose.xlu0.b32.start [1/16] %v64_v0, 128  ;;  %v66_v2 = vld [vmem:[%s11343_s0 + $0x10] sm:$0xff]  ;;  %v67_v3 = vld [vmem:[%s11343_s0 + $0x18] sm:$0xff]  ;;  %v68_v4 = vld [vmem:[%s11343_s0 + $0x20] sm:$0xff]  ;;  %7602 = vmatprep.subr.bf16.mxu0 %v11358_v16  ;;  %v11354_v40 = vmov 0.0   ;;  %vm170_vm1 = vcmask 1040384   ;;  %vm276_vm2 = vcmask 64512  }
  0x29   :  { %v69_v5 = vld [vmem:[%s11343_s0 + $0x28] sm:$0xff]  ;;  %v70_v6 = vld [vmem:[%s11343_s0 + $0x30] sm:$0xff]  ;;  %v71_v7 = vld [vmem:[%s11343_s0 + $0x38] sm:$0xff]  ;;  %6914 = vmatprep.mubr.msk.f32.mxu0 %vm8410_vm0, %v11354_v40  ;;  %6917 = vmatprep.subr.mxu1 %v11354_v40  ;;  %vm881_vm3 = vcmask 261120   ;;  %s8414_s22 = smov 96   ;;  %s8415_s23 = smov 32  }
  0x2a   :  { %v72_v8 = vld [vmem:[%s11343_s0 + $0x40] sm:$0xff]  ;;  %v73_v9 = vld [vmem:[%s11343_s0 + $0x48] sm:$0xff]  ;;  %v74_v10 = vld [vmem:[%s11343_s0 + $0x50] sm:$0xff]  ;;  %6919 = vmatprep.mubr.msk.f32.mxu1 %vm8410_vm0, %v11354_v40  ;;  %vm1830_vm4 = vcmask 523520   ;;  %vm2377_vm5 = vcmask 785920   ;;  %vm2924_vm6 = vcmask 1048320  }
  0x2b   :  { %v75_v11 = vld [vmem:[%s11343_s0 + $0x58] sm:$0xff]  ;;  %v172_v12 = vld [vmem:[%s11344_s1] sm:$0xff]  ;;  %v173_v13 = vld [vmem:[%s11344_s1 + $0x8] sm:$0xff] }
  0x2c   :  { %81 = vxpose.xlu0.b32.cont [2/16] %v65_v1, 128  ;;  %v76_v14 = vld [vmem:[%s11343_s0 + $0x60] sm:$0xff]  ;;  %v7603_v15 = vpack.c.bf16 %v173_v13, %v172_v12  ;;  %v174_v17 = vld [vmem:[%s11344_s1 + $0x10] sm:$0xff]  ;;  %v175_v18 = vld [vmem:[%s11344_s1 + $0x18] sm:$0xff] }
  0x2d   :  { %v77_v19 = vld [vmem:[%s11343_s0 + $0x68] sm:$0xff]  ;;  %v7606_v20 = vpack.c.bf16 %v175_v18, %v174_v17  ;;  %v176_v21 = vld [vmem:[%s11344_s1 + $0x20] sm:$0xff]  ;;  %v78_v23 = vld [vmem:[%s11343_s0 + $0x70] sm:$0xff] }
  0x2e   :  { %7604 = vmatpush3.bf16.msra.mxu0 %v7603_v15  ;;  %v177_v22 = vld [vmem:[%s11344_s1 + $0x28] sm:$0xff]  ;;  %v178_v25 = vld [vmem:[%s11344_s1 + $0x30] sm:$0xff]  ;;  %v179_v26 = vld [vmem:[%s11344_s1 + $0x38] sm:$0xff] }
  0x2f   :  { %7605 = vmatprep.subr.bf16.mxu0 %v11358_v16  ;;  %v7609_v24 = vpack.c.bf16 %v177_v22, %v176_v21  ;;  %v79_v27 = vld [vmem:[%s11343_s0 + $0x78] sm:$0xff]  ;;  %v7612_v28 = vpack.c.bf16 %v179_v26, %v178_v25  ;;  %v180_v29 = vld [vmem:[%s11344_s1 + $0x40] sm:$0xff]  ;;  %v181_v30 = vld [vmem:[%s11344_s1 + $0x48] sm:$0xff] }
  0x30   :  { %82 = vxpose.xlu0.b32.cont [3/16] %v66_v2, 128  ;;  %v7615_v31 = vpack.c.bf16 %v181_v30, %v180_v29  ;;  %v182_v32 = vld [vmem:[%s11344_s1 + $0x50] sm:$0xff]  ;;  %v183_v33 = vld [vmem:[%s11344_s1 + $0x58] sm:$0xff]  ;;  %v184_v35 = vld [vmem:[%s11344_s1 + $0x60] sm:$0xff] }
  0x31   :  { %v7618_v34 = vpack.c.bf16 %v183_v33, %v182_v32  ;;  %v185_v36 = vld [vmem:[%s11344_s1 + $0x68] sm:$0xff]  ;;  %v186_v38 = vld [vmem:[%s11344_s1 + $0x70] sm:$0xff]  ;;  %v187_v39 = vld [vmem:[%s11344_s1 + $0x78] sm:$0xff] }
  0x32   :  { %7607 = vmatpush3.bf16.msra.mxu0 %v7606_v20  ;;  %v7621_v37 = vpack.c.bf16 %v185_v36, %v184_v35  ;;  %v7624_v41 = vpack.c.bf16 %v187_v39, %v186_v38 }
  0x33   :  { %7608 = vmatprep.subr.bf16.mxu0 %v11358_v16 }
  0x34   :  { %83 = vxpose.xlu0.b32.cont [4/16] %v67_v3, 128 }
  0x36   :  { %7610 = vmatpush3.bf16.msra.mxu0 %v7609_v24 }
  0x37   :  { %7611 = vmatprep.subr.bf16.mxu0 %v11358_v16 }
  0x38   :  { %84 = vxpose.xlu0.b32.cont [5/16] %v68_v4, 128 }
  0x3a   :  { %7613 = vmatpush3.bf16.msra.mxu0 %v7612_v28 }
  0x3b   :  { %7614 = vmatprep.subr.bf16.mxu0 %v11358_v16 }
  0x3c   :  { %85 = vxpose.xlu0.b32.cont [6/16] %v69_v5, 128 }
  0x3e   :  { %7616 = vmatpush3.bf16.msra.mxu0 %v7615_v31 }
  0x3f   :  { %7617 = vmatprep.subr.bf16.mxu0 %v11358_v16 }
  0x40   :  { %86 = vxpose.xlu0.b32.cont [7/16] %v70_v6, 128 }
  0x42   :  { %7619 = vmatpush3.bf16.msra.mxu0 %v7618_v34 }
  0x43   :  { %7620 = vmatprep.subr.bf16.mxu0 %v11358_v16 }
  0x44   :  { %87 = vxpose.xlu0.b32.cont [8/16] %v71_v7, 128 }
  0x46   :  { %7622 = vmatpush3.bf16.msra.mxu0 %v7621_v37 }
  0x47   :  { %7623 = vmatprep.subr.bf16.mxu0 %v11358_v16 }
  0x48   :  { %88 = vxpose.xlu0.b32.cont [9/16] %v72_v8, 128 }
  0x4a   :  { %7625 = vmatpush3.bf16.msra.mxu0 %v7624_v41 }
  0x4c   :  { %89 = vxpose.xlu0.b32.cont [10/16] %v73_v9, 128 }
  0x50   :  { %90 = vxpose.xlu0.b32.cont [11/16] %v74_v10, 128 }
  0x54   :  { %91 = vxpose.xlu0.b32.cont [12/16] %v75_v11, 128 }
  0x58   :  { %92 = vxpose.xlu0.b32.cont [13/16] %v76_v14, 128 }
  0x5c   :  { %93 = vxpose.xlu0.b32.cont [14/16] %v77_v19, 128 }
  0x60   :  { %94 = vxpose.xlu0.b32.cont [15/16] %v78_v23, 128 }
  0x64   :  { %95 = vxpose.xlu0.b32.end [16/16] %v79_v27, 128 }
  0xa8   :  { %v8604_v42 = vpop.trf.xlu0 }
  0xa9   :  { %v133_v52 = vmul.f32 %v8604_v42, %v8604_v42 }
  0xac   :  { %v8606_v43 = vpop.trf.xlu0 }
  0xad   :  { %v134_v50 = vmul.f32 %v8606_v43, %v8606_v43  ;;  %v112_v53 = vadd.f32 %v8606_v43, %v8604_v42 }
  0xaf   :  { %v149_v55 = vadd.f32 %v134_v50, %v133_v52 }
  0xb0   :  { %v8608_v44 = vpop.trf.xlu0 }
  0xb1   :  { %v135_v54 = vmul.f32 %v8608_v44, %v8608_v44  ;;  %v113_v56 = vadd.f32 %v112_v53, %v8608_v44 }
  0xb3   :  { %v150_v59 = vadd.f32 %v149_v55, %v135_v54 }
  0xb4   :  { %v8610_v45 = vpop.trf.xlu0 }
  0xb5   :  { %v136_v57 = vmul.f32 %v8610_v45, %v8610_v45  ;;  %v114_v60 = vadd.f32 %v113_v56, %v8610_v45 }
  0xb7   :  { %v151_v62 = vadd.f32 %v150_v59, %v136_v57 }
  0xb8   :  { %v8612_v46 = vpop.trf.xlu0 }
  0xb9   :  { %v137_v61 = vmul.f32 %v8612_v46, %v8612_v46  ;;  %v115_v63 = vadd.f32 %v114_v60, %v8612_v46 }
  0xbb   :  { %v152_v2 = vadd.f32 %v151_v62, %v137_v61 }
  0xbc   :  { %v8614_v47 = vpop.trf.xlu0 }
  0xbd   :  { %v138_v0 = vmul.f32 %v8614_v47, %v8614_v47  ;;  %v116_v3 = vadd.f32 %v115_v63, %v8614_v47 }
  0xbf   :  { %v153_v5 = vadd.f32 %v152_v2, %v138_v0  ;;  %v275_v2 = vld [vmem:[%s11345_s2] sm:$0xff] }
  0xc0   :  { %v8616_v48 = vpop.trf.xlu0  ;;  %6918 = vmatpush3.msra.mxu1 %v275_v2 }
  0xc1   :  { %v139_v4 = vmul.f32 %v8616_v48, %v8616_v48  ;;  %v117_v6 = vadd.f32 %v116_v3, %v8616_v48  ;;  %v7734_v3 = vld [vmem:[#allocation4 + $0x4] ss:$12 sps:$4 sm:$0xff]  }
  0xc2   :  { %599 = vmatprep.subr.bf16.mxu1 %v7734_v3 }
  0xc3   :  { %v154_v9 = vadd.f32 %v153_v5, %v139_v4  ;;  %v7735_v4 = vld [vmem:[#allocation4 + $0x8] ss:$12 sps:$4 sm:$0xff]   ;;  %v7739_v5 = vld [vmem:[#allocation4 + $0x20] ss:$12 sps:$4 sm:$0xff]  }
  0xc4   :  { %v8618_v49 = vpop.trf.xlu0  ;;  %6922 = vmatprep.subr.bf16.mxu0 %v7735_v4 }
  0xc5   :  { %v140_v7 = vmul.f32 %v8618_v49, %v8618_v49  ;;  %v118_v10 = vadd.f32 %v117_v6, %v8618_v49  ;;  %v7743_v6 = vld [vmem:[#allocation4 + $0x38] ss:$12 sps:$4 sm:$0xff]  }
  0xc7   :  { %v155_v12 = vadd.f32 %v154_v9, %v140_v7  ;;  %v7747_v7 = vld [vmem:[#allocation4 + $0x50] ss:$12 sps:$4 sm:$0xff]  }
  0xc8   :  { %v8622_v51 = vpop.trf.xlu0 }
  0xc9   :  { %v141_v11 = vmul.f32 %v8622_v51, %v8622_v51  ;;  %v119_v13 = vadd.f32 %v118_v10, %v8622_v51 }
  0xcb   :  { %v156_v17 = vadd.f32 %v155_v12, %v141_v11 }
  0xcc   :  { %v8633_v58 = vpop.trf.xlu0 }
  0xcd   :  { %v142_v14 = vmul.f32 %v8633_v58, %v8633_v58  ;;  %v120_v18 = vadd.f32 %v119_v13, %v8633_v58 }
  0xcf   :  { %v157_v20 = vadd.f32 %v156_v17, %v142_v14 }
  0xd0   :  { %v8641_v1 = vpop.trf.xlu0 }
  0xd1   :  { %v143_v19 = vmul.f32 %v8641_v1, %v8641_v1  ;;  %v121_v21 = vadd.f32 %v120_v18, %v8641_v1 }
  0xd3   :  { %v158_v24 = vadd.f32 %v157_v20, %v143_v19 }
  0xd4   :  { %v8649_v8 = vpop.trf.xlu0 }
  0xd5   :  { %v144_v22 = vmul.f32 %v8649_v8, %v8649_v8  ;;  %v122_v25 = vadd.f32 %v121_v21, %v8649_v8 }
  0xd7   :  { %v159_v27 = vadd.f32 %v158_v24, %v144_v22  ;;  %v7732_v24 = vld [vmem:[#allocation4] ss:$12 sps:$4 sm:$0xff]  }
  0xd8   :  { %v8657_v15 = vpop.trf.xlu0 }
  0xd9   :  { %v145_v26 = vmul.f32 %v8657_v15, %v8657_v15  ;;  %v123_v28 = vadd.f32 %v122_v25, %v8657_v15  ;;  %v7738_v25 = vld [vmem:[#allocation4 + $0x1c] ss:$12 sps:$4 sm:$0xff]  }
  0xdb   :  { %v160_v31 = vadd.f32 %v159_v27, %v145_v26  ;;  %v7736_v27 = vld [vmem:[#allocation4 + $0x18] ss:$12 sps:$4 sm:$0xff]  }
  0xdc   :  { %v8665_v23 = vpop.trf.xlu0 }
  0xdd   :  { %v146_v29 = vmul.f32 %v8665_v23, %v8665_v23  ;;  %v124_v32 = vadd.f32 %v123_v28, %v8665_v23  ;;  %v7742_v28 = vld [vmem:[#allocation4 + $0x34] ss:$12 sps:$4 sm:$0xff]  }
  0xdf   :  { %v161_v34 = vadd.f32 %v160_v31, %v146_v29  ;;  %v7740_v29 = vld [vmem:[#allocation4 + $0x30] ss:$12 sps:$4 sm:$0xff]   ;;  %v7746_v31 = vld [vmem:[#allocation4 + $0x4c] ss:$12 sps:$4 sm:$0xff]  }
  0xe0   :  { %v8673_v30 = vpop.trf.xlu0 }
  0xe1   :  { %v147_v33 = vmul.f32 %v8673_v30, %v8673_v30  ;;  %v125_v35 = vadd.f32 %v124_v32, %v8673_v30  ;;  %v7744_v32 = vld [vmem:[#allocation4 + $0x48] ss:$12 sps:$4 sm:$0xff]  }
  0xe3   :  { %v162_v37 = vadd.f32 %v161_v34, %v147_v33  ;;  %v7750_v33 = vld [vmem:[#allocation4 + $0x64] ss:$12 sps:$4 sm:$0xff]   ;;  %v7748_v34 = vld [vmem:[#allocation4 + $0x60] ss:$12 sps:$4 sm:$0xff]  }
  0xe4   :  { %v8679_v36 = vpop.trf.xlu0 }
  0xe5   :  { %v126_v38 = vadd.f32 %v125_v35, %v8679_v36  ;;  %v148_v39 = vmul.f32 %v8679_v36, %v8679_v36  ;;  %v7751_v35 = vld [vmem:[#allocation4 + $0x68] ss:$12 sps:$4 sm:$0xff]  }
  0xe7   :  { %v127_v41 = vrot.slane %v126_v38, 4  ;;  %v163_v50 = vadd.f32 %v162_v37, %v148_v39  ;;  %v7754_v37 = vld [vmem:[#allocation4 + $0x7c] ss:$12 sps:$4 sm:$0xff]   ;;  %v7755_v39 = vld [vmem:[#allocation4 + $0x80] ss:$12 sps:$4 sm:$0xff]  }
  0xe9   :  { %v128_v52 = vadd.f32 %v127_v41, %v126_v38  ;;  %v164_v53 = vrot.slane %v163_v50, 4  ;;  %v7752_v38 = vld [vmem:[#allocation4 + $0x78] ss:$12 sps:$4 sm:$0xff]   ;;  %v355_v41 = vlaneseq }
  0xeb   :  { %v129_v54 = vrot.slane %v128_v52, 2  ;;  %v165_v55 = vadd.f32 %v164_v53, %v163_v50  ;;  %v7758_v50 = vld [vmem:[#allocation4 + $0x94] ss:$12 sps:$4 sm:$0xff]   ;;  %v7759_v53 = vld [vmem:[#allocation4 + $0x98] ss:$12 sps:$4 sm:$0xff]  }
  0xed   :  { %v130_v56 = vadd.f32 %v129_v54, %v128_v52  ;;  %v166_v57 = vrot.slane %v165_v55, 2  ;;  %v7756_v52 = vld [vmem:[#allocation4 + $0x90] ss:$12 sps:$4 sm:$0xff]   ;;  %v8690_v54 = vshrl.u32 %v355_v41, 7 }
  0xef   :  { %v131_v59 = vrot.slane %v130_v56, 1  ;;  %v167_v60 = vadd.f32 %v166_v57, %v165_v55  ;;  %11405 = vst [vmem:[#allocation13_spill] sm:$0xff] %v8690_v54  ;;  %v462_v55 = vsub.s32 1, %v8690_v54  ;;  %v7760_v57 = vld [vmem:[#allocation4 + $0xa8] ss:$12 sps:$4 sm:$0xff]  }
  0xf1   :  { %v168_v61 = vrot.slane %v167_v60, 1  ;;  %v132_v62 = vadd.f32 %v131_v59, %v130_v56  ;;  %v3603_v56 = vld [vmem:[%s11349_s6] sm:$0x7]  ;;  %v7762_v59 = vld [vmem:[#allocation4 + $0xac] ss:$12 sps:$4 sm:$0xff]  }
  0xf3   :  { %v169_v63 = vadd.f32 %v168_v61, %v167_v60  ;;  %v7763_v60 = vld [vmem:[#allocation4 + $0xb0] ss:$12 sps:$4 sm:$0xff]   ;;  %v8698_v61 = vrot.slane %v3603_v56, %v462_v55 }
  0xf5   :  { %v171_v0 = vsel %vm170_vm1, %v132_v62, %v169_v63  ;;  %11406 = vst [vmem:[#allocation14_spill] sm:$0xff] %v8698_v61  ;;  %v11356_v62 = vmov 0   ;;  %v8413_v63 = vmov 1966171168  }
  0xf6   :  { %6915 = vmatmul.mubr.f32.vlgmr.msra.gmra.mrb[0].mxu0 %v171_v0  ;;  %7730 = vset.pattern.permute.xlu1 %v11356_v62  ;;  %v353_v0 = vunpack.c.l.s4 %v8413_v63 }
  0xf7   :  { %6923 = vmatpush3.bf16.msra.mxu0 %v7735_v4  ;;  %v62_v4 = vld [vmem:[%s11346_s3] sm:$0x1] }
  0xf8   :  { %6924 = vmatprep.subr.bf16.mxu0 %v7739_v5  ;;  %v354_v2 = vunpack.c.0.s8 %v353_v0 }
  0xfa   :  { %v8703_v3 = vsub.s32 %v354_v2, %v8690_v54 }
  0xfb   :  { %6925 = vmatpush3.bf16.msra.mxu0 %v7739_v5 }
  0xfc   :  { %6926 = vmatprep.subr.bf16.mxu0 %v7743_v6  ;;  %11407 = vst [vmem:[#allocation15_spill] sm:$0xff] %v8703_v3 }
  0xff   :  { %6927 = vmatpush3.bf16.msra.mxu0 %v7743_v6 }
 0x100   :  { %6928 = vmatprep.subr.bf16.mxu0 %v7747_v7 }
 0x103   :  { %6929 = vmatpush3.bf16.msra.mxu0 %v7747_v7 }
 0x104   :  { %6930 = vmatprep.subr.bf16.mxu0 %v7751_v35 }
 0x107   :  { %6931 = vmatpush3.bf16.msra.mxu0 %v7751_v35 }
 0x108   :  { %6932 = vmatprep.subr.bf16.mxu0 %v7755_v39 }
 0x10b   :  { %6933 = vmatpush3.bf16.msra.mxu0 %v7755_v39 }
 0x10c   :  { %6934 = vmatprep.subr.bf16.mxu0 %v7759_v53 }
 0x10f   :  { %6935 = vmatpush3.bf16.msra.mxu0 %v7759_v53 }
 0x110   :  { %6936 = vmatprep.subr.bf16.mxu0 %v7763_v60 }
 0x113   :  { %6937 = vmatpush3.bf16.msra.mxu0 %v7763_v60 }
 0x1c9   :  { %v254_v9 = vpop.f32.mrb[0].mxu0 }
 0x1ca   :  { %v258_v10 = vmul.f32 0.00048828125, %v254_v9  ;;  %v6916_v11 = vpop.f32.mrb[1].mxu0 }
 0x1cc   :  { %v259_v12 = vmul.f32 %v258_v10, %v258_v10 }
 0x1ce   :  { %v261_v13 = vrot.slane %v259_v12, 7 }
 0x1d0   :  { %v263_v14 = vsub.f32 %v258_v10, %v261_v13  ;;  %v63_v13 = vld [vmem:[%s11347_s4] sm:$0x1] }
 0x1d2   :  { %v264_v17 = vmax.f32 %v263_v14, 0.0 }
 0x1d4   :  { %v265_v18 = vadd.f32 1e-06, %v264_v17 }
 0x1d6   :  { %7812 = vrsqrt.f32 %v265_v18 }
 0x1e0   :  { %v7813_v19 = vpop.eup %7812 }
 0x1e1   :  { %v268_v20 = vrot.slane %v7813_v19, 1 }
 0x1e3   :  { %v270_v21 = vmul.f32 %v268_v20, %v258_v10  ;;  %v8710_v10 = vsub.s32 0, %v8690_v54 }
 0x1e5   :  { %v272_v22 = vrot.slane %v270_v21, 7  ;;  %11408 = vst [vmem:[#allocation16_spill] sm:$0xff] %v8710_v10 }
 0x1e7   :  { %v274_v26 = vsel %vm170_vm1, %v268_v20, %v272_v22 }
 0x1e8   :  { %6920 = vmatmul.mubr.msk.f32.vlgmr.msra.gmra.mrb[0].mxu1 %vm276_vm2, %v274_v26 }
 0x1e9   :  { %600 = vmatpush1.bf16.msra.mxu1 %v7732_v24  ;;  %631 = vmatprep.mubr.bf16.mxu1 %v11356_v62 }
 0x1ea   :  { %601 = vmatprep.subr.bf16.mxu1 %v7738_v25 }
 0x1ed   :  { %602 = vmatpush1.bf16.msra.mxu1 %v7736_v27 }
 0x1ee   :  { %603 = vmatprep.subr.bf16.mxu1 %v7742_v28 }
 0x1f1   :  { %604 = vmatpush1.bf16.msra.mxu1 %v7740_v29 }
 0x1f2   :  { %605 = vmatprep.subr.bf16.mxu1 %v7746_v31 }
 0x1f5   :  { %606 = vmatpush1.bf16.msra.mxu1 %v7744_v32 }
 0x1f6   :  { %607 = vmatprep.subr.bf16.mxu1 %v7750_v33 }
 0x1f9   :  { %608 = vmatpush1.bf16.msra.mxu1 %v7748_v34 }
 0x1fa   :  { %609 = vmatprep.subr.bf16.mxu1 %v7754_v37 }
 0x1fd   :  { %610 = vmatpush1.bf16.msra.mxu1 %v7752_v38 }
 0x1fe   :  { %611 = vmatprep.subr.bf16.mxu1 %v7758_v50 }
 0x201   :  { %612 = vmatpush1.bf16.msra.mxu1 %v7756_v52 }
 0x202   :  { %613 = vmatprep.subr.bf16.mxu1 %v7762_v59 }
 0x205   :  { %614 = vmatpush1.bf16.msra.mxu1 %v7760_v57 }
 0x2bb   :  { %v346_v5 = vpop.f32.mrb[0].mxu1 }
 0x2bc   :  { %v358_v6 = vrot.slane %v346_v5, %v8703_v3  ;;  %v6921_v7 = vpop.f32.mrb[1].mxu1  ;;  %v350_v9 = vmul.f32 %v346_v5, %v62_v4 }
 0x2be   :  { %v359_v11 = vcombine.high %v358_v6, %v358_v6  ;;  %v374_v14 = vrot.slane %v350_v9, %v8710_v10 }
 0x2c0   :  { %v366_v12 = vrot.slane %v359_v11, %v8703_v3  ;;  %v376_v19 = vmul.f32 %v374_v14, %v8604_v42  ;;  %v377_v21 = vmul.f32 %v374_v14, %v8606_v43  ;;  %v378_v22 = vmul.f32 %v374_v14, %v8608_v44 }
 0x2c1   :  { %v379_v24 = vmul.f32 %v374_v14, %v8610_v45  ;;  %v380_v25 = vmul.f32 %v374_v14, %v8612_v46  ;;  %v381_v26 = vmul.f32 %v374_v14, %v8614_v47  ;;  %v382_v43 = vmul.f32 %v374_v14, %v8616_v48 }
 0x2c2   :  { %v368_v17 = vmul.f32 %v366_v12, %v62_v4  ;;  %v383_v44 = vmul.f32 %v374_v14, %v8618_v49  ;;  %v384_v45 = vmul.f32 %v374_v14, %v8622_v51  ;;  %v385_v46 = vmul.f32 %v374_v14, %v8633_v58 }
 0x2c3   :  { %v386_v52 = vmul.f32 %v374_v14, %v8641_v1  ;;  %v387_v48 = vmul.f32 %v374_v14, %v8649_v8  ;;  %v388_v49 = vmul.f32 %v374_v14, %v8657_v15  ;;  %v389_v51 = vmul.f32 %v374_v14, %v8665_v23 }
 0x2c4   :  { %v369_v18 = vsub.f32 %v63_v13, %v368_v17  ;;  %v390_v63 = vmul.f32 %v374_v14, %v8673_v30  ;;  %v391_v1 = vmul.f32 %v374_v14, %v8679_v36  ;;  %v11353_v23 = vsub.s32 2, %v8690_v54  ;;  %v454_v30 = vld [vmem:[%s11349_s6] sm:$0x7] }
 0x2c5   :  { %v8747_v36 = vrot.slane %v454_v30, %v462_v55  ;;  %v8754_v4 = vrot.slane %v454_v30, %v8710_v10 }
 0x2c6   :  { %v396_v20 = vrot.slane %v369_v18, %v8710_v10  ;;  %v8751_v2 = vrot.slane %v454_v30, %v11353_v23 }
 0x2c8   :  { %v398_v27 = vadd.f32 %v396_v20, %v376_v19  ;;  %v399_v28 = vadd.f32 %v396_v20, %v377_v21  ;;  %v400_v29 = vadd.f32 %v396_v20, %v378_v22  ;;  %v401_v31 = vadd.f32 %v396_v20, %v379_v24 }
 0x2c9   :  { %v402_v32 = vadd.f32 %v396_v20, %v380_v25  ;;  %v403_v33 = vadd.f32 %v396_v20, %v381_v26  ;;  %v404_v47 = vadd.f32 %v396_v20, %v382_v43  ;;  %v405_v37 = vadd.f32 %v396_v20, %v383_v44 }
 0x2ca   :  { %v414_v34 = vpack.c.bf16 %v399_v28, %v398_v27  ;;  %v415_v42 = vpack.c.bf16 %v401_v31, %v400_v29  ;;  %v406_v38 = vadd.f32 %v396_v20, %v384_v45  ;;  %v407_v39 = vadd.f32 %v396_v20, %v385_v46 }
 0x2cb   :  { %v416_v35 = vpack.c.bf16 %v403_v33, %v402_v32  ;;  %v417_v41 = vpack.c.bf16 %v405_v37, %v404_v47  ;;  %v408_v58 = vadd.f32 %v396_v20, %v386_v52  ;;  %v409_v53 = vadd.f32 %v396_v20, %v387_v48 }
 0x2cc   :  { %632 = vmatmul.mubr.bf16.vlgmr.msra.gmra.mrb[4].mxu1 %v414_v34  ;;  %6938 = vmatprep.mubr.bf16.mxu0 %v414_v34  ;;  %v418_v50 = vpack.c.bf16 %v407_v39, %v406_v38  ;;  %v410_v56 = vadd.f32 %v396_v20, %v388_v49  ;;  %v411_v57 = vadd.f32 %v396_v20, %v389_v51 }
 0x2cd   :  { %6939 = vmatmul.mubr.bf16.vlgmr.msra.gmra.mrb[4].mxu0 %v415_v42  ;;  %641 = vmatprep.mubr.bf16.mxu1 %v11356_v62  ;;  %v419_v59 = vpack.c.bf16 %v409_v53, %v408_v58  ;;  %v412_v8 = vadd.f32 %v396_v20, %v390_v63  ;;  %v413_v0 = vadd.f32 %v396_v20, %v391_v1 }
 0x2ce   :  { %6942 = vmatprep.mubr.bf16.mxu0 %v416_v35  ;;  %v420_v60 = vpack.c.bf16 %v411_v57, %v410_v56 }
 0x2cf   :  { %v421_v15 = vpack.c.bf16 %v413_v0, %v412_v8 }
 0x2d4   :  { %642 = vmatmul.mubr.bf16.gmra.mrb[8].mxu1 %v415_v42 }
 0x2d5   :  { %6943 = vmatmul.mubr.bf16.gmra.mrb[8].mxu0 %v417_v41  ;;  %651 = vmatprep.mubr.bf16.mxu1 %v11356_v62 }
 0x2d6   :  { %6946 = vmatprep.mubr.bf16.mxu0 %v418_v50 }
 0x2dc   :  { %652 = vmatmul.mubr.bf16.gmra.mrb[12].mxu1 %v416_v35 }
 0x2dd   :  { %6947 = vmatmul.mubr.bf16.gmra.mrb[12].mxu0 %v419_v59  ;;  %661 = vmatprep.mubr.bf16.mxu1 %v11356_v62 }
 0x2de   :  { %6950 = vmatprep.mubr.bf16.mxu0 %v420_v60 }
 0x2e4   :  { %662 = vmatmul.mubr.bf16.gmra.mrb[16].mxu1 %v417_v41 }
 0x2e5   :  { %6951 = vmatmul.mubr.bf16.gmra.mrb[16].mxu0 %v421_v15  ;;  %671 = vmatprep.mubr.bf16.mxu1 %v11356_v62 }
 0x2ec   :  { %672 = vmatmul.mubr.bf16.gmra.mrb[20].mxu1 %v418_v50 }
 0x2ed   :  { %681 = vmatprep.mubr.bf16.mxu1 %v11356_v62 }
 0x2f4   :  { %682 = vmatmul.mubr.bf16.gmra.mrb[24].mxu1 %v419_v59 }
 0x2f5   :  { %691 = vmatprep.mubr.bf16.mxu1 %v11356_v62 }
 0x2fc   :  { %692 = vmatmul.mubr.bf16.gmra.mrb[28].mxu1 %v420_v60 }
 0x2fd   :  { %701 = vmatprep.mubr.bf16.mxu1 %v11356_v62 }
 0x304   :  { %702 = vmatmul.mubr.bf16.gmra.mrb[32].mxu1 %v421_v15 }
 0x39f   :  { %v633_v5 = vpop.f32.mrb[4].mxu1 }
 0x3a0   :  { %v635_v6 = vpop.f32.mrb[5].mxu1  ;;  %v6940_v7 = vpop.f32.mrb[4].mxu0  ;;  %v634_v14 = vadd.f32 %v633_v5, %v8754_v4 }
 0x3a1   :  { %v636_v9 = vadd.f32 %v635_v6, %v8747_v36  ;;  %v755_v11 = vadd.f32 %v6940_v7, %v8751_v2  ;;  %v637_v12 = vpop.f32.mrb[6].mxu1  ;;  %v746_v13 = vpop.f32.mrb[5].mxu0 }
 0x3a2   :  { %v638_v55 = vadd.f32 %v637_v12, %v8754_v4  ;;  %v747_v17 = vadd.f32 %v746_v13, %v8751_v2  ;;  %v639_v18 = vpop.f32.mrb[7].mxu1  ;;  %v6941_v19 = vpop.f32.mrb[6].mxu0 }
 0x3a3   :  { %v640_v20 = vadd.f32 %v639_v18, %v8747_v36  ;;  %v758_v21 = vadd.f32 %v6941_v19, %v8751_v2  ;;  %v749_v22 = vpop.f32.mrb[7].mxu0 }
 0x3a4   :  { %v8763_v24 = vpack.c.bf16 %v638_v55, %v634_v14  ;;  %v750_v25 = vadd.f32 %v749_v22, %v8751_v2 }
 0x3a5   :  { %v8766_v26 = vpack.c.bf16 %v640_v20, %v636_v9  ;;  %v8768_v27 = vpack.c.bf16 %v758_v21, %v755_v11 }
 0x3a6   :  { %v8770_v28 = vpack.c.bf16 %v750_v25, %v747_v17  ;;  %6970 = vmatprep.mubr.msk.bf16.mxu1 %vm881_vm3, %v8763_v24 }
 0x3a7   :  { %v643_v29 = vpop.f32.mrb[8].mxu1  ;;  %1348 = vrot.lane.b32.xlu1 %v8766_v26, %s8414_s22  ;;  %7650 = vmatprep.subr.msk.bf16.mxu1 %vm881_vm3, %v8766_v26  ;;  %v907_v31 = vsel %vm881_vm3, %v8766_v26, 0 }
 0x3a8   :  { %v644_v32 = vadd.f32 %v643_v29, %v8754_v4  ;;  %v645_v33 = vpop.f32.mrb[9].mxu1  ;;  %v6944_v34 = vpop.f32.mrb[8].mxu0  ;;  %6955 = vmatpush3.bf16.xpose.msra.mxu1 %v907_v31  ;;  %6986 = vmatprep.subr.bf16.mxu0 %v8770_v28 }
 0x3a9   :  { %v646_v42 = vadd.f32 %v645_v33, %v8747_v36  ;;  %v771_v35 = vadd.f32 %v6944_v34, %v8751_v2  ;;  %v647_v43 = vpop.f32.mrb[10].mxu1  ;;  %v762_v44 = vpop.f32.mrb[9].mxu0  ;;  %6987 = vmatpush3.bf16.msra.mxu0 %v8770_v28 }
 0x3aa   :  { %v648_v45 = vadd.f32 %v647_v43, %v8754_v4  ;;  %v763_v46 = vadd.f32 %v762_v44, %v8751_v2  ;;  %v649_v47 = vpop.f32.mrb[11].mxu1  ;;  %v6945_v37 = vpop.f32.mrb[10].mxu0  ;;  %6988 = vmatprep.subr.bf16.mxu0 %v8768_v27 }
 0x3ab   :  { %v650_v38 = vadd.f32 %v649_v47, %v8747_v36  ;;  %v774_v39 = vadd.f32 %v6945_v37, %v8751_v2  ;;  %v765_v41 = vpop.f32.mrb[11].mxu0 }
 0x3ac   :  { %v8790_v50 = vpack.c.bf16 %v648_v45, %v644_v32  ;;  %v766_v52 = vadd.f32 %v765_v41, %v8751_v2 }
 0x3ad   :  { %v8793_v48 = vpack.c.bf16 %v650_v38, %v646_v42  ;;  %v8795_v49 = vpack.c.bf16 %v774_v39, %v771_v35  ;;  %6989 = vmatpush3.bf16.msra.mxu0 %v8768_v27 }
 0x3ae   :  { %11409 = vst [vmem:[#allocation17_spill] sm:$0xff] %v8790_v50  ;;  %v8798_v51 = vpack.c.bf16 %v766_v52, %v763_v46 }
 0x3af   :  { %v653_v58 = vpop.f32.mrb[12].mxu1  ;;  %1350 = vrot.lane.b32.xlu1 %v8793_v48, %s8414_s22  ;;  %7651 = vmatprep.subr.msk.bf16.mxu1 %vm881_vm3, %v8793_v48  ;;  %v910_v53 = vsel %vm881_vm3, %v8793_v48, 0 }
 0x3b0   :  { %v654_v56 = vadd.f32 %v653_v58, %v8754_v4  ;;  %v655_v57 = vpop.f32.mrb[13].mxu1  ;;  %v6948_v59 = vpop.f32.mrb[12].mxu0  ;;  %6957 = vmatpush3.bf16.xpose.msra.mxu1 %v910_v53  ;;  %6990 = vmatprep.subr.bf16.mxu0 %v8798_v51 }
 0x3b1   :  { %v656_v60 = vadd.f32 %v655_v57, %v8747_v36  ;;  %v787_v63 = vadd.f32 %v6948_v59, %v8751_v2  ;;  %v657_v1 = vpop.f32.mrb[14].mxu1  ;;  %v778_v8 = vpop.f32.mrb[13].mxu0  ;;  %6991 = vmatpush3.bf16.msra.mxu0 %v8798_v51 }
 0x3b2   :  { %v658_v0 = vadd.f32 %v657_v1, %v8754_v4  ;;  %v779_v15 = vadd.f32 %v778_v8, %v8751_v2  ;;  %v659_v30 = vpop.f32.mrb[15].mxu1  ;;  %v6949_v5 = vpop.f32.mrb[14].mxu0  ;;  %6992 = vmatprep.subr.bf16.mxu0 %v8795_v49 }
 0x3b3   :  { %v660_v6 = vadd.f32 %v659_v30, %v8747_v36  ;;  %v790_v7 = vadd.f32 %v6949_v5, %v8751_v2  ;;  %v781_v9 = vpop.f32.mrb[15].mxu0 }
 0x3b4   :  { %v8816_v11 = vpack.c.bf16 %v658_v0, %v654_v56  ;;  %v782_v12 = vadd.f32 %v781_v9, %v8751_v2 }
 0x3b5   :  { %v8819_v13 = vpack.c.bf16 %v660_v6, %v656_v60  ;;  %v8821_v14 = vpack.c.bf16 %v790_v7, %v787_v63  ;;  %6993 = vmatpush3.bf16.msra.mxu0 %v8795_v49 }
 0x3b6   :  { %v8824_v55 = vpack.c.bf16 %v782_v12, %v779_v15 }
 0x3b7   :  { %11410 = vst [vmem:[#allocation18_spill] sm:$0xff] %v8821_v14  ;;  %v663_v17 = vpop.f32.mrb[16].mxu1  ;;  %1352 = vrot.lane.b32.xlu0 %v8819_v13, %s8414_s22  ;;  %7652 = vmatprep.subr.msk.bf16.mxu1 %vm881_vm3, %v8819_v13  ;;  %v913_v18 = vsel %vm881_vm3, %v8819_v13, 0 }
 0x3b8   :  { %11411 = vst [vmem:[#allocation19_spill] sm:$0xff] %v8824_v55  ;;  %v664_v19 = vadd.f32 %v663_v17, %v8754_v4  ;;  %v665_v20 = vpop.f32.mrb[17].mxu1  ;;  %v6952_v21 = vpop.f32.mrb[16].mxu0  ;;  %6959 = vmatpush3.bf16.xpose.msra.mxu1 %v913_v18  ;;  %6994 = vmatprep.subr.bf16.mxu0 %v8824_v55 }
 0x3b9   :  { %v666_v22 = vadd.f32 %v665_v20, %v8747_v36  ;;  %v803_v25 = vadd.f32 %v6952_v21, %v8751_v2  ;;  %v667_v29 = vpop.f32.mrb[18].mxu1  ;;  %v794_v31 = vpop.f32.mrb[17].mxu0  ;;  %6995 = vmatpush3.bf16.msra.mxu0 %v8824_v55 }
 0x3ba   :  { %v668_v32 = vadd.f32 %v667_v29, %v8754_v4  ;;  %v795_v33 = vadd.f32 %v794_v31, %v8751_v2  ;;  %v669_v34 = vpop.f32.mrb[19].mxu1  ;;  %v6953_v42 = vpop.f32.mrb[18].mxu0  ;;  %6996 = vmatprep.subr.bf16.mxu0 %v8821_v14 }
 0x3bb   :  { %v670_v35 = vadd.f32 %v669_v34, %v8747_v36  ;;  %v806_v43 = vadd.f32 %v6953_v42, %v8751_v2  ;;  %v797_v44 = vpop.f32.mrb[19].mxu0 }
 0x3bc   :  { %v8842_v45 = vpack.c.bf16 %v668_v32, %v664_v19  ;;  %v798_v46 = vadd.f32 %v797_v44, %v8751_v2 }
 0x3bd   :  { %v8845_v47 = vpack.c.bf16 %v670_v35, %v666_v22  ;;  %v8847_v37 = vpack.c.bf16 %v806_v43, %v803_v25  ;;  %6997 = vmatpush3.bf16.msra.mxu0 %v8821_v14 }
 0x3be   :  { %11412 = vst [vmem:[#allocation20_spill] sm:$0xff] %v8842_v45  ;;  %v8850_v38 = vpack.c.bf16 %v798_v46, %v795_v33 }
 0x3bf   :  { %11413 = vst [vmem:[#allocation21_spill] sm:$0xff] %v8847_v37  ;;  %v673_v39 = vpop.f32.mrb[20].mxu1  ;;  %1354 = vrot.lane.b32.xlu1 %v8845_v47, %s8414_s22  ;;  %7653 = vmatprep.subr.msk.bf16.mxu1 %vm881_vm3, %v8845_v47  ;;  %v916_v41 = vsel %vm881_vm3, %v8845_v47, 0 }
 0x3c0   :  { %11414 = vst [vmem:[#allocation22_spill] sm:$0xff] %v8850_v38  ;;  %v674_v2 = vadd.f32 %v673_v39, %v8754_v4  ;;  %v675_v52 = vpop.f32.mrb[21].mxu1  ;;  %6961 = vmatpush3.bf16.xpose.msra.mxu1 %v916_v41  ;;  %6998 = vmatprep.subr.bf16.mxu0 %v8850_v38 }
 0x3c1   :  { %v676_v58 = vadd.f32 %v675_v52, %v8747_v36  ;;  %v677_v53 = vpop.f32.mrb[22].mxu1  ;;  %6999 = vmatpush3.bf16.msra.mxu0 %v8850_v38 }
 0x3c2   :  { %v678_v56 = vadd.f32 %v677_v53, %v8754_v4  ;;  %v679_v57 = vpop.f32.mrb[23].mxu1  ;;  %7000 = vmatprep.subr.bf16.mxu0 %v8847_v37 }
 0x3c3   :  { %v680_v59 = vadd.f32 %v679_v57, %v8747_v36 }
 0x3c4   :  { %v8865_v60 = vpack.c.bf16 %v678_v56, %v674_v2 }
 0x3c5   :  { %v8867_v63 = vpack.c.bf16 %v680_v59, %v676_v58  ;;  %7001 = vmatpush3.bf16.msra.mxu0 %v8847_v37 }
 0x3c7   :  { %v683_v1 = vpop.f32.mrb[24].mxu1  ;;  %1356 = vrot.lane.b32.xlu0 %v8867_v63, %s8414_s22  ;;  %7654 = vmatprep.subr.msk.bf16.mxu1 %vm881_vm3, %v8867_v63  ;;  %v919_v8 = vsel %vm881_vm3, %v8867_v63, 0 }
 0x3c8   :  { %v684_v0 = vadd.f32 %v683_v1, %v8754_v4  ;;  %v685_v15 = vpop.f32.mrb[25].mxu1  ;;  %6963 = vmatpush3.bf16.xpose.msra.mxu1 %v919_v8 }
 0x3c9   :  { %v686_v30 = vadd.f32 %v685_v15, %v8747_v36  ;;  %v687_v5 = vpop.f32.mrb[26].mxu1 }
 0x3ca   :  { %v688_v6 = vadd.f32 %v687_v5, %v8754_v4  ;;  %v689_v7 = vpop.f32.mrb[27].mxu1 }
 0x3cb   :  { %v690_v9 = vadd.f32 %v689_v7, %v8747_v36 }
 0x3cc   :  { %v8880_v12 = vpack.c.bf16 %v688_v6, %v684_v0 }
 0x3cd   :  { %v8882_v17 = vpack.c.bf16 %v690_v9, %v686_v30 }
 0x3ce   :  { %11415 = vst [vmem:[#allocation23_spill] sm:$0xff] %v8880_v12 }
 0x3cf   :  { %v693_v18 = vpop.f32.mrb[28].mxu1  ;;  %1358 = vrot.lane.b32.xlu0 %v8882_v17, %s8414_s22  ;;  %7655 = vmatprep.subr.msk.bf16.mxu1 %vm881_vm3, %v8882_v17  ;;  %v922_v19 = vsel %vm881_vm3, %v8882_v17, 0 }
 0x3d0   :  { %v694_v20 = vadd.f32 %v693_v18, %v8754_v4  ;;  %v695_v21 = vpop.f32.mrb[29].mxu1  ;;  %6965 = vmatpush3.bf16.xpose.msra.mxu1 %v922_v19 }
 0x3d1   :  { %v696_v22 = vadd.f32 %v695_v21, %v8747_v36  ;;  %v697_v25 = vpop.f32.mrb[30].mxu1 }
 0x3d2   :  { %v698_v29 = vadd.f32 %v697_v25, %v8754_v4  ;;  %v699_v31 = vpop.f32.mrb[31].mxu1 }
 0x3d3   :  { %v700_v32 = vadd.f32 %v699_v31, %v8747_v36  ;;  %1897 = vrot.lane.b32.xlu0 %v8793_v48, %s8407_s5 }
 0x3d4   :  { %v8896_v33 = vpack.c.bf16 %v698_v29, %v694_v20 }
 0x3d5   :  { %v8898_v34 = vpack.c.bf16 %v700_v32, %v696_v22 }
 0x3d7   :  { %v703_v42 = vpop.f32.mrb[32].mxu1  ;;  %7656 = vmatprep.subr.msk.bf16.mxu1 %vm881_vm3, %v8898_v34  ;;  %v925_v35 = vsel %vm881_vm3, %v8898_v34, 0 }
 0x3d8   :  { %v704_v43 = vadd.f32 %v703_v42, %v8754_v4  ;;  %v705_v44 = vpop.f32.mrb[33].mxu1  ;;  %6967 = vmatpush3.bf16.xpose.msra.mxu1 %v925_v35 }
 0x3d9   :  { %v706_v46 = vadd.f32 %v705_v44, %v8747_v36  ;;  %v707_v39 = vpop.f32.mrb[34].mxu1 }
 0x3da   :  { %v708_v41 = vadd.f32 %v707_v39, %v8754_v4  ;;  %v709_v2 = vpop.f32.mrb[35].mxu1 }
 0x3db   :  { %v710_v52 = vadd.f32 %v709_v2, %v8747_v36 }
 0x3dc   :  { %v8908_v58 = vpack.c.bf16 %v708_v41, %v704_v43 }
 0x3dd   :  { %v8910_v53 = vpack.c.bf16 %v710_v52, %v706_v46 }
 0x3de   :  { %11416 = vst [vmem:[#allocation24_spill] sm:$0xff] %v8908_v58 }
 0x3df   :  { %7657 = vmatprep.subr.msk.bf16.mxu1 %vm881_vm3, %v8910_v53  ;;  %v928_v56 = vsel %vm881_vm3, %v8910_v53, 0 }
 0x3e0   :  { %6969 = vmatpush3.bf16.xpose.msra.mxu1 %v928_v56 }
 0x3e7   :  { %6971 = vmatmul.mubr.msk.bf16.vlgmr.msra.gmra.mrb[36].mxu1 %vm881_vm3, %v8790_v50 }
 0x3e8   :  { %6974 = vmatprep.mubr.msk.bf16.mxu1 %vm881_vm3, %v8816_v11 }
 0x3ef   :  { %6975 = vmatmul.mubr.msk.bf16.gmra.mrb[40].mxu1 %vm881_vm3, %v8842_v45 }
 0x3f0   :  { %6978 = vmatprep.mubr.msk.bf16.mxu1 %vm881_vm3, %v8865_v60 }
 0x3f7   :  { %6979 = vmatmul.mubr.msk.bf16.gmra.mrb[44].mxu1 %vm881_vm3, %v8880_v12 }
 0x3f8   :  { %6982 = vmatprep.mubr.msk.bf16.mxu1 %vm881_vm3, %v8896_v33 }
 0x3ff   :  { %6983 = vmatmul.mubr.msk.bf16.gmra.mrb[48].mxu1 %vm881_vm3, %v8908_v58 }
 0x419   :  { %v8930_v36 = vpop.permute.xlu1 %1348 }
 0x41a   :  { %7658 = vmatprep.subr.msk.bf16.mxu0 %vm881_vm3, %v8930_v36  ;;  %v1389_v54 = vsel %vm881_vm3, %v8930_v36, 0 }
 0x421   :  { %v8972_v22 = vpop.permute.xlu1 %1350 }
 0x429   :  { %v8976_v42 = vpop.permute.xlu0 %1352 }
 0x431   :  { %v8974_v25 = vpop.permute.xlu1 %1354 }
 0x439   :  { %v8978_v46 = vpop.permute.xlu0 %1356 }
 0x43a   :  { %v1401_v36 = vsel %vm881_vm3, %v8978_v46, 0 }
 0x441   :  { %v8980_v52 = vpop.permute.xlu0 %1358 }
 0x4ba   :  { %v6972_v4 = vpop.f32.mrb[36].mxu1 }
 0x4bb   :  { %1031 = vmax.xlane.f32.xlu1 %v6972_v4  ;;  %v964_v57 = vpop.f32.mrb[37].mxu1 }
 0x4bc   :  { %v6973_v59 = vpop.f32.mrb[38].mxu1 }
 0x4bd   :  { %v967_v1 = vpop.f32.mrb[39].mxu1 }
 0x4bf   :  { %1027 = vmax.xlane.f32.xlu1 %v964_v57 }
 0x4c2   :  { %v8934_v8 = vpop.f32.mrb[40].mxu1 }
 0x4c3   :  { %1033 = vmax.xlane.f32.xlu1 %v6973_v59  ;;  %v8936_v0 = vpop.f32.mrb[41].mxu1 }
 0x4c4   :  { %v8938_v15 = vpop.f32.mrb[42].mxu1 }
 0x4c5   :  { %v8940_v30 = vpop.f32.mrb[43].mxu1 }
 0x4c7   :  { %1029 = vmax.xlane.f32.xlu1 %v967_v1 }
 0x4ca   :  { %v8942_v5 = vpop.f32.mrb[44].mxu1 }
 0x4cb   :  { %v8944_v6 = vpop.f32.mrb[45].mxu1 }
 0x4cc   :  { %v8946_v7 = vpop.f32.mrb[46].mxu1 }
 0x4cd   :  { %v8948_v9 = vpop.f32.mrb[47].mxu1 }
 0x4d2   :  { %v8950_v18 = vpop.f32.mrb[48].mxu1 }
 0x4d3   :  { %v8952_v19 = vpop.f32.mrb[49].mxu1 }
 0x4d4   :  { %v8954_v20 = vpop.f32.mrb[50].mxu1 }
 0x4d5   :  { %v8956_v21 = vpop.f32.mrb[51].mxu1 }
 0x4d8   :  { %1895 = vrot.lane.b32.xlu1 %v8766_v26, %s8407_s5 }
 0x4fc   :  { %1039 = vmax.xlane.f32.xlu1 %v8934_v8 }
 0x500   :  { %1035 = vmax.xlane.f32.xlu1 %v8936_v0 }
 0x504   :  { %1041 = vmax.xlane.f32.xlu1 %v8938_v15 }
 0x508   :  { %1037 = vmax.xlane.f32.xlu1 %v8940_v30 }
 0x50c   :  { %1047 = vmax.xlane.f32.xlu1 %v8942_v5 }
 0x510   :  { %1043 = vmax.xlane.f32.xlu1 %v8944_v6 }
 0x514   :  { %1049 = vmax.xlane.f32.xlu1 %v8946_v7 }
 0x518   :  { %1045 = vmax.xlane.f32.xlu1 %v8948_v9 }
 0x51c   :  { %1055 = vmax.xlane.f32.xlu1 %v8950_v18 }
 0x520   :  { %1051 = vmax.xlane.f32.xlu1 %v8952_v19 }
 0x524   :  { %1057 = vmax.xlane.f32.xlu1 %v8954_v20 }
 0x528   :  { %1053 = vmax.xlane.f32.xlu1 %v8956_v21 }
 0x548   :  { %v1032_v29 = vpop.xlane.xlu1 %1031 }
 0x549   :  { %v1061_v31 = vsub.f32 %v6972_v4, %v1032_v29 }
 0x54b   :  { %v1079_v32 = vmul.f32 1.442695, %v1061_v31  ;;  %v1898_v31 = vpop.permute.xlu0 %1897 }
 0x54c   :  { %v1028_v35 = vpop.xlane.xlu1 %1027 }
 0x54d   :  { %7814 = vpow2.f32 %v1079_v32  ;;  %v1059_v43 = vsub.f32 %v964_v57, %v1028_v35 }
 0x54f   :  { %v1075_v44 = vmul.f32 1.442695, %v1059_v43 }
 0x550   :  { %v1034_v39 = vpop.xlane.xlu1 %1033 }
 0x551   :  { %7816 = vpow2.f32 %v1075_v44  ;;  %v1062_v41 = vsub.f32 %v6973_v59, %v1034_v39 }
 0x553   :  { %v1081_v2 = vmul.f32 1.442695, %v1062_v41 }
 0x554   :  { %v1030_v56 = vpop.xlane.xlu1 %1029 }
 0x555   :  { %7818 = vpow2.f32 %v1081_v2  ;;  %v1060_v23 = vsub.f32 %v967_v1, %v1030_v56 }
 0x557   :  { %v8982_v40 = vpop.eup %7814  ;;  %v1077_v4 = vmul.f32 1.442695, %v1060_v23  ;;  %v1939_v23 = vsel %vm881_vm3, %v1898_v31, 0 }
 0x558   :  { %v1896_v29 = vpop.permute.xlu1 %1895  ;;  %1111 = vadd.xlane.f32.xlu1 %v8982_v40 }
 0x559   :  { %7820 = vpow2.f32 %v1077_v4  ;;  %7666 = vmatprep.subr.msk.bf16.mxu1 %vm881_vm3, %v1896_v29  ;;  %v1936_v57 = vsel %vm881_vm3, %v1896_v29, 0 }
 0x55a   :  { %7083 = vmatpush3.bf16.xpose.msra.mxu1 %v1936_v57 }
 0x55b   :  { %v8987_v59 = vpop.eup %7816  ;;  %7667 = vmatprep.subr.msk.bf16.mxu1 %vm881_vm3, %v1898_v31 }
 0x55c   :  { %1107 = vadd.xlane.f32.xlu0 %v8987_v59 }
 0x55f   :  { %v8991_v1 = vpop.eup %7818 }
 0x560   :  { %1113 = vadd.xlane.f32.xlu1 %v8991_v1 }
 0x562   :  { %7085 = vmatpush3.bf16.xpose.msra.mxu1 %v1939_v23 }
 0x563   :  { %v8995_v32 = vpop.eup %7820 }
 0x564   :  { %1109 = vadd.xlane.f32.xlu1 %v8995_v32 }
 0x572   :  { %1899 = vrot.lane.b32.xlu0 %v8819_v13, %s8407_s5 }
 0x575   :  { %1360 = vrot.lane.b32.xlu1 %v8898_v34, %s8414_s22 }
 0x589   :  { %v1040_v35 = vpop.xlane.xlu1 %1039 }
 0x58a   :  { %v1065_v43 = vsub.f32 %v8934_v8, %v1040_v35 }
 0x58c   :  { %v1087_v44 = vmul.f32 1.442695, %v1065_v43 }
 0x58d   :  { %v1036_v39 = vpop.xlane.xlu1 %1035 }
 0x58e   :  { %7822 = vpow2.f32 %v1087_v44  ;;  %v1063_v41 = vsub.f32 %v8936_v0, %v1036_v39 }
 0x590   :  { %v1083_v2 = vmul.f32 1.442695, %v1063_v41 }
 0x591   :  { %v1042_v56 = vpop.xlane.xlu1 %1041 }
 0x592   :  { %7824 = vpow2.f32 %v1083_v2  ;;  %v1066_v4 = vsub.f32 %v8938_v15, %v1042_v56 }
 0x594   :  { %v1089_v29 = vmul.f32 1.442695, %v1066_v4 }
 0x595   :  { %v1038_v57 = vpop.xlane.xlu1 %1037 }
 0x596   :  { %7826 = vpow2.f32 %v1089_v29  ;;  %v1064_v31 = vsub.f32 %v8940_v30, %v1038_v57 }
 0x598   :  { %v9006_v23 = vpop.eup %7822  ;;  %v1085_v62 = vmul.f32 1.442695, %v1064_v31 }
 0x599   :  { %1119 = vadd.xlane.f32.xlu0 %v9006_v23  ;;  %v1048_v8 = vpop.xlane.xlu1 %1047 }
 0x59a   :  { %7828 = vpow2.f32 %v1085_v62  ;;  %v1069_v35 = vsub.f32 %v8942_v5, %v1048_v8 }
 0x59c   :  { %v9010_v0 = vpop.eup %7824  ;;  %v1095_v43 = vmul.f32 1.442695, %v1069_v35 }
 0x59d   :  { %v1044_v44 = vpop.xlane.xlu1 %1043  ;;  %1115 = vadd.xlane.f32.xlu1 %v9010_v0 }
 0x59e   :  { %7830 = vpow2.f32 %v1095_v43  ;;  %v1067_v15 = vsub.f32 %v8944_v6, %v1044_v44 }
 0x5a0   :  { %v9014_v39 = vpop.eup %7826  ;;  %v1091_v30 = vmul.f32 1.442695, %v1067_v15 }
 0x5a1   :  { %1121 = vadd.xlane.f32.xlu0 %v9014_v39  ;;  %v1050_v41 = vpop.xlane.xlu1 %1049 }
 0x5a2   :  { %7832 = vpow2.f32 %v1091_v30  ;;  %v1070_v62 = vsub.f32 %v8946_v7, %v1050_v41 }
 0x5a4   :  { %v9018_v2 = vpop.eup %7828  ;;  %v1097_v5 = vmul.f32 1.442695, %v1070_v62 }
 0x5a5   :  { %1117 = vadd.xlane.f32.xlu0 %v9018_v2  ;;  %v1046_v56 = vpop.xlane.xlu1 %1045 }
 0x5a6   :  { %7834 = vpow2.f32 %v1097_v5  ;;  %v1068_v4 = vsub.f32 %v8948_v9, %v1046_v56 }
 0x5a8   :  { %v9022_v29 = vpop.eup %7830  ;;  %v1093_v6 = vmul.f32 1.442695, %v1068_v4 }
 0x5a9   :  { %v1056_v57 = vpop.xlane.xlu1 %1055  ;;  %1127 = vadd.xlane.f32.xlu1 %v9022_v29 }
 0x5aa   :  { %7836 = vpow2.f32 %v1093_v6  ;;  %v1073_v31 = vsub.f32 %v8950_v18, %v1056_v57 }
 0x5ac   :  { %v9026_v8 = vpop.eup %7832  ;;  %v1103_v7 = vmul.f32 1.442695, %v1073_v31 }
 0x5ad   :  { %v1052_v35 = vpop.xlane.xlu1 %1051  ;;  %1123 = vadd.xlane.f32.xlu1 %v9026_v8 }
 0x5ae   :  { %7838 = vpow2.f32 %v1103_v7  ;;  %v1071_v43 = vsub.f32 %v8952_v19, %v1052_v35 }
 0x5b0   :  { %v9030_v44 = vpop.eup %7834  ;;  %v1099_v9 = vmul.f32 1.442695, %v1071_v43 }
 0x5b1   :  { %1129 = vadd.xlane.f32.xlu0 %v9030_v44  ;;  %v1058_v19 = vpop.xlane.xlu1 %1057 }
 0x5b2   :  { %7840 = vpow2.f32 %v1099_v9  ;;  %v1074_v43 = vsub.f32 %v8954_v20, %v1058_v19 }
 0x5b4   :  { %v9033_v15 = vpop.eup %7836 }
 0x5b5   :  { %1125 = vadd.xlane.f32.xlu1 %v9033_v15  ;;  %v1054_v41 = vpop.xlane.xlu1 %1053 }
 0x5b8   :  { %v9036_v18 = vpop.eup %7838 }
 0x5b9   :  { %1135 = vadd.xlane.f32.xlu0 %v9036_v18 }
 0x5bc   :  { %v9039_v30 = vpop.eup %7840 }
 0x5bd   :  { %1131 = vadd.xlane.f32.xlu1 %v9039_v30 }
 0x5ce   :  { %1362 = vrot.lane.b32.xlu1 %v8910_v53, %s8414_s22 }
 0x5cf   :  { %1901 = vrot.lane.b32.xlu0 %v8845_v47, %s8407_s5 }
 0x5d2   :  { %1324 = vrot.lane.b32.xlu1 %v8763_v24, %s8414_s22 }
 0x5d3   :  { %1326 = vrot.lane.b32.xlu0 %v8790_v50, %s8414_s22 }
 0x5d6   :  { %1903 = vrot.lane.b32.xlu1 %v8867_v63, %s8407_s5 }
 0x5d7   :  { %1328 = vrot.lane.b32.xlu0 %v8816_v11, %s8414_s22 }
 0x5da   :  { %1330 = vrot.lane.b32.xlu1 %v8842_v45, %s8414_s22 }
 0x5db   :  { %1905 = vrot.lane.b32.xlu0 %v8882_v17, %s8407_s5 }
 0x5de   :  { %1332 = vrot.lane.b32.xlu1 %v8865_v60, %s8414_s22 }
 0x5df   :  { %1334 = vrot.lane.b32.xlu0 %v8880_v12, %s8414_s22 }
 0x5e2   :  { %1907 = vrot.lane.b32.xlu1 %v8898_v34, %s8407_s5 }
 0x5e3   :  { %1336 = vrot.lane.b32.xlu0 %v8896_v33, %s8414_s22 }
 0x5e5   :  { %v1112_v62 = vpop.xlane.xlu1 %1111 }
 0x5e6   :  { %1338 = vrot.lane.b32.xlu1 %v8908_v58, %s8414_s22 }
 0x5e7   :  { %1909 = vrot.lane.b32.xlu0 %v8910_v53, %s8407_s5 }
 0x5e9   :  { %v1108_v5 = vpop.xlane.xlu0 %1107 }
 0x5ea   :  { %1871 = vrot.lane.b32.xlu1 %v8763_v24, %s8407_s5 }
 0x5eb   :  { %1873 = vrot.lane.b32.xlu0 %v8790_v50, %s8407_s5 }
 0x5ed   :  { %v1900_v56 = vpop.permute.xlu0 %1899  ;;  %v1114_v4 = vpop.xlane.xlu1 %1113 }
 0x5ee   :  { %7668 = vmatprep.subr.msk.bf16.mxu1 %vm881_vm3, %v1900_v56  ;;  %1875 = vrot.lane.b32.xlu1 %v8816_v11, %s8407_s5  ;;  %v1942_v6 = vsel %vm881_vm3, %v1900_v56, 0  ;;  %7842 = vrcp.f32 %v1114_v4 }
 0x5ef   :  { %7087 = vmatpush3.bf16.xpose.msra.mxu1 %v1942_v6  ;;  %1877 = vrot.lane.b32.xlu0 %v8842_v45, %s8407_s5  ;;  %7844 = vrcp.f32 %v1108_v5  ;;  %v1105_v6 = vmul.f32 1.442695, %v1074_v43 }
 0x5f0   :  { %7846 = vrcp.f32 %v1112_v62 }
 0x5f1   :  { %v1110_v57 = vpop.xlane.xlu1 %1109 }
 0x5f2   :  { %7848 = vrcp.f32 %v1110_v57  ;;  %1879 = vrot.lane.b32.xlu1 %v8865_v60, %s8407_s5  ;;  %v1072_v57 = vsub.f32 %v8956_v21, %v1054_v41 }
 0x5f3   :  { %7850 = vpow2.f32 %v1105_v6 }
 0x5f4   :  { %v1101_v20 = vmul.f32 1.442695, %v1072_v57 }
 0x5f6   :  { %1883 = vrot.lane.b32.xlu1 %v8896_v33, %s8407_s5  ;;  %7852 = vpow2.f32 %v1101_v20 }
 0x5f8   :  { %v7843_v31 = vpop.eup %7842 }
 0x5f9   :  { %v7845_v7 = vpop.eup %7844  ;;  %v1158_v56 = vmul.f32 %v7843_v31, %v8991_v1 }
 0x5fa   :  { %v7847_v35 = vpop.eup %7846  ;;  %v1155_v4 = vmul.f32 %v7845_v7, %v8987_v59  ;;  %v1404_v59 = vsel %vm881_vm3, %v8980_v52, 0 }
 0x5fb   :  { %v1157_v5 = vmul.f32 %v7847_v35, %v8982_v40  ;;  %v1392_v40 = vsel %vm881_vm3, %v8972_v22, 0 }
 0x5fc   :  { %v7849_v9 = vpop.eup %7848 }
 0x5fd   :  { %v1156_v62 = vmul.f32 %v7849_v9, %v8995_v32  ;;  %v1172_v61 = vpack.c.bf16 %v1158_v56, %v1157_v5  ;;  %v9098_v21 = vpop.eup %7850 }
 0x5ff   :  { %v1171_v16 = vpack.c.bf16 %v1156_v62, %v1155_v4 }
 0x601   :  { %7002 = vmatprep.mubr.bf16.mxu0 %v1171_v16  ;;  %v9101_v16 = vpop.eup %7852 }
 0x602   :  { %7003 = vmatmul.mubr.bf16.vlgmr.msra.gmra.mrb[20].mxu0 %v1172_v61  ;;  %v1398_v61 = vsel %vm881_vm3, %v8974_v25, 0 }
 0x603   :  { %7019 = vmatpush3.bf16.xpose.msra.mxu0 %v1389_v54  ;;  %v1395_v54 = vsel %vm881_vm3, %v8976_v42, 0 }
 0x604   :  { %7659 = vmatprep.subr.msk.bf16.mxu0 %vm881_vm3, %v8972_v22  ;;  %v1361_v22 = vpop.permute.xlu1 %1360 }
 0x605   :  { %v1407_v32 = vsel %vm881_vm3, %v1361_v22, 0 }
 0x60b   :  { %7021 = vmatpush3.bf16.xpose.msra.mxu0 %v1392_v40 }
 0x60c   :  { %7660 = vmatprep.subr.msk.bf16.mxu0 %vm881_vm3, %v8976_v42 }
 0x60e   :  { %1137 = vadd.xlane.f32.xlu0 %v9098_v21 }
 0x612   :  { %1133 = vadd.xlane.f32.xlu0 %v9101_v16 }
 0x613   :  { %7023 = vmatpush3.bf16.xpose.msra.mxu0 %v1395_v54 }
 0x614   :  { %7661 = vmatprep.subr.msk.bf16.mxu0 %vm881_vm3, %v8974_v25 }
 0x61b   :  { %7025 = vmatpush3.bf16.xpose.msra.mxu0 %v1398_v61 }
 0x61c   :  { %7662 = vmatprep.subr.msk.bf16.mxu0 %vm881_vm3, %v8978_v46 }
 0x623   :  { %7027 = vmatpush3.bf16.xpose.msra.mxu0 %v1401_v36 }
 0x624   :  { %7663 = vmatprep.subr.msk.bf16.mxu0 %vm881_vm3, %v8980_v52 }
 0x626   :  { %v1120_v42 = vpop.xlane.xlu0 %1119 }
 0x628   :  { %1881 = vrot.lane.b32.xlu0 %v8880_v12, %s8407_s5 }
 0x62a   :  { %v1116_v25 = vpop.xlane.xlu1 %1115 }
 0x62b   :  { %7029 = vmatpush3.bf16.xpose.msra.mxu0 %v1404_v59 }
 0x62c   :  { %7664 = vmatprep.subr.msk.bf16.mxu0 %vm881_vm3, %v1361_v22  ;;  %1885 = vrot.lane.b32.xlu0 %v8908_v58, %s8407_s5 }
 0x62e   :  { %v1122_v46 = vpop.xlane.xlu0 %1121 }
 0x62f   :  { %7854 = vrcp.f32 %v1122_v46 }
 0x630   :  { %7856 = vrcp.f32 %v1116_v25 }
 0x631   :  { %7858 = vrcp.f32 %v1120_v42 }
 0x632   :  { %v1118_v1 = vpop.xlane.xlu0 %1117 }
 0x633   :  { %7860 = vrcp.f32 %v1118_v1  ;;  %7031 = vmatpush3.bf16.xpose.msra.mxu0 %v1407_v32 }
 0x636   :  { %v1128_v19 = vpop.xlane.xlu1 %1127 }
 0x639   :  { %v7855_v41 = vpop.eup %7854 }
 0x63a   :  { %v7857_v31 = vpop.eup %7856  ;;  %v1162_v35 = vmul.f32 %v7855_v41, %v9014_v39  ;;  %v1124_v43 = vpop.xlane.xlu1 %1123 }
 0x63b   :  { %v7859_v52 = vpop.eup %7858  ;;  %v1159_v56 = vmul.f32 %v7857_v31, %v9010_v0 }
 0x63c   :  { %v1161_v62 = vmul.f32 %v7859_v52, %v9006_v23 }
 0x63d   :  { %v7861_v7 = vpop.eup %7860 }
 0x63e   :  { %v1130_v9 = vpop.xlane.xlu0 %1129  ;;  %v1160_v4 = vmul.f32 %v7861_v7, %v9018_v2  ;;  %v1174_v6 = vpack.c.bf16 %v1162_v35, %v1161_v62 }
 0x63f   :  { %7862 = vrcp.f32 %v1130_v9 }
 0x640   :  { %v1173_v5 = vpack.c.bf16 %v1160_v4, %v1159_v56  ;;  %7864 = vrcp.f32 %v1124_v43 }
 0x641   :  { %7866 = vrcp.f32 %v1128_v19 }
 0x642   :  { %7006 = vmatprep.mubr.bf16.mxu0 %v1173_v5  ;;  %v1126_v57 = vpop.xlane.xlu1 %1125 }
 0x643   :  { %7868 = vrcp.f32 %v1126_v57  ;;  %7007 = vmatmul.mubr.bf16.gmra.mrb[24].mxu0 %v1174_v6 }
 0x646   :  { %v1136_v20 = vpop.xlane.xlu0 %1135 }
 0x649   :  { %v7863_v40 = vpop.eup %7862 }
 0x64a   :  { %v1902_v39 = vpop.permute.xlu0 %1901  ;;  %v1132_v54 = vpop.xlane.xlu1 %1131  ;;  %v1166_v36 = vmul.f32 %v7863_v40, %v9030_v44 }
 0x64b   :  { %v7865_v61 = vpop.eup %7864  ;;  %7669 = vmatprep.subr.msk.bf16.mxu1 %vm881_vm3, %v1902_v39  ;;  %v1945_v0 = vsel %vm881_vm3, %v1902_v39, 0 }
 0x64c   :  { %v7867_v2 = vpop.eup %7866  ;;  %7089 = vmatpush3.bf16.xpose.msra.mxu1 %v1945_v0  ;;  %v1163_v59 = vmul.f32 %v7865_v61, %v9026_v8 }
 0x64d   :  { %v7869_v23 = vpop.eup %7868  ;;  %v1165_v1 = vmul.f32 %v7867_v2, %v9022_v29 }
 0x64e   :  { %v9131_v22 = vpop.permute.xlu0 %1326  ;;  %v1363_v42 = vpop.permute.xlu1 %1362  ;;  %v1164_v25 = vmul.f32 %v7869_v23, %v9033_v15 }
 0x64f   :  { %7665 = vmatprep.subr.msk.bf16.mxu0 %vm881_vm3, %v1363_v42  ;;  %v1410_v46 = vsel %vm881_vm3, %v1363_v42, 0  ;;  %v1176_v19 = vpack.c.bf16 %v1166_v36, %v1165_v1 }
 0x650   :  { %7033 = vmatpush3.bf16.xpose.msra.mxu0 %v1410_v46  ;;  %v1175_v32 = vpack.c.bf16 %v1164_v25, %v1163_v59 }
 0x652   :  { %v1329_v41 = vpop.permute.xlu0 %1328  ;;  %7010 = vmatprep.mubr.bf16.mxu0 %v1175_v32  ;;  %v1325_v31 = vpop.permute.xlu1 %1324 }
 0x653   :  { %7011 = vmatmul.mubr.bf16.gmra.mrb[28].mxu0 %v1176_v19 }
 0x656   :  { %v1906_v44 = vpop.permute.xlu0 %1905  ;;  %v1904_v52 = vpop.permute.xlu1 %1903 }
 0x657   :  { %7670 = vmatprep.subr.msk.bf16.mxu1 %vm881_vm3, %v1904_v52  ;;  %v1948_v8 = vsel %vm881_vm3, %v1904_v52, 0  ;;  %v1951_v29 = vsel %vm881_vm3, %v1906_v44, 0 }
 0x658   :  { %7091 = vmatpush3.bf16.xpose.msra.mxu1 %v1948_v8 }
 0x659   :  { %7671 = vmatprep.subr.msk.bf16.mxu1 %vm881_vm3, %v1906_v44 }
 0x65a   :  { %v1331_v15 = vpop.permute.xlu1 %1330  ;;  %v1335_v7 = vpop.permute.xlu0 %1334 }
 0x65e   :  { %v1333_v35 = vpop.permute.xlu1 %1332  ;;  %v1337_v43 = vpop.permute.xlu0 %1336 }
 0x660   :  { %7093 = vmatpush3.bf16.xpose.msra.mxu1 %v1951_v29 }
 0x662   :  { %v1908_v9 = vpop.permute.xlu1 %1907  ;;  %v1910_v62 = vpop.permute.xlu0 %1909 }
 0x663   :  { %7672 = vmatprep.subr.msk.bf16.mxu1 %vm881_vm3, %v1908_v9  ;;  %v1954_v4 = vsel %vm881_vm3, %v1908_v9, 0  ;;  %v1957_v6 = vsel %vm881_vm3, %v1910_v62, 0 }
 0x666   :  { %v1339_v56 = vpop.permute.xlu1 %1338  ;;  %v1874_v57 = vpop.permute.xlu0 %1873 }
 0x668   :  { %7095 = vmatpush3.bf16.xpose.msra.mxu1 %v1954_v4 }
 0x669   :  { %7673 = vmatprep.subr.msk.bf16.mxu1 %vm881_vm3, %v1910_v62 }
 0x66a   :  { %v1872_v5 = vpop.permute.xlu1 %1871  ;;  %v1878_v39 = vpop.permute.xlu0 %1877 }
 0x66b   :  { %7098 = vmatprep.mubr.msk.bf16.mxu1 %vm881_vm3, %v1872_v5 }
 0x66e   :  { %v1876_v40 = vpop.permute.xlu1 %1875 }
 0x670   :  { %7097 = vmatpush3.bf16.xpose.msra.mxu1 %v1957_v6 }
 0x672   :  { %v1880_v61 = vpop.permute.xlu1 %1879 }
 0x676   :  { %v1884_v36 = vpop.permute.xlu1 %1883 }
 0x677   :  { %7099 = vmatmul.mubr.msk.bf16.vlgmr.msra.gmra.mrb[52].mxu1 %vm881_vm3, %v1874_v57 }
 0x678   :  { %7102 = vmatprep.mubr.msk.bf16.mxu1 %vm881_vm3, %v1876_v40 }
 0x67f   :  { %7103 = vmatmul.mubr.msk.bf16.gmra.mrb[56].mxu1 %vm881_vm3, %v1878_v39 }
 0x680   :  { %7106 = vmatprep.mubr.msk.bf16.mxu1 %vm881_vm3, %v1880_v61 }
 0x69b   :  { %v1138_v0 = vpop.xlane.xlu0 %1137 }
 0x69c   :  { %7870 = vrcp.f32 %v1138_v0 }
 0x69d   :  { %7872 = vrcp.f32 %v1132_v54 }
 0x69e   :  { %7874 = vrcp.f32 %v1136_v20 }
 0x69f   :  { %v1134_v2 = vpop.xlane.xlu0 %1133 }
 0x6a0   :  { %7876 = vrcp.f32 %v1134_v2 }
 0x6a3   :  { %v1882_v23 = vpop.permute.xlu0 %1881 }
 0x6a4   :  { %7107 = vmatmul.mubr.msk.bf16.gmra.mrb[60].mxu1 %vm881_vm3, %v1882_v23 }
 0x6a5   :  { %7110 = vmatprep.mubr.msk.bf16.mxu1 %vm881_vm3, %v1884_v36 }
 0x6a6   :  { %v7871_v42 = vpop.eup %7870 }
 0x6a7   :  { %v7873_v59 = vpop.eup %7872  ;;  %v1170_v1 = vmul.f32 %v7871_v42, %v9098_v21  ;;  %v1886_v32 = vpop.permute.xlu0 %1885 }
 0x6a8   :  { %v7875_v25 = vpop.eup %7874  ;;  %v1167_v19 = vmul.f32 %v7873_v59, %v9039_v30 }
 0x6a9   :  { %v1169_v20 = vmul.f32 %v7875_v25, %v9036_v18 }
 0x6aa   :  { %v7877_v46 = vpop.eup %7876 }
 0x6ab   :  { %v1168_v54 = vmul.f32 %v7877_v46, %v9101_v16  ;;  %v1178_v52 = vpack.c.bf16 %v1170_v1, %v1169_v20 }
 0x6ac   :  { %7111 = vmatmul.mubr.msk.bf16.gmra.mrb[64].mxu1 %vm881_vm3, %v1886_v32 }
 0x6ad   :  { %v1177_v44 = vpack.c.bf16 %v1168_v54, %v1167_v19 }
 0x6af   :  { %7014 = vmatprep.mubr.bf16.mxu0 %v1177_v44 }
 0x6b0   :  { %7015 = vmatmul.mubr.bf16.gmra.mrb[32].mxu0 %v1178_v52 }
 0x6b1   :  { %7034 = vmatprep.mubr.msk.bf16.mxu0 %vm881_vm3, %v1325_v31 }
 0x6b8   :  { %7035 = vmatmul.mubr.msk.bf16.vlgmr.msra.gmra.mrb[36].mxu0 %vm881_vm3, %v9131_v22 }
 0x6b9   :  { %7038 = vmatprep.mubr.msk.bf16.mxu0 %vm881_vm3, %v1329_v41 }
 0x6c0   :  { %7039 = vmatmul.mubr.msk.bf16.gmra.mrb[40].mxu0 %vm881_vm3, %v1331_v15 }
 0x6c1   :  { %7042 = vmatprep.mubr.msk.bf16.mxu0 %vm881_vm3, %v1333_v35 }
 0x6c8   :  { %7043 = vmatmul.mubr.msk.bf16.gmra.mrb[44].mxu0 %vm881_vm3, %v1335_v7 }
 0x6c9   :  { %7046 = vmatprep.mubr.msk.bf16.mxu0 %vm881_vm3, %v1337_v43 }
 0x6d0   :  { %7047 = vmatmul.mubr.msk.bf16.gmra.mrb[48].mxu0 %vm881_vm3, %v1339_v56 }
 0x6d5   :  { %v7004_v18 = vpop.f32.mrb[20].mxu0 }
 0x6d6   :  { %v1213_v30 = vpop.f32.mrb[21].mxu0 }
 0x6d7   :  { %v7005_v21 = vpop.f32.mrb[22].mxu0 }
 0x6d8   :  { %v1277_v16 = vpack.c.bf16 %v7005_v21, %v7004_v18  ;;  %v1216_v31 = vpop.f32.mrb[23].mxu0 }
 0x6d9   :  { %v1276_v8 = vpack.c.bf16 %v1216_v31, %v1213_v30 }
 0x6da   :  { %1285 = vst.msk [vmem:[#allocation3 + $0x8] sm:$0xff] %vm881_vm3, %v1277_v16 }
 0x6db   :  { %1284 = vst.msk [vmem:[#allocation3] sm:$0xff] %vm881_vm3, %v1276_v8 }
 0x716   :  { %v7008_v22 = vpop.f32.mrb[24].mxu0 }
 0x717   :  { %v1229_v41 = vpop.f32.mrb[25].mxu0 }
 0x718   :  { %v7009_v15 = vpop.f32.mrb[26].mxu0 }
 0x719   :  { %v1279_v35 = vpack.c.bf16 %v7009_v15, %v7008_v22  ;;  %v1232_v29 = vpop.f32.mrb[27].mxu0 }
 0x71a   :  { %v1278_v7 = vpack.c.bf16 %v1232_v29, %v1229_v41 }
 0x71b   :  { %1287 = vst.msk [vmem:[#allocation3 + $0x18] sm:$0xff] %vm881_vm3, %v1279_v35 }
 0x71c   :  { %1286 = vst.msk [vmem:[#allocation3 + $0x10] sm:$0xff] %vm881_vm3, %v1278_v7 }
 0x726   :  { %v7012_v43 = vpop.f32.mrb[28].mxu0 }
 0x727   :  { %v1245_v9 = vpop.f32.mrb[29].mxu0 }
 0x728   :  { %v7013_v56 = vpop.f32.mrb[30].mxu0 }
 0x729   :  { %v1281_v4 = vpack.c.bf16 %v7013_v56, %v7012_v43  ;;  %v1248_v62 = vpop.f32.mrb[31].mxu0 }
 0x72a   :  { %v1280_v5 = vpack.c.bf16 %v1248_v62, %v1245_v9 }
 0x72b   :  { %1289 = vst.msk [vmem:[#allocation3 + $0x28] sm:$0xff] %vm881_vm3, %v1281_v4 }
 0x72c   :  { %1288 = vst.msk [vmem:[#allocation3 + $0x20] sm:$0xff] %vm881_vm3, %v1280_v5 }
 0x74a   :  { %v9173_v6 = vpop.f32.mrb[52].mxu1 }
 0x74b   :  { %v9175_v57 = vpop.f32.mrb[53].mxu1 }
 0x74c   :  { %2056 = vmax.xlane.f32.xlu1 %v9175_v57  ;;  %v9178_v40 = vpop.f32.mrb[54].mxu1 }
 0x74d   :  { %v9180_v39 = vpop.f32.mrb[55].mxu1 }
 0x74e   :  { %2058 = vmax.xlane.f32.xlu0 %v9180_v39 }
 0x750   :  { %2060 = vmax.xlane.f32.xlu1 %v9173_v6 }
 0x752   :  { %2062 = vmax.xlane.f32.xlu0 %v9178_v40  ;;  %v9185_v61 = vpop.f32.mrb[56].mxu1 }
 0x753   :  { %v9187_v0 = vpop.f32.mrb[57].mxu1 }
 0x754   :  { %2064 = vmax.xlane.f32.xlu1 %v9187_v0  ;;  %v9190_v2 = vpop.f32.mrb[58].mxu1 }
 0x755   :  { %v9192_v23 = vpop.f32.mrb[59].mxu1 }
 0x756   :  { %2066 = vmax.xlane.f32.xlu0 %v9192_v23 }
 0x758   :  { %2068 = vmax.xlane.f32.xlu1 %v9185_v61 }
 0x75a   :  { %2070 = vmax.xlane.f32.xlu0 %v9190_v2 }
 0x769   :  { %1669 = vrot.lane.b32.xlu1 %v8770_v28, %s8414_s22 }
 0x76d   :  { %1673 = vrot.lane.b32.xlu1 %v8798_v51, %s8414_s22 }
 0x777   :  { %v9201_v36 = vpop.f32.mrb[60].mxu1 }
 0x778   :  { %v9203_v42 = vpop.f32.mrb[61].mxu1 }
 0x779   :  { %2072 = vmax.xlane.f32.xlu0 %v9203_v42  ;;  %v9206_v59 = vpop.f32.mrb[62].mxu1 }
 0x77a   :  { %v9208_v25 = vpop.f32.mrb[63].mxu1 }
 0x77d   :  { %2074 = vmax.xlane.f32.xlu0 %v9208_v25 }
 0x77f   :  { %v9211_v46 = vpop.f32.mrb[64].mxu1 }
 0x780   :  { %v9213_v1 = vpop.f32.mrb[65].mxu1 }
 0x781   :  { %2076 = vmax.xlane.f32.xlu0 %v9201_v36  ;;  %v9216_v32 = vpop.f32.mrb[66].mxu1 }
 0x782   :  { %v9218_v19 = vpop.f32.mrb[67].mxu1 }
 0x783   :  { %v7016_v54 = vpop.f32.mrb[32].mxu0 }
 0x784   :  { %v1261_v20 = vpop.f32.mrb[33].mxu0 }
 0x785   :  { %v7017_v44 = vpop.f32.mrb[34].mxu0  ;;  %2078 = vmax.xlane.f32.xlu0 %v9206_v59 }
 0x786   :  { %v1283_v52 = vpack.c.bf16 %v7017_v44, %v7016_v54  ;;  %v1264_v18 = vpop.f32.mrb[35].mxu0 }
 0x787   :  { %v1282_v30 = vpack.c.bf16 %v1264_v18, %v1261_v20 }
 0x788   :  { %1291 = vst.msk [vmem:[#allocation3 + $0x38] sm:$0xff] %vm881_vm3, %v1283_v52 }
 0x789   :  { %1290 = vst.msk [vmem:[#allocation3 + $0x30] sm:$0xff] %vm881_vm3, %v1282_v30 }
 0x78b   :  { %v9223_v21 = vpop.f32.mrb[36].mxu0 }
 0x78c   :  { %v9225_v16 = vpop.f32.mrb[37].mxu0 }
 0x78d   :  { %v9227_v31 = vpop.f32.mrb[38].mxu0 }
 0x78e   :  { %v9229_v8 = vpop.f32.mrb[39].mxu0 }
 0x791   :  { %2082 = vmax.xlane.f32.xlu1 %v9218_v19 }
 0x793   :  { %v9232_v22 = vpop.f32.mrb[40].mxu0 }
 0x794   :  { %v9234_v41 = vpop.f32.mrb[41].mxu0 }
 0x795   :  { %v9236_v15 = vpop.f32.mrb[42].mxu0 }
 0x796   :  { %v9238_v35 = vpop.f32.mrb[43].mxu0 }
 0x79b   :  { %v9240_v29 = vpop.f32.mrb[44].mxu0  ;;  %1671 = vrot.lane.b32.xlu0 %v8768_v27, %s8414_s22 }
 0x79c   :  { %v9244_v7 = vpop.f32.mrb[45].mxu0 }
 0x79d   :  { %v9246_v43 = vpop.f32.mrb[46].mxu0 }
 0x79e   :  { %v9248_v9 = vpop.f32.mrb[47].mxu0 }
 0x7a2   :  { %1677 = vrot.lane.b32.xlu1 %v8824_v55, %s8414_s22 }
 0x7a3   :  { %v9252_v56 = vpop.f32.mrb[48].mxu0 }
 0x7a4   :  { %v9254_v4 = vpop.f32.mrb[49].mxu0 }
 0x7a5   :  { %v9256_v62 = vpop.f32.mrb[50].mxu0 }
 0x7a6   :  { %v9258_v5 = vpop.f32.mrb[51].mxu0  ;;  %1681 = vrot.lane.b32.xlu1 %v8850_v38, %s8414_s22 }
 0x7aa   :  { %2216 = vrot.lane.b32.xlu1 %v8770_v28, %s8407_s5 }
 0x7ae   :  { %2220 = vrot.lane.b32.xlu1 %v8798_v51, %s8407_s5 }
 0x7ba   :  { %2080 = vmax.xlane.f32.xlu0 %v9213_v1 }
 0x7be   :  { %2084 = vmax.xlane.f32.xlu0 %v9211_v46 }
 0x7c2   :  { %2086 = vmax.xlane.f32.xlu0 %v9216_v32 }
 0x7d8   :  { %1675 = vrot.lane.b32.xlu0 %v8795_v49, %s8414_s22 }
 0x7d9   :  { %v2057_v54 = vpop.xlane.xlu1 %2056 }
 0x7da   :  { %v2088_v44 = vsub.f32 %v9175_v57, %v2057_v54 }
 0x7db   :  { %v2059_v57 = vpop.xlane.xlu0 %2058 }
 0x7dc   :  { %1679 = vrot.lane.b32.xlu0 %v8821_v14, %s8414_s22  ;;  %v2104_v10 = vmul.f32 1.442695, %v2088_v44 }
 0x7dd   :  { %v2061_v20 = vpop.xlane.xlu1 %2060 }
 0x7de   :  { %v2090_v52 = vsub.f32 %v9173_v6, %v2061_v20 }
 0x7df   :  { %v2063_v20 = vpop.xlane.xlu0 %2062 }
 0x7e0   :  { %v2108_v18 = vmul.f32 1.442695, %v2090_v52  ;;  %1683 = vrot.lane.b32.xlu0 %v8847_v37, %s8414_s22  ;;  %v2091_v44 = vsub.f32 %v9178_v40, %v2063_v20 }
 0x7e1   :  { %v2065_v30 = vpop.xlane.xlu1 %2064 }
 0x7e2   :  { %7878 = vpow2.f32 %v2108_v18  ;;  %v2110_v52 = vmul.f32 1.442695, %v2091_v44 }
 0x7e3   :  { %7880 = vpow2.f32 %v2104_v10  ;;  %v2089_v10 = vsub.f32 %v9180_v39, %v2059_v57 }
 0x7e4   :  { %2218 = vrot.lane.b32.xlu0 %v8768_v27, %s8407_s5  ;;  %7882 = vpow2.f32 %v2110_v52 }
 0x7e5   :  { %v9279_v3 = vpop.xlane.xlu1 %2068  ;;  %v2106_v18 = vmul.f32 1.442695, %v2089_v10 }
 0x7e7   :  { %7884 = vpow2.f32 %v2106_v18 }
 0x7e8   :  { %2222 = vrot.lane.b32.xlu0 %v8795_v49, %s8407_s5 }
 0x7e9   :  { %v1670_v58 = vpop.permute.xlu1 %1669 }
 0x7ea   :  { %7050 = vmatprep.subr.bf16.mxu0 %v1670_v58 }
 0x7eb   :  { %7051 = vmatpush3.bf16.msra.mxu0 %v1670_v58  ;;  %v9293_v58 = vpop.xlane.xlu0 %2066 }
 0x7ec   :  { %v9283_v6 = vpop.eup %7878 }
 0x7ed   :  { %11417 = vst [vmem:[#allocation25_spill] sm:$0xff] %v9283_v6  ;;  %2140 = vadd.xlane.f32.xlu1 %v9283_v6  ;;  %v9286_v54 = vpop.eup %7880  ;;  %v1674_v44 = vpop.permute.xlu1 %1673 }
 0x7ee   :  { %11418 = vst [vmem:[#allocation26_spill] sm:$0xff] %v9286_v54  ;;  %v9298_v40 = vpop.eup %7882 }
 0x7ef   :  { %v2071_v6 = vpop.xlane.xlu0 %2070  ;;  %11419 = vst [vmem:[#allocation27_spill] sm:$0xff] %v9298_v40 }
 0x7f1   :  { %2136 = vadd.xlane.f32.xlu1 %v9286_v54  ;;  %v9304_v39 = vpop.eup %7884 }
 0x7f2   :  { %11420 = vst [vmem:[#allocation28_spill] sm:$0xff] %v9304_v39 }
 0x7f5   :  { %1509 = vmax.xlane.f32.xlu1 %v9225_v16 }
 0x7f9   :  { %1521 = vmax.xlane.f32.xlu1 %v9232_v22 }
 0x7fd   :  { %1517 = vmax.xlane.f32.xlu1 %v9234_v41 }
 0x801   :  { %1529 = vmax.xlane.f32.xlu1 %v9240_v29 }
 0x805   :  { %1525 = vmax.xlane.f32.xlu1 %v9244_v7 }
 0x806   :  { %v9300_v20 = vpop.xlane.xlu0 %2072 }
 0x807   :  { %2142 = vadd.xlane.f32.xlu0 %v9298_v40  ;;  %v2092_v40 = vsub.f32 %v9187_v0, %v2065_v30 }
 0x809   :  { %1537 = vmax.xlane.f32.xlu1 %v9252_v56  ;;  %v2112_v52 = vmul.f32 1.442695, %v2092_v40 }
 0x80a   :  { %v9306_v57 = vpop.xlane.xlu0 %2074 }
 0x80b   :  { %2138 = vadd.xlane.f32.xlu0 %v9304_v39  ;;  %v2095_v39 = vsub.f32 %v9190_v2, %v2071_v6  ;;  %7886 = vpow2.f32 %v2112_v52 }
 0x80d   :  { %1533 = vmax.xlane.f32.xlu1 %v9254_v4 }
 0x80e   :  { %v9312_v10 = vpop.xlane.xlu0 %2076 }
 0x80f   :  { %1513 = vmax.xlane.f32.xlu0 %v9223_v21 }
 0x812   :  { %v9317_v18 = vpop.xlane.xlu0 %2078 }
 0x813   :  { %1515 = vmax.xlane.f32.xlu0 %v9227_v31 }
 0x816   :  { %v1672_v54 = vpop.permute.xlu0 %1671 }
 0x817   :  { %1511 = vmax.xlane.f32.xlu0 %v9229_v8  ;;  %7052 = vmatprep.subr.bf16.mxu0 %v1672_v54 }
 0x818   :  { %7053 = vmatpush3.bf16.msra.mxu0 %v1672_v54  ;;  %v2118_v54 = vmul.f32 1.442695, %v2095_v39 }
 0x819   :  { %7054 = vmatprep.subr.bf16.mxu0 %v1674_v44 }
 0x81a   :  { %7888 = vpow2.f32 %v2118_v54 }
 0x81b   :  { %1523 = vmax.xlane.f32.xlu0 %v9236_v15 }
 0x81c   :  { %7055 = vmatpush3.bf16.msra.mxu0 %v1674_v44  ;;  %v9333_v44 = vpop.eup %7886 }
 0x81d   :  { %11421 = vst [vmem:[#allocation29_spill] sm:$0xff] %v9333_v44 }
 0x81e   :  { %2224 = vrot.lane.b32.xlu1 %v8824_v55, %s8407_s5  ;;  %v9353_v40 = vpop.xlane.xlu1 %2082 }
 0x81f   :  { %1519 = vmax.xlane.f32.xlu0 %v9238_v35 }
 0x823   :  { %1531 = vmax.xlane.f32.xlu0 %v9246_v43 }
 0x824   :  { %v9338_v55 = vpop.eup %7888 }
 0x825   :  { %11422 = vst [vmem:[#allocation30_spill] sm:$0xff] %v9338_v55 }
 0x827   :  { %1527 = vmax.xlane.f32.xlu0 %v9248_v9 }
 0x83d   :  { %2226 = vrot.lane.b32.xlu0 %v8821_v14, %s8407_s5 }
 0x841   :  { %2228 = vrot.lane.b32.xlu0 %v8850_v38, %s8407_s5 }
 0x842   :  { %2144 = vadd.xlane.f32.xlu1 %v9333_v44 }
 0x845   :  { %2230 = vrot.lane.b32.xlu0 %v8847_v37, %s8407_s5  ;;  %v1678_v37 = vpop.permute.xlu1 %1677 }
 0x846   :  { %2150 = vadd.xlane.f32.xlu1 %v9338_v55 }
 0x847   :  { %v9343_v0 = vpop.xlane.xlu0 %2080 }
 0x849   :  { %2442 = vrot.lane.b32.xlu0 %v8766_v26, %s8415_s23  ;;  %v1682_v26 = vpop.permute.xlu1 %1681 }
 0x84b   :  { %v9349_v30 = vpop.xlane.xlu0 %2084 }
 0x84d   :  { %v9359_v6 = vpop.permute.xlu1 %2216 }
 0x84f   :  { %v9355_v39 = vpop.xlane.xlu0 %2086 }
 0x853   :  { %v1676_v54 = vpop.permute.xlu0 %1675 }
 0x854   :  { %7056 = vmatprep.subr.bf16.mxu0 %v1676_v54 }
 0x855   :  { %7057 = vmatpush3.bf16.msra.mxu0 %v1676_v54  ;;  %v9364_v54 = vpop.permute.xlu1 %2220 }
 0x856   :  { %7058 = vmatprep.subr.bf16.mxu0 %v1678_v37 }
 0x857   :  { %v1680_v2 = vpop.permute.xlu0 %1679 }
 0x859   :  { %7059 = vmatpush3.bf16.msra.mxu0 %v1678_v37 }
 0x85a   :  { %7060 = vmatprep.subr.bf16.mxu0 %v1680_v2 }
 0x85b   :  { %v1684_v38 = vpop.permute.xlu0 %1683 }
 0x85d   :  { %7061 = vmatpush3.bf16.msra.mxu0 %v1680_v2 }
 0x85e   :  { %7062 = vmatprep.subr.bf16.mxu0 %v1682_v26 }
 0x85f   :  { %v9373_v55 = vpop.permute.xlu0 %2218 }
 0x861   :  { %7063 = vmatpush3.bf16.msra.mxu0 %v1682_v26 }
 0x862   :  { %7064 = vmatprep.subr.bf16.mxu0 %v1684_v38 }
 0x865   :  { %7065 = vmatpush3.bf16.msra.mxu0 %v1684_v38 }
 0x866   :  { %7114 = vmatprep.subr.bf16.mxu0 %v9359_v6 }
 0x868   :  { %1539 = vmax.xlane.f32.xlu0 %v9256_v62 }
 0x86c   :  { %1535 = vmax.xlane.f32.xlu0 %v9258_v5 }
 0x87a   :  { %v9366_v52 = vpop.xlane.xlu1 %2140 }
 0x87b   :  { %11423 = vst [vmem:[#allocation31_spill] sm:$0xff] %v9366_v52  ;;  %v2093_v52 = vsub.f32 %v9192_v23, %v9293_v58 }
 0x87e   :  { %v9368_v37 = vpop.xlane.xlu1 %2136 }
 0x87f   :  { %11424 = vst [vmem:[#allocation32_spill] sm:$0xff] %v9368_v37  ;;  %v9378_v37 = vpop.permute.xlu0 %2222 }
 0x882   :  { %2444 = vrot.lane.b32.xlu0 %v8793_v48, %s8415_s23  ;;  %v1510_v2 = vpop.xlane.xlu1 %1509  ;;  %v2114_v48 = vmul.f32 1.442695, %v2093_v52 }
 0x883   :  { %v1541_v26 = vsub.f32 %v9225_v16, %v1510_v2  ;;  %v2094_v16 = vsub.f32 %v9185_v61, %v9279_v3 }
 0x885   :  { %v1557_v14 = vmul.f32 1.442695, %v1541_v26  ;;  %v2116_v2 = vmul.f32 1.442695, %v2094_v16 }
 0x886   :  { %v1522_v38 = vpop.xlane.xlu1 %1521 }
 0x887   :  { %7890 = vpow2.f32 %v1557_v14 }
 0x88a   :  { %v1518_v44 = vpop.xlane.xlu1 %1517 }
 0x88b   :  { %v1545_v12 = vsub.f32 %v9234_v41, %v1518_v44 }
 0x88d   :  { %v1565_v45 = vmul.f32 1.442695, %v1545_v12 }
 0x88e   :  { %v1530_v16 = vpop.xlane.xlu1 %1529 }
 0x88f   :  { %7892 = vpow2.f32 %v1565_v45 }
 0x890   :  { %7894 = vpow2.f32 %v2114_v48  ;;  %v1547_v48 = vsub.f32 %v9232_v22, %v1522_v38  ;;  %v1551_v22 = vsub.f32 %v9240_v29, %v1530_v16 }
 0x891   :  { %v9380_v50 = vpop.eup %7890  ;;  %7896 = vpow2.f32 %v2116_v2 }
 0x892   :  { %1589 = vadd.xlane.f32.xlu1 %v9380_v50 }
 0x894   :  { %v9385_v14 = vpop.xlane.xlu0 %2142 }
 0x895   :  { %11425 = vst [vmem:[#allocation33_spill] sm:$0xff] %v9385_v14 }
 0x898   :  { %v9387_v41 = vpop.xlane.xlu0 %2138 }
 0x899   :  { %v9389_v12 = vpop.eup %7892 }
 0x89a   :  { %1597 = vadd.xlane.f32.xlu1 %v9389_v12  ;;  %v9393_v44 = vpop.eup %7894 }
 0x89b   :  { %v9397_v26 = vpop.eup %7896 }
 0x89c   :  { %v1514_v45 = vpop.xlane.xlu0 %1513 }
 0x89d   :  { %v1543_v23 = vsub.f32 %v9223_v21, %v1514_v45  ;;  %v1569_v45 = vmul.f32 1.442695, %v1547_v48  ;;  %v1577_v48 = vmul.f32 1.442695, %v1551_v22 }
 0x89f   :  { %v1561_v58 = vmul.f32 1.442695, %v1543_v23 }
 0x8a0   :  { %v1516_v3 = vpop.xlane.xlu0 %1515 }
 0x8a1   :  { %7898 = vpow2.f32 %v1561_v58  ;;  %v1544_v61 = vsub.f32 %v9227_v31, %v1516_v3  ;;  %2146 = vadd.xlane.f32.xlu0 %v9393_v44  ;;  %v1526_v58 = vpop.xlane.xlu1 %1525 }
 0x8a3   :  { %v1563_v52 = vmul.f32 1.442695, %v1544_v61 }
 0x8a4   :  { %v1512_v2 = vpop.xlane.xlu0 %1511 }
 0x8a5   :  { %7900 = vpow2.f32 %v1563_v52  ;;  %v1542_v14 = vsub.f32 %v9229_v8, %v1512_v2  ;;  %2148 = vadd.xlane.f32.xlu0 %v9397_v26  ;;  %v1549_v2 = vsub.f32 %v9244_v7, %v1526_v58 }
 0x8a7   :  { %v1559_v21 = vmul.f32 1.442695, %v1542_v14 }
 0x8a8   :  { %v1524_v23 = vpop.xlane.xlu0 %1523 }
 0x8a9   :  { %7902 = vpow2.f32 %v1559_v21  ;;  %v1548_v31 = vsub.f32 %v9236_v15, %v1524_v23  ;;  %v1538_v15 = vpop.xlane.xlu1 %1537  ;;  %v1573_v23 = vmul.f32 1.442695, %v1549_v2 }
 0x8aa   :  { %7904 = vpow2.f32 %v1569_v45 }
 0x8ab   :  { %v9403_v3 = vpop.eup %7898  ;;  %v1571_v61 = vmul.f32 1.442695, %v1548_v31 }
 0x8ac   :  { %v1520_v38 = vpop.xlane.xlu0 %1519  ;;  %1593 = vadd.xlane.f32.xlu0 %v9403_v3 }
 0x8ad   :  { %7906 = vpow2.f32 %v1571_v61  ;;  %v1546_v8 = vsub.f32 %v9238_v35, %v1520_v38  ;;  %v1555_v35 = vsub.f32 %v9252_v56, %v1538_v15  ;;  %v1534_v61 = vpop.xlane.xlu1 %1533 }
 0x8af   :  { %v9408_v52 = vpop.eup %7900  ;;  %v1567_v14 = vmul.f32 1.442695, %v1546_v8  ;;  %v1553_v8 = vsub.f32 %v9254_v4, %v1534_v61 }
 0x8b0   :  { %v1532_v21 = vpop.xlane.xlu0 %1531  ;;  %1595 = vadd.xlane.f32.xlu0 %v9408_v52 }
 0x8b1   :  { %7908 = vpow2.f32 %v1567_v14  ;;  %v1552_v45 = vsub.f32 %v9246_v43, %v1532_v21  ;;  %v1585_v43 = vmul.f32 1.442695, %v1555_v35  ;;  %v1581_v56 = vmul.f32 1.442695, %v1553_v8 }
 0x8b2   :  { %7910 = vpow2.f32 %v1577_v48  ;;  %v11428_v35 = vsub.f32 %v9206_v59, %v9317_v18 }
 0x8b3   :  { %v9413_v29 = vpop.eup %7902  ;;  %v1579_v16 = vmul.f32 1.442695, %v1552_v45 }
 0x8b4   :  { %v1528_v31 = vpop.xlane.xlu0 %1527  ;;  %1591 = vadd.xlane.f32.xlu0 %v9413_v29  ;;  %v9418_v58 = vpop.eup %7904 }
 0x8b5   :  { %7912 = vpow2.f32 %v1579_v16  ;;  %v1550_v7 = vsub.f32 %v9248_v9, %v1528_v31  ;;  %v2096_v9 = vsub.f32 %v9203_v42, %v9300_v20  ;;  %v11426_v42 = vsub.f32 %v9208_v25, %v9306_v57 }
 0x8b6   :  { %7914 = vpow2.f32 %v1573_v23  ;;  %v11427_v16 = vsub.f32 %v9201_v36, %v9312_v10 }
 0x8b7   :  { %v9420_v22 = vpop.eup %7906  ;;  %v1575_v38 = vmul.f32 1.442695, %v1550_v7  ;;  %v2120_v15 = vmul.f32 1.442695, %v2096_v9  ;;  %v2122_v20 = vmul.f32 1.442695, %v11426_v42 }
 0x8b8   :  { %1601 = vadd.xlane.f32.xlu0 %v9418_v58  ;;  %1603 = vadd.xlane.f32.xlu1 %v9420_v22  ;;  %v2124_v23 = vmul.f32 1.442695, %v11427_v16  ;;  %v2126_v7 = vmul.f32 1.442695, %v11428_v35  ;;  %v9469_v61 = vpop.permute.xlu0 %2226  ;;  %v9507_v35 = vpop.permute.xlu1 %2224 }
 0x8b9   :  { %7916 = vpow2.f32 %v1575_v38 }
 0x8ba   :  { %7918 = vpow2.f32 %v1585_v43 }
 0x8bb   :  { %v9425_v14 = vpop.eup %7908  ;;  %7920 = vpow2.f32 %v1581_v56 }
 0x8bc   :  { %1599 = vadd.xlane.f32.xlu1 %v9425_v14  ;;  %v9430_v48 = vpop.eup %7910  ;;  %7922 = vpow2.f32 %v2120_v15  ;;  %v9471_v59 = vpop.permute.xlu0 %2228 }
 0x8bd   :  { %7924 = vpow2.f32 %v2122_v20  ;;  %v2101_v20 = vsub.f32 %v9218_v19, %v9353_v40 }
 0x8be   :  { %7926 = vpow2.f32 %v2124_v23 }
 0x8bf   :  { %v9432_v2 = vpop.eup %7912  ;;  %7928 = vpow2.f32 %v2126_v7  ;;  %v2130_v16 = vmul.f32 1.442695, %v2101_v20 }
 0x8c0   :  { %1611 = vadd.xlane.f32.xlu0 %v9432_v2  ;;  %1609 = vadd.xlane.f32.xlu1 %v9430_v48  ;;  %v9436_v4 = vpop.eup %7914  ;;  %v9473_v18 = vpop.permute.xlu0 %2230 }
 0x8c3   :  { %v9438_v21 = vpop.eup %7916 }
 0x8c4   :  { %1607 = vadd.xlane.f32.xlu0 %v9438_v21  ;;  %1605 = vadd.xlane.f32.xlu1 %v9436_v4  ;;  %v9445_v45 = vpop.eup %7918  ;;  %v9477_v38 = vpop.permute.xlu0 %2442 }
 0x8c5   :  { %v9451_v31 = vpop.eup %7920 }
 0x8c6   :  { %v9457_v25 = vpop.eup %7922 }
 0x8c7   :  { %v9460_v57 = vpop.eup %7924 }
 0x8c8   :  { %1617 = vadd.xlane.f32.xlu1 %v9445_v45  ;;  %v9463_v36 = vpop.eup %7926 }
 0x8c9   :  { %v9466_v10 = vpop.eup %7928 }
 0x8cc   :  { %1613 = vadd.xlane.f32.xlu1 %v9451_v31 }
 0x8d0   :  { %2152 = vadd.xlane.f32.xlu1 %v9457_v25 }
 0x8d4   :  { %2154 = vadd.xlane.f32.xlu1 %v9460_v57 }
 0x8d8   :  { %2156 = vadd.xlane.f32.xlu1 %v9463_v36 }
 0x8dc   :  { %2158 = vadd.xlane.f32.xlu1 %v9466_v10 }
 0x8ed   :  { %2448 = vrot.lane.b32.xlu1 %v8845_v47, %s8415_s23 }
 0x8f5   :  { %v1540_v43 = vpop.xlane.xlu0 %1539 }
 0x8f6   :  { %v1556_v8 = vsub.f32 %v9256_v62, %v1540_v43 }
 0x8f8   :  { %v1587_v9 = vmul.f32 1.442695, %v1556_v8 }
 0x8f9   :  { %v1536_v56 = vpop.xlane.xlu0 %1535 }
 0x8fa   :  { %7930 = vpow2.f32 %v1587_v9  ;;  %v1554_v15 = vsub.f32 %v9258_v5, %v1536_v56  ;;  %v11429_v5 = vsub.f32 %v9213_v1, %v9343_v0 }
 0x8fc   :  { %v1583_v42 = vmul.f32 1.442695, %v1554_v15  ;;  %v2128_v40 = vmul.f32 1.442695, %v11429_v5 }
 0x8fd   :  { %v9500_v19 = vpop.permute.xlu0 %2444 }
 0x8fe   :  { %7932 = vpow2.f32 %v1583_v42 }
 0x8ff   :  { %7934 = vpow2.f32 %v2130_v16 }
 0x900   :  { %7936 = vpow2.f32 %v2128_v40 }
 0x904   :  { %v9483_v23 = vpop.eup %7930 }
 0x905   :  { %1619 = vadd.xlane.f32.xlu0 %v9483_v23 }
 0x908   :  { %v9486_v47 = vpop.eup %7932 }
 0x909   :  { %1615 = vadd.xlane.f32.xlu0 %v9486_v47  ;;  %v9489_v62 = vpop.eup %7934 }
 0x911   :  { %2162 = vadd.xlane.f32.xlu1 %v9489_v62 }
 0x91f   :  { %2446 = vrot.lane.b32.xlu0 %v8819_v13, %s8415_s23 }
 0x922   :  { %2452 = vrot.lane.b32.xlu1 %v8882_v17, %s8415_s23  ;;  %v9516_v17 = vpop.xlane.xlu1 %2144 }
 0x926   :  { %2418 = vrot.lane.b32.xlu1 %v8763_v24, %s8415_s23  ;;  %v11430_v24 = vsub.f32 %v9211_v46, %v9349_v30  ;;  %v9525_v0 = vpop.xlane.xlu1 %2150  ;;  %v9529_v46 = vpop.eup %7936 }
 0x92a   :  { %2422 = vrot.lane.b32.xlu1 %v8816_v11, %s8415_s23  ;;  %v2132_v11 = vmul.f32 1.442695, %v11430_v24  ;;  %v1590_v30 = vpop.xlane.xlu1 %1589 }
 0x92c   :  { %7938 = vpow2.f32 %v2132_v11 }
 0x92e   :  { %2426 = vrot.lane.b32.xlu1 %v8865_v60, %s8415_s23  ;;  %v9509_v13 = vpop.xlane.xlu0 %2146  ;;  %v11431_v60 = vsub.f32 %v9216_v32, %v9355_v39  ;;  %v1598_v32 = vpop.xlane.xlu1 %1597 }
 0x930   :  { %v2134_v1 = vmul.f32 1.442695, %v11431_v60 }
 0x932   :  { %2430 = vrot.lane.b32.xlu1 %v8896_v33, %s8415_s23  ;;  %v9518_v7 = vpop.xlane.xlu0 %2148  ;;  %7940 = vpow2.f32 %v2134_v1 }
 0x936   :  { %2763 = vrot.lane.b32.xlu1 %v8770_v28, %s8415_s23  ;;  %v9534_v28 = vpop.eup %7938 }
 0x939   :  { %v1594_v33 = vpop.xlane.xlu0 %1593 }
 0x93a   :  { %2765 = vrot.lane.b32.xlu1 %v8768_v27, %s8415_s23 }
 0x93c   :  { %v9539_v27 = vpop.eup %7940 }
 0x93d   :  { %v1596_v43 = vpop.xlane.xlu0 %1595 }
 0x93e   :  { %2160 = vadd.xlane.f32.xlu0 %v9529_v46  ;;  %2767 = vrot.lane.b32.xlu1 %v8798_v51, %s8415_s23  ;;  %7942 = vrcp.f32 %v1596_v43 }
 0x93f   :  { %7944 = vrcp.f32 %v1590_v30 }
 0x940   :  { %7946 = vrcp.f32 %v1594_v33 }
 0x941   :  { %v1592_v39 = vpop.xlane.xlu0 %1591 }
 0x942   :  { %7948 = vrcp.f32 %v1592_v39  ;;  %2164 = vadd.xlane.f32.xlu0 %v9534_v28  ;;  %2769 = vrot.lane.b32.xlu1 %v8795_v49, %s8415_s23 }
 0x945   :  { %v1602_v8 = vpop.xlane.xlu0 %1601  ;;  %v1604_v9 = vpop.xlane.xlu1 %1603 }
 0x946   :  { %7950 = vrcp.f32 %v1602_v8  ;;  %2166 = vadd.xlane.f32.xlu0 %v9539_v27 }
 0x947   :  { %7952 = vrcp.f32 %v1604_v9 }
 0x948   :  { %7954 = vrcp.f32 %v1598_v32  ;;  %v7943_v51 = vpop.eup %7942 }
 0x949   :  { %v1600_v56 = vpop.xlane.xlu1 %1599  ;;  %v7945_v15 = vpop.eup %7944  ;;  %v1640_v16 = vmul.f32 %v7943_v51, %v9408_v52 }
 0x94a   :  { %7956 = vrcp.f32 %v1600_v56  ;;  %v7947_v42 = vpop.eup %7946  ;;  %v1637_v49 = vmul.f32 %v7945_v15, %v9380_v50 }
 0x94b   :  { %v1639_v11 = vmul.f32 %v7947_v42, %v9403_v3 }
 0x94c   :  { %v7949_v20 = vpop.eup %7948 }
 0x94d   :  { %v1612_v5 = vpop.xlane.xlu0 %1611  ;;  %v1610_v40 = vpop.xlane.xlu1 %1609  ;;  %v1638_v24 = vmul.f32 %v7949_v20, %v9413_v29  ;;  %v1654_v33 = vpack.c.bf16 %v1640_v16, %v1639_v11  ;;  %v6444_v20 = vld [vmem:[%s11343_s0 + $0x88] sm:$0xff]  ;;  %v11437_v11 = vld [vmem:[#allocation33_spill] sm:$0xff] }
 0x94e   :  { %7958 = vrcp.f32 %v1612_v5 }
 0x94f   :  { %v1653_v60 = vpack.c.bf16 %v1638_v24, %v1637_v49  ;;  %7960 = vrcp.f32 %v1610_v40  ;;  %v6445_v40 = vld [vmem:[%s11343_s0 + $0x90] sm:$0xff] }
 0x950   :  { %v7951_v1 = vpop.eup %7950 }
 0x951   :  { %v7953_v30 = vpop.eup %7952  ;;  %v1608_v43 = vpop.xlane.xlu0 %1607  ;;  %7066 = vmatprep.mubr.bf16.mxu0 %v1653_v60  ;;  %v1643_v3 = vmul.f32 %v7951_v1, %v9418_v58 }
 0x952   :  { %v1606_v32 = vpop.xlane.xlu1 %1605  ;;  %v7955_v39 = vpop.eup %7954  ;;  %7962 = vrcp.f32 %v1608_v43  ;;  %7067 = vmatmul.mubr.bf16.vlgmr.msra.gmra.mrb[52].mxu0 %v1654_v33  ;;  %v1644_v52 = vmul.f32 %v7953_v30, %v9420_v22  ;;  %v11438_v33 = vld [vmem:[#allocation31_spill] sm:$0xff] }
 0x953   :  { %7964 = vrcp.f32 %v1606_v32  ;;  %7115 = vmatpush3.bf16.msra.mxu0 %v9359_v6  ;;  %v1641_v29 = vmul.f32 %v7955_v39, %v9389_v12  ;;  %v6447_v32 = vld [vmem:[%s11343_s0 + $0xa0] sm:$0xff] }
 0x954   :  { %v7957_v50 = vpop.eup %7956  ;;  %7116 = vmatprep.subr.bf16.mxu0 %v9373_v55  ;;  %v1656_v51 = vpack.c.bf16 %v1644_v52, %v1643_v3 }
 0x955   :  { %v1642_v8 = vmul.f32 %v7957_v50, %v9425_v14 }
 0x957   :  { %7117 = vmatpush3.bf16.msra.mxu0 %v9373_v55  ;;  %v1655_v9 = vpack.c.bf16 %v1642_v8, %v1641_v29  ;;  %v11439_v8 = vld [vmem:[#allocation28_spill] sm:$0xff] }
 0x958   :  { %7118 = vmatprep.subr.bf16.mxu0 %v9364_v54  ;;  %v7959_v56 = vpop.eup %7958 }
 0x959   :  { %7070 = vmatprep.mubr.bf16.mxu0 %v1655_v9  ;;  %v7961_v6 = vpop.eup %7960  ;;  %v1648_v22 = vmul.f32 %v7959_v56, %v9432_v2 }
 0x95a   :  { %7071 = vmatmul.mubr.bf16.gmra.mrb[56].mxu0 %v1656_v51  ;;  %v1647_v55 = vmul.f32 %v7961_v6, %v9430_v48  ;;  %v1618_v48 = vpop.xlane.xlu1 %1617  ;;  %v11440_v6 = vld [vmem:[#allocation26_spill] sm:$0xff] }
 0x95b   :  { %7119 = vmatpush3.bf16.msra.mxu0 %v9364_v54 }
 0x95c   :  { %v7963_v15 = vpop.eup %7962  ;;  %7120 = vmatprep.subr.bf16.mxu0 %v9378_v37  ;;  %2450 = vrot.lane.b32.xlu0 %v8867_v63, %s8415_s23  ;;  %v1658_v42 = vpack.c.bf16 %v1648_v22, %v1647_v55  ;;  %v11432_v63 = vld [vmem:[#allocation17_spill] sm:$0xff]  ;;  %v11441_v22 = vld [vmem:[#allocation27_spill] sm:$0xff] }
 0x95d   :  { %v7965_v12 = vpop.eup %7964  ;;  %v1646_v58 = vmul.f32 %v7963_v15, %v9438_v21 }
 0x95e   :  { %v1645_v14 = vmul.f32 %v7965_v12, %v9436_v4  ;;  %v1614_v2 = vpop.xlane.xlu1 %1613 }
 0x95f   :  { %7121 = vmatpush3.bf16.msra.mxu0 %v9378_v37  ;;  %v11435_v37 = vld [vmem:[#allocation24_spill] sm:$0xff] }
 0x960   :  { %7122 = vmatprep.subr.bf16.mxu0 %v9507_v35  ;;  %2454 = vrot.lane.b32.xlu0 %v8898_v34, %s8415_s23  ;;  %v1657_v54 = vpack.c.bf16 %v1646_v58, %v1645_v14  ;;  %v11433_v34 = vld [vmem:[#allocation20_spill] sm:$0xff] }
 0x962   :  { %7074 = vmatprep.mubr.bf16.mxu0 %v1657_v54  ;;  %v2153_v4 = vpop.xlane.xlu1 %2152 }
 0x963   :  { %7075 = vmatmul.mubr.bf16.gmra.mrb[60].mxu0 %v1658_v42  ;;  %v11442_v42 = vld [vmem:[#allocation25_spill] sm:$0xff] }
 0x964   :  { %7123 = vmatpush3.bf16.msra.mxu0 %v9507_v35  ;;  %2456 = vrot.lane.b32.xlu0 %v8910_v53, %s8415_s23  ;;  %v11434_v53 = vld [vmem:[#allocation23_spill] sm:$0xff] }
 0x965   :  { %7124 = vmatprep.subr.bf16.mxu0 %v9469_v61 }
 0x966   :  { %v2155_v21 = vpop.xlane.xlu1 %2154 }
 0x968   :  { %7125 = vmatpush3.bf16.msra.mxu0 %v9469_v61  ;;  %2420 = vrot.lane.b32.xlu0 %v11432_v63, %s8415_s23 }
 0x969   :  { %7126 = vmatprep.subr.bf16.mxu0 %v9471_v59 }
 0x96a   :  { %v9585_v61 = vpop.xlane.xlu1 %2156 }
 0x96c   :  { %7127 = vmatpush3.bf16.msra.mxu0 %v9471_v59  ;;  %2424 = vrot.lane.b32.xlu0 %v11433_v34, %s8415_s23  ;;  %v6443_v59 = vld [vmem:[%s11343_s0 + $0x80] sm:$0xff]  ;;  %v6450_v34 = vld [vmem:[%s11343_s0 + $0xb8] sm:$0xff] }
 0x96d   :  { %7128 = vmatprep.subr.bf16.mxu0 %v9473_v18 }
 0x96e   :  { %v2159_v16 = vpop.xlane.xlu1 %2158 }
 0x970   :  { %7129 = vmatpush3.bf16.msra.mxu0 %v9473_v18  ;;  %2428 = vrot.lane.b32.xlu0 %v11434_v53, %s8415_s23  ;;  %v11436_v18 = vld [vmem:[#allocation32_spill] sm:$0xff]  ;;  %v11443_v53 = vld [vmem:[#allocation29_spill] sm:$0xff] }
 0x971   :  { %7674 = vmatprep.subr.msk.bf16.mxu0 %vm881_vm3, %v9477_v38  ;;  %7966 = vrcp.f32 %v11436_v18  ;;  %v6451_v18 = vld [vmem:[%s11343_s0 + $0xc0] sm:$0xff] }
 0x972   :  { %7968 = vrcp.f32 %v9387_v41  ;;  %v9598_v49 = vpop.permute.xlu1 %2448  ;;  %v6446_v41 = vld [vmem:[%s11343_s0 + $0x98] sm:$0xff] }
 0x974   :  { %2432 = vrot.lane.b32.xlu0 %v11435_v37, %s8415_s23 }
 0x97b   :  { %v7967_v24 = vpop.eup %7966 }
 0x97c   :  { %v7969_v60 = vpop.eup %7968 }
 0x97d   :  { %v2185_v9 = vmul.f32 %v7969_v60, %v11439_v8 }
 0x992   :  { %3231 = vxpose.xlu0.b32.start [1/16] %v6443_v59, 128  ;;  %v1620_v35 = vpop.xlane.xlu0 %1619 }
 0x993   :  { %7970 = vrcp.f32 %v1620_v35 }
 0x994   :  { %7972 = vrcp.f32 %v1614_v2 }
 0x995   :  { %7974 = vrcp.f32 %v1618_v48 }
 0x996   :  { %3232 = vxpose.xlu0.b32.cont [2/16] %v6444_v20, 128  ;;  %v1616_v5 = vpop.xlane.xlu0 %1615 }
 0x997   :  { %7976 = vrcp.f32 %v1616_v5 }
 0x998   :  { %7978 = vrcp.f32 %v11437_v11 }
 0x999   :  { %7980 = vrcp.f32 %v9509_v13 }
 0x99a   :  { %3233 = vxpose.xlu0.b32.cont [3/16] %v6445_v40, 128  ;;  %7982 = vrcp.f32 %v11438_v33  ;;  %v11444_v40 = vld [vmem:[#allocation30_spill] sm:$0xff] }
 0x99b   :  { %7984 = vrcp.f32 %v9516_v17  ;;  %v6448_v17 = vld [vmem:[%s11343_s0 + $0xa8] sm:$0xff] }
 0x99c   :  { %7986 = vrcp.f32 %v9518_v7 }
 0x99d   :  { %v7971_v1 = vpop.eup %7970  ;;  %7988 = vrcp.f32 %v2155_v21 }
 0x99e   :  { %3234 = vxpose.xlu0.b32.cont [4/16] %v6446_v41, 128  ;;  %v9606_v30 = vpop.xlane.xlu1 %2162  ;;  %v7973_v43 = vpop.eup %7972  ;;  %v1652_v3 = vmul.f32 %v7971_v1, %v9483_v23  ;;  %v2184_v23 = vmul.f32 %v7967_v24, %v11440_v6  ;;  %7990 = vrcp.f32 %v9525_v0 }
 0x99f   :  { %v7975_v39 = vpop.eup %7974  ;;  %v1649_v13 = vmul.f32 %v7973_v43, %v9451_v31  ;;  %7992 = vrcp.f32 %v2153_v4 }
 0x9a0   :  { %v1651_v51 = vmul.f32 %v7975_v39, %v9445_v45  ;;  %v6449_v45 = vld [vmem:[%s11343_s0 + $0xb0] sm:$0xff]  ;;  %7994 = vrcp.f32 %v2159_v16 }
 0x9a1   :  { %v7977_v50 = vpop.eup %7976  ;;  %7996 = vrcp.f32 %v9585_v61 }
 0x9a2   :  { %3235 = vxpose.xlu0.b32.cont [5/16] %v6447_v32, 128  ;;  %v9613_v52 = vpop.permute.xlu1 %2452  ;;  %v1650_v29 = vmul.f32 %v7977_v50, %v9486_v47  ;;  %v1660_v15 = vpack.c.bf16 %v1652_v3, %v1651_v51  ;;  %v7979_v12 = vpop.eup %7978  ;;  %v2200_v47 = vpack.c.bf16 %v2185_v9, %v2184_v23  ;;  %v2492_v9 = vsel %vm881_vm3, %v9598_v49, 0 }
 0x9a3   :  { %v7981_v58 = vpop.eup %7980  ;;  %v2187_v14 = vmul.f32 %v7979_v12, %v11441_v22  ;;  %v2447_v32 = vpop.permute.xlu0 %2446  ;;  %7998 = vrcp.f32 %v9606_v30 }
 0x9a4   :  { %v1659_v56 = vpack.c.bf16 %v1650_v29, %v1649_v13  ;;  %v7983_v7 = vpop.eup %7982  ;;  %v2189_v0 = vmul.f32 %v7981_v58, %v9393_v44  ;;  %v2483_v44 = vsel %vm881_vm3, %v9477_v38, 0  ;;  %v6452_v38 = vld [vmem:[%s11343_s0 + $0xc8] sm:$0xff]  ;;  %v2489_v29 = vsel %vm881_vm3, %v2447_v32, 0 }
 0x9a5   :  { %v7985_v55 = vpop.eup %7984  ;;  %v2186_v63 = vmul.f32 %v7983_v7, %v11442_v42 }
 0x9a6   :  { %3236 = vxpose.xlu0.b32.cont [6/16] %v6448_v17, 128  ;;  %7078 = vmatprep.mubr.bf16.mxu0 %v1659_v56  ;;  %v9625_v31 = vpop.permute.xlu1 %2418  ;;  %v2188_v37 = vmul.f32 %v7985_v55, %v11443_v53  ;;  %v7987_v2 = vpop.eup %7986  ;;  %v6457_v17 = vld [vmem:[%s11343_s0 + $0xf0] sm:$0xff]  ;;  %v6458_v56 = vld [vmem:[%s11343_s0 + $0xf8] sm:$0xff] }
 0x9a7   :  { %7079 = vmatmul.mubr.bf16.gmra.mrb[64].mxu0 %v1660_v15  ;;  %v2201_v48 = vpack.c.bf16 %v2187_v14, %v2186_v63  ;;  %v7989_v59 = vpop.eup %7988  ;;  %v2190_v61 = vmul.f32 %v7987_v2, %v9397_v26  ;;  %v2486_v26 = vsel %vm881_vm3, %v9500_v19, 0  ;;  %v3324_v53 = vld [vmem:[%s11344_s1 + $0x10] sm:$0xff]  ;;  %v11446_v2 = vmov 0  }
 0x9a8   :  { %7130 = vmatprep.mubr.bf16.mxu0 %v2200_v47  ;;  %v2202_v21 = vpack.c.bf16 %v2189_v0, %v2188_v37  ;;  %v7991_v35 = vpop.eup %7990  ;;  %v2193_v5 = vmul.f32 %v7989_v59, %v9460_v57  ;;  %v6453_v57 = vld [vmem:[%s11343_s0 + $0xd0] sm:$0xff]  ;;  %v3325_v37 = vld [vmem:[%s11344_s1 + $0x18] sm:$0xff]  ;;  %v3326_v59 = vld [vmem:[%s11344_s1 + $0x20] sm:$0xff] }
 0x9a9   :  { %v7993_v20 = vpop.eup %7992  ;;  %v2191_v41 = vmul.f32 %v7991_v35, %v11444_v40  ;;  %v3329_v35 = vld [vmem:[%s11344_s1 + $0x38] sm:$0xff] }
 0x9aa   :  { %3237 = vxpose.xlu0.b32.cont [7/16] %v6449_v45, 128  ;;  %v9631_v54 = vpop.permute.xlu1 %2422  ;;  %v2192_v24 = vmul.f32 %v7993_v20, %v9457_v25  ;;  %v7995_v60 = vpop.eup %7994 }
 0x9ab   :  { %v2203_v11 = vpack.c.bf16 %v2191_v41, %v2190_v61  ;;  %v7997_v43 = vpop.eup %7996  ;;  %v2195_v25 = vmul.f32 %v7995_v60, %v9466_v10  ;;  %v6455_v10 = vld [vmem:[%s11343_s0 + $0xe0] sm:$0xff]  ;;  %v3333_v41 = vld [vmem:[%s11344_s1 + $0x58] sm:$0xff] }
 0x9ac   :  { %v2204_v33 = vpack.c.bf16 %v2193_v5, %v2192_v24  ;;  %v2194_v50 = vmul.f32 %v7997_v43, %v9463_v36  ;;  %v6456_v36 = vld [vmem:[%s11343_s0 + $0xe8] sm:$0xff]  ;;  %v3330_v5 = vld [vmem:[%s11344_s1 + $0x40] sm:$0xff] }
 0x9ad   :  { %v7999_v15 = vpop.eup %7998  ;;  %v3334_v60 = vld [vmem:[%s11344_s1 + $0x60] sm:$0xff] }
 0x9ae   :  { %3238 = vxpose.xlu0.b32.cont [8/16] %v6450_v34, 128  ;;  %v9640_v4 = vpop.permute.xlu1 %2426  ;;  %v2205_v3 = vpack.c.bf16 %v2195_v25, %v2194_v50  ;;  %v2197_v58 = vmul.f32 %v7999_v15, %v9489_v62  ;;  %v3323_v34 = vld [vmem:[%s11344_s1 + $0x8] sm:$0xff] }
 0x9af   :  { %7131 = vmatmul.mubr.bf16.vlgmr.msra.gmra.mrb[68].mxu0 %v2201_v48 }
 0x9b0   :  { %7147 = vmatpush3.bf16.xpose.msra.mxu0 %v2483_v44  ;;  %7134 = vmatprep.mubr.bf16.mxu0 %v2202_v21  ;;  %v7630_v21 = vpack.c.bf16 %v3325_v37, %v3324_v53  ;;  %v3327_v44 = vld [vmem:[%s11344_s1 + $0x28] sm:$0xff] }
 0x9b1   :  { %7675 = vmatprep.subr.msk.bf16.mxu0 %vm881_vm3, %v9500_v19  ;;  %v6454_v19 = vld [vmem:[%s11343_s0 + $0xd8] sm:$0xff] }
 0x9b2   :  { %3239 = vxpose.xlu0.b32.cont [9/16] %v6451_v18, 128  ;;  %v9650_v16 = vpop.permute.xlu1 %2430  ;;  %v7633_v18 = vpack.c.bf16 %v3327_v44, %v3326_v59 }
 0x9b6   :  { %3240 = vxpose.xlu0.b32.cont [10/16] %v6452_v38, 128  ;;  %v2764_v1 = vpop.permute.xlu1 %2763  ;;  %v3331_v38 = vld [vmem:[%s11344_s1 + $0x48] sm:$0xff] }
 0x9b7   :  { %7135 = vmatmul.mubr.bf16.gmra.mrb[72].mxu0 %v2203_v11  ;;  %7178 = vmatprep.subr.bf16.mxu1 %v2764_v1  ;;  %v7639_v40 = vpack.c.bf16 %v3331_v38, %v3330_v5 }
 0x9b8   :  { %7149 = vmatpush3.bf16.xpose.msra.mxu0 %v2486_v26  ;;  %7138 = vmatprep.mubr.bf16.mxu0 %v2204_v33 }
 0x9b9   :  { %7676 = vmatprep.subr.msk.bf16.mxu0 %vm881_vm3, %v2447_v32  ;;  %7179 = vmatpush3.bf16.msra.mxu1 %v2764_v1  ;;  %v3335_v1 = vld [vmem:[%s11344_s1 + $0x68] sm:$0xff]  ;;  %v11447_v32 = vmov 0.0  }
 0x9ba   :  { %3241 = vxpose.xlu0.b32.cont [11/16] %v6453_v57, 128  ;;  %v2766_v39 = vpop.permute.xlu1 %2765  ;;  %v7645_v33 = vpack.c.bf16 %v3335_v1, %v3334_v60  ;;  %v3337_v57 = vld [vmem:[%s11344_s1 + $0x78] sm:$0xff] }
 0x9bb   :  { %7180 = vmatprep.subr.bf16.mxu1 %v2766_v39 }
 0x9bd   :  { %7181 = vmatpush3.bf16.msra.mxu1 %v2766_v39 }
 0x9be   :  { %3242 = vxpose.xlu0.b32.cont [12/16] %v6454_v19, 128  ;;  %v2768_v13 = vpop.permute.xlu1 %2767 }
 0x9bf   :  { %7139 = vmatmul.mubr.bf16.gmra.mrb[76].mxu0 %v2205_v3  ;;  %7182 = vmatprep.subr.bf16.mxu1 %v2768_v13 }
 0x9c0   :  { %7151 = vmatpush3.bf16.xpose.msra.mxu0 %v2489_v29 }
 0x9c1   :  { %7677 = vmatprep.subr.msk.bf16.mxu0 %vm881_vm3, %v9598_v49  ;;  %7183 = vmatpush3.bf16.msra.mxu1 %v2768_v13 }
 0x9c2   :  { %3243 = vxpose.xlu0.b32.cont [13/16] %v6455_v10, 128  ;;  %v2770_v8 = vpop.permute.xlu1 %2769 }
 0x9c3   :  { %7184 = vmatprep.subr.bf16.mxu1 %v2770_v8 }
 0x9c5   :  { %7185 = vmatpush3.bf16.msra.mxu1 %v2770_v8 }
 0x9c6   :  { %3244 = vxpose.xlu0.b32.cont [14/16] %v6456_v36, 128 }
 0x9c8   :  { %7153 = vmatpush3.bf16.xpose.msra.mxu0 %v2492_v9 }
 0x9ca   :  { %3245 = vxpose.xlu0.b32.cont [15/16] %v6457_v17, 128 }
 0x9cb   :  { %v2161_v51 = vpop.xlane.xlu0 %2160 }
 0x9cc   :  { %8000 = vrcp.f32 %v2161_v51 }
 0x9ce   :  { %3246 = vxpose.xlu0.b32.end [16/16] %v6458_v56, 128 }
 0x9cf   :  { %v2165_v6 = vpop.xlane.xlu0 %2164 }
 0x9d0   :  { %8002 = vrcp.f32 %v2165_v6 }
 0x9d3   :  { %v2167_v23 = vpop.xlane.xlu0 %2166 }
 0x9d4   :  { %8004 = vrcp.f32 %v2167_v23 }
 0x9d6   :  { %v8001_v49 = vpop.eup %8000 }
 0x9d7   :  { %v2451_v12 = vpop.permute.xlu0 %2450  ;;  %v2196_v47 = vmul.f32 %v8001_v49, %v9529_v46  ;;  %v2498_v46 = vsel %vm881_vm3, %v9613_v52, 0 }
 0x9d8   :  { %7678 = vmatprep.subr.msk.bf16.mxu0 %vm881_vm3, %v2451_v12  ;;  %v2495_v30 = vsel %vm881_vm3, %v2451_v12, 0 }
 0x9d9   :  { %7155 = vmatpush3.bf16.xpose.msra.mxu0 %v2495_v30  ;;  %v2206_v45 = vpack.c.bf16 %v2197_v58, %v2196_v47 }
 0x9da   :  { %7679 = vmatprep.subr.msk.bf16.mxu0 %vm881_vm3, %v9613_v52  ;;  %v8003_v7 = vpop.eup %8002  ;;  %v3322_v52 = vld [vmem:[%s11344_s1] sm:$0xff] }
 0x9db   :  { %7142 = vmatprep.mubr.bf16.mxu0 %v2206_v45  ;;  %v2198_v22 = vmul.f32 %v8003_v7, %v9534_v28  ;;  %v2455_v62 = vpop.permute.xlu0 %2454 }
 0x9dc   :  { %v2501_v42 = vsel %vm881_vm3, %v2455_v62, 0 }
 0x9de   :  { %v8005_v55 = vpop.eup %8004 }
 0x9df   :  { %v2199_v14 = vmul.f32 %v8005_v55, %v9539_v27  ;;  %v2457_v63 = vpop.permute.xlu0 %2456  ;;  %v11445_v27 = vmov 0.0|0.0  }
 0x9e0   :  { %v2504_v28 = vsel %vm881_vm3, %v2457_v63, 0 }
 0x9e1   :  { %7157 = vmatpush3.bf16.xpose.msra.mxu0 %v2498_v46  ;;  %v2207_v0 = vpack.c.bf16 %v2199_v14, %v2198_v22 }
 0x9e2   :  { %7680 = vmatprep.subr.msk.bf16.mxu0 %vm881_vm3, %v2455_v62 }
 0x9e3   :  { %7143 = vmatmul.mubr.bf16.gmra.mrb[80].mxu0 %v2207_v0  ;;  %v2421_v48 = vpop.permute.xlu0 %2420 }
 0x9e4   :  { %7162 = vmatprep.mubr.msk.bf16.mxu0 %vm881_vm3, %v9625_v31  ;;  %v7627_v31 = vpack.c.bf16 %v3323_v34, %v3322_v52 }
 0x9e7   :  { %v2425_v20 = vpop.permute.xlu0 %2424 }
 0x9e9   :  { %7159 = vmatpush3.bf16.xpose.msra.mxu0 %v2501_v42 }
 0x9ea   :  { %7681 = vmatprep.subr.msk.bf16.mxu0 %vm881_vm3, %v2457_v63 }
 0x9eb   :  { %v2429_v24 = vpop.permute.xlu0 %2428 }
 0x9ef   :  { %v2433_v26 = vpop.permute.xlu0 %2432 }
 0x9f1   :  { %7161 = vmatpush3.bf16.xpose.msra.mxu0 %v2504_v28 }
 0x9f2   :  { %7626 = vmatprep.subr.bf16.mxu0 %v11445_v27 }
 0x9f7   :  { %7731 = vset.pattern.permute.xlu0 %v11446_v2  ;;  %v11467_v2 = vld [vmem:[#allocation18_spill] sm:$0xff] }
 0x9f8   :  { %7163 = vmatmul.mubr.msk.bf16.vlgmr.msra.gmra.mrb[84].mxu0 %vm881_vm3, %v2421_v48 }
 0x9f9   :  { %7166 = vmatprep.mubr.msk.bf16.mxu0 %vm881_vm3, %v9631_v54  ;;  %7628 = vmatpush3.bf16.msra.mxu0 %v7627_v31  ;;  %v3328_v54 = vld [vmem:[%s11344_s1 + $0x30] sm:$0xff] }
 0x9fa   :  { %7629 = vmatprep.subr.bf16.mxu0 %v11445_v27  ;;  %v7636_v61 = vpack.c.bf16 %v3329_v35, %v3328_v54 }
 0x9fd   :  { %7631 = vmatpush3.bf16.msra.mxu0 %v7630_v21 }
 0x9fe   :  { %7632 = vmatprep.subr.bf16.mxu0 %v11445_v27 }
 0xa00   :  { %7167 = vmatmul.mubr.msk.bf16.gmra.mrb[88].mxu0 %vm881_vm3, %v2425_v20 }
 0xa01   :  { %7170 = vmatprep.mubr.msk.bf16.mxu0 %vm881_vm3, %v9640_v4  ;;  %7634 = vmatpush3.bf16.msra.mxu0 %v7633_v18  ;;  %v3332_v4 = vld [vmem:[%s11344_s1 + $0x50] sm:$0xff] }
 0xa02   :  { %7635 = vmatprep.subr.bf16.mxu0 %v11445_v27  ;;  %v7642_v11 = vpack.c.bf16 %v3333_v41, %v3332_v4 }
 0xa05   :  { %7637 = vmatpush3.bf16.msra.mxu0 %v7636_v61 }
 0xa06   :  { %7638 = vmatprep.subr.bf16.mxu0 %v11445_v27 }
 0xa08   :  { %7171 = vmatmul.mubr.msk.bf16.gmra.mrb[92].mxu0 %vm881_vm3, %v2429_v24 }
 0xa09   :  { %7174 = vmatprep.mubr.msk.bf16.mxu0 %vm881_vm3, %v9650_v16  ;;  %7640 = vmatpush3.bf16.msra.mxu0 %v7639_v40  ;;  %v3336_v16 = vld [vmem:[%s11344_s1 + $0x70] sm:$0xff] }
 0xa0a   :  { %7641 = vmatprep.subr.bf16.mxu0 %v11445_v27  ;;  %v7648_v43 = vpack.c.bf16 %v3337_v57, %v3336_v16 }
 0xa0d   :  { %7643 = vmatpush3.bf16.msra.mxu0 %v7642_v11 }
 0xa0e   :  { %7644 = vmatprep.subr.bf16.mxu0 %v11445_v27 }
 0xa10   :  { %7175 = vmatmul.mubr.msk.bf16.gmra.mrb[96].mxu0 %vm881_vm3, %v2433_v26 }
 0xa11   :  { %7646 = vmatpush3.bf16.msra.mxu0 %v7645_v33  ;;  %7274 = vmatprep.mubr.msk.f32.mxu0 %vm8410_vm0, %v11447_v32 }
 0xa12   :  { %v9771_v25 = vpop.trf.xlu0  ;;  %7647 = vmatprep.subr.bf16.mxu0 %v11445_v27 }
 0xa13   :  { %v3284_v39 = vmul.f32 %v9771_v25, %v9771_v25 }
 0xa15   :  { %7649 = vmatpush3.bf16.msra.mxu0 %v7648_v43 }
 0xa16   :  { %v9776_v19 = vpop.trf.xlu0  ;;  %7277 = vmatprep.subr.mxu0 %v11447_v32 }
 0xa17   :  { %v3263_v50 = vadd.f32 %v9776_v19, %v9771_v25  ;;  %v3285_v3 = vmul.f32 %v9776_v19, %v9776_v19 }
 0xa19   :  { %v3300_v13 = vadd.f32 %v3285_v3, %v3284_v39 }
 0xa1a   :  { %v9783_v29 = vpop.trf.xlu0 }
 0xa1b   :  { %v3264_v10 = vadd.f32 %v3263_v50, %v9783_v29  ;;  %v3286_v8 = vmul.f32 %v9783_v29, %v9783_v29 }
 0xa1d   :  { %v3301_v36 = vadd.f32 %v3300_v13, %v3286_v8 }
 0xa1e   :  { %v9788_v9 = vpop.trf.xlu0 }
 0xa1f   :  { %v3265_v17 = vadd.f32 %v3264_v10, %v9788_v9  ;;  %v3287_v51 = vmul.f32 %v9788_v9, %v9788_v9 }
 0xa21   :  { %v3302_v56 = vadd.f32 %v3301_v36, %v3287_v51 }
 0xa22   :  { %v9793_v6 = vpop.trf.xlu0 }
 0xa23   :  { %v3266_v23 = vadd.f32 %v3265_v17, %v9793_v6  ;;  %v3288_v15 = vmul.f32 %v9793_v6, %v9793_v6 }
 0xa25   :  { %v3303_v49 = vadd.f32 %v3302_v56, %v3288_v15  ;;  %v9798_v12 = vpop.f32.mrb[52].mxu0 }
 0xa26   :  { %v9800_v47 = vpop.trf.xlu0  ;;  %v9802_v58 = vpop.f32.mrb[53].mxu0 }
 0xa27   :  { %v3267_v30 = vadd.f32 %v3266_v23, %v9800_v47  ;;  %v3289_v45 = vmul.f32 %v9800_v47, %v9800_v47  ;;  %v9807_v7 = vpop.f32.mrb[54].mxu0 }
 0xa28   :  { %v9811_v22 = vpop.f32.mrb[55].mxu0 }
 0xa29   :  { %v3304_v14 = vadd.f32 %v3303_v49, %v3289_v45 }
 0xa2a   :  { %v9815_v62 = vpop.trf.xlu0 }
 0xa2b   :  { %v3268_v0 = vadd.f32 %v3267_v30, %v9815_v62  ;;  %v3290_v42 = vmul.f32 %v9815_v62, %v9815_v62 }
 0xa2d   :  { %v3305_v63 = vadd.f32 %v3304_v14, %v3290_v42  ;;  %v9820_v28 = vpop.f32.mrb[56].mxu0 }
 0xa2e   :  { %v9822_v27 = vpop.trf.xlu0  ;;  %v9824_v52 = vpop.f32.mrb[57].mxu0 }
 0xa2f   :  { %11448 = vst [vmem:[#allocation17_spill] sm:$0xff] %v9824_v52  ;;  %v3269_v34 = vadd.f32 %v3268_v0, %v9822_v27  ;;  %v3291_v31 = vmul.f32 %v9822_v27, %v9822_v27  ;;  %v9829_v53 = vpop.f32.mrb[58].mxu0  ;;  %v7767_v52 = vld [vmem:[#allocation4 + $0x50] ss:$12 sps:$4 sm:$0xff]  }
 0xa30   :  { %v9833_v48 = vpop.f32.mrb[59].mxu0 }
 0xa31   :  { %v3306_v21 = vadd.f32 %v3305_v63, %v3291_v31 }
 0xa32   :  { %v9837_v44 = vpop.trf.xlu0 }
 0xa33   :  { %v3270_v18 = vadd.f32 %v3269_v34, %v9837_v44  ;;  %v3292_v54 = vmul.f32 %v9837_v44, %v9837_v44 }
 0xa35   :  { %v3307_v35 = vadd.f32 %v3306_v21, %v3292_v54 }
 0xa36   :  { %v9842_v20 = vpop.f32.mrb[60].mxu0  ;;  %v9844_v61 = vpop.trf.xlu0 }
 0xa37   :  { %11449 = vst [vmem:[#allocation20_spill] sm:$0xff] %v9842_v20  ;;  %v3271_v5 = vadd.f32 %v3270_v18, %v9844_v61  ;;  %v3293_v38 = vmul.f32 %v9844_v61, %v9844_v61  ;;  %v9849_v40 = vpop.f32.mrb[61].mxu0 }
 0xa38   :  { %11450 = vst [vmem:[#allocation23_spill] sm:$0xff] %v9849_v40  ;;  %v9851_v4 = vpop.f32.mrb[62].mxu0 }
 0xa39   :  { %11451 = vst [vmem:[#allocation24_spill] sm:$0xff] %v9851_v4  ;;  %v3308_v41 = vadd.f32 %v3307_v35, %v3293_v38  ;;  %v9855_v11 = vpop.f32.mrb[63].mxu0 }
 0xa3a   :  { %11452 = vst [vmem:[#allocation32_spill] sm:$0xff] %v9855_v11  ;;  %v9859_v1 = vpop.trf.xlu0 }
 0xa3b   :  { %v3272_v33 = vadd.f32 %v3271_v5, %v9859_v1  ;;  %v3294_v26 = vmul.f32 %v9859_v1, %v9859_v1 }
 0xa3d   :  { %v3309_v16 = vadd.f32 %v3308_v41, %v3294_v26 }
 0xa3e   :  { %v9864_v57 = vpop.trf.xlu0 }
 0xa3f   :  { %v3273_v43 = vadd.f32 %v3272_v33, %v9864_v57  ;;  %v3295_v39 = vmul.f32 %v9864_v57, %v9864_v57 }
 0xa41   :  { %v3310_v50 = vadd.f32 %v3309_v16, %v3295_v39 }
 0xa42   :  { %v9869_v3 = vpop.trf.xlu0 }
 0xa43   :  { %v3274_v13 = vadd.f32 %v3273_v43, %v9869_v3  ;;  %v3296_v10 = vmul.f32 %v9869_v3, %v9869_v3 }
 0xa45   :  { %v3311_v8 = vadd.f32 %v3310_v50, %v3296_v10 }
 0xa46   :  { %v9874_v36 = vpop.trf.xlu0 }
 0xa47   :  { %v3275_v17 = vadd.f32 %v3274_v13, %v9874_v36  ;;  %v3297_v51 = vmul.f32 %v9874_v36, %v9874_v36 }
 0xa49   :  { %v3312_v56 = vadd.f32 %v3311_v8, %v3297_v51 }
 0xa4a   :  { %v9879_v23 = vpop.trf.xlu0 }
 0xa4b   :  { %v3276_v15 = vadd.f32 %v3275_v17, %v9879_v23  ;;  %v3298_v49 = vmul.f32 %v9879_v23, %v9879_v23 }
 0xa4d   :  { %v3313_v30 = vadd.f32 %v3312_v56, %v3298_v49 }
 0xa4e   :  { %v9884_v45 = vpop.trf.xlu0 }
 0xa4f   :  { %v3277_v14 = vadd.f32 %v3276_v15, %v9884_v45  ;;  %v3299_v0 = vmul.f32 %v9884_v45, %v9884_v45 }
 0xa51   :  { %v3278_v42 = vrot.slane %v3277_v14, 4  ;;  %v3314_v63 = vadd.f32 %v3313_v30, %v3299_v0 }
 0xa53   :  { %v3279_v34 = vadd.f32 %v3278_v42, %v3277_v14  ;;  %v3315_v31 = vrot.slane %v3314_v63, 4  ;;  %v3425_v42 = vld [vmem:[%s11345_s2] sm:$0xff] }
 0xa55   :  { %v3280_v21 = vrot.slane %v3279_v34, 2  ;;  %v3316_v18 = vadd.f32 %v3315_v31, %v3314_v63 }
 0xa57   :  { %v3281_v54 = vadd.f32 %v3280_v21, %v3279_v34  ;;  %v3317_v35 = vrot.slane %v3316_v18, 2 }
 0xa59   :  { %v3282_v5 = vrot.slane %v3281_v54, 1  ;;  %v3318_v38 = vadd.f32 %v3317_v35, %v3316_v18 }
 0xa5b   :  { %v3283_v41 = vadd.f32 %v3282_v5, %v3281_v54  ;;  %v3319_v33 = vrot.slane %v3318_v38, 1 }
 0xa5d   :  { %v3320_v26 = vadd.f32 %v3319_v33, %v3318_v38 }
 0xa5f   :  { %v3321_v16 = vsel %vm170_vm1, %v3283_v41, %v3320_v26 }
 0xa60   :  { %7275 = vmatmul.mubr.f32.vlgmr.msra.gmra.mrb[2].mxu0 %v3321_v16 }
 0xa61   :  { %7279 = vmatprep.mubr.msk.f32.mxu0 %vm8410_vm0, %v11447_v32  ;;  %7278 = vmatpush3.msra.mxu0 %v3425_v42 }
 0xa7a   :  { %v9892_v43 = vpop.f32.mrb[64].mxu0 }
 0xa7b   :  { %11453 = vst [vmem:[#allocation33_spill] sm:$0xff] %v9892_v43  ;;  %v9894_v39 = vpop.f32.mrb[65].mxu0 }
 0xa7c   :  { %11454 = vst [vmem:[#allocation31_spill] sm:$0xff] %v9894_v39  ;;  %v9896_v50 = vpop.f32.mrb[66].mxu0 }
 0xa7d   :  { %11455 = vst [vmem:[#allocation28_spill] sm:$0xff] %v9896_v50  ;;  %v9900_v10 = vpop.f32.mrb[67].mxu0 }
 0xa7e   :  { %11456 = vst [vmem:[#allocation26_spill] sm:$0xff] %v9900_v10 }
 0xa82   :  { %v9904_v17 = vpop.f32.mrb[68].mxu0 }
 0xa83   :  { %v9906_v51 = vpop.f32.mrb[69].mxu0 }
 0xa84   :  { %v9908_v56 = vpop.f32.mrb[70].mxu0 }
 0xa85   :  { %v9912_v15 = vpop.f32.mrb[71].mxu0 }
 0xa8a   :  { %v9916_v30 = vpop.f32.mrb[72].mxu0 }
 0xa8b   :  { %11457 = vst [vmem:[#allocation27_spill] sm:$0xff] %v9916_v30  ;;  %v9918_v14 = vpop.f32.mrb[73].mxu0 }
 0xa8c   :  { %v9920_v0 = vpop.f32.mrb[74].mxu0 }
 0xa8d   :  { %11458 = vst [vmem:[#allocation25_spill] sm:$0xff] %v9920_v0  ;;  %v9924_v63 = vpop.f32.mrb[75].mxu0 }
 0xa92   :  { %v9928_v31 = vpop.f32.mrb[76].mxu0 }
 0xa93   :  { %11459 = vst [vmem:[#allocation29_spill] sm:$0xff] %v9928_v31  ;;  %v9930_v21 = vpop.f32.mrb[77].mxu0 }
 0xa94   :  { %11460 = vst [vmem:[#allocation30_spill] sm:$0xff] %v9930_v21  ;;  %v9932_v18 = vpop.f32.mrb[78].mxu0 }
 0xa95   :  { %11461 = vst [vmem:[#allocation34_spill] sm:$0xff] %v9932_v18  ;;  %v9936_v35 = vpop.f32.mrb[79].mxu0 }
 0xa96   :  { %11462 = vst [vmem:[#allocation35_spill] sm:$0xff] %v9936_v35 }
 0xab6   :  { %v9940_v38 = vpop.f32.mrb[80].mxu0 }
 0xab7   :  { %11463 = vst [vmem:[#allocation36_spill] sm:$0xff] %v9940_v38  ;;  %v9942_v41 = vpop.f32.mrb[81].mxu0 }
 0xab8   :  { %11464 = vst [vmem:[#allocation37_spill] sm:$0xff] %v9942_v41  ;;  %v9944_v33 = vpop.f32.mrb[82].mxu0 }
 0xab9   :  { %11465 = vst [vmem:[#allocation38_spill] sm:$0xff] %v9944_v33  ;;  %v9948_v16 = vpop.f32.mrb[83].mxu0  ;;  %v11468_v33 = vld [vmem:[#allocation19_spill] sm:$0xff] }
 0xaba   :  { %11466 = vst [vmem:[#allocation39_spill] sm:$0xff] %v9948_v16 }
 0xacb   :  { %v7164_v13 = vpop.f32.mrb[84].mxu0 }
 0xacc   :  { %2607 = vmax.xlane.f32.xlu0 %v7164_v13  ;;  %v2540_v54 = vpop.f32.mrb[85].mxu0 }
 0xacd   :  { %2603 = vmax.xlane.f32.xlu1 %v2540_v54  ;;  %v7165_v60 = vpop.f32.mrb[86].mxu0 }
 0xace   :  { %v2543_v24 = vpop.f32.mrb[87].mxu0 }
 0xad0   :  { %2605 = vmax.xlane.f32.xlu0 %v2543_v24 }
 0xad1   :  { %2609 = vmax.xlane.f32.xlu1 %v7165_v60 }
 0xad3   :  { %v7168_v5 = vpop.f32.mrb[88].mxu0 }
 0xad4   :  { %v9955_v26 = vpop.f32.mrb[89].mxu0 }
 0xad5   :  { %2615 = vmax.xlane.f32.xlu1 %v7168_v5  ;;  %v9957_v59 = vpop.f32.mrb[90].mxu0 }
 0xad6   :  { %v9959_v8 = vpop.f32.mrb[91].mxu0 }
 0xad9   :  { %2611 = vmax.xlane.f32.xlu1 %v9955_v26 }
 0xadb   :  { %v9962_v37 = vpop.f32.mrb[92].mxu0 }
 0xadc   :  { %v9964_v32 = vpop.f32.mrb[93].mxu0 }
 0xadd   :  { %2617 = vmax.xlane.f32.xlu1 %v9957_v59  ;;  %v9967_v34 = vpop.f32.mrb[94].mxu0 }
 0xade   :  { %v9969_v42 = vpop.f32.mrb[95].mxu0 }
 0xae1   :  { %2613 = vmax.xlane.f32.xlu1 %v9959_v8 }
 0xae3   :  { %v9972_v55 = vpop.f32.mrb[96].mxu0 }
 0xae4   :  { %v9974_v46 = vpop.f32.mrb[97].mxu0 }
 0xae5   :  { %2623 = vmax.xlane.f32.xlu1 %v9962_v37  ;;  %v9977_v49 = vpop.f32.mrb[98].mxu0 }
 0xae6   :  { %2773 = vrot.lane.b32.xlu0 %v11467_v2, %s8415_s23  ;;  %v9981_v38 = vpop.f32.mrb[99].mxu0 }
 0xae9   :  { %2619 = vmax.xlane.f32.xlu1 %v9964_v32 }
 0xaed   :  { %2625 = vmax.xlane.f32.xlu1 %v9967_v34 }
 0xaf1   :  { %2621 = vmax.xlane.f32.xlu1 %v9969_v42 }
 0xaf5   :  { %2631 = vmax.xlane.f32.xlu1 %v9972_v55 }
 0xaf9   :  { %2627 = vmax.xlane.f32.xlu1 %v9974_v46 }
 0xafd   :  { %2633 = vmax.xlane.f32.xlu1 %v9977_v49 }
 0xb01   :  { %2629 = vmax.xlane.f32.xlu1 %v9981_v38 }
 0xb12   :  { %2771 = vrot.lane.b32.xlu1 %v11468_v33, %s8415_s23 }
 0xb33   :  { %v3404_v2 = vpop.f32.mrb[2].mxu0 }
 0xb34   :  { %v3408_v39 = vmul.f32 0.00048828125, %v3404_v2  ;;  %v7276_v10 = vpop.f32.mrb[3].mxu0 }
 0xb36   :  { %v3409_v43 = vmul.f32 %v3408_v39, %v3408_v39 }
 0xb38   :  { %v3411_v50 = vrot.slane %v3409_v43, 7 }
 0xb3a   :  { %v3413_v31 = vsub.f32 %v3408_v39, %v3411_v50 }
 0xb3c   :  { %v3414_v18 = vmax.f32 %v3413_v31, 0.0 }
 0xb3e   :  { %v3415_v41 = vadd.f32 1e-06, %v3414_v18 }
 0xb40   :  { %8006 = vrsqrt.f32 %v3415_v41 }
 0xb4a   :  { %v8007_v16 = vpop.eup %8006 }
 0xb4b   :  { %v3418_v40 = vrot.slane %v8007_v16, 1 }
 0xb4d   :  { %v3420_v11 = vmul.f32 %v3418_v40, %v3408_v39 }
 0xb4f   :  { %v3422_v20 = vrot.slane %v3420_v11, 7 }
 0xb51   :  { %v3424_v4 = vsel %vm170_vm1, %v3418_v40, %v3422_v20 }
 0xb52   :  { %7280 = vmatmul.mubr.msk.f32.vlgmr.msra.gmra.mrb[100].mxu0 %vm276_vm2, %v3424_v4 }
 0xb59   :  { %v2608_v30 = vpop.xlane.xlu0 %2607 }
 0xb5a   :  { %v2637_v0 = vsub.f32 %v7164_v13, %v2608_v30  ;;  %v2604_v33 = vpop.xlane.xlu1 %2603 }
 0xb5b   :  { %v2635_v21 = vsub.f32 %v2540_v54, %v2604_v33 }
 0xb5c   :  { %v2655_v2 = vmul.f32 1.442695, %v2637_v0 }
 0xb5d   :  { %v2651_v10 = vmul.f32 1.442695, %v2635_v21  ;;  %v2606_v35 = vpop.xlane.xlu0 %2605 }
 0xb5e   :  { %8008 = vpow2.f32 %v2655_v2  ;;  %v2636_v43 = vsub.f32 %v2543_v24, %v2606_v35  ;;  %v2610_v50 = vpop.xlane.xlu1 %2609 }
 0xb5f   :  { %8010 = vpow2.f32 %v2651_v10  ;;  %v2638_v31 = vsub.f32 %v7165_v60, %v2610_v50 }
 0xb60   :  { %v2653_v41 = vmul.f32 1.442695, %v2636_v43 }
 0xb61   :  { %v2657_v18 = vmul.f32 1.442695, %v2638_v31 }
 0xb62   :  { %v2616_v39 = vpop.xlane.xlu1 %2615 }
 0xb63   :  { %8012 = vpow2.f32 %v2657_v18  ;;  %v2641_v11 = vsub.f32 %v7168_v5, %v2616_v39  ;;  %v11469_v39 = vld [vmem:[#allocation22_spill] sm:$0xff] }
 0xb64   :  { %8014 = vpow2.f32 %v2653_v41 }
 0xb65   :  { %v2663_v20 = vmul.f32 1.442695, %v2641_v11 }
 0xb66   :  { %v2612_v40 = vpop.xlane.xlu1 %2611 }
 0xb67   :  { %8016 = vpow2.f32 %v2663_v20  ;;  %v2639_v4 = vsub.f32 %v9955_v26, %v2612_v40 }
 0xb68   :  { %v9995_v13 = vpop.eup %8008 }
 0xb69   :  { %v9997_v30 = vpop.eup %8010  ;;  %v2659_v0 = vmul.f32 1.442695, %v2639_v4  ;;  %2687 = vadd.xlane.f32.xlu0 %v9995_v13  ;;  %v2774_v4 = vpop.permute.xlu0 %2773 }
 0xb6a   :  { %2683 = vadd.xlane.f32.xlu1 %v9997_v30  ;;  %v2618_v24 = vpop.xlane.xlu1 %2617 }
 0xb6b   :  { %8018 = vpow2.f32 %v2659_v0  ;;  %v2642_v60 = vsub.f32 %v9957_v59, %v2618_v24  ;;  %v11470_v0 = vld [vmem:[#allocation21_spill] sm:$0xff]  ;;  %v7764_v24 = vld [vmem:[#allocation4 + $0x8] ss:$12 sps:$4 sm:$0xff]  }
 0xb6c   :  { %7282 = vmatprep.subr.bf16.mxu0 %v7764_v24 }
 0xb6d   :  { %v10002_v21 = vpop.eup %8012  ;;  %v2665_v54 = vmul.f32 1.442695, %v2642_v60  ;;  %7283 = vmatpush3.bf16.msra.mxu0 %v7764_v24 }
 0xb6e   :  { %2689 = vadd.xlane.f32.xlu1 %v10002_v21  ;;  %v2614_v35 = vpop.xlane.xlu1 %2613  ;;  %v10006_v26 = vpop.eup %8014 }
 0xb6f   :  { %8020 = vpow2.f32 %v2665_v54  ;;  %v2640_v5 = vsub.f32 %v9959_v8, %v2614_v35  ;;  %v7765_v54 = vld [vmem:[#allocation4 + $0x20] ss:$12 sps:$4 sm:$0xff]  }
 0xb70   :  { %7284 = vmatprep.subr.bf16.mxu0 %v7765_v54 }
 0xb71   :  { %v10008_v16 = vpop.eup %8016  ;;  %v2661_v33 = vmul.f32 1.442695, %v2640_v5  ;;  %7285 = vmatpush3.bf16.msra.mxu0 %v7765_v54 }
 0xb72   :  { %2685 = vadd.xlane.f32.xlu1 %v10006_v26  ;;  %2695 = vadd.xlane.f32.xlu0 %v10008_v16  ;;  %v2624_v2 = vpop.xlane.xlu1 %2623 }
 0xb73   :  { %8022 = vpow2.f32 %v2661_v33  ;;  %v7766_v33 = vld [vmem:[#allocation4 + $0x38] ss:$12 sps:$4 sm:$0xff]  }
 0xb74   :  { %7286 = vmatprep.subr.bf16.mxu0 %v7766_v33 }
 0xb75   :  { %v10012_v59 = vpop.eup %8018  ;;  %7287 = vmatpush3.bf16.msra.mxu0 %v7766_v33  ;;  %v11472_v33 = vpack.c.bf16 %v9811_v22, %v9802_v58 }
 0xb76   :  { %2691 = vadd.xlane.f32.xlu1 %v10012_v59  ;;  %v2620_v10 = vpop.xlane.xlu1 %2619  ;;  %7288 = vmatprep.subr.bf16.mxu0 %v7767_v52 }
 0xb79   :  { %v10015_v43 = vpop.eup %8020  ;;  %7289 = vmatpush3.bf16.msra.mxu0 %v7767_v52 }
 0xb7a   :  { %2697 = vadd.xlane.f32.xlu0 %v10015_v43  ;;  %v2626_v8 = vpop.xlane.xlu1 %2625 }
 0xb7d   :  { %v10018_v50 = vpop.eup %8022 }
 0xb7e   :  { %2693 = vadd.xlane.f32.xlu0 %v10018_v50  ;;  %v2622_v31 = vpop.xlane.xlu1 %2621 }
 0xb7f   :  { %v2644_v60 = vsub.f32 %v9969_v42, %v2622_v31  ;;  %v2645_v42 = vsub.f32 %v9962_v37, %v2624_v2  ;;  %v7769_v2 = vld [vmem:[#allocation4 + $0x80] ss:$12 sps:$4 sm:$0xff]  }
 0xb81   :  { %v2669_v35 = vmul.f32 1.442695, %v2644_v60 }
 0xb82   :  { %v2632_v18 = vpop.xlane.xlu1 %2631 }
 0xb83   :  { %8024 = vpow2.f32 %v2669_v35  ;;  %v2649_v52 = vsub.f32 %v9972_v55, %v2632_v18 }
 0xb86   :  { %v2628_v41 = vpop.xlane.xlu1 %2627 }
 0xb87   :  { %2775 = vrot.lane.b32.xlu1 %v11469_v39, %s8415_s23  ;;  %v2643_v39 = vsub.f32 %v9964_v32, %v2620_v10  ;;  %v7768_v10 = vld [vmem:[#allocation4 + $0x68] ss:$12 sps:$4 sm:$0xff]  }
 0xb88   :  { %7290 = vmatprep.subr.bf16.mxu0 %v7768_v10 }
 0xb89   :  { %v2667_v24 = vmul.f32 1.442695, %v2643_v39  ;;  %7291 = vmatpush3.bf16.msra.mxu0 %v7768_v10  ;;  %v11473_v39 = vpack.c.bf16 %v9807_v7, %v9798_v12 }
 0xb8a   :  { %v2634_v11 = vpop.xlane.xlu1 %2633  ;;  %7292 = vmatprep.subr.bf16.mxu0 %v7769_v2 }
 0xb8d   :  { %v10031_v32 = vpop.eup %8024  ;;  %7293 = vmatpush3.bf16.msra.mxu0 %v7769_v2 }
 0xb8e   :  { %v2630_v20 = vpop.xlane.xlu1 %2629 }
 0xb8f   :  { %v2648_v5 = vsub.f32 %v9981_v38, %v2630_v20  ;;  %v2671_v38 = vmul.f32 1.442695, %v2645_v42  ;;  %v2646_v20 = vsub.f32 %v9967_v34, %v2626_v8  ;;  %v7770_v8 = vld [vmem:[#allocation4 + $0x98] ss:$12 sps:$4 sm:$0xff]  }
 0xb90   :  { %7294 = vmatprep.subr.bf16.mxu0 %v7770_v8 }
 0xb91   :  { %7295 = vmatpush3.bf16.msra.mxu0 %v7770_v8 }
 0xb92   :  { %v2772_v40 = vpop.permute.xlu1 %2771 }
 0xb93   :  { %7186 = vmatprep.subr.bf16.mxu1 %v2772_v40 }
 0xb94   :  { %2777 = vrot.lane.b32.xlu0 %v11470_v0, %s8415_s23  ;;  %7187 = vmatpush3.bf16.msra.mxu1 %v2772_v40  ;;  %v2650_v40 = vsub.f32 %v9977_v49, %v2634_v11  ;;  %v2677_v0 = vmul.f32 1.442695, %v2648_v5  ;;  %v2673_v49 = vmul.f32 1.442695, %v2646_v20  ;;  %v2647_v11 = vsub.f32 %v9974_v46, %v2628_v41  ;;  %v7771_v46 = vld [vmem:[#allocation4 + $0xb0] ss:$12 sps:$4 sm:$0xff]  }
 0xb95   :  { %7188 = vmatprep.subr.bf16.mxu1 %v2774_v4  ;;  %v2679_v41 = vmul.f32 1.442695, %v2649_v52  ;;  %7296 = vmatprep.subr.bf16.mxu0 %v7771_v46  ;;  %v11471_v5 = vpack.c.bf16 %v9912_v15, %v9906_v51 }
 0xb96   :  { %v2681_v31 = vmul.f32 1.442695, %v2650_v40  ;;  %8026 = vpow2.f32 %v2677_v0  ;;  %v2675_v34 = vmul.f32 1.442695, %v2647_v11  ;;  %7297 = vmatpush3.bf16.msra.mxu0 %v7771_v46 }
 0xb97   :  { %8028 = vpow2.f32 %v2667_v24 }
 0xb98   :  { %7189 = vmatpush3.bf16.msra.mxu1 %v2774_v4  ;;  %8030 = vpow2.f32 %v2681_v31 }
 0xb99   :  { %8032 = vpow2.f32 %v2671_v38 }
 0xb9a   :  { %8034 = vpow2.f32 %v2673_v49 }
 0xb9b   :  { %8036 = vpow2.f32 %v2675_v34 }
 0xb9c   :  { %8038 = vpow2.f32 %v2679_v41 }
 0xba0   :  { %v10035_v37 = vpop.eup %8026 }
 0xba1   :  { %v10039_v4 = vpop.eup %8028 }
 0xba2   :  { %v10041_v60 = vpop.eup %8030 }
 0xba3   :  { %v10045_v54 = vpop.eup %8032 }
 0xba4   :  { %v10048_v55 = vpop.eup %8034 }
 0xba5   :  { %v10051_v18 = vpop.eup %8036 }
 0xba6   :  { %v10054_v35 = vpop.eup %8038 }
 0xbab   :  { %2701 = vadd.xlane.f32.xlu1 %v10031_v32 }
 0xbaf   :  { %2709 = vadd.xlane.f32.xlu1 %v10035_v37 }
 0xbb3   :  { %2699 = vadd.xlane.f32.xlu0 %v10039_v4  ;;  %2713 = vadd.xlane.f32.xlu1 %v10041_v60 }
 0xbb7   :  { %2703 = vadd.xlane.f32.xlu0 %v10045_v54 }
 0xbbb   :  { %2705 = vadd.xlane.f32.xlu0 %v10048_v55 }
 0xbbf   :  { %2707 = vadd.xlane.f32.xlu0 %v10051_v18 }
 0xbc3   :  { %2711 = vadd.xlane.f32.xlu0 %v10054_v35 }
 0xbc4   :  { %2353 = vrot.lane.b32.xlu1 %v11471_v5, %s8407_s5 }
 0xbd9   :  { %1806 = vrot.lane.b32.xlu0 %v11472_v33, %s8415_s23 }
 0xbdd   :  { %1808 = vrot.lane.b32.xlu0 %v11473_v39, %s8415_s23 }
 0xbf6   :  { %v2688_v24 = vpop.xlane.xlu0 %2687 }
 0xbf7   :  { %v2684_v40 = vpop.xlane.xlu1 %2683 }
 0xbf8   :  { %8040 = vrcp.f32 %v2684_v40 }
 0xbfb   :  { %v2690_v0 = vpop.xlane.xlu1 %2689 }
 0xbfc   :  { %8042 = vrcp.f32 %v2690_v0 }
 0xbff   :  { %v2686_v42 = vpop.xlane.xlu1 %2685  ;;  %v2696_v51 = vpop.xlane.xlu0 %2695 }
 0xc00   :  { %8044 = vrcp.f32 %v2686_v42 }
 0xc01   :  { %8046 = vrcp.f32 %v2688_v24  ;;  %v11474_v24 = vld [vmem:[#allocation15_spill] sm:$0xff] }
 0xc02   :  { %v8041_v58 = vpop.eup %8040 }
 0xc03   :  { %v2692_v15 = vpop.xlane.xlu1 %2691  ;;  %v2731_v20 = vmul.f32 %v8041_v58, %v9997_v30 }
 0xc06   :  { %v8043_v22 = vpop.eup %8042 }
 0xc07   :  { %v2698_v31 = vpop.xlane.xlu0 %2697  ;;  %v2776_v38 = vpop.permute.xlu1 %2775  ;;  %v2734_v11 = vmul.f32 %v8043_v22, %v10002_v21 }
 0xc08   :  { %7190 = vmatprep.subr.bf16.mxu1 %v2776_v38  ;;  %8048 = vrcp.f32 %v2698_v31 }
 0xc09   :  { %7191 = vmatpush3.bf16.msra.mxu1 %v2776_v38  ;;  %8050 = vrcp.f32 %v2692_v15  ;;  %v8328_v15 = vld [vmem:[%s11346_s3] sm:$0x1]  ;;  %v11475_v38 = vld [vmem:[#allocation16_spill] sm:$0xff] }
 0xc0a   :  { %v8045_v12 = vpop.eup %8044  ;;  %8052 = vrcp.f32 %v2696_v51 }
 0xc0b   :  { %v2694_v7 = vpop.xlane.xlu0 %2693  ;;  %v2732_v10 = vmul.f32 %v8045_v12, %v10006_v26  ;;  %v8047_v49 = vpop.eup %8046 }
 0xc0c   :  { %8054 = vrcp.f32 %v2694_v7  ;;  %v2733_v34 = vmul.f32 %v8047_v49, %v9995_v13 }
 0xc0d   :  { %v2747_v2 = vpack.c.bf16 %v2732_v10, %v2731_v20 }
 0xc0e   :  { %v2748_v8 = vpack.c.bf16 %v2734_v11, %v2733_v34 }
 0xc0f   :  { %v2778_v52 = vpop.permute.xlu0 %2777  ;;  %7194 = vmatprep.mubr.bf16.mxu1 %v2747_v2 }
 0xc10   :  { %7192 = vmatprep.subr.bf16.mxu1 %v2778_v52 }
 0xc11   :  { %7193 = vmatpush3.bf16.msra.mxu1 %v2778_v52 }
 0xc12   :  { %v8049_v46 = vpop.eup %8048 }
 0xc13   :  { %v8051_v41 = vpop.eup %8050  ;;  %v2738_v30 = vmul.f32 %v8049_v46, %v10015_v43 }
 0xc14   :  { %7195 = vmatmul.mubr.bf16.vlgmr.msra.gmra.mrb[68].mxu1 %v2748_v8  ;;  %v8053_v5 = vpop.eup %8052  ;;  %v2735_v26 = vmul.f32 %v8051_v41, %v10012_v59 }
 0xc15   :  { %v2737_v21 = vmul.f32 %v8053_v5, %v10008_v16  ;;  %v8329_v16 = vld [vmem:[%s11347_s4] sm:$0x1] }
 0xc16   :  { %v8055_v33 = vpop.eup %8054 }
 0xc17   :  { %v2736_v39 = vmul.f32 %v8055_v33, %v10018_v50  ;;  %v2750_v0 = vpack.c.bf16 %v2738_v30, %v2737_v21 }
 0xc19   :  { %v2749_v40 = vpack.c.bf16 %v2736_v39, %v2735_v26 }
 0xc1b   :  { %7198 = vmatprep.mubr.bf16.mxu1 %v2749_v40 }
 0xc1c   :  { %7199 = vmatmul.mubr.bf16.gmra.mrb[72].mxu1 %v2750_v0 }
 0xc25   :  { %v3495_v13 = vpop.f32.mrb[100].mxu0 }
 0xc26   :  { %v3507_v42 = vrot.slane %v3495_v13, %v11474_v24  ;;  %v7281_v51 = vpop.f32.mrb[101].mxu0  ;;  %v3499_v31 = vmul.f32 %v8328_v15, %v3495_v13 }
 0xc28   :  { %v3508_v43 = vcombine.high %v3507_v42, %v3507_v42  ;;  %v3523_v50 = vrot.slane %v3499_v31, %v11475_v38 }
 0xc2a   :  { %v3515_v59 = vrot.slane %v3508_v43, %v11474_v24  ;;  %v3525_v12 = vmul.f32 %v3523_v50, %v9771_v25  ;;  %v3526_v20 = vmul.f32 %v3523_v50, %v9776_v19  ;;  %v3527_v10 = vmul.f32 %v3523_v50, %v9783_v29 }
 0xc2b   :  { %v3528_v49 = vmul.f32 %v3523_v50, %v9788_v9  ;;  %v3529_v11 = vmul.f32 %v3523_v50, %v9793_v6  ;;  %v3530_v2 = vmul.f32 %v3523_v50, %v9800_v47  ;;  %v3531_v29 = vmul.f32 %v3523_v50, %v9815_v62 }
 0xc2c   :  { %v3517_v58 = vmul.f32 %v8328_v15, %v3515_v59  ;;  %v3532_v9 = vmul.f32 %v3523_v50, %v9822_v27  ;;  %v3533_v6 = vmul.f32 %v3523_v50, %v9837_v44  ;;  %v3534_v47 = vmul.f32 %v3523_v50, %v9844_v61 }
 0xc2d   :  { %v3535_v62 = vmul.f32 %v3523_v50, %v9859_v1  ;;  %v3536_v27 = vmul.f32 %v3523_v50, %v9864_v57  ;;  %v3537_v61 = vmul.f32 %v3523_v50, %v9869_v3  ;;  %v3538_v24 = vmul.f32 %v3523_v50, %v9874_v36 }
 0xc2e   :  { %v3518_v22 = vsub.f32 %v8329_v16, %v3517_v58  ;;  %v3539_v1 = vmul.f32 %v3523_v50, %v9879_v23  ;;  %v3540_v57 = vmul.f32 %v3523_v50, %v9884_v45 }
 0xc30   :  { %v3545_v7 = vrot.slane %v3518_v22, %v11475_v38 }
 0xc32   :  { %v3547_v52 = vadd.f32 %v3545_v7, %v3525_v12  ;;  %v3548_v34 = vadd.f32 %v3545_v7, %v3526_v20  ;;  %v3549_v8 = vadd.f32 %v3545_v7, %v3527_v10  ;;  %v3550_v46 = vadd.f32 %v3545_v7, %v3528_v49 }
 0xc33   :  { %v3551_v41 = vadd.f32 %v3545_v7, %v3529_v11  ;;  %v3552_v5 = vadd.f32 %v3545_v7, %v3530_v2  ;;  %v3553_v30 = vadd.f32 %v3545_v7, %v3531_v29  ;;  %v3554_v26 = vadd.f32 %v3545_v7, %v3532_v9 }
 0xc34   :  { %v10093_v33 = vpack.c.bf16 %v3548_v34, %v3547_v52  ;;  %v10095_v25 = vpack.c.bf16 %v3550_v46, %v3549_v8  ;;  %v3555_v39 = vadd.f32 %v3545_v7, %v3533_v6  ;;  %v3556_v21 = vadd.f32 %v3545_v7, %v3534_v47 }
 0xc35   :  { %v10098_v19 = vpack.c.bf16 %v3552_v5, %v3551_v41  ;;  %v10106_v0 = vpack.c.bf16 %v3554_v26, %v3553_v30  ;;  %v3557_v42 = vadd.f32 %v3545_v7, %v3535_v62  ;;  %v3558_v51 = vadd.f32 %v3545_v7, %v3536_v27 }
 0xc36   :  { %7298 = vmatprep.mubr.bf16.mxu0 %v10093_v33  ;;  %v10108_v13 = vpack.c.bf16 %v3556_v21, %v3555_v39  ;;  %v3559_v15 = vadd.f32 %v3545_v7, %v3537_v61  ;;  %v3560_v31 = vadd.f32 %v3545_v7, %v3538_v24  ;;  %v3561_v22 = vadd.f32 %v3545_v7, %v3539_v1  ;;  %v11485_v1 = vld [vmem:[#allocation27_spill] sm:$0xff] }
 0xc37   :  { %7299 = vmatmul.mubr.bf16.vlgmr.msra.gmra.mrb[104].mxu0 %v10095_v25  ;;  %v10116_v59 = vpack.c.bf16 %v3558_v51, %v3557_v42  ;;  %v3562_v12 = vadd.f32 %v3545_v7, %v3540_v57  ;;  %v11476_v61 = vpack.c.bf16 %v9924_v63, %v9918_v14 }
 0xc38   :  { %7302 = vmatprep.mubr.bf16.mxu0 %v10098_v19  ;;  %v2702_v40 = vpop.xlane.xlu1 %2701  ;;  %v10118_v16 = vpack.c.bf16 %v3560_v31, %v3559_v15  ;;  %v11478_v31 = vpack.c.bf16 %v9829_v53, %v9820_v28  ;;  %v11487_v28 = vld [vmem:[#allocation24_spill] sm:$0xff] }
 0xc39   :  { %8056 = vrcp.f32 %v2702_v40  ;;  %v10126_v52 = vpack.c.bf16 %v3562_v12, %v3561_v22  ;;  %v11488_v53 = vld [vmem:[#allocation20_spill] sm:$0xff]  ;;  %v10177_v12 = vld [vmem:[%s11349_s6] sm:$0x7] }
 0xc3c   :  { %v2710_v58 = vpop.xlane.xlu1 %2709 }
 0xc3f   :  { %7303 = vmatmul.mubr.bf16.gmra.mrb[108].mxu0 %v10106_v0 }
 0xc40   :  { %7306 = vmatprep.mubr.bf16.mxu0 %v10108_v13  ;;  %v2700_v44 = vpop.xlane.xlu0 %2699  ;;  %v2714_v10 = vpop.xlane.xlu1 %2713 }
 0xc41   :  { %8058 = vrcp.f32 %v2700_v44 }
 0xc43   :  { %v8057_v36 = vpop.eup %8056 }
 0xc44   :  { %v2704_v43 = vpop.xlane.xlu0 %2703  ;;  %v2740_v2 = vmul.f32 %v8057_v36, %v10031_v32  ;;  %v2354_v46 = vpop.permute.xlu1 %2353  ;;  %v11491_v36 = vld [vmem:[#allocation23_spill] sm:$0xff] }
 0xc45   :  { %8060 = vrcp.f32 %v2704_v43  ;;  %v11479_v43 = vld [vmem:[#allocation17_spill] sm:$0xff] }
 0xc46   :  { %v11480_v14 = vpack.c.bf16 %v9833_v48, %v11479_v43  ;;  %v11490_v48 = vld [vmem:[#allocation32_spill] sm:$0xff] }
 0xc47   :  { %7307 = vmatmul.mubr.bf16.gmra.mrb[112].mxu0 %v10116_v59  ;;  %v11492_v22 = vpack.c.bf16 %v11490_v48, %v11491_v36  ;;  %v11496_v48 = vld [vmem:[#allocation37_spill] sm:$0xff] }
 0xc48   :  { %7310 = vmatprep.mubr.bf16.mxu0 %v10118_v16  ;;  %v2706_v3 = vpop.xlane.xlu0 %2705 }
 0xc49   :  { %8062 = vrcp.f32 %v2706_v3  ;;  %v11489_v3 = vpack.c.bf16 %v11487_v28, %v11488_v53 }
 0xc4a   :  { %8064 = vrcp.f32 %v2710_v58  ;;  %v11484_v58 = vld [vmem:[#allocation25_spill] sm:$0xff] }
 0xc4b   :  { %v8059_v20 = vpop.eup %8058  ;;  %v11486_v57 = vpack.c.bf16 %v11484_v58, %v11485_v1 }
 0xc4c   :  { %v2708_v49 = vpop.xlane.xlu0 %2707  ;;  %v2739_v11 = vmul.f32 %v8059_v20, %v10039_v4  ;;  %v11493_v20 = vld [vmem:[#allocation13_spill] sm:$0xff] }
 0xc4d   :  { %8066 = vrcp.f32 %v2708_v49 }
 0xc4e   :  { %v2751_v23 = vpack.c.bf16 %v2740_v2, %v2739_v11  ;;  %8068 = vrcp.f32 %v2714_v10  ;;  %v11494_v10 = vsub.s32 2, %v11493_v20  ;;  %v11498_v20 = vld [vmem:[#allocation34_spill] sm:$0xff] }
 0xc4f   :  { %7311 = vmatmul.mubr.bf16.gmra.mrb[116].mxu0 %v10126_v52  ;;  %v8061_v50 = vpop.eup %8060 }
 0xc50   :  { %v2712_v45 = vpop.xlane.xlu0 %2711  ;;  %7202 = vmatprep.mubr.bf16.mxu1 %v2751_v23  ;;  %v2741_v8 = vmul.f32 %v8061_v50, %v10045_v54  ;;  %v3616_v49 = vrot.slane %v10177_v12, %v11494_v10  ;;  %v11499_v10 = vld [vmem:[#allocation29_spill] sm:$0xff] }
 0xc51   :  { %8070 = vrcp.f32 %v2712_v45 }
 0xc53   :  { %v8063_v7 = vpop.eup %8062 }
 0xc54   :  { %v1807_v34 = vpop.permute.xlu0 %1806  ;;  %v2742_v4 = vmul.f32 %v8063_v7, %v10048_v55  ;;  %v8065_v32 = vpop.eup %8064 }
 0xc55   :  { %1831 = vst.msk [vmem:[#allocation3] sm:$0xff] %vm1830_vm4, %v1807_v34  ;;  %v2744_v6 = vmul.f32 %v8065_v32, %v10035_v37 }
 0xc56   :  { %v2752_v41 = vpack.c.bf16 %v2742_v4, %v2741_v8  ;;  %2378 = vst.msk [vmem:[#allocation3] sm:$0xff] %vm2377_vm5, %v2354_v46 }
 0xc57   :  { %v8067_v5 = vpop.eup %8066 }
 0xc58   :  { %v1809_v29 = vpop.permute.xlu0 %1808  ;;  %7203 = vmatmul.mubr.bf16.gmra.mrb[76].mxu1 %v2752_v41  ;;  %v2743_v9 = vmul.f32 %v8067_v5, %v10051_v18  ;;  %v8069_v47 = vpop.eup %8068 }
 0xc59   :  { %1832 = vst.msk [vmem:[#allocation3 + $0x8] sm:$0xff] %vm1830_vm4, %v1809_v29  ;;  %v2746_v26 = vmul.f32 %v8069_v47, %v10041_v60  ;;  %v11477_v60 = vpack.c.bf16 %v9908_v56, %v9904_v17  ;;  %v11481_v17 = vld [vmem:[#allocation35_spill] sm:$0xff]  ;;  %v11482_v56 = vld [vmem:[#allocation30_spill] sm:$0xff] }
 0xc5a   :  { %v2753_v54 = vpack.c.bf16 %v2744_v6, %v2743_v9  ;;  %v11483_v63 = vpack.c.bf16 %v11481_v17, %v11482_v56 }
 0xc5b   :  { %v8071_v30 = vpop.eup %8070 }
 0xc5c   :  { %7206 = vmatprep.mubr.bf16.mxu1 %v2753_v54  ;;  %v2745_v55 = vmul.f32 %v8071_v30, %v10054_v35 }
 0xc5e   :  { %v2754_v39 = vpack.c.bf16 %v2746_v26, %v2745_v55 }
 0xc60   :  { %7207 = vmatmul.mubr.bf16.gmra.mrb[80].mxu1 %v2754_v39 }
 0xce7   :  { %v7196_v21 = vpop.f32.mrb[68].mxu1 }
 0xce8   :  { %v2821_v40 = vpop.f32.mrb[69].mxu1 }
 0xce9   :  { %v7197_v62 = vpop.f32.mrb[70].mxu1 }
 0xcea   :  { %v2885_v27 = vpack.c.bf16 %v7197_v62, %v7196_v21  ;;  %v2824_v44 = vpop.f32.mrb[71].mxu1 }
 0xceb   :  { %v2884_v18 = vpack.c.bf16 %v2824_v44, %v2821_v40 }
 0xcec   :  { %2902 = vrot.lane.b32.xlu0 %v2885_v27, %s8414_s22 }
 0xced   :  { %2900 = vrot.lane.b32.xlu1 %v2884_v18, %s8414_s22 }
 0xcef   :  { %v7200_v37 = vpop.f32.mrb[72].mxu1 }
 0xcf0   :  { %2357 = vrot.lane.b32.xlu0 %v11476_v61, %s8407_s5  ;;  %v2837_v35 = vpop.f32.mrb[73].mxu1 }
 0xcf1   :  { %2355 = vrot.lane.b32.xlu1 %v11477_v60, %s8407_s5  ;;  %v7201_v24 = vpop.f32.mrb[74].mxu1 }
 0xcf2   :  { %v2887_v42 = vpack.c.bf16 %v7201_v24, %v7200_v37  ;;  %v2840_v51 = vpop.f32.mrb[75].mxu1 }
 0xcf3   :  { %v2886_v15 = vpack.c.bf16 %v2840_v51, %v2837_v35 }
 0xcf4   :  { %1812 = vrot.lane.b32.xlu0 %v11478_v31, %s8415_s23 }
 0xcf5   :  { %1810 = vrot.lane.b32.xlu1 %v11480_v14, %s8415_s23 }
 0xcf8   :  { %2906 = vrot.lane.b32.xlu0 %v2887_v42, %s8414_s22 }
 0xcf9   :  { %2904 = vrot.lane.b32.xlu1 %v2886_v15, %s8414_s22 }
 0xcfc   :  { %2361 = vrot.lane.b32.xlu0 %v11483_v63, %s8407_s5 }
 0xcfd   :  { %2359 = vrot.lane.b32.xlu1 %v11486_v57, %s8407_s5 }
 0xd00   :  { %1816 = vrot.lane.b32.xlu0 %v11489_v3, %s8415_s23  ;;  %v11495_v3 = vld [vmem:[#allocation39_spill] sm:$0xff] }
 0xd01   :  { %1814 = vrot.lane.b32.xlu1 %v11492_v22, %s8415_s23  ;;  %v11497_v36 = vpack.c.bf16 %v11495_v3, %v11496_v48 }
 0xd0a   :  { %v7300_v11 = vpop.f32.mrb[104].mxu0 }
 0xd0b   :  { %v3904_v2 = vadd.f32 %v7300_v11, %v3616_v49  ;;  %v3895_v23 = vpop.f32.mrb[105].mxu0 }
 0xd0c   :  { %v3896_v45 = vadd.f32 %v3895_v23, %v3616_v49  ;;  %v7301_v50 = vpop.f32.mrb[106].mxu0 }
 0xd0d   :  { %v3907_v7 = vadd.f32 %v7301_v50, %v3616_v49  ;;  %v3898_v34 = vpop.f32.mrb[107].mxu0  ;;  %v11501_v50 = vld [vmem:[#allocation28_spill] sm:$0xff] }
 0xd0e   :  { %v3899_v8 = vadd.f32 %v3898_v34, %v3616_v49 }
 0xd0f   :  { %v10182_v4 = vpack.c.bf16 %v3907_v7, %v3904_v2  ;;  %v11502_v7 = vld [vmem:[#allocation33_spill] sm:$0xff] }
 0xd10   :  { %v10184_v32 = vpack.c.bf16 %v3899_v8, %v3896_v45  ;;  %v11503_v34 = vpack.c.bf16 %v11501_v50, %v11502_v7  ;;  %v11504_v8 = vld [vmem:[#allocation26_spill] sm:$0xff]  ;;  %v7781_v50 = vld [vmem:[#allocation7 + $0x18] sm:$0xff]  }
 0xd11   :  { %v7782_v7 = vld [vmem:[#allocation4 + $0x30] ss:$12 sps:$4 sm:$0xff]  }
 0xd12   :  { %v7304_v46 = vpop.f32.mrb[108].mxu0  ;;  %7346 = vmatprep.subr.bf16.mxu0 %v10184_v32 }
 0xd13   :  { %v3920_v41 = vadd.f32 %v7304_v46, %v3616_v49  ;;  %v3911_v5 = vpop.f32.mrb[109].mxu0  ;;  %7347 = vmatpush3.bf16.msra.mxu0 %v10184_v32  ;;  %v11505_v46 = vld [vmem:[#allocation31_spill] sm:$0xff] }
 0xd14   :  { %v3912_v29 = vadd.f32 %v3911_v5, %v3616_v49  ;;  %v7305_v9 = vpop.f32.mrb[110].mxu0  ;;  %7348 = vmatprep.subr.bf16.mxu0 %v10182_v4  ;;  %v11507_v5 = vld [vmem:[#allocation38_spill] sm:$0xff] }
 0xd15   :  { %v3923_v6 = vadd.f32 %v7305_v9, %v3616_v49  ;;  %v3914_v47 = vpop.f32.mrb[111].mxu0 }
 0xd16   :  { %v3915_v54 = vadd.f32 %v3914_v47, %v3616_v49 }
 0xd17   :  { %v10189_v30 = vpack.c.bf16 %v3923_v6, %v3920_v41  ;;  %7349 = vmatpush3.bf16.msra.mxu0 %v10182_v4  ;;  %v11506_v41 = vpack.c.bf16 %v11504_v8, %v11505_v46  ;;  %v7772_v6 = vld [vmem:[#allocation7] sm:$0xff]   ;;  %v7787_v8 = vld [vmem:[#allocation4 + $0x4c] ss:$12 sps:$4 sm:$0xff]   ;;  %v7785_v46 = vld [vmem:[#allocation4 + $0x48] ss:$12 sps:$4 sm:$0xff]  }
 0xd18   :  { %v10192_v55 = vpack.c.bf16 %v3915_v54, %v3912_v29  ;;  %v11508_v29 = vld [vmem:[#allocation36_spill] sm:$0xff]  ;;  %7226 = vmatprep.mubr.bf16.mxu1 %v7772_v6 }
 0xd19   :  { %v11509_v9 = vpack.c.bf16 %v11507_v5, %v11508_v29  ;;  %v7789_v5 = vld [vmem:[#allocation7 + $0x28] sm:$0xff]  }
 0xd1a   :  { %v7308_v26 = vpop.f32.mrb[112].mxu0  ;;  %7350 = vmatprep.subr.bf16.mxu0 %v10192_v55  ;;  %v7790_v29 = vld [vmem:[#allocation4 + $0x60] ss:$12 sps:$4 sm:$0xff]   ;;  %v7795_v6 = vld [vmem:[#allocation4 + $0x7c] ss:$12 sps:$4 sm:$0xff]  }
 0xd1b   :  { %v3936_v39 = vadd.f32 %v7308_v26, %v3616_v49  ;;  %v3927_v21 = vpop.f32.mrb[113].mxu0  ;;  %7351 = vmatpush3.bf16.msra.mxu0 %v10192_v55 }
 0xd1c   :  { %v3928_v40 = vadd.f32 %v3927_v21, %v3616_v49  ;;  %v7309_v62 = vpop.f32.mrb[114].mxu0  ;;  %7352 = vmatprep.subr.bf16.mxu0 %v10189_v30 }
 0xd1d   :  { %v3939_v27 = vadd.f32 %v7309_v62, %v3616_v49  ;;  %v3930_v44 = vpop.f32.mrb[115].mxu0 }
 0xd1e   :  { %v3931_v18 = vadd.f32 %v3930_v44, %v3616_v49 }
 0xd1f   :  { %v10197_v37 = vpack.c.bf16 %v3939_v27, %v3936_v39  ;;  %7353 = vmatpush3.bf16.msra.mxu0 %v10189_v30 }
 0xd20   :  { %v10200_v61 = vpack.c.bf16 %v3931_v18, %v3928_v40 }
 0xd22   :  { %v7312_v35 = vpop.f32.mrb[116].mxu0  ;;  %7354 = vmatprep.subr.bf16.mxu0 %v10200_v61 }
 0xd23   :  { %v3952_v60 = vadd.f32 %v7312_v35, %v3616_v49  ;;  %v3943_v24 = vpop.f32.mrb[117].mxu0  ;;  %7355 = vmatpush3.bf16.msra.mxu0 %v10200_v61 }
 0xd24   :  { %v3944_v42 = vadd.f32 %v3943_v24, %v3616_v49  ;;  %v7313_v51 = vpop.f32.mrb[118].mxu0  ;;  %7356 = vmatprep.subr.bf16.mxu0 %v10197_v37 }
 0xd25   :  { %v3955_v15 = vadd.f32 %v7313_v51, %v3616_v49  ;;  %v3946_v31 = vpop.f32.mrb[119].mxu0 }
 0xd26   :  { %v3947_v43 = vadd.f32 %v3946_v31, %v3616_v49  ;;  %v11500_v49 = vpack.c.bf16 %v11498_v20, %v11499_v10  ;;  %v7776_v20 = vld [vmem:[#allocation4 + $0x4] ss:$12 sps:$4 sm:$0xff]   ;;  %v7773_v10 = vld [vmem:[#allocation7 + $0x8] sm:$0xff]  }
 0xd27   :  { %v10205_v14 = vpack.c.bf16 %v3955_v15, %v3952_v60  ;;  %7357 = vmatpush3.bf16.msra.mxu0 %v10197_v37 }
 0xd28   :  { %v10208_v17 = vpack.c.bf16 %v3947_v43, %v3944_v42 }
 0xd2a   :  { %7358 = vmatprep.subr.bf16.mxu0 %v10208_v17 }
 0xd2b   :  { %v7204_v56 = vpop.f32.mrb[76].mxu1  ;;  %7359 = vmatpush3.bf16.msra.mxu0 %v10208_v17 }
 0xd2c   :  { %v2853_v63 = vpop.f32.mrb[77].mxu1  ;;  %7360 = vmatprep.subr.bf16.mxu0 %v10205_v14 }
 0xd2d   :  { %v7205_v58 = vpop.f32.mrb[78].mxu1 }
 0xd2e   :  { %v2889_v1 = vpack.c.bf16 %v7205_v58, %v7204_v56  ;;  %v2856_v57 = vpop.f32.mrb[79].mxu1 }
 0xd2f   :  { %v2888_v28 = vpack.c.bf16 %v2856_v57, %v2853_v63  ;;  %7361 = vmatpush3.bf16.msra.mxu0 %v10205_v14 }
 0xd30   :  { %2910 = vrot.lane.b32.xlu0 %v2889_v1, %s8414_s22 }
 0xd31   :  { %2908 = vrot.lane.b32.xlu1 %v2888_v28, %s8414_s22 }
 0xd33   :  { %v7208_v53 = vpop.f32.mrb[80].mxu1 }
 0xd34   :  { %2365 = vrot.lane.b32.xlu0 %v11497_v36, %s8407_s5  ;;  %v2869_v22 = vpop.f32.mrb[81].mxu1 }
 0xd35   :  { %2363 = vrot.lane.b32.xlu1 %v11500_v49, %s8407_s5  ;;  %v7209_v11 = vpop.f32.mrb[82].mxu1  ;;  %v7774_v49 = vld [vmem:[#allocation4] ss:$12 sps:$4 sm:$0xff]  }
 0xd36   :  { %v2891_v2 = vpack.c.bf16 %v7209_v11, %v7208_v53  ;;  %v2872_v23 = vpop.f32.mrb[83].mxu1  ;;  %v7780_v11 = vld [vmem:[#allocation7 + $0x10] sm:$0xff]  }
 0xd37   :  { %v2890_v45 = vpack.c.bf16 %v2872_v23, %v2869_v22  ;;  %v7777_v23 = vld [vmem:[#allocation4 + $0x18] ss:$12 sps:$4 sm:$0xff]  }
 0xd38   :  { %1820 = vrot.lane.b32.xlu0 %v11503_v34, %s8415_s23  ;;  %v7788_v34 = vld [vmem:[#allocation7 + $0x20] sm:$0xff]  }
 0xd39   :  { %1818 = vrot.lane.b32.xlu1 %v11506_v41, %s8415_s23  ;;  %v7792_v41 = vld [vmem:[#allocation4 + $0x64] ss:$12 sps:$4 sm:$0xff]  }
 0xd3c   :  { %2914 = vrot.lane.b32.xlu0 %v2891_v2, %s8414_s22  ;;  %v7779_v2 = vld [vmem:[#allocation4 + $0x1c] ss:$12 sps:$4 sm:$0xff]  }
 0xd3d   :  { %2912 = vrot.lane.b32.xlu1 %v2890_v45, %s8414_s22  ;;  %v7784_v45 = vld [vmem:[#allocation4 + $0x34] ss:$12 sps:$4 sm:$0xff]  }
 0xd41   :  { %2367 = vrot.lane.b32.xlu1 %v11509_v9, %s8407_s5  ;;  %v7796_v9 = vld [vmem:[#allocation7 + $0x30] sm:$0xff]  }
 0xd5e   :  { %v2903_v47 = vpop.permute.xlu0 %2902 }
 0xd5f   :  { %v2901_v54 = vpop.permute.xlu1 %2900 }
 0xd60   :  { %2925 = vst.msk [vmem:[#allocation3] sm:$0xff] %vm2924_vm6, %v2901_v54  ;;  %v7800_v54 = vld [vmem:[#allocation4 + $0x94] ss:$12 sps:$4 sm:$0xff]  }
 0xd62   :  { %v2358_v26 = vpop.permute.xlu0 %2357 }
 0xd63   :  { %v2356_v39 = vpop.permute.xlu1 %2355 }
 0xd64   :  { %2379 = vst.msk [vmem:[#allocation3 + $0x8] sm:$0xff] %vm2377_vm5, %v2356_v39  ;;  %v7798_v39 = vld [vmem:[#allocation4 + $0x90] ss:$12 sps:$4 sm:$0xff]  }
 0xd65   :  { %2926 = vst.msk [vmem:[#allocation3 + $0x8] sm:$0xff] %vm2924_vm6, %v2903_v47  ;;  %v7793_v47 = vld [vmem:[#allocation4 + $0x78] ss:$12 sps:$4 sm:$0xff]  }
 0xd66   :  { %v1813_v21 = vpop.permute.xlu0 %1812 }
 0xd67   :  { %1834 = vst.msk [vmem:[#allocation3 + $0x18] sm:$0xff] %vm1830_vm4, %v1813_v21  ;;  %v1811_v40 = vpop.permute.xlu1 %1810  ;;  %v2949_v62 = vld [vmem:[#allocation3] sm:$0xff]  ;;  %v7803_v21 = vld [vmem:[#allocation4 + $0xac] ss:$12 sps:$4 sm:$0xff]  }
 0xd68   :  { %1833 = vst.msk [vmem:[#allocation3 + $0x10] sm:$0xff] %vm1830_vm4, %v1811_v40  ;;  %7210 = vmatprep.subr.bf16.mxu1 %v2949_v62  ;;  %v7801_v40 = vld [vmem:[#allocation4 + $0xa8] ss:$12 sps:$4 sm:$0xff]  }
 0xd69   :  { %2380 = vst.msk [vmem:[#allocation3 + $0x10] sm:$0xff] %vm2377_vm5, %v2358_v26  ;;  %7211 = vmatpush3.bf16.xpose.msra.mxu1 %v2949_v62  ;;  %v7797_v26 = vld [vmem:[#allocation7 + $0x38] sm:$0xff]   ;;  %v11510_v62 = vmov 0  }
 0xd6a   :  { %v2907_v27 = vpop.permute.xlu0 %2906 }
 0xd6b   :  { %v2905_v44 = vpop.permute.xlu1 %2904 }
 0xd6c   :  { %2927 = vst.msk [vmem:[#allocation3 + $0x10] sm:$0xff] %vm2924_vm6, %v2905_v44  ;;  %v2950_v18 = vld [vmem:[#allocation3 + $0x8] sm:$0xff] }
 0xd6d   :  { %7212 = vmatprep.subr.bf16.mxu1 %v2950_v18 }
 0xd6e   :  { %v2362_v35 = vpop.permute.xlu0 %2361 }
 0xd6f   :  { %v2360_v60 = vpop.permute.xlu1 %2359 }
 0xd70   :  { %2381 = vst.msk [vmem:[#allocation3 + $0x18] sm:$0xff] %vm2377_vm5, %v2360_v60 }
 0xd71   :  { %2928 = vst.msk [vmem:[#allocation3 + $0x18] sm:$0xff] %vm2924_vm6, %v2907_v27  ;;  %7213 = vmatpush3.bf16.xpose.msra.mxu1 %v2950_v18 }
 0xd72   :  { %v1817_v24 = vpop.permute.xlu0 %1816 }
 0xd73   :  { %1836 = vst.msk [vmem:[#allocation3 + $0x28] sm:$0xff] %vm1830_vm4, %v1817_v24  ;;  %v1815_v42 = vpop.permute.xlu1 %1814  ;;  %v2951_v51 = vld [vmem:[#allocation3 + $0x10] sm:$0xff] }
 0xd74   :  { %1835 = vst.msk [vmem:[#allocation3 + $0x20] sm:$0xff] %vm1830_vm4, %v1815_v42  ;;  %7214 = vmatprep.subr.bf16.mxu1 %v2951_v51 }
 0xd75   :  { %2382 = vst.msk [vmem:[#allocation3 + $0x20] sm:$0xff] %vm2377_vm5, %v2362_v35 }
 0xd78   :  { %v2952_v15 = vld [vmem:[#allocation3 + $0x18] sm:$0xff] }
 0xd79   :  { %7215 = vmatpush3.bf16.xpose.msra.mxu1 %v2951_v51 }
 0xd7a   :  { %7216 = vmatprep.subr.bf16.mxu1 %v2952_v15 }
 0xd81   :  { %7217 = vmatpush3.bf16.xpose.msra.mxu1 %v2952_v15  ;;  %v10309_v15 = vrot.slane %v10177_v12, %v11475_v38 }
 0xda2   :  { %v2911_v31 = vpop.permute.xlu0 %2910 }
 0xda3   :  { %v2909_v43 = vpop.permute.xlu1 %2908 }
 0xda4   :  { %2929 = vst.msk [vmem:[#allocation3 + $0x20] sm:$0xff] %vm2924_vm6, %v2909_v43 }
 0xda6   :  { %v2366_v56 = vpop.permute.xlu0 %2365 }
 0xda7   :  { %v2364_v63 = vpop.permute.xlu1 %2363 }
 0xda8   :  { %2383 = vst.msk [vmem:[#allocation3 + $0x28] sm:$0xff] %vm2377_vm5, %v2364_v63  ;;  %v11527_v63 = vld [vmem:[#allocation14_spill] sm:$0xff] }
 0xda9   :  { %2930 = vst.msk [vmem:[#allocation3 + $0x28] sm:$0xff] %vm2924_vm6, %v2911_v31 }
 0xdaa   :  { %v1821_v58 = vpop.permute.xlu0 %1820 }
 0xdab   :  { %1838 = vst.msk [vmem:[#allocation3 + $0x38] sm:$0xff] %vm1830_vm4, %v1821_v58  ;;  %v1819_v1 = vpop.permute.xlu1 %1818  ;;  %v2953_v57 = vld [vmem:[#allocation3 + $0x20] sm:$0xff] }
 0xdac   :  { %1837 = vst.msk [vmem:[#allocation3 + $0x30] sm:$0xff] %vm1830_vm4, %v1819_v1  ;;  %7218 = vmatprep.subr.bf16.mxu1 %v2953_v57 }
 0xdad   :  { %2384 = vst.msk [vmem:[#allocation3 + $0x30] sm:$0xff] %vm2377_vm5, %v2366_v56  ;;  %7219 = vmatpush3.bf16.xpose.msra.mxu1 %v2953_v57 }
 0xdae   :  { %v2915_v48 = vpop.permute.xlu0 %2914 }
 0xdaf   :  { %v2913_v28 = vpop.permute.xlu1 %2912 }
 0xdb0   :  { %2931 = vst.msk [vmem:[#allocation3 + $0x30] sm:$0xff] %vm2924_vm6, %v2913_v28  ;;  %v2954_v53 = vld [vmem:[#allocation3 + $0x28] sm:$0xff] }
 0xdb1   :  { %7220 = vmatprep.subr.bf16.mxu1 %v2954_v53 }
 0xdb3   :  { %v2368_v3 = vpop.permute.xlu1 %2367 }
 0xdb4   :  { %2385 = vst.msk [vmem:[#allocation3 + $0x38] sm:$0xff] %vm2377_vm5, %v2368_v3 }
 0xdb5   :  { %2932 = vst.msk [vmem:[#allocation3 + $0x38] sm:$0xff] %vm2924_vm6, %v2915_v48  ;;  %7221 = vmatpush3.bf16.xpose.msra.mxu1 %v2954_v53 }
 0xdb7   :  { %v2955_v36 = vld [vmem:[#allocation3 + $0x30] sm:$0xff] }
 0xdb8   :  { %7222 = vmatprep.subr.bf16.mxu1 %v2955_v36 }
 0xdbc   :  { %v2956_v22 = vld [vmem:[#allocation3 + $0x38] sm:$0xff] }
 0xdbd   :  { %7223 = vmatpush3.bf16.xpose.msra.mxu1 %v2955_v36 }
 0xdbe   :  { %7224 = vmatprep.subr.bf16.mxu1 %v2956_v22 }
 0xdc5   :  { %7225 = vmatpush3.bf16.xpose.msra.mxu1 %v2956_v22 }
 0xdc6   :  { %3748 = vmatprep.subr.bf16.mxu1 %v7776_v20 }
 0xdcc   :  { %7227 = vmatmul.mubr.bf16.vlgmr.msra.gmra.mrb[84].mxu1 %v7773_v10 }
 0xdcd   :  { %3749 = vmatpush1.bf16.msra.mxu1 %v7774_v49  ;;  %7230 = vmatprep.mubr.bf16.mxu1 %v7780_v11 }
 0xdce   :  { %3750 = vmatprep.subr.bf16.mxu1 %v7779_v2 }
 0xdd1   :  { %3751 = vmatpush1.bf16.msra.mxu1 %v7777_v23 }
 0xdd2   :  { %3752 = vmatprep.subr.bf16.mxu1 %v7784_v45 }
 0xdd4   :  { %7231 = vmatmul.mubr.bf16.gmra.mrb[88].mxu1 %v7781_v50 }
 0xdd5   :  { %3753 = vmatpush1.bf16.msra.mxu1 %v7782_v7  ;;  %7234 = vmatprep.mubr.bf16.mxu1 %v7788_v34 }
 0xdd6   :  { %3754 = vmatprep.subr.bf16.mxu1 %v7787_v8 }
 0xdd9   :  { %3755 = vmatpush1.bf16.msra.mxu1 %v7785_v46 }
 0xdda   :  { %3756 = vmatprep.subr.bf16.mxu1 %v7792_v41 }
 0xddc   :  { %7235 = vmatmul.mubr.bf16.gmra.mrb[92].mxu1 %v7789_v5 }
 0xddd   :  { %3757 = vmatpush1.bf16.msra.mxu1 %v7790_v29  ;;  %7238 = vmatprep.mubr.bf16.mxu1 %v7796_v9 }
 0xdde   :  { %3758 = vmatprep.subr.bf16.mxu1 %v7795_v6 }
 0xde1   :  { %3759 = vmatpush1.bf16.msra.mxu1 %v7793_v47 }
 0xde2   :  { %3760 = vmatprep.subr.bf16.mxu1 %v7800_v54 }
 0xde4   :  { %7239 = vmatmul.mubr.bf16.gmra.mrb[96].mxu1 %v7797_v26 }
 0xde5   :  { %3761 = vmatpush1.bf16.msra.mxu1 %v7798_v39  ;;  %3780 = vmatprep.mubr.bf16.mxu1 %v11510_v62 }
 0xde6   :  { %3762 = vmatprep.subr.bf16.mxu1 %v7803_v21 }
 0xde9   :  { %3763 = vmatpush1.bf16.msra.mxu1 %v7801_v40 }
 0xdec   :  { %3781 = vmatmul.mubr.bf16.vlgmr.msra.gmra.mrb[100].mxu1 %v10093_v33 }
 0xded   :  { %3790 = vmatprep.mubr.bf16.mxu1 %v11510_v62 }
 0xdf4   :  { %3791 = vmatmul.mubr.bf16.gmra.mrb[104].mxu1 %v10095_v25 }
 0xdf5   :  { %3800 = vmatprep.mubr.bf16.mxu1 %v11510_v62 }
 0xdfc   :  { %3801 = vmatmul.mubr.bf16.gmra.mrb[108].mxu1 %v10098_v19 }
 0xdfd   :  { %3810 = vmatprep.mubr.bf16.mxu1 %v11510_v62 }
 0xe04   :  { %3811 = vmatmul.mubr.bf16.gmra.mrb[112].mxu1 %v10106_v0 }
 0xe05   :  { %3820 = vmatprep.mubr.bf16.mxu1 %v11510_v62 }
 0xe0c   :  { %3821 = vmatmul.mubr.bf16.gmra.mrb[116].mxu1 %v10108_v13 }
 0xe0d   :  { %3830 = vmatprep.mubr.bf16.mxu1 %v11510_v62 }
 0xe14   :  { %3831 = vmatmul.mubr.bf16.gmra.mrb[120].mxu1 %v10116_v59 }
 0xe15   :  { %3840 = vmatprep.mubr.bf16.mxu1 %v11510_v62 }
 0xe1c   :  { %3841 = vmatmul.mubr.bf16.gmra.mrb[124].mxu1 %v10118_v16 }
 0xe1d   :  { %3850 = vmatprep.mubr.bf16.mxu1 %v11510_v62 }
 0xe24   :  { %3851 = vmatmul.mubr.bf16.gmra.mrb[128].mxu1 %v10126_v52 }
 0xe9f   :  { %v10275_v33 = vpop.f32.mrb[84].mxu1 }
 0xea0   :  { %11511 = vst [vmem:[#allocation18_spill] sm:$0xff] %v10275_v33  ;;  %v10277_v25 = vpop.f32.mrb[85].mxu1 }
 0xea1   :  { %11512 = vst [vmem:[#allocation19_spill] sm:$0xff] %v10277_v25  ;;  %v10279_v19 = vpop.f32.mrb[86].mxu1 }
 0xea2   :  { %11513 = vst [vmem:[#allocation22_spill] sm:$0xff] %v10279_v19  ;;  %v10281_v0 = vpop.f32.mrb[87].mxu1 }
 0xea3   :  { %11514 = vst [vmem:[#allocation21_spill] sm:$0xff] %v10281_v0 }
 0xea7   :  { %v10283_v13 = vpop.f32.mrb[88].mxu1 }
 0xea8   :  { %11515 = vst [vmem:[#allocation15_spill] sm:$0xff] %v10283_v13  ;;  %v10285_v27 = vpop.f32.mrb[89].mxu1 }
 0xea9   :  { %11516 = vst [vmem:[#allocation16_spill] sm:$0xff] %v10285_v27  ;;  %v10287_v59 = vpop.f32.mrb[90].mxu1 }
 0xeaa   :  { %11517 = vst [vmem:[#allocation17_spill] sm:$0xff] %v10287_v59  ;;  %v10289_v44 = vpop.f32.mrb[91].mxu1 }
 0xeab   :  { %11518 = vst [vmem:[#allocation35_spill] sm:$0xff] %v10289_v44 }
 0xeaf   :  { %v10291_v16 = vpop.f32.mrb[92].mxu1 }
 0xeb0   :  { %11519 = vst [vmem:[#allocation30_spill] sm:$0xff] %v10291_v16  ;;  %v10293_v18 = vpop.f32.mrb[93].mxu1 }
 0xeb1   :  { %11520 = vst [vmem:[#allocation25_spill] sm:$0xff] %v10293_v18  ;;  %v10295_v52 = vpop.f32.mrb[94].mxu1 }
 0xeb2   :  { %11521 = vst [vmem:[#allocation27_spill] sm:$0xff] %v10295_v52  ;;  %v10297_v35 = vpop.f32.mrb[95].mxu1 }
 0xeb3   :  { %11522 = vst [vmem:[#allocation24_spill] sm:$0xff] %v10297_v35 }
 0xeb7   :  { %v10299_v60 = vpop.f32.mrb[96].mxu1 }
 0xeb8   :  { %11523 = vst [vmem:[#allocation20_spill] sm:$0xff] %v10299_v60  ;;  %v10301_v24 = vpop.f32.mrb[97].mxu1 }
 0xeb9   :  { %11524 = vst [vmem:[#allocation32_spill] sm:$0xff] %v10301_v24  ;;  %v10303_v42 = vpop.f32.mrb[98].mxu1 }
 0xeba   :  { %11525 = vst [vmem:[#allocation23_spill] sm:$0xff] %v10303_v42  ;;  %v10305_v51 = vpop.f32.mrb[99].mxu1 }
 0xebb   :  { %11526 = vst [vmem:[#allocation13_spill] sm:$0xff] %v10305_v51 }
 0xebf   :  { %v3782_v31 = vpop.f32.mrb[100].mxu1 }
 0xec0   :  { %v3783_v43 = vadd.f32 %v3782_v31, %v10309_v15  ;;  %v3784_v56 = vpop.f32.mrb[101].mxu1 }
 0xec1   :  { %v3785_v58 = vadd.f32 %v3784_v56, %v11527_v63  ;;  %v3786_v1 = vpop.f32.mrb[102].mxu1 }
 0xec2   :  { %v3787_v57 = vadd.f32 %v3786_v1, %v10309_v15  ;;  %v3788_v28 = vpop.f32.mrb[103].mxu1 }
 0xec3   :  { %v3789_v53 = vadd.f32 %v3788_v28, %v11527_v63 }
 0xec4   :  { %v10315_v3 = vpack.c.bf16 %v3787_v57, %v3783_v43 }
 0xec5   :  { %v10317_v48 = vpack.c.bf16 %v3789_v53, %v3785_v58 }
 0xec6   :  { %7330 = vmatprep.mubr.msk.bf16.mxu1 %vm881_vm3, %v10315_v3 }
 0xec7   :  { %v3792_v38 = vpop.f32.mrb[104].mxu1  ;;  %4496 = vrot.lane.b32.xlu0 %v10317_v48, %s8414_s22  ;;  %7682 = vmatprep.subr.msk.bf16.mxu1 %vm881_vm3, %v10317_v48  ;;  %v4055_v12 = vsel %vm881_vm3, %v10317_v48, 0 }
 0xec8   :  { %v3793_v36 = vadd.f32 %v3792_v38, %v10309_v15  ;;  %v3794_v22 = vpop.f32.mrb[105].mxu1  ;;  %7315 = vmatpush3.bf16.xpose.msra.mxu1 %v4055_v12 }
 0xec9   :  { %v3795_v20 = vadd.f32 %v3794_v22, %v11527_v63  ;;  %v3796_v10 = vpop.f32.mrb[106].mxu1 }
 0xeca   :  { %v3797_v49 = vadd.f32 %v3796_v10, %v10309_v15  ;;  %v3798_v11 = vpop.f32.mrb[107].mxu1 }
 0xecb   :  { %v3799_v2 = vadd.f32 %v3798_v11, %v11527_v63 }
 0xecc   :  { %v10331_v23 = vpack.c.bf16 %v3797_v49, %v3793_v36 }
 0xecd   :  { %v10333_v45 = vpack.c.bf16 %v3799_v2, %v3795_v20 }
 0xecf   :  { %v3802_v50 = vpop.f32.mrb[108].mxu1  ;;  %7683 = vmatprep.subr.msk.bf16.mxu1 %vm881_vm3, %v10333_v45  ;;  %v4058_v7 = vsel %vm881_vm3, %v10333_v45, 0 }
 0xed0   :  { %v3803_v34 = vadd.f32 %v3802_v50, %v10309_v15  ;;  %v3804_v8 = vpop.f32.mrb[109].mxu1  ;;  %7317 = vmatpush3.bf16.xpose.msra.mxu1 %v4058_v7 }
 0xed1   :  { %v3805_v46 = vadd.f32 %v3804_v8, %v11527_v63  ;;  %v3806_v41 = vpop.f32.mrb[110].mxu1 }
 0xed2   :  { %v3807_v5 = vadd.f32 %v3806_v41, %v10309_v15  ;;  %v3808_v29 = vpop.f32.mrb[111].mxu1 }
 0xed3   :  { %v3809_v9 = vadd.f32 %v3808_v29, %v11527_v63 }
 0xed4   :  { %v10343_v6 = vpack.c.bf16 %v3807_v5, %v3803_v34 }
 0xed5   :  { %v10345_v47 = vpack.c.bf16 %v3809_v9, %v3805_v46 }
 0xed7   :  { %v3812_v54 = vpop.f32.mrb[112].mxu1  ;;  %7684 = vmatprep.subr.msk.bf16.mxu1 %vm881_vm3, %v10345_v47  ;;  %v4061_v26 = vsel %vm881_vm3, %v10345_v47, 0 }
 0xed8   :  { %v3813_v39 = vadd.f32 %v3812_v54, %v10309_v15  ;;  %v3814_v21 = vpop.f32.mrb[113].mxu1  ;;  %7319 = vmatpush3.bf16.xpose.msra.mxu1 %v4061_v26 }
 0xed9   :  { %v3815_v40 = vadd.f32 %v3814_v21, %v11527_v63  ;;  %v3816_v62 = vpop.f32.mrb[114].mxu1 }
 0xeda   :  { %v3817_v31 = vadd.f32 %v3816_v62, %v10309_v15  ;;  %v3818_v43 = vpop.f32.mrb[115].mxu1 }
 0xedb   :  { %v3819_v56 = vadd.f32 %v3818_v43, %v11527_v63 }
 0xedc   :  { %v10355_v58 = vpack.c.bf16 %v3817_v31, %v3813_v39 }
 0xedd   :  { %v10357_v1 = vpack.c.bf16 %v3819_v56, %v3815_v40 }
 0xedf   :  { %v3822_v57 = vpop.f32.mrb[116].mxu1  ;;  %7685 = vmatprep.subr.msk.bf16.mxu1 %vm881_vm3, %v10357_v1  ;;  %v4064_v28 = vsel %vm881_vm3, %v10357_v1, 0 }
 0xee0   :  { %v3823_v53 = vadd.f32 %v3822_v57, %v10309_v15  ;;  %v3824_v38 = vpop.f32.mrb[117].mxu1  ;;  %7321 = vmatpush3.bf16.xpose.msra.mxu1 %v4064_v28 }
 0xee1   :  { %v3825_v12 = vadd.f32 %v3824_v38, %v11527_v63  ;;  %v3826_v36 = vpop.f32.mrb[118].mxu1 }
 0xee2   :  { %v3827_v22 = vadd.f32 %v3826_v36, %v10309_v15  ;;  %v3828_v20 = vpop.f32.mrb[119].mxu1 }
 0xee3   :  { %v3829_v10 = vadd.f32 %v3828_v20, %v11527_v63 }
 0xee4   :  { %v10367_v49 = vpack.c.bf16 %v3827_v22, %v3823_v53 }
 0xee5   :  { %v10369_v11 = vpack.c.bf16 %v3829_v10, %v3825_v12 }
 0xee7   :  { %v3832_v2 = vpop.f32.mrb[120].mxu1  ;;  %7686 = vmatprep.subr.msk.bf16.mxu1 %vm881_vm3, %v10369_v11  ;;  %v4067_v50 = vsel %vm881_vm3, %v10369_v11, 0 }
 0xee8   :  { %v3833_v7 = vadd.f32 %v3832_v2, %v10309_v15  ;;  %v3834_v34 = vpop.f32.mrb[121].mxu1  ;;  %7323 = vmatpush3.bf16.xpose.msra.mxu1 %v4067_v50 }
 0xee9   :  { %v3835_v8 = vadd.f32 %v3834_v34, %v11527_v63  ;;  %v3836_v46 = vpop.f32.mrb[122].mxu1 }
 0xeea   :  { %v3837_v41 = vadd.f32 %v3836_v46, %v10309_v15  ;;  %v3838_v5 = vpop.f32.mrb[123].mxu1 }
 0xeeb   :  { %v3839_v29 = vadd.f32 %v3838_v5, %v11527_v63 }
 0xeec   :  { %v10379_v9 = vpack.c.bf16 %v3837_v41, %v3833_v7 }
 0xeed   :  { %v10381_v54 = vpack.c.bf16 %v3839_v29, %v3835_v8 }
 0xeef   :  { %v3842_v26 = vpop.f32.mrb[124].mxu1  ;;  %7687 = vmatprep.subr.msk.bf16.mxu1 %vm881_vm3, %v10381_v54  ;;  %v4070_v39 = vsel %vm881_vm3, %v10381_v54, 0 }
 0xef0   :  { %v3843_v21 = vadd.f32 %v3842_v26, %v10309_v15  ;;  %v3844_v40 = vpop.f32.mrb[125].mxu1  ;;  %7325 = vmatpush3.bf16.xpose.msra.mxu1 %v4070_v39 }
 0xef1   :  { %v3845_v62 = vadd.f32 %v3844_v40, %v11527_v63  ;;  %v3846_v31 = vpop.f32.mrb[126].mxu1 }
 0xef2   :  { %v3847_v43 = vadd.f32 %v3846_v31, %v10309_v15  ;;  %v3848_v56 = vpop.f32.mrb[127].mxu1 }
 0xef3   :  { %v3849_v57 = vadd.f32 %v3848_v56, %v11527_v63 }
 0xef4   :  { %v10391_v28 = vpack.c.bf16 %v3847_v43, %v3843_v21 }
 0xef5   :  { %v10393_v53 = vpack.c.bf16 %v3849_v57, %v3845_v62 }
 0xef7   :  { %v3852_v38 = vpop.f32.mrb[128].mxu1  ;;  %7688 = vmatprep.subr.msk.bf16.mxu1 %vm881_vm3, %v10393_v53  ;;  %v4073_v12 = vsel %vm881_vm3, %v10393_v53, 0 }
 0xef8   :  { %v3853_v36 = vadd.f32 %v3852_v38, %v10309_v15  ;;  %v3854_v22 = vpop.f32.mrb[129].mxu1  ;;  %7327 = vmatpush3.bf16.xpose.msra.mxu1 %v4073_v12 }
 0xef9   :  { %v3855_v20 = vadd.f32 %v3854_v22, %v11527_v63  ;;  %v3856_v10 = vpop.f32.mrb[130].mxu1 }
 0xefa   :  { %v3857_v2 = vadd.f32 %v3856_v10, %v10309_v15  ;;  %v3858_v50 = vpop.f32.mrb[131].mxu1 }
 0xefb   :  { %v3859_v7 = vadd.f32 %v3858_v50, %v11527_v63 }
 0xefc   :  { %v10403_v34 = vpack.c.bf16 %v3857_v2, %v3853_v36 }
 0xefd   :  { %v10405_v8 = vpack.c.bf16 %v3859_v7, %v3855_v20 }
 0xeff   :  { %7689 = vmatprep.subr.msk.bf16.mxu1 %vm881_vm3, %v10405_v8  ;;  %v4076_v46 = vsel %vm881_vm3, %v10405_v8, 0 }
 0xf00   :  { %7329 = vmatpush3.bf16.xpose.msra.mxu1 %v4076_v46 }
 0xf07   :  { %7331 = vmatmul.mubr.msk.bf16.vlgmr.msra.gmra.mrb[132].mxu1 %vm881_vm3, %v10331_v23 }
 0xf08   :  { %7334 = vmatprep.mubr.msk.bf16.mxu1 %vm881_vm3, %v10343_v6 }
 0xf0f   :  { %7335 = vmatmul.mubr.msk.bf16.gmra.mrb[136].mxu1 %vm881_vm3, %v10355_v58 }
 0xf10   :  { %7338 = vmatprep.mubr.msk.bf16.mxu1 %vm881_vm3, %v10367_v49 }
 0xf17   :  { %7339 = vmatmul.mubr.msk.bf16.gmra.mrb[140].mxu1 %vm881_vm3, %v10379_v9 }
 0xf18   :  { %7342 = vmatprep.mubr.msk.bf16.mxu1 %vm881_vm3, %v10391_v28 }
 0xf1f   :  { %7343 = vmatmul.mubr.msk.bf16.gmra.mrb[144].mxu1 %vm881_vm3, %v10403_v34 }
 0xf39   :  { %v10425_v15 = vpop.permute.xlu0 %4496 }
 0xf3a   :  { %7690 = vmatprep.subr.msk.bf16.mxu0 %vm881_vm3, %v10425_v15 }
 0xfda   :  { %v7332_v63 = vpop.f32.mrb[132].mxu1 }
 0xfdb   :  { %4179 = vmax.xlane.f32.xlu0 %v7332_v63  ;;  %v4112_v41 = vpop.f32.mrb[133].mxu1 }
 0xfdc   :  { %4175 = vmax.xlane.f32.xlu1 %v4112_v41  ;;  %v7333_v5 = vpop.f32.mrb[134].mxu1 }
 0xfdd   :  { %v4115_v29 = vpop.f32.mrb[135].mxu1 }
 0xfdf   :  { %4177 = vmax.xlane.f32.xlu0 %v4115_v29 }
 0xfe0   :  { %4181 = vmax.xlane.f32.xlu1 %v7333_v5 }
 0xfe2   :  { %v7336_v26 = vpop.f32.mrb[136].mxu1 }
 0xfe3   :  { %4187 = vmax.xlane.f32.xlu0 %v7336_v26  ;;  %v4128_v39 = vpop.f32.mrb[137].mxu1 }
 0xfe4   :  { %v10429_v21 = vpop.f32.mrb[138].mxu1 }
 0xfe5   :  { %v10431_v40 = vpop.f32.mrb[139].mxu1 }
 0xfe7   :  { %4183 = vmax.xlane.f32.xlu0 %v4128_v39 }
 0xfea   :  { %v10433_v62 = vpop.f32.mrb[140].mxu1 }
 0xfeb   :  { %4195 = vmax.xlane.f32.xlu0 %v10433_v62  ;;  %v10436_v31 = vpop.f32.mrb[141].mxu1 }
 0xfec   :  { %v10438_v43 = vpop.f32.mrb[142].mxu1 }
 0xfed   :  { %v10440_v56 = vpop.f32.mrb[143].mxu1 }
 0xfef   :  { %4191 = vmax.xlane.f32.xlu0 %v10436_v31 }
 0xff1   :  { %4498 = vrot.lane.b32.xlu1 %v10333_v45, %s8414_s22 }
 0xff2   :  { %v7344_v57 = vpop.f32.mrb[144].mxu1 }
 0xff3   :  { %4203 = vmax.xlane.f32.xlu0 %v7344_v57  ;;  %v10445_v38 = vpop.f32.mrb[145].mxu1 }
 0xff4   :  { %v10447_v12 = vpop.f32.mrb[146].mxu1 }
 0xff5   :  { %v10449_v36 = vpop.f32.mrb[147].mxu1 }
 0xff7   :  { %4199 = vmax.xlane.f32.xlu0 %v10445_v38 }
0x100d   :  { %4500 = vrot.lane.b32.xlu0 %v10345_v47, %s8414_s22 }
0x1015   :  { %4189 = vmax.xlane.f32.xlu1 %v10429_v21 }
0x1019   :  { %4185 = vmax.xlane.f32.xlu1 %v10431_v40 }
0x101d   :  { %4197 = vmax.xlane.f32.xlu1 %v10438_v43 }
0x1021   :  { %4193 = vmax.xlane.f32.xlu1 %v10440_v56 }
0x1025   :  { %4205 = vmax.xlane.f32.xlu1 %v10447_v12 }
0x1029   :  { %4201 = vmax.xlane.f32.xlu1 %v10449_v36 }
0x1068   :  { %v4180_v22 = vpop.xlane.xlu0 %4179 }
0x1069   :  { %v4209_v20 = vsub.f32 %v7332_v63, %v4180_v22  ;;  %v4176_v10 = vpop.xlane.xlu1 %4175 }
0x106a   :  { %v4207_v2 = vsub.f32 %v4112_v41, %v4176_v10 }
0x106b   :  { %v4227_v50 = vmul.f32 1.442695, %v4209_v20 }
0x106c   :  { %v4178_v7 = vpop.xlane.xlu0 %4177  ;;  %v4223_v46 = vmul.f32 1.442695, %v4207_v2 }
0x106d   :  { %8072 = vpow2.f32 %v4227_v50  ;;  %v4182_v42 = vpop.xlane.xlu1 %4181  ;;  %v4208_v51 = vsub.f32 %v4115_v29, %v4178_v7 }
0x106e   :  { %v4210_v52 = vsub.f32 %v7333_v5, %v4182_v42  ;;  %8074 = vpow2.f32 %v4223_v46 }
0x106f   :  { %v4225_v60 = vmul.f32 1.442695, %v4208_v51 }
0x1070   :  { %v4229_v35 = vmul.f32 1.442695, %v4210_v52  ;;  %v4188_v52 = vpop.xlane.xlu0 %4187 }
0x1071   :  { %v4213_v51 = vsub.f32 %v7336_v26, %v4188_v52  ;;  %v10476_v5 = vpop.permute.xlu1 %4498 }
0x1072   :  { %8076 = vpow2.f32 %v4229_v35 }
0x1073   :  { %8078 = vpow2.f32 %v4225_v60  ;;  %v4235_v29 = vmul.f32 1.442695, %v4213_v51 }
0x1074   :  { %v4184_v42 = vpop.xlane.xlu0 %4183 }
0x1075   :  { %v4211_v22 = vsub.f32 %v4128_v39, %v4184_v42  ;;  %8080 = vpow2.f32 %v4235_v29 }
0x1077   :  { %v10460_v59 = vpop.eup %8072  ;;  %v4231_v2 = vmul.f32 1.442695, %v4211_v22 }
0x1078   :  { %4259 = vadd.xlane.f32.xlu0 %v10460_v59  ;;  %v10463_v24 = vpop.eup %8074  ;;  %v4196_v35 = vpop.xlane.xlu0 %4195 }
0x1079   :  { %8082 = vpow2.f32 %v4231_v2  ;;  %v4217_v18 = vsub.f32 %v10433_v62, %v4196_v35 }
0x107b   :  { %v4243_v42 = vmul.f32 1.442695, %v4217_v18 }
0x107c   :  { %v10465_v63 = vpop.eup %8076  ;;  %4255 = vadd.xlane.f32.xlu0 %v10463_v24  ;;  %v4192_v60 = vpop.xlane.xlu0 %4191 }
0x107d   :  { %4261 = vadd.xlane.f32.xlu1 %v10465_v63  ;;  %v10469_v41 = vpop.eup %8078  ;;  %v4215_v29 = vsub.f32 %v10436_v31, %v4192_v60 }
0x1080   :  { %v4204_v20 = vpop.xlane.xlu0 %4203 }
0x1081   :  { %4257 = vadd.xlane.f32.xlu1 %v10469_v41  ;;  %v4221_v50 = vsub.f32 %v7344_v57, %v4204_v20 }
0x1083   :  { %v4251_v26 = vmul.f32 1.442695, %v4221_v50 }
0x1084   :  { %v4200_v16 = vpop.xlane.xlu0 %4199 }
0x1085   :  { %v4219_v51 = vsub.f32 %v10445_v38, %v4200_v16 }
0x1087   :  { %v4247_v22 = vmul.f32 1.442695, %v4219_v51 }
0x1088   :  { %v4501_v51 = vpop.permute.xlu0 %4500 }
0x1092   :  { %4504 = vrot.lane.b32.xlu0 %v10369_v11, %s8414_s22  ;;  %4502 = vrot.lane.b32.xlu1 %v10357_v1, %s8414_s22 }
0x10a2   :  { %v4190_v10 = vpop.xlane.xlu1 %4189 }
0x10a3   :  { %v4214_v46 = vsub.f32 %v10429_v21, %v4190_v10  ;;  %v10483_v21 = vpop.eup %8080 }
0x10a5   :  { %v4237_v39 = vmul.f32 1.442695, %v4214_v46 }
0x10a6   :  { %v4186_v7 = vpop.xlane.xlu1 %4185 }
0x10a7   :  { %v4212_v44 = vsub.f32 %v10431_v40, %v4186_v7 }
0x10a9   :  { %v4233_v19 = vmul.f32 1.442695, %v4212_v44  ;;  %v4239_v44 = vmul.f32 1.442695, %v4215_v29 }
0x10aa   :  { %v4198_v52 = vpop.xlane.xlu1 %4197 }
0x10ab   :  { %8084 = vpow2.f32 %v4233_v19  ;;  %v4218_v62 = vsub.f32 %v10438_v43, %v4198_v52  ;;  %v10488_v19 = vpop.eup %8082 }
0x10ac   :  { %8086 = vpow2.f32 %v4251_v26 }
0x10ad   :  { %8088 = vpow2.f32 %v4237_v39  ;;  %v4245_v38 = vmul.f32 1.442695, %v4218_v62 }
0x10ae   :  { %v4194_v57 = vpop.xlane.xlu1 %4193  ;;  %8090 = vpow2.f32 %v4243_v42 }
0x10af   :  { %8092 = vpow2.f32 %v4247_v22  ;;  %v4216_v35 = vsub.f32 %v10440_v56, %v4194_v57 }
0x10b0   :  { %8094 = vpow2.f32 %v4239_v44 }
0x10b1   :  { %4267 = vadd.xlane.f32.xlu0 %v10483_v21 }
0x10b2   :  { %v4206_v40 = vpop.xlane.xlu1 %4205 }
0x10b3   :  { %v4222_v16 = vsub.f32 %v10447_v12, %v4206_v40  ;;  %v4241_v12 = vmul.f32 1.442695, %v4216_v35 }
0x10b5   :  { %v10490_v18 = vpop.eup %8084  ;;  %v4253_v31 = vmul.f32 1.442695, %v4222_v16 }
0x10b6   :  { %4265 = vadd.xlane.f32.xlu0 %v10490_v18  ;;  %4263 = vadd.xlane.f32.xlu1 %v10488_v19  ;;  %v10495_v60 = vpop.eup %8086  ;;  %v4202_v20 = vpop.xlane.xlu1 %4201 }
0x10b7   :  { %8096 = vpow2.f32 %v4253_v31  ;;  %v10497_v43 = vpop.eup %8088  ;;  %v4220_v10 = vsub.f32 %v10449_v36, %v4202_v20 }
0x10b8   :  { %8098 = vpow2.f32 %v4245_v38  ;;  %v10502_v2 = vpop.eup %8090 }
0x10b9   :  { %v10504_v50 = vpop.eup %8092  ;;  %8100 = vpow2.f32 %v4241_v12  ;;  %v4249_v56 = vmul.f32 1.442695, %v4220_v10  ;;  %v4537_v10 = vsel %vm881_vm3, %v10425_v15, 0 }
0x10ba   :  { %4283 = vadd.xlane.f32.xlu0 %v10495_v60  ;;  %4269 = vadd.xlane.f32.xlu1 %v10497_v43  ;;  %v10508_v7 = vpop.eup %8094 }
0x10bb   :  { %8102 = vpow2.f32 %v4249_v56 }
0x10be   :  { %4279 = vadd.xlane.f32.xlu0 %v10504_v50  ;;  %4275 = vadd.xlane.f32.xlu1 %v10502_v2 }
0x10c1   :  { %v10510_v46 = vpop.eup %8096 }
0x10c2   :  { %4285 = vadd.xlane.f32.xlu0 %v10510_v46  ;;  %4271 = vadd.xlane.f32.xlu1 %v10508_v7  ;;  %v10514_v36 = vpop.eup %8098 }
0x10c3   :  { %v10517_v26 = vpop.eup %8100 }
0x10c5   :  { %v10520_v52 = vpop.eup %8102 }
0x10c6   :  { %4277 = vadd.xlane.f32.xlu1 %v10514_v36 }
0x10ca   :  { %4273 = vadd.xlane.f32.xlu1 %v10517_v26 }
0x10ce   :  { %4281 = vadd.xlane.f32.xlu1 %v10520_v52 }
0x10d8   :  { %4508 = vrot.lane.b32.xlu0 %v10393_v53, %s8414_s22 }
0x10dc   :  { %4510 = vrot.lane.b32.xlu0 %v10405_v8, %s8414_s22 }
0x10df   :  { %4506 = vrot.lane.b32.xlu1 %v10381_v54, %s8414_s22 }
0x10e0   :  { %4474 = vrot.lane.b32.xlu0 %v10331_v23, %s8414_s22 }
0x10e3   :  { %4472 = vrot.lane.b32.xlu1 %v10315_v3, %s8414_s22 }
0x10e4   :  { %4478 = vrot.lane.b32.xlu0 %v10355_v58, %s8414_s22 }
0x10e7   :  { %4476 = vrot.lane.b32.xlu1 %v10343_v6, %s8414_s22 }
0x10e8   :  { %4482 = vrot.lane.b32.xlu0 %v10379_v9, %s8414_s22 }
0x10eb   :  { %4480 = vrot.lane.b32.xlu1 %v10367_v49, %s8414_s22 }
0x10ec   :  { %4486 = vrot.lane.b32.xlu0 %v10403_v34, %s8414_s22 }
0x10ef   :  { %4484 = vrot.lane.b32.xlu1 %v10391_v28, %s8414_s22 }
0x10f0   :  { %4817 = vrot.lane.b32.xlu0 %v10184_v32, %s8414_s22 }
0x10f3   :  { %4819 = vrot.lane.b32.xlu1 %v10182_v4, %s8414_s22 }
0x10f4   :  { %4821 = vrot.lane.b32.xlu0 %v10192_v55, %s8414_s22 }
0x10f7   :  { %4823 = vrot.lane.b32.xlu1 %v10189_v30, %s8414_s22 }
0x10f8   :  { %4825 = vrot.lane.b32.xlu0 %v10200_v61, %s8414_s22 }
0x10fb   :  { %4829 = vrot.lane.b32.xlu1 %v10208_v17, %s8414_s22 }
0x10fc   :  { %4827 = vrot.lane.b32.xlu0 %v10197_v37, %s8414_s22 }
0x1100   :  { %4831 = vrot.lane.b32.xlu0 %v10205_v14, %s8414_s22 }
0x1105   :  { %v4260_v39 = vpop.xlane.xlu0 %4259 }
0x1109   :  { %v4256_v42 = vpop.xlane.xlu0 %4255 }
0x110a   :  { %v4262_v29 = vpop.xlane.xlu1 %4261 }
0x110b   :  { %8104 = vrcp.f32 %v4262_v29 }
0x110c   :  { %8106 = vrcp.f32 %v4256_v42 }
0x110d   :  { %8108 = vrcp.f32 %v4260_v39  ;;  %v4505_v56 = vpop.permute.xlu0 %4504 }
0x110e   :  { %v4258_v57 = vpop.xlane.xlu1 %4257  ;;  %v4549_v39 = vsel %vm881_vm3, %v4505_v56, 0 }
0x110f   :  { %8110 = vrcp.f32 %v4258_v57 }
0x1115   :  { %v8105_v22 = vpop.eup %8104 }
0x1116   :  { %v8107_v44 = vpop.eup %8106  ;;  %v4306_v16 = vmul.f32 %v8105_v22, %v10465_v63  ;;  %v4540_v63 = vsel %vm881_vm3, %v10476_v5, 0 }
0x1117   :  { %v8109_v40 = vpop.eup %8108  ;;  %v4303_v31 = vmul.f32 %v8107_v44, %v10463_v24  ;;  %v4543_v24 = vsel %vm881_vm3, %v4501_v51, 0 }
0x1118   :  { %v4305_v35 = vmul.f32 %v8109_v40, %v10460_v59  ;;  %v4503_v59 = vpop.permute.xlu1 %4502 }
0x1119   :  { %v8111_v62 = vpop.eup %8110 }
0x111a   :  { %v4304_v38 = vmul.f32 %v8111_v62, %v10469_v41  ;;  %v4320_v12 = vpack.c.bf16 %v4306_v16, %v4305_v35  ;;  %v4546_v41 = vsel %vm881_vm3, %v4503_v59, 0 }
0x111c   :  { %v4319_v20 = vpack.c.bf16 %v4304_v38, %v4303_v31 }
0x111e   :  { %7362 = vmatprep.mubr.bf16.mxu0 %v4319_v20 }
0x111f   :  { %7363 = vmatmul.mubr.bf16.vlgmr.msra.gmra.mrb[120].mxu0 %v4320_v12 }
0x1120   :  { %7379 = vmatpush3.bf16.xpose.msra.mxu0 %v4537_v10 }
0x1121   :  { %7691 = vmatprep.subr.msk.bf16.mxu0 %vm881_vm3, %v10476_v5 }
0x1128   :  { %7381 = vmatpush3.bf16.xpose.msra.mxu0 %v4540_v63 }
0x1129   :  { %7692 = vmatprep.subr.msk.bf16.mxu0 %vm881_vm3, %v4501_v51 }
0x1130   :  { %7383 = vmatpush3.bf16.xpose.msra.mxu0 %v4543_v24 }
0x1131   :  { %7693 = vmatprep.subr.msk.bf16.mxu0 %vm881_vm3, %v4503_v59 }
0x1138   :  { %7385 = vmatpush3.bf16.xpose.msra.mxu0 %v4546_v41 }
0x1139   :  { %7694 = vmatprep.subr.msk.bf16.mxu0 %vm881_vm3, %v4505_v56 }
0x113e   :  { %v4268_v15 = vpop.xlane.xlu0 %4267 }
0x1140   :  { %7387 = vmatpush3.bf16.xpose.msra.mxu0 %v4549_v39 }
0x1143   :  { %v4266_v5 = vpop.xlane.xlu0 %4265  ;;  %v4264_v42 = vpop.xlane.xlu1 %4263 }
0x1144   :  { %8112 = vrcp.f32 %v4266_v5 }
0x1145   :  { %8114 = vrcp.f32 %v4264_v42 }
0x1146   :  { %8116 = vrcp.f32 %v4268_v15 }
0x1147   :  { %v4284_v51 = vpop.xlane.xlu0 %4283  ;;  %v4270_v29 = vpop.xlane.xlu1 %4269 }
0x1148   :  { %8118 = vrcp.f32 %v4270_v29 }
0x114b   :  { %v4280_v57 = vpop.xlane.xlu0 %4279  ;;  %v4276_v22 = vpop.xlane.xlu1 %4275 }
0x114e   :  { %v8113_v44 = vpop.eup %8112 }
0x114f   :  { %v8115_v40 = vpop.eup %8114  ;;  %v4286_v62 = vpop.xlane.xlu0 %4285  ;;  %v4308_v31 = vmul.f32 %v8113_v44, %v10490_v18 }
0x1150   :  { %v4272_v16 = vpop.xlane.xlu1 %4271  ;;  %v4307_v38 = vmul.f32 %v8115_v40, %v10488_v19  ;;  %v8117_v35 = vpop.eup %8116 }
0x1151   :  { %v4309_v24 = vmul.f32 %v8117_v35, %v10483_v21 }
0x1152   :  { %v4321_v20 = vpack.c.bf16 %v4308_v31, %v4307_v38  ;;  %v8119_v12 = vpop.eup %8118 }
0x1153   :  { %v4509_v10 = vpop.permute.xlu0 %4508  ;;  %v4310_v59 = vmul.f32 %v8119_v12, %v10497_v43 }
0x1154   :  { %v4278_v63 = vpop.xlane.xlu1 %4277  ;;  %7366 = vmatprep.mubr.bf16.mxu0 %v4321_v20 }
0x1155   :  { %8120 = vrcp.f32 %v4278_v63  ;;  %v4322_v41 = vpack.c.bf16 %v4310_v59, %v4309_v24 }
0x1156   :  { %8122 = vrcp.f32 %v4272_v16 }
0x1157   :  { %8124 = vrcp.f32 %v4276_v22  ;;  %v4511_v56 = vpop.permute.xlu0 %4510  ;;  %7367 = vmatmul.mubr.bf16.gmra.mrb[124].mxu0 %v4322_v41  ;;  %v4555_v41 = vsel %vm881_vm3, %v4509_v10, 0 }
0x1158   :  { %v4274_v15 = vpop.xlane.xlu1 %4273 }
0x1159   :  { %8126 = vrcp.f32 %v4274_v15 }
0x115a   :  { %8128 = vrcp.f32 %v4280_v57 }
0x115b   :  { %v4475_v19 = vpop.permute.xlu0 %4474 }
0x115c   :  { %v4282_v18 = vpop.xlane.xlu1 %4281 }
0x115d   :  { %8130 = vrcp.f32 %v4282_v18 }
0x115e   :  { %8132 = vrcp.f32 %v4286_v62 }
0x115f   :  { %v8121_v39 = vpop.eup %8120  ;;  %8134 = vrcp.f32 %v4284_v51  ;;  %v4479_v5 = vpop.permute.xlu0 %4478 }
0x1160   :  { %v4507_v42 = vpop.permute.xlu1 %4506  ;;  %v8123_v21 = vpop.eup %8122  ;;  %v4314_v57 = vmul.f32 %v8121_v39, %v10514_v36 }
0x1161   :  { %7695 = vmatprep.subr.msk.bf16.mxu0 %vm881_vm3, %v4507_v42  ;;  %v4552_v43 = vsel %vm881_vm3, %v4507_v42, 0  ;;  %v8125_v29 = vpop.eup %8124  ;;  %v4311_v62 = vmul.f32 %v8123_v21, %v10508_v7 }
0x1162   :  { %7389 = vmatpush3.bf16.xpose.msra.mxu0 %v4552_v43  ;;  %v4313_v31 = vmul.f32 %v8125_v29, %v10502_v2 }
0x1163   :  { %v8127_v22 = vpop.eup %8126  ;;  %7696 = vmatprep.subr.msk.bf16.mxu0 %vm881_vm3, %v4509_v10  ;;  %v4483_v44 = vpop.permute.xlu0 %4482 }
0x1164   :  { %v4473_v40 = vpop.permute.xlu1 %4472  ;;  %v4312_v51 = vmul.f32 %v8127_v22, %v10517_v26  ;;  %v8129_v16 = vpop.eup %8128  ;;  %v4324_v20 = vpack.c.bf16 %v4314_v57, %v4313_v31 }
0x1165   :  { %v4315_v59 = vmul.f32 %v8129_v16, %v10504_v50 }
0x1166   :  { %v4323_v38 = vpack.c.bf16 %v4312_v51, %v4311_v62 }
0x1167   :  { %v8131_v35 = vpop.eup %8130  ;;  %v4487_v63 = vpop.permute.xlu0 %4486 }
0x1168   :  { %v8133_v12 = vpop.eup %8132  ;;  %7370 = vmatprep.mubr.bf16.mxu0 %v4323_v38  ;;  %v4477_v24 = vpop.permute.xlu1 %4476  ;;  %v4316_v36 = vmul.f32 %v8131_v35, %v10520_v52  ;;  %v4558_v52 = vsel %vm881_vm3, %v4511_v56, 0 }
0x1169   :  { %7371 = vmatmul.mubr.bf16.gmra.mrb[128].mxu0 %v4324_v20  ;;  %v8135_v7 = vpop.eup %8134  ;;  %v4318_v2 = vmul.f32 %v8133_v12, %v10510_v46 }
0x116a   :  { %7391 = vmatpush3.bf16.xpose.msra.mxu0 %v4555_v41  ;;  %v4325_v26 = vpack.c.bf16 %v4316_v36, %v4315_v59  ;;  %v4317_v39 = vmul.f32 %v8135_v7, %v10495_v60 }
0x116b   :  { %7697 = vmatprep.subr.msk.bf16.mxu0 %vm881_vm3, %v4511_v56  ;;  %v4818_v15 = vpop.permute.xlu0 %4817 }
0x116c   :  { %7374 = vmatprep.mubr.bf16.mxu0 %v4325_v26  ;;  %v4481_v18 = vpop.permute.xlu1 %4480  ;;  %7410 = vmatprep.subr.bf16.mxu1 %v4818_v15  ;;  %v4326_v50 = vpack.c.bf16 %v4318_v2, %v4317_v39 }
0x116d   :  { %7411 = vmatpush3.bf16.msra.mxu1 %v4818_v15 }
0x116f   :  { %v4822_v21 = vpop.permute.xlu0 %4821 }
0x1170   :  { %v4485_v42 = vpop.permute.xlu1 %4484 }
0x1171   :  { %7375 = vmatmul.mubr.bf16.gmra.mrb[132].mxu0 %v4326_v50 }
0x1172   :  { %7393 = vmatpush3.bf16.xpose.msra.mxu0 %v4558_v52  ;;  %7394 = vmatprep.mubr.msk.bf16.mxu0 %vm881_vm3, %v4473_v40 }
0x1173   :  { %v4826_v60 = vpop.permute.xlu0 %4825 }
0x1174   :  { %v4820_v10 = vpop.permute.xlu1 %4819 }
0x1175   :  { %7412 = vmatprep.subr.bf16.mxu1 %v4820_v10 }
0x1176   :  { %7413 = vmatpush3.bf16.msra.mxu1 %v4820_v10 }
0x1177   :  { %7414 = vmatprep.subr.bf16.mxu1 %v4822_v21  ;;  %v4828_v56 = vpop.permute.xlu0 %4827 }
0x1178   :  { %v4824_v46 = vpop.permute.xlu1 %4823 }
0x1179   :  { %7395 = vmatmul.mubr.msk.bf16.vlgmr.msra.gmra.mrb[136].mxu0 %vm881_vm3, %v4475_v19 }
0x117a   :  { %7398 = vmatprep.mubr.msk.bf16.mxu0 %vm881_vm3, %v4477_v24  ;;  %7415 = vmatpush3.bf16.msra.mxu1 %v4822_v21 }
0x117b   :  { %7416 = vmatprep.subr.bf16.mxu1 %v4824_v46  ;;  %v4832_v19 = vpop.permute.xlu0 %4831 }
0x117c   :  { %v4830_v43 = vpop.permute.xlu1 %4829 }
0x117e   :  { %7417 = vmatpush3.bf16.msra.mxu1 %v4824_v46 }
0x117f   :  { %7418 = vmatprep.subr.bf16.mxu1 %v4826_v60 }
0x1181   :  { %7399 = vmatmul.mubr.msk.bf16.gmra.mrb[140].mxu0 %vm881_vm3, %v4479_v5 }
0x1182   :  { %7402 = vmatprep.mubr.msk.bf16.mxu0 %vm881_vm3, %v4481_v18  ;;  %7419 = vmatpush3.bf16.msra.mxu1 %v4826_v60 }
0x1183   :  { %7420 = vmatprep.subr.bf16.mxu1 %v4828_v56 }
0x1186   :  { %7421 = vmatpush3.bf16.msra.mxu1 %v4828_v56 }
0x1187   :  { %7422 = vmatprep.subr.bf16.mxu1 %v4830_v43 }
0x1189   :  { %7403 = vmatmul.mubr.msk.bf16.gmra.mrb[144].mxu0 %vm881_vm3, %v4483_v44 }
0x118a   :  { %7406 = vmatprep.mubr.msk.bf16.mxu0 %vm881_vm3, %v4485_v42  ;;  %7423 = vmatpush3.bf16.msra.mxu1 %v4830_v43 }
0x118b   :  { %7424 = vmatprep.subr.bf16.mxu1 %v4832_v19 }
0x118e   :  { %7425 = vmatpush3.bf16.msra.mxu1 %v4832_v19 }
0x1191   :  { %7407 = vmatmul.mubr.msk.bf16.gmra.mrb[148].mxu0 %vm881_vm3, %v4487_v63 }
0x11f2   :  { %v7364_v29 = vpop.f32.mrb[120].mxu0 }
0x11f3   :  { %v4361_v5 = vpop.f32.mrb[121].mxu0 }
0x11f4   :  { %v7365_v22 = vpop.f32.mrb[122].mxu0 }
0x11f5   :  { %v4425_v57 = vpack.c.bf16 %v7365_v22, %v7364_v29  ;;  %v4364_v40 = vpop.f32.mrb[123].mxu0 }
0x11f6   :  { %v4424_v62 = vpack.c.bf16 %v4364_v40, %v4361_v5 }
0x11f7   :  { %4433 = vst.msk [vmem:[#allocation3 + $0x8] sm:$0xff] %vm881_vm3, %v4425_v57 }
0x11f8   :  { %4432 = vst.msk [vmem:[#allocation3] sm:$0xff] %vm881_vm3, %v4424_v62 }
0x122a   :  { %v7368_v51 = vpop.f32.mrb[124].mxu0 }
0x122b   :  { %v4377_v44 = vpop.f32.mrb[125].mxu0 }
0x122c   :  { %v7369_v16 = vpop.f32.mrb[126].mxu0 }
0x122d   :  { %v4427_v31 = vpack.c.bf16 %v7369_v16, %v7368_v51  ;;  %v4380_v38 = vpop.f32.mrb[127].mxu0 }
0x122e   :  { %v4426_v35 = vpack.c.bf16 %v4380_v38, %v4377_v44 }
0x122f   :  { %4435 = vst.msk [vmem:[#allocation3 + $0x18] sm:$0xff] %vm881_vm3, %v4427_v31 }
0x1230   :  { %4434 = vst.msk [vmem:[#allocation3 + $0x10] sm:$0xff] %vm881_vm3, %v4426_v35 }
0x123c   :  { %v7372_v20 = vpop.f32.mrb[128].mxu0 }
0x123d   :  { %v4393_v12 = vpop.f32.mrb[129].mxu0 }
0x123e   :  { %v7373_v63 = vpop.f32.mrb[130].mxu0 }
0x123f   :  { %v4429_v24 = vpack.c.bf16 %v7373_v63, %v7372_v20  ;;  %v4396_v59 = vpop.f32.mrb[131].mxu0 }
0x1240   :  { %v4428_v36 = vpack.c.bf16 %v4396_v59, %v4393_v12 }
0x1241   :  { %4437 = vst.msk [vmem:[#allocation3 + $0x28] sm:$0xff] %vm881_vm3, %v4429_v24 }
0x1242   :  { %4436 = vst.msk [vmem:[#allocation3 + $0x20] sm:$0xff] %vm881_vm3, %v4428_v36 }
0x1244   :  { %v7376_v41 = vpop.f32.mrb[132].mxu0 }
0x1245   :  { %v4409_v7 = vpop.f32.mrb[133].mxu0 }
0x1246   :  { %v7377_v26 = vpop.f32.mrb[134].mxu0 }
0x1247   :  { %v4431_v2 = vpack.c.bf16 %v7377_v26, %v7376_v41  ;;  %v4412_v15 = vpop.f32.mrb[135].mxu0 }
0x1248   :  { %v4430_v18 = vpack.c.bf16 %v4412_v15, %v4409_v7 }
0x1249   :  { %4439 = vst.msk [vmem:[#allocation3 + $0x38] sm:$0xff] %vm881_vm3, %v4431_v2 }
0x124a   :  { %4438 = vst.msk [vmem:[#allocation3 + $0x30] sm:$0xff] %vm881_vm3, %v4430_v18 }
0x124c   :  { %v7396_v39 = vpop.f32.mrb[136].mxu0 }
0x124d   :  { %4661 = vmax.xlane.f32.xlu0 %v7396_v39  ;;  %v4594_v50 = vpop.f32.mrb[137].mxu0 }
0x124e   :  { %4657 = vmax.xlane.f32.xlu1 %v4594_v50  ;;  %v7397_v42 = vpop.f32.mrb[138].mxu0 }
0x124f   :  { %v4597_v52 = vpop.f32.mrb[139].mxu0 }
0x1252   :  { %4663 = vmax.xlane.f32.xlu1 %v7397_v42 }
0x1254   :  { %v10611_v10 = vpop.f32.mrb[140].mxu0 }
0x1255   :  { %v4610_v21 = vpop.f32.mrb[141].mxu0 }
0x1256   :  { %v7401_v46 = vpop.f32.mrb[142].mxu0 }
0x1257   :  { %v10613_v60 = vpop.f32.mrb[143].mxu0 }
0x125c   :  { %v10615_v56 = vpop.f32.mrb[144].mxu0 }
0x125d   :  { %v10617_v43 = vpop.f32.mrb[145].mxu0 }
0x125e   :  { %v10619_v19 = vpop.f32.mrb[146].mxu0 }
0x125f   :  { %v10621_v29 = vpop.f32.mrb[147].mxu0 }
0x1263   :  { %5044 = vrot.lane.b32.xlu0 %v10333_v45, %s8407_s5  ;;  %5042 = vrot.lane.b32.xlu1 %v10317_v48, %s8407_s5 }
0x1264   :  { %v10627_v5 = vpop.f32.mrb[148].mxu0 }
0x1265   :  { %v10629_v22 = vpop.f32.mrb[149].mxu0 }
0x1266   :  { %v10631_v57 = vpop.f32.mrb[150].mxu0 }
0x1267   :  { %v10633_v40 = vpop.f32.mrb[151].mxu0 }
0x1282   :  { %4659 = vmax.xlane.f32.xlu0 %v4597_v52 }
0x1286   :  { %4669 = vmax.xlane.f32.xlu0 %v10611_v10 }
0x1287   :  { %4671 = vmax.xlane.f32.xlu1 %v7401_v46 }
0x128a   :  { %4665 = vmax.xlane.f32.xlu0 %v4610_v21 }
0x128b   :  { %4667 = vmax.xlane.f32.xlu1 %v10613_v60 }
0x128e   :  { %4677 = vmax.xlane.f32.xlu0 %v10615_v56 }
0x128f   :  { %4679 = vmax.xlane.f32.xlu1 %v10619_v19 }
0x1292   :  { %4673 = vmax.xlane.f32.xlu0 %v10617_v43 }
0x1293   :  { %4675 = vmax.xlane.f32.xlu1 %v10621_v29 }
0x1296   :  { %4685 = vmax.xlane.f32.xlu0 %v10627_v5 }
0x1297   :  { %4687 = vmax.xlane.f32.xlu1 %v10631_v57 }
0x129a   :  { %4681 = vmax.xlane.f32.xlu0 %v10629_v22 }
0x129b   :  { %4683 = vmax.xlane.f32.xlu1 %v10633_v40 }
0x12b0   :  { %5046 = vrot.lane.b32.xlu0 %v10345_v47, %s8407_s5 }
0x12da   :  { %v4662_v62 = vpop.xlane.xlu0 %4661 }
0x12db   :  { %v4691_v51 = vsub.f32 %v7396_v39, %v4662_v62  ;;  %v4658_v44 = vpop.xlane.xlu1 %4657 }
0x12dc   :  { %v4689_v16 = vsub.f32 %v4594_v50, %v4658_v44 }
0x12dd   :  { %v4709_v31 = vmul.f32 1.442695, %v4691_v51 }
0x12de   :  { %v4705_v38 = vmul.f32 1.442695, %v4689_v16  ;;  %v10662_v41 = vpop.permute.xlu0 %5044 }
0x12df   :  { %8136 = vpow2.f32 %v4709_v31  ;;  %v4664_v35 = vpop.xlane.xlu1 %4663 }
0x12e0   :  { %v4692_v20 = vsub.f32 %v7397_v42, %v4664_v35  ;;  %8138 = vpow2.f32 %v4705_v38 }
0x12e2   :  { %v4711_v12 = vmul.f32 1.442695, %v4692_v20 }
0x12e3   :  { %v10647_v63 = vpop.permute.xlu1 %5042 }
0x12e4   :  { %7698 = vmatprep.subr.msk.bf16.mxu1 %vm881_vm3, %v10647_v63  ;;  %8140 = vpow2.f32 %v4711_v12 }
0x12e9   :  { %v10651_v24 = vpop.eup %8136 }
0x12ea   :  { %4741 = vadd.xlane.f32.xlu1 %v10651_v24  ;;  %v10654_v59 = vpop.eup %8138 }
0x12ee   :  { %4737 = vadd.xlane.f32.xlu1 %v10654_v59  ;;  %v10657_v36 = vpop.eup %8140 }
0x12f2   :  { %4743 = vadd.xlane.f32.xlu1 %v10657_v36 }
0x1303   :  { %5048 = vrot.lane.b32.xlu1 %v10357_v1, %s8407_s5 }
0x130f   :  { %v4660_v7 = vpop.xlane.xlu0 %4659 }
0x1310   :  { %v4690_v26 = vsub.f32 %v4597_v52, %v4660_v7 }
0x1312   :  { %v4707_v2 = vmul.f32 1.442695, %v4690_v26 }
0x1313   :  { %v4670_v15 = vpop.xlane.xlu0 %4669 }
0x1314   :  { %8142 = vpow2.f32 %v4707_v2  ;;  %v4672_v18 = vpop.xlane.xlu1 %4671 }
0x1315   :  { %v4696_v50 = vsub.f32 %v7401_v46, %v4672_v18 }
0x1317   :  { %v4666_v39 = vpop.xlane.xlu0 %4665  ;;  %v4719_v16 = vmul.f32 1.442695, %v4696_v50 }
0x1318   :  { %v4693_v42 = vsub.f32 %v4610_v21, %v4666_v39  ;;  %v4668_v62 = vpop.xlane.xlu1 %4667 }
0x131a   :  { %v4713_v51 = vmul.f32 1.442695, %v4693_v42 }
0x131b   :  { %v4678_v44 = vpop.xlane.xlu0 %4677 }
0x131c   :  { %8144 = vpow2.f32 %v4713_v51  ;;  %v4699_v31 = vsub.f32 %v10615_v56, %v4678_v44  ;;  %v4680_v38 = vpop.xlane.xlu1 %4679 }
0x131d   :  { %8146 = vpow2.f32 %v4719_v16  ;;  %v4700_v21 = vsub.f32 %v10619_v19, %v4680_v38 }
0x131e   :  { %v10665_v35 = vpop.eup %8142  ;;  %v4725_v52 = vmul.f32 1.442695, %v4699_v31  ;;  %v4695_v31 = vsub.f32 %v10611_v10, %v4670_v15 }
0x131f   :  { %v4674_v20 = vpop.xlane.xlu0 %4673  ;;  %4739 = vadd.xlane.f32.xlu0 %v10665_v35  ;;  %v4727_v56 = vmul.f32 1.442695, %v4700_v21 }
0x1320   :  { %v4697_v12 = vsub.f32 %v10617_v43, %v4674_v20  ;;  %v4676_v7 = vpop.xlane.xlu1 %4675  ;;  %8148 = vpow2.f32 %v4725_v52  ;;  %v4717_v20 = vmul.f32 1.442695, %v4695_v31  ;;  %v4694_v52 = vsub.f32 %v10613_v60, %v4668_v62 }
0x1321   :  { %v4698_v18 = vsub.f32 %v10621_v29, %v4676_v7 }
0x1322   :  { %v4721_v46 = vmul.f32 1.442695, %v4697_v12  ;;  %v4715_v12 = vmul.f32 1.442695, %v4694_v52 }
0x1323   :  { %v4723_v43 = vmul.f32 1.442695, %v4698_v18  ;;  %v4686_v38 = vpop.xlane.xlu0 %4685 }
0x1324   :  { %v4688_v26 = vpop.xlane.xlu1 %4687  ;;  %8150 = vpow2.f32 %v4721_v46  ;;  %v4703_v7 = vsub.f32 %v10627_v5, %v4686_v38 }
0x1325   :  { %8152 = vpow2.f32 %v4727_v56  ;;  %v4704_v18 = vsub.f32 %v10631_v57, %v4688_v26 }
0x1326   :  { %v10670_v2 = vpop.eup %8144  ;;  %8154 = vpow2.f32 %v4723_v43  ;;  %v4733_v46 = vmul.f32 1.442695, %v4703_v7 }
0x1327   :  { %4745 = vadd.xlane.f32.xlu1 %v10670_v2  ;;  %v10674_v50 = vpop.eup %8146  ;;  %v4682_v21 = vpop.xlane.xlu0 %4681  ;;  %v4735_v60 = vmul.f32 1.442695, %v4704_v18 }
0x1328   :  { %v4684_v39 = vpop.xlane.xlu1 %4683  ;;  %v4701_v56 = vsub.f32 %v10629_v22, %v4682_v21 }
0x1329   :  { %v4702_v42 = vsub.f32 %v10633_v40, %v4684_v39 }
0x132a   :  { %v10678_v19 = vpop.eup %8148  ;;  %v4729_v10 = vmul.f32 1.442695, %v4701_v56 }
0x132b   :  { %4751 = vadd.xlane.f32.xlu1 %v10674_v50  ;;  %v4731_v51 = vmul.f32 1.442695, %v4702_v42  ;;  %v5047_v42 = vpop.permute.xlu0 %5046 }
0x132d   :  { %8156 = vpow2.f32 %v4731_v51 }
0x132e   :  { %v10681_v44 = vpop.eup %8150  ;;  %8158 = vpow2.f32 %v4717_v20 }
0x132f   :  { %4757 = vadd.xlane.f32.xlu1 %v10678_v19  ;;  %v10686_v29 = vpop.eup %8152  ;;  %8160 = vpow2.f32 %v4715_v12 }
0x1330   :  { %v10689_v16 = vpop.eup %8154  ;;  %8162 = vpow2.f32 %v4733_v46 }
0x1331   :  { %8164 = vpow2.f32 %v4729_v10 }
0x1332   :  { %8166 = vpow2.f32 %v4735_v60 }
0x1333   :  { %4753 = vadd.xlane.f32.xlu1 %v10681_v44 }
0x1335   :  { %5050 = vrot.lane.b32.xlu0 %v10369_v11, %s8407_s5 }
0x1337   :  { %4759 = vadd.xlane.f32.xlu1 %v10686_v29  ;;  %v10692_v40 = vpop.eup %8156 }
0x1338   :  { %v10702_v15 = vpop.eup %8158 }
0x1339   :  { %v10707_v5 = vpop.eup %8160 }
0x133a   :  { %v10712_v22 = vpop.eup %8162 }
0x133b   :  { %4755 = vadd.xlane.f32.xlu1 %v10689_v16  ;;  %v10717_v57 = vpop.eup %8164 }
0x133c   :  { %v10722_v62 = vpop.eup %8166 }
0x133f   :  { %4763 = vadd.xlane.f32.xlu1 %v10692_v40 }
0x1350   :  { %5052 = vrot.lane.b32.xlu1 %v10381_v54, %s8407_s5 }
0x1354   :  { %4749 = vadd.xlane.f32.xlu0 %v10702_v15  ;;  %5018 = vrot.lane.b32.xlu1 %v10315_v3, %s8407_s5 }
0x1358   :  { %4747 = vadd.xlane.f32.xlu0 %v10707_v5  ;;  %5022 = vrot.lane.b32.xlu1 %v10343_v6, %s8407_s5 }
0x135c   :  { %4765 = vadd.xlane.f32.xlu0 %v10712_v22  ;;  %5026 = vrot.lane.b32.xlu1 %v10367_v49, %s8407_s5 }
0x1360   :  { %4761 = vadd.xlane.f32.xlu0 %v10717_v57  ;;  %5030 = vrot.lane.b32.xlu1 %v10391_v28, %s8407_s5 }
0x1364   :  { %4767 = vadd.xlane.f32.xlu0 %v10722_v62  ;;  %5365 = vrot.lane.b32.xlu1 %v10182_v4, %s8407_s5 }
0x1368   :  { %5369 = vrot.lane.b32.xlu1 %v10189_v30, %s8407_s5 }
0x136c   :  { %5375 = vrot.lane.b32.xlu1 %v10208_v17, %s8407_s5 }
0x1377   :  { %v4742_v26 = vpop.xlane.xlu1 %4741 }
0x137a   :  { %5054 = vrot.lane.b32.xlu0 %v10393_v53, %s8407_s5 }
0x137b   :  { %v4738_v39 = vpop.xlane.xlu1 %4737 }
0x137e   :  { %5056 = vrot.lane.b32.xlu0 %v10405_v8, %s8407_s5 }
0x137f   :  { %v4744_v43 = vpop.xlane.xlu1 %4743 }
0x1380   :  { %8168 = vrcp.f32 %v4744_v43 }
0x1381   :  { %8170 = vrcp.f32 %v4738_v39 }
0x1382   :  { %5020 = vrot.lane.b32.xlu0 %v10331_v23, %s8407_s5  ;;  %8172 = vrcp.f32 %v4742_v26  ;;  %v5083_v26 = vsel %vm881_vm3, %v10647_v63, 0 }
0x1383   :  { %v5049_v31 = vpop.permute.xlu1 %5048 }
0x1384   :  { %v5092_v63 = vsel %vm881_vm3, %v5049_v31, 0 }
0x1386   :  { %5024 = vrot.lane.b32.xlu0 %v10355_v58, %s8407_s5 }
0x138a   :  { %5028 = vrot.lane.b32.xlu0 %v10379_v9, %s8407_s5  ;;  %v8169_v38 = vpop.eup %8168 }
0x138b   :  { %v8171_v52 = vpop.eup %8170  ;;  %v4788_v21 = vmul.f32 %v8169_v38, %v10657_v36 }
0x138c   :  { %v8173_v12 = vpop.eup %8172  ;;  %v4785_v46 = vmul.f32 %v8171_v52, %v10654_v59  ;;  %v5086_v59 = vsel %vm881_vm3, %v10662_v41, 0 }
0x138d   :  { %v4787_v18 = vmul.f32 %v8173_v12, %v10651_v24 }
0x138e   :  { %5032 = vrot.lane.b32.xlu0 %v10403_v34, %s8407_s5 }
0x138f   :  { %v4802_v39 = vpack.c.bf16 %v4788_v21, %v4787_v18 }
0x1392   :  { %5363 = vrot.lane.b32.xlu0 %v10184_v32, %s8407_s5 }
0x1396   :  { %5367 = vrot.lane.b32.xlu0 %v10192_v55, %s8407_s5 }
0x139a   :  { %5371 = vrot.lane.b32.xlu0 %v10200_v61, %s8407_s5 }
0x139e   :  { %5373 = vrot.lane.b32.xlu0 %v10197_v37, %s8407_s5 }
0x13a2   :  { %5377 = vrot.lane.b32.xlu0 %v10205_v14, %s8407_s5 }
0x13ac   :  { %v4740_v51 = vpop.xlane.xlu0 %4739 }
0x13ad   :  { %8174 = vrcp.f32 %v4740_v51 }
0x13b0   :  { %v5051_v38 = vpop.permute.xlu0 %5050 }
0x13b4   :  { %v4746_v20 = vpop.xlane.xlu1 %4745 }
0x13b5   :  { %8176 = vrcp.f32 %v4746_v20 }
0x13b7   :  { %v8175_v7 = vpop.eup %8174 }
0x13b8   :  { %v4786_v56 = vmul.f32 %v8175_v7, %v10665_v35  ;;  %v4752_v10 = vpop.xlane.xlu1 %4751  ;;  %v5089_v35 = vsel %vm881_vm3, %v5047_v42, 0 }
0x13b9   :  { %8178 = vrcp.f32 %v4752_v10 }
0x13ba   :  { %v4801_v60 = vpack.c.bf16 %v4786_v56, %v4785_v46 }
0x13bc   :  { %7426 = vmatprep.mubr.bf16.mxu1 %v4801_v60  ;;  %v4758_v43 = vpop.xlane.xlu1 %4757 }
0x13bd   :  { %7427 = vmatmul.mubr.bf16.vlgmr.msra.gmra.mrb[148].mxu1 %v4802_v39 }
0x13be   :  { %7443 = vmatpush3.bf16.xpose.msra.mxu1 %v5083_v26 }
0x13bf   :  { %7699 = vmatprep.subr.msk.bf16.mxu1 %vm881_vm3, %v10662_v41  ;;  %v5095_v41 = vsel %vm881_vm3, %v5051_v38, 0  ;;  %v8177_v46 = vpop.eup %8176 }
0x13c0   :  { %v4754_v36 = vpop.xlane.xlu1 %4753 }
0x13c3   :  { %v8179_v56 = vpop.eup %8178 }
0x13c4   :  { %v4760_v24 = vpop.xlane.xlu1 %4759 }
0x13c6   :  { %7445 = vmatpush3.bf16.xpose.msra.mxu1 %v5086_v59 }
0x13c7   :  { %7700 = vmatprep.subr.msk.bf16.mxu1 %vm881_vm3, %v5047_v42 }
0x13c8   :  { %v4756_v51 = vpop.xlane.xlu1 %4755 }
0x13cc   :  { %v4764_v52 = vpop.xlane.xlu1 %4763 }
0x13ce   :  { %7447 = vmatpush3.bf16.xpose.msra.mxu1 %v5089_v35 }
0x13cf   :  { %7701 = vmatprep.subr.msk.bf16.mxu1 %vm881_vm3, %v5049_v31 }
0x13d0   :  { %v5053_v12 = vpop.permute.xlu1 %5052 }
0x13d1   :  { %v5098_v31 = vsel %vm881_vm3, %v5053_v12, 0 }
0x13d6   :  { %7449 = vmatpush3.bf16.xpose.msra.mxu1 %v5092_v63 }
0x13d7   :  { %7702 = vmatprep.subr.msk.bf16.mxu1 %vm881_vm3, %v5051_v38 }
0x13de   :  { %7451 = vmatpush3.bf16.xpose.msra.mxu1 %v5095_v41 }
0x13df   :  { %7703 = vmatprep.subr.msk.bf16.mxu1 %vm881_vm3, %v5053_v12 }
0x13e1   :  { %v4750_v7 = vpop.xlane.xlu0 %4749 }
0x13e2   :  { %8180 = vrcp.f32 %v4750_v7 }
0x13e3   :  { %8182 = vrcp.f32 %v4756_v51 }
0x13e4   :  { %8184 = vrcp.f32 %v4754_v36  ;;  %v4789_v36 = vmul.f32 %v8177_v46, %v10670_v2 }
0x13e5   :  { %v4748_v42 = vpop.xlane.xlu0 %4747 }
0x13e6   :  { %8186 = vrcp.f32 %v4748_v42  ;;  %7453 = vmatpush3.bf16.xpose.msra.mxu1 %v5098_v31 }
0x13e7   :  { %8188 = vrcp.f32 %v4760_v24  ;;  %v4792_v24 = vmul.f32 %v8179_v56, %v10674_v50 }
0x13e8   :  { %8190 = vrcp.f32 %v4758_v43 }
0x13e9   :  { %v4766_v21 = vpop.xlane.xlu0 %4765  ;;  %8192 = vrcp.f32 %v4764_v52 }
0x13ec   :  { %v8181_v18 = vpop.eup %8180 }
0x13ed   :  { %v4762_v60 = vpop.xlane.xlu0 %4761  ;;  %v8183_v39 = vpop.eup %8182  ;;  %v4791_v26 = vmul.f32 %v8181_v18, %v10702_v15 }
0x13ee   :  { %8194 = vrcp.f32 %v4762_v60  ;;  %v8185_v20 = vpop.eup %8184  ;;  %v4794_v51 = vmul.f32 %v8183_v39, %v10689_v16  ;;  %v5019_v16 = vpop.permute.xlu1 %5018 }
0x13ef   :  { %v4793_v63 = vmul.f32 %v8185_v20, %v10681_v44  ;;  %v4804_v38 = vpack.c.bf16 %v4792_v24, %v4791_v26 }
0x13f0   :  { %v8187_v10 = vpop.eup %8186 }
0x13f1   :  { %v4768_v59 = vpop.xlane.xlu0 %4767  ;;  %v4790_v35 = vmul.f32 %v8187_v10, %v10707_v5  ;;  %v8189_v52 = vpop.eup %8188  ;;  %v4805_v12 = vpack.c.bf16 %v4794_v51, %v4793_v63 }
0x13f2   :  { %8196 = vrcp.f32 %v4768_v59  ;;  %v8191_v15 = vpop.eup %8190  ;;  %v4796_v7 = vmul.f32 %v8189_v52, %v10686_v29  ;;  %v5023_v18 = vpop.permute.xlu1 %5022 }
0x13f3   :  { %v4803_v43 = vpack.c.bf16 %v4790_v35, %v4789_v36  ;;  %8198 = vrcp.f32 %v4766_v21  ;;  %v8193_v5 = vpop.eup %8192  ;;  %v4795_v31 = vmul.f32 %v8191_v15, %v10678_v19 }
0x13f4   :  { %v4798_v21 = vmul.f32 %v8193_v5, %v10692_v40 }
0x13f5   :  { %v5055_v41 = vpop.permute.xlu0 %5054  ;;  %7430 = vmatprep.mubr.bf16.mxu1 %v4803_v43  ;;  %v4806_v46 = vpack.c.bf16 %v4796_v7, %v4795_v31 }
0x13f6   :  { %7431 = vmatmul.mubr.bf16.gmra.mrb[152].mxu1 %v4804_v38  ;;  %7704 = vmatprep.subr.msk.bf16.mxu1 %vm881_vm3, %v5055_v41  ;;  %v5101_v2 = vsel %vm881_vm3, %v5055_v41, 0  ;;  %v5027_v59 = vpop.permute.xlu1 %5026 }
0x13f7   :  { %7434 = vmatprep.mubr.bf16.mxu1 %v4805_v12  ;;  %7455 = vmatpush3.bf16.xpose.msra.mxu1 %v5101_v2 }
0x13f8   :  { %v8195_v50 = vpop.eup %8194 }
0x13f9   :  { %v5057_v44 = vpop.permute.xlu0 %5056  ;;  %v4797_v42 = vmul.f32 %v8195_v50, %v10717_v57 }
0x13fa   :  { %7705 = vmatprep.subr.msk.bf16.mxu1 %vm881_vm3, %v5057_v44  ;;  %v5104_v20 = vsel %vm881_vm3, %v5057_v44, 0  ;;  %v5031_v40 = vpop.permute.xlu1 %5030 }
0x13fb   :  { %v4807_v39 = vpack.c.bf16 %v4798_v21, %v4797_v42 }
0x13fc   :  { %v8197_v56 = vpop.eup %8196 }
0x13fd   :  { %v5021_v60 = vpop.permute.xlu0 %5020  ;;  %v8199_v10 = vpop.eup %8198  ;;  %v4800_v29 = vmul.f32 %v8197_v56, %v10722_v62 }
0x13fe   :  { %7435 = vmatmul.mubr.bf16.gmra.mrb[156].mxu1 %v4806_v46  ;;  %v4799_v26 = vmul.f32 %v8199_v10, %v10712_v22  ;;  %v5366_v24 = vpop.permute.xlu1 %5365 }
0x13ff   :  { %7438 = vmatprep.mubr.bf16.mxu1 %v4807_v39  ;;  %7457 = vmatpush3.bf16.xpose.msra.mxu1 %v5104_v20 }
0x1400   :  { %v4808_v19 = vpack.c.bf16 %v4800_v29, %v4799_v26 }
0x1401   :  { %v5025_v57 = vpop.permute.xlu0 %5024 }
0x1402   :  { %v5370_v22 = vpop.permute.xlu1 %5369 }
0x1405   :  { %v5029_v36 = vpop.permute.xlu0 %5028 }
0x1406   :  { %7439 = vmatmul.mubr.bf16.gmra.mrb[160].mxu1 %v4808_v19  ;;  %v5376_v38 = vpop.permute.xlu1 %5375 }
0x1407   :  { %7458 = vmatprep.mubr.msk.bf16.mxu1 %vm881_vm3, %v5019_v16 }
0x1409   :  { %v5033_v35 = vpop.permute.xlu0 %5032 }
0x140d   :  { %v5364_v51 = vpop.permute.xlu0 %5363 }
0x140e   :  { %7459 = vmatmul.mubr.msk.bf16.vlgmr.msra.gmra.mrb[164].mxu1 %vm881_vm3, %v5021_v60  ;;  %7474 = vmatprep.subr.bf16.mxu0 %v5364_v51 }
0x140f   :  { %7462 = vmatprep.mubr.msk.bf16.mxu1 %vm881_vm3, %v5023_v18  ;;  %7475 = vmatpush3.bf16.msra.mxu0 %v5364_v51 }
0x1410   :  { %7476 = vmatprep.subr.bf16.mxu0 %v5366_v24 }
0x1411   :  { %v5368_v62 = vpop.permute.xlu0 %5367 }
0x1413   :  { %7477 = vmatpush3.bf16.msra.mxu0 %v5366_v24 }
0x1414   :  { %7478 = vmatprep.subr.bf16.mxu0 %v5368_v62 }
0x1415   :  { %v5372_v43 = vpop.permute.xlu0 %5371 }
0x1416   :  { %7463 = vmatmul.mubr.msk.bf16.gmra.mrb[168].mxu1 %vm881_vm3, %v5025_v57 }
0x1417   :  { %7466 = vmatprep.mubr.msk.bf16.mxu1 %vm881_vm3, %v5027_v59  ;;  %7479 = vmatpush3.bf16.msra.mxu0 %v5368_v62 }
0x1418   :  { %7480 = vmatprep.subr.bf16.mxu0 %v5370_v22 }
0x1419   :  { %v5374_v63 = vpop.permute.xlu0 %5373 }
0x141b   :  { %7481 = vmatpush3.bf16.msra.mxu0 %v5370_v22 }
0x141c   :  { %7482 = vmatprep.subr.bf16.mxu0 %v5372_v43 }
0x141d   :  { %v5378_v52 = vpop.permute.xlu0 %5377 }
0x141e   :  { %7467 = vmatmul.mubr.msk.bf16.gmra.mrb[172].mxu1 %vm881_vm3, %v5029_v36 }
0x141f   :  { %7470 = vmatprep.mubr.msk.bf16.mxu1 %vm881_vm3, %v5031_v40  ;;  %7483 = vmatpush3.bf16.msra.mxu0 %v5372_v43 }
0x1420   :  { %7484 = vmatprep.subr.bf16.mxu0 %v5374_v63 }
0x1423   :  { %7485 = vmatpush3.bf16.msra.mxu0 %v5374_v63 }
0x1424   :  { %7486 = vmatprep.subr.bf16.mxu0 %v5376_v38 }
0x1426   :  { %7471 = vmatmul.mubr.msk.bf16.gmra.mrb[176].mxu1 %vm881_vm3, %v5033_v35 }
0x1427   :  { %7487 = vmatpush3.bf16.msra.mxu0 %v5376_v38 }
0x1428   :  { %7488 = vmatprep.subr.bf16.mxu0 %v5378_v52 }
0x142b   :  { %7489 = vmatpush3.bf16.msra.mxu0 %v5378_v52 }
0x1490   :  { %v10795_v41 = vpop.f32.mrb[148].mxu1 }
0x1491   :  { %v10797_v12 = vpop.f32.mrb[149].mxu1 }
0x1492   :  { %v10799_v15 = vpop.f32.mrb[150].mxu1 }
0x1493   :  { %v10803_v5 = vpop.f32.mrb[151].mxu1 }
0x14c9   :  { %v10807_v50 = vpop.f32.mrb[152].mxu1 }
0x14ca   :  { %v10809_v7 = vpop.f32.mrb[153].mxu1 }
0x14cb   :  { %v10811_v44 = vpop.f32.mrb[154].mxu1 }
0x14cc   :  { %v10815_v31 = vpop.f32.mrb[155].mxu1 }
0x14d1   :  { %v10819_v46 = vpop.f32.mrb[156].mxu1 }
0x14d2   :  { %v10821_v56 = vpop.f32.mrb[157].mxu1 }
0x14d3   :  { %11528 = vst [vmem:[#allocation39_spill] sm:$0xff] %v10821_v56  ;;  %v10823_v18 = vpop.f32.mrb[158].mxu1 }
0x14d4   :  { %v10827_v39 = vpop.f32.mrb[159].mxu1 }
0x14d5   :  { %11529 = vst [vmem:[#allocation37_spill] sm:$0xff] %v10827_v39 }
0x14d9   :  { %v10831_v10 = vpop.f32.mrb[160].mxu1 }
0x14da   :  { %11530 = vst [vmem:[#allocation34_spill] sm:$0xff] %v10831_v10  ;;  %v10833_v29 = vpop.f32.mrb[161].mxu1 }
0x14db   :  { %11531 = vst [vmem:[#allocation29_spill] sm:$0xff] %v10833_v29  ;;  %v10835_v57 = vpop.f32.mrb[162].mxu1 }
0x14dc   :  { %11532 = vst [vmem:[#allocation28_spill] sm:$0xff] %v10835_v57  ;;  %v10839_v59 = vpop.f32.mrb[163].mxu1 }
0x14dd   :  { %11533 = vst [vmem:[#allocation33_spill] sm:$0xff] %v10839_v59 }
0x14e1   :  { %v7460_v36 = vpop.f32.mrb[164].mxu1 }
0x14e2   :  { %5207 = vmax.xlane.f32.xlu0 %v7460_v36  ;;  %v5140_v40 = vpop.f32.mrb[165].mxu1 }
0x14e3   :  { %5203 = vmax.xlane.f32.xlu1 %v5140_v40  ;;  %v7461_v35 = vpop.f32.mrb[166].mxu1 }
0x14e4   :  { %v5143_v51 = vpop.f32.mrb[167].mxu1 }
0x14e7   :  { %5209 = vmax.xlane.f32.xlu1 %v7461_v35 }
0x14e9   :  { %v10843_v24 = vpop.f32.mrb[168].mxu1 }
0x14ea   :  { %v5156_v62 = vpop.f32.mrb[169].mxu1 }
0x14eb   :  { %v7465_v22 = vpop.f32.mrb[170].mxu1 }
0x14ec   :  { %v10845_v43 = vpop.f32.mrb[171].mxu1 }
0x14f1   :  { %v10847_v63 = vpop.f32.mrb[172].mxu1 }
0x14f2   :  { %v10849_v38 = vpop.f32.mrb[173].mxu1 }
0x14f3   :  { %v10851_v52 = vpop.f32.mrb[174].mxu1 }
0x14f4   :  { %v10853_v19 = vpop.f32.mrb[175].mxu1 }
0x14f8   :  { %5590 = vrot.lane.b32.xlu0 %v10333_v45, %s8415_s23  ;;  %5588 = vrot.lane.b32.xlu1 %v10317_v48, %s8415_s23 }
0x14f9   :  { %v10859_v26 = vpop.f32.mrb[176].mxu1 }
0x14fa   :  { %v10861_v20 = vpop.f32.mrb[177].mxu1 }
0x14fb   :  { %v10863_v60 = vpop.f32.mrb[178].mxu1 }
0x14fc   :  { %v10865_v21 = vpop.f32.mrb[179].mxu1 }
0x1517   :  { %5205 = vmax.xlane.f32.xlu0 %v5143_v51 }
0x151b   :  { %5215 = vmax.xlane.f32.xlu0 %v10843_v24 }
0x151c   :  { %5217 = vmax.xlane.f32.xlu1 %v7465_v22 }
0x151f   :  { %5211 = vmax.xlane.f32.xlu0 %v5156_v62 }
0x1520   :  { %5213 = vmax.xlane.f32.xlu1 %v10845_v43 }
0x1523   :  { %5223 = vmax.xlane.f32.xlu0 %v10847_v63 }
0x1524   :  { %5225 = vmax.xlane.f32.xlu1 %v10851_v52 }
0x1527   :  { %5219 = vmax.xlane.f32.xlu0 %v10849_v38 }
0x1528   :  { %5221 = vmax.xlane.f32.xlu1 %v10853_v19 }
0x152b   :  { %5231 = vmax.xlane.f32.xlu0 %v10859_v26 }
0x152c   :  { %5233 = vmax.xlane.f32.xlu1 %v10863_v60 }
0x152f   :  { %5227 = vmax.xlane.f32.xlu0 %v10861_v20 }
0x1530   :  { %5229 = vmax.xlane.f32.xlu1 %v10865_v21 }
0x1545   :  { %5592 = vrot.lane.b32.xlu0 %v10345_v47, %s8415_s23 }
0x156f   :  { %v5208_v48 = vpop.xlane.xlu0 %5207 }
0x1570   :  { %v5237_v45 = vsub.f32 %v7460_v36, %v5208_v48  ;;  %v5204_v42 = vpop.xlane.xlu1 %5203 }
0x1571   :  { %v5235_v2 = vsub.f32 %v5140_v40, %v5204_v42 }
0x1572   :  { %v5255_v16 = vmul.f32 1.442695, %v5237_v45 }
0x1573   :  { %v5251_v33 = vmul.f32 1.442695, %v5235_v2 }
0x1574   :  { %8200 = vpow2.f32 %v5255_v16  ;;  %v5210_v13 = vpop.xlane.xlu1 %5209 }
0x1575   :  { %v5238_v25 = vsub.f32 %v7461_v35, %v5210_v13  ;;  %8202 = vpow2.f32 %v5251_v33  ;;  %v10894_v33 = vpop.permute.xlu0 %5590 }
0x1577   :  { %v5257_v27 = vmul.f32 1.442695, %v5238_v25 }
0x1578   :  { %v10879_v0 = vpop.permute.xlu1 %5588 }
0x1579   :  { %7706 = vmatprep.subr.msk.bf16.mxu0 %vm881_vm3, %v10879_v0  ;;  %8204 = vpow2.f32 %v5257_v27 }
0x157e   :  { %v10883_v29 = vpop.eup %8200 }
0x157f   :  { %5287 = vadd.xlane.f32.xlu1 %v10883_v29  ;;  %v10886_v47 = vpop.eup %8202 }
0x1583   :  { %5283 = vadd.xlane.f32.xlu1 %v10886_v47  ;;  %v10889_v16 = vpop.eup %8204 }
0x1587   :  { %5289 = vadd.xlane.f32.xlu1 %v10889_v16 }
0x1598   :  { %5594 = vrot.lane.b32.xlu1 %v10357_v1, %s8415_s23 }
0x15a4   :  { %v5206_v25 = vpop.xlane.xlu0 %5205 }
0x15a5   :  { %v5236_v13 = vsub.f32 %v5143_v51, %v5206_v25 }
0x15a7   :  { %v5253_v27 = vmul.f32 1.442695, %v5236_v13 }
0x15a8   :  { %v5216_v2 = vpop.xlane.xlu0 %5215 }
0x15a9   :  { %8206 = vpow2.f32 %v5253_v27  ;;  %v5218_v42 = vpop.xlane.xlu1 %5217 }
0x15aa   :  { %v5242_v40 = vsub.f32 %v7465_v22, %v5218_v42 }
0x15ac   :  { %v5212_v36 = vpop.xlane.xlu0 %5211  ;;  %v5265_v10 = vmul.f32 1.442695, %v5242_v40 }
0x15ad   :  { %v5239_v35 = vsub.f32 %v5156_v62, %v5212_v36  ;;  %v5214_v48 = vpop.xlane.xlu1 %5213 }
0x15af   :  { %v5259_v45 = vmul.f32 1.442695, %v5239_v35  ;;  %v5241_v35 = vsub.f32 %v10843_v24, %v5216_v2 }
0x15b0   :  { %v5224_v59 = vpop.xlane.xlu0 %5223 }
0x15b1   :  { %8208 = vpow2.f32 %v5259_v45  ;;  %v5245_v57 = vsub.f32 %v10847_v63, %v5224_v59  ;;  %v5226_v56 = vpop.xlane.xlu1 %5225 }
0x15b2   :  { %8210 = vpow2.f32 %v5265_v10  ;;  %v5246_v62 = vsub.f32 %v10851_v52, %v5226_v56 }
0x15b3   :  { %v10897_v1 = vpop.eup %8206  ;;  %v5271_v51 = vmul.f32 1.442695, %v5245_v57 }
0x15b4   :  { %v5220_v39 = vpop.xlane.xlu0 %5219  ;;  %5285 = vadd.xlane.f32.xlu0 %v10897_v1  ;;  %v5273_v59 = vmul.f32 1.442695, %v5246_v62 }
0x15b5   :  { %v5243_v25 = vsub.f32 %v10849_v38, %v5220_v39  ;;  %v5222_v13 = vpop.xlane.xlu1 %5221  ;;  %8212 = vpow2.f32 %v5271_v51  ;;  %v5263_v51 = vmul.f32 1.442695, %v5241_v35 }
0x15b6   :  { %v5244_v63 = vsub.f32 %v10853_v19, %v5222_v13 }
0x15b7   :  { %v5267_v22 = vmul.f32 1.442695, %v5243_v25  ;;  %v5240_v25 = vsub.f32 %v10845_v43, %v5214_v48 }
0x15b8   :  { %v5269_v39 = vmul.f32 1.442695, %v5244_v63  ;;  %v5232_v45 = vpop.xlane.xlu0 %5231 }
0x15b9   :  { %v5234_v27 = vpop.xlane.xlu1 %5233  ;;  %8214 = vpow2.f32 %v5267_v22  ;;  %v5249_v13 = vsub.f32 %v10859_v26, %v5232_v45 }
0x15ba   :  { %8216 = vpow2.f32 %v5273_v59  ;;  %v5250_v63 = vsub.f32 %v10863_v60, %v5234_v27 }
0x15bb   :  { %v10902_v42 = vpop.eup %8208  ;;  %8218 = vpow2.f32 %v5269_v39  ;;  %v5279_v22 = vmul.f32 1.442695, %v5249_v13 }
0x15bc   :  { %5291 = vadd.xlane.f32.xlu1 %v10902_v42  ;;  %v10906_v40 = vpop.eup %8210  ;;  %v5228_v62 = vpop.xlane.xlu0 %5227  ;;  %v5281_v26 = vmul.f32 1.442695, %v5250_v63 }
0x15bd   :  { %v5230_v36 = vpop.xlane.xlu1 %5229  ;;  %v5247_v59 = vsub.f32 %v10861_v20, %v5228_v62 }
0x15be   :  { %v5248_v10 = vsub.f32 %v10865_v21, %v5230_v36 }
0x15bf   :  { %v10910_v56 = vpop.eup %8212  ;;  %v5275_v24 = vmul.f32 1.442695, %v5247_v59 }
0x15c0   :  { %5297 = vadd.xlane.f32.xlu1 %v10906_v40  ;;  %v5277_v57 = vmul.f32 1.442695, %v5248_v10  ;;  %v5629_v10 = vsel %vm881_vm3, %v10879_v0, 0 }
0x15c2   :  { %8220 = vpow2.f32 %v5277_v57 }
0x15c3   :  { %v10913_v38 = vpop.eup %8214  ;;  %8222 = vpow2.f32 %v5263_v51 }
0x15c4   :  { %5303 = vadd.xlane.f32.xlu1 %v10910_v56  ;;  %v10918_v19 = vpop.eup %8216 }
0x15c5   :  { %v10921_v52 = vpop.eup %8218 }
0x15c8   :  { %5299 = vadd.xlane.f32.xlu1 %v10913_v38 }
0x15ca   :  { %5596 = vrot.lane.b32.xlu0 %v10369_v11, %s8415_s23  ;;  %v5261_v11 = vmul.f32 1.442695, %v5240_v25 }
0x15cc   :  { %5305 = vadd.xlane.f32.xlu1 %v10918_v19  ;;  %v10924_v21 = vpop.eup %8220  ;;  %8224 = vpow2.f32 %v5261_v11 }
0x15cd   :  { %8226 = vpow2.f32 %v5279_v22  ;;  %v10934_v2 = vpop.eup %8222 }
0x15ce   :  { %8228 = vpow2.f32 %v5275_v24 }
0x15cf   :  { %8230 = vpow2.f32 %v5281_v26 }
0x15d0   :  { %5301 = vadd.xlane.f32.xlu1 %v10921_v52 }
0x15d4   :  { %5309 = vadd.xlane.f32.xlu1 %v10924_v21 }
0x15d6   :  { %v10939_v43 = vpop.eup %8224 }
0x15e5   :  { %5598 = vrot.lane.b32.xlu1 %v10381_v54, %s8415_s23  ;;  %v10944_v54 = vpop.eup %8226 }
0x15e6   :  { %v10949_v60 = vpop.eup %8228 }
0x15e9   :  { %5295 = vadd.xlane.f32.xlu0 %v10934_v2  ;;  %5564 = vrot.lane.b32.xlu1 %v10315_v3, %s8415_s23  ;;  %v10954_v3 = vpop.eup %8230 }
0x15ed   :  { %5293 = vadd.xlane.f32.xlu0 %v10939_v43  ;;  %5568 = vrot.lane.b32.xlu1 %v10343_v6, %s8415_s23 }
0x15f1   :  { %5311 = vadd.xlane.f32.xlu0 %v10944_v54  ;;  %5572 = vrot.lane.b32.xlu1 %v10367_v49, %s8415_s23  ;;  %v5593_v49 = vpop.permute.xlu0 %5592 }
0x15f5   :  { %5307 = vadd.xlane.f32.xlu0 %v10949_v60  ;;  %5576 = vrot.lane.b32.xlu1 %v10391_v28, %s8415_s23 }
0x15f9   :  { %5313 = vadd.xlane.f32.xlu0 %v10954_v3  ;;  %5911 = vrot.lane.b32.xlu1 %v10182_v4, %s8415_s23 }
0x160c   :  { %v5288_v4 = vpop.xlane.xlu1 %5287 }
0x160f   :  { %5600 = vrot.lane.b32.xlu0 %v10393_v53, %s8415_s23 }
0x1613   :  { %5602 = vrot.lane.b32.xlu0 %v10405_v8, %s8415_s23 }
0x1617   :  { %5566 = vrot.lane.b32.xlu0 %v10331_v23, %s8415_s23  ;;  %v5284_v23 = vpop.xlane.xlu1 %5283 }
0x161b   :  { %5570 = vrot.lane.b32.xlu0 %v10355_v58, %s8415_s23  ;;  %v5290_v6 = vpop.xlane.xlu1 %5289 }
0x161c   :  { %8232 = vrcp.f32 %v5290_v6 }
0x161d   :  { %8234 = vrcp.f32 %v5284_v23 }
0x161e   :  { %8236 = vrcp.f32 %v5288_v4 }
0x161f   :  { %5574 = vrot.lane.b32.xlu0 %v10379_v9, %s8415_s23  ;;  %v5595_v9 = vpop.permute.xlu1 %5594 }
0x1620   :  { %v5638_v0 = vsel %vm881_vm3, %v5595_v9, 0 }
0x1623   :  { %5578 = vrot.lane.b32.xlu0 %v10403_v34, %s8415_s23 }
0x1626   :  { %v8233_v28 = vpop.eup %8232 }
0x1627   :  { %5909 = vrot.lane.b32.xlu0 %v10184_v32, %s8415_s23  ;;  %v8235_v34 = vpop.eup %8234 }
0x1628   :  { %v8237_v32 = vpop.eup %8236  ;;  %v5331_v20 = vmul.f32 %v8235_v34, %v10886_v47  ;;  %v5632_v47 = vsel %vm881_vm3, %v10894_v33, 0 }
0x1629   :  { %v5333_v48 = vmul.f32 %v8237_v32, %v10883_v29 }
0x162b   :  { %5913 = vrot.lane.b32.xlu0 %v10192_v55, %s8415_s23  ;;  %v5334_v55 = vmul.f32 %v8233_v28, %v10889_v16 }
0x162d   :  { %v5348_v39 = vpack.c.bf16 %v5334_v55, %v5333_v48 }
0x162f   :  { %5915 = vrot.lane.b32.xlu0 %v10189_v30, %s8415_s23 }
0x1641   :  { %v5286_v58 = vpop.xlane.xlu0 %5285 }
0x1642   :  { %8238 = vrcp.f32 %v5286_v58 }
0x1645   :  { %v5597_v45 = vpop.permute.xlu0 %5596 }
0x1649   :  { %v5292_v53 = vpop.xlane.xlu1 %5291 }
0x164a   :  { %8240 = vrcp.f32 %v5292_v53 }
0x164c   :  { %v8239_v8 = vpop.eup %8238 }
0x164d   :  { %v5332_v30 = vmul.f32 %v8239_v8, %v10897_v1  ;;  %v5298_v27 = vpop.xlane.xlu1 %5297  ;;  %v5635_v1 = vsel %vm881_vm3, %v5593_v49, 0 }
0x164e   :  { %8242 = vrcp.f32 %v5298_v27 }
0x164f   :  { %v5347_v36 = vpack.c.bf16 %v5332_v30, %v5331_v20 }
0x1651   :  { %7490 = vmatprep.mubr.bf16.mxu0 %v5347_v36  ;;  %v5304_v57 = vpop.xlane.xlu1 %5303 }
0x1652   :  { %7491 = vmatmul.mubr.bf16.vlgmr.msra.gmra.mrb[152].mxu0 %v5348_v39 }
0x1653   :  { %7507 = vmatpush3.bf16.xpose.msra.mxu0 %v5629_v10 }
0x1654   :  { %7707 = vmatprep.subr.msk.bf16.mxu0 %vm881_vm3, %v10894_v33  ;;  %v5641_v33 = vsel %vm881_vm3, %v5597_v45, 0  ;;  %v8241_v59 = vpop.eup %8240 }
0x1655   :  { %v5300_v16 = vpop.xlane.xlu1 %5299 }
0x1658   :  { %v8243_v63 = vpop.eup %8242 }
0x1659   :  { %v5306_v29 = vpop.xlane.xlu1 %5305  ;;  %v5338_v34 = vmul.f32 %v8243_v63, %v10906_v40 }
0x165b   :  { %7509 = vmatpush3.bf16.xpose.msra.mxu0 %v5632_v47 }
0x165c   :  { %7708 = vmatprep.subr.msk.bf16.mxu0 %vm881_vm3, %v5593_v49 }
0x165d   :  { %v5302_v35 = vpop.xlane.xlu1 %5301 }
0x1661   :  { %v5310_v51 = vpop.xlane.xlu1 %5309 }
0x1663   :  { %7511 = vmatpush3.bf16.xpose.msra.mxu0 %v5635_v1 }
0x1664   :  { %7709 = vmatprep.subr.msk.bf16.mxu0 %vm881_vm3, %v5595_v9  ;;  %v5335_v9 = vmul.f32 %v8241_v59, %v10902_v42 }
0x1665   :  { %v5599_v25 = vpop.permute.xlu1 %5598 }
0x1666   :  { %v5644_v62 = vsel %vm881_vm3, %v5599_v25, 0 }
0x166b   :  { %7513 = vmatpush3.bf16.xpose.msra.mxu0 %v5638_v0 }
0x166c   :  { %7710 = vmatprep.subr.msk.bf16.mxu0 %vm881_vm3, %v5597_v45 }
0x1673   :  { %7515 = vmatpush3.bf16.xpose.msra.mxu0 %v5641_v33 }
0x1674   :  { %7711 = vmatprep.subr.msk.bf16.mxu0 %vm881_vm3, %v5599_v25 }
0x1676   :  { %v5296_v11 = vpop.xlane.xlu0 %5295 }
0x1677   :  { %8244 = vrcp.f32 %v5296_v11 }
0x1678   :  { %8246 = vrcp.f32 %v5302_v35 }
0x1679   :  { %8248 = vrcp.f32 %v5300_v16 }
0x167a   :  { %v5294_v13 = vpop.xlane.xlu0 %5293 }
0x167b   :  { %8250 = vrcp.f32 %v5294_v13  ;;  %7517 = vmatpush3.bf16.xpose.msra.mxu0 %v5644_v62 }
0x167c   :  { %8252 = vrcp.f32 %v5306_v29 }
0x167d   :  { %8254 = vrcp.f32 %v5304_v57 }
0x167e   :  { %v5312_v22 = vpop.xlane.xlu0 %5311  ;;  %8256 = vrcp.f32 %v5310_v51 }
0x1681   :  { %v8245_v24 = vpop.eup %8244 }
0x1682   :  { %v5308_v26 = vpop.xlane.xlu0 %5307  ;;  %v8247_v4 = vpop.eup %8246  ;;  %v5337_v49 = vmul.f32 %v8245_v24, %v10934_v2 }
0x1683   :  { %8258 = vrcp.f32 %v5308_v26  ;;  %v8249_v23 = vpop.eup %8248  ;;  %v5340_v53 = vmul.f32 %v8247_v4, %v10921_v52  ;;  %v5565_v52 = vpop.permute.xlu1 %5564 }
0x1684   :  { %v5339_v8 = vmul.f32 %v8249_v23, %v10913_v38  ;;  %v5350_v55 = vpack.c.bf16 %v5338_v34, %v5337_v49 }
0x1685   :  { %v8251_v6 = vpop.eup %8250 }
0x1686   :  { %v5314_v58 = vpop.xlane.xlu0 %5313  ;;  %v5336_v28 = vmul.f32 %v8251_v6, %v10939_v43  ;;  %v8253_v20 = vpop.eup %8252  ;;  %v5351_v48 = vpack.c.bf16 %v5340_v53, %v5339_v8 }
0x1687   :  { %8260 = vrcp.f32 %v5314_v58  ;;  %v8255_v2 = vpop.eup %8254  ;;  %v5342_v27 = vmul.f32 %v8253_v20, %v10918_v19  ;;  %v5569_v16 = vpop.permute.xlu1 %5568 }
0x1688   :  { %v5349_v32 = vpack.c.bf16 %v5336_v28, %v5335_v9  ;;  %8262 = vrcp.f32 %v5312_v22  ;;  %v8257_v43 = vpop.eup %8256  ;;  %v5341_v39 = vmul.f32 %v8255_v2, %v10910_v56 }
0x1689   :  { %v5344_v10 = vmul.f32 %v8257_v43, %v10924_v21 }
0x168a   :  { %v5601_v30 = vpop.permute.xlu0 %5600  ;;  %7494 = vmatprep.mubr.bf16.mxu0 %v5349_v32  ;;  %v5352_v57 = vpack.c.bf16 %v5342_v27, %v5341_v39 }
0x168b   :  { %7495 = vmatmul.mubr.bf16.gmra.mrb[156].mxu0 %v5350_v55  ;;  %7712 = vmatprep.subr.msk.bf16.mxu0 %vm881_vm3, %v5601_v30  ;;  %v5647_v42 = vsel %vm881_vm3, %v5601_v30, 0  ;;  %v5573_v51 = vpop.permute.xlu1 %5572 }
0x168c   :  { %7498 = vmatprep.mubr.bf16.mxu0 %v5351_v48  ;;  %7519 = vmatpush3.bf16.xpose.msra.mxu0 %v5647_v42 }
0x168d   :  { %v8259_v40 = vpop.eup %8258 }
0x168e   :  { %v5603_v38 = vpop.permute.xlu0 %5602  ;;  %v5343_v36 = vmul.f32 %v8259_v40, %v10949_v60 }
0x168f   :  { %7713 = vmatprep.subr.msk.bf16.mxu0 %vm881_vm3, %v5603_v38  ;;  %v5650_v35 = vsel %vm881_vm3, %v5603_v38, 0  ;;  %v5577_v21 = vpop.permute.xlu1 %5576 }
0x1690   :  { %v5353_v1 = vpack.c.bf16 %v5344_v10, %v5343_v36 }
0x1691   :  { %v8261_v47 = vpop.eup %8260 }
0x1692   :  { %v5567_v29 = vpop.permute.xlu0 %5566  ;;  %v8263_v0 = vpop.eup %8262  ;;  %v5346_v19 = vmul.f32 %v8261_v47, %v10954_v3 }
0x1693   :  { %7499 = vmatmul.mubr.bf16.gmra.mrb[160].mxu0 %v5352_v57  ;;  %v5345_v45 = vmul.f32 %v8263_v0, %v10944_v54  ;;  %v5912_v13 = vpop.permute.xlu1 %5911 }
0x1694   :  { %7502 = vmatprep.mubr.bf16.mxu0 %v5353_v1  ;;  %7521 = vmatpush3.bf16.xpose.msra.mxu0 %v5650_v35 }
0x1695   :  { %v5354_v56 = vpack.c.bf16 %v5346_v19, %v5345_v45 }
0x1696   :  { %v5571_v60 = vpop.permute.xlu0 %5570 }
0x169a   :  { %v5575_v33 = vpop.permute.xlu0 %5574 }
0x169b   :  { %7503 = vmatmul.mubr.bf16.gmra.mrb[164].mxu0 %v5354_v56 }
0x169c   :  { %7522 = vmatprep.mubr.msk.bf16.mxu0 %vm881_vm3, %v5565_v52 }
0x169e   :  { %v5579_v25 = vpop.permute.xlu0 %5578 }
0x16a2   :  { %v5910_v11 = vpop.permute.xlu0 %5909 }
0x16a3   :  { %7523 = vmatmul.mubr.msk.bf16.vlgmr.msra.gmra.mrb[168].mxu0 %vm881_vm3, %v5567_v29  ;;  %7538 = vmatprep.subr.bf16.mxu1 %v5910_v11 }
0x16a4   :  { %7526 = vmatprep.mubr.msk.bf16.mxu0 %vm881_vm3, %v5569_v16  ;;  %7539 = vmatpush3.bf16.msra.mxu1 %v5910_v11 }
0x16a5   :  { %7540 = vmatprep.subr.bf16.mxu1 %v5912_v13 }
0x16a6   :  { %v5914_v3 = vpop.permute.xlu0 %5913 }
0x16a8   :  { %7541 = vmatpush3.bf16.msra.mxu1 %v5912_v13 }
0x16a9   :  { %7542 = vmatprep.subr.bf16.mxu1 %v5914_v3 }
0x16aa   :  { %v5916_v54 = vpop.permute.xlu0 %5915 }
0x16ab   :  { %7527 = vmatmul.mubr.msk.bf16.gmra.mrb[172].mxu0 %vm881_vm3, %v5571_v60 }
0x16ac   :  { %7530 = vmatprep.mubr.msk.bf16.mxu0 %vm881_vm3, %v5573_v51  ;;  %7543 = vmatpush3.bf16.msra.mxu1 %v5914_v3 }
0x16ad   :  { %7544 = vmatprep.subr.bf16.mxu1 %v5916_v54 }
0x16b0   :  { %7545 = vmatpush3.bf16.msra.mxu1 %v5916_v54 }
0x16b3   :  { %7531 = vmatmul.mubr.msk.bf16.gmra.mrb[176].mxu0 %vm881_vm3, %v5575_v33 }
0x16b4   :  { %7534 = vmatprep.mubr.msk.bf16.mxu0 %vm881_vm3, %v5577_v21 }
0x16bb   :  { %7535 = vmatmul.mubr.msk.bf16.gmra.mrb[180].mxu0 %vm881_vm3, %v5579_v25 }
0x1725   :  { %v11019_v62 = vpop.f32.mrb[152].mxu0 }
0x1726   :  { %v11021_v22 = vpop.f32.mrb[153].mxu0 }
0x1727   :  { %v11023_v59 = vpop.f32.mrb[154].mxu0 }
0x1728   :  { %v11027_v24 = vpop.f32.mrb[155].mxu0 }
0x1729   :  { %v5484_v26 = vpack.c.bf16 %v11027_v24, %v11021_v22 }
0x175e   :  { %v11031_v4 = vpop.f32.mrb[156].mxu0 }
0x175f   :  { %v11033_v23 = vpop.f32.mrb[157].mxu0 }
0x1760   :  { %v11035_v6 = vpop.f32.mrb[158].mxu0 }
0x1761   :  { %v11039_v58 = vpop.f32.mrb[159].mxu0 }
0x1762   :  { %v5486_v9 = vpack.c.bf16 %v11039_v58, %v11033_v23  ;;  %v11538_v23 = vpack.c.bf16 %v10815_v31, %v10809_v7  ;;  %v11542_v7 = vld [vmem:[#allocation37_spill] sm:$0xff] }
0x1766   :  { %v11043_v28 = vpop.f32.mrb[160].mxu0 }
0x1767   :  { %v11045_v53 = vpop.f32.mrb[161].mxu0 }
0x1768   :  { %v11047_v34 = vpop.f32.mrb[162].mxu0 }
0x1769   :  { %v11051_v8 = vpop.f32.mrb[163].mxu0 }
0x176e   :  { %v11055_v20 = vpop.f32.mrb[164].mxu0 }
0x176f   :  { %v11057_v30 = vpop.f32.mrb[165].mxu0 }
0x1770   :  { %v11059_v48 = vpop.f32.mrb[166].mxu0 }
0x1771   :  { %v11063_v42 = vpop.f32.mrb[167].mxu0 }
0x1776   :  { %v7524_v52 = vpop.f32.mrb[168].mxu0 }
0x1777   :  { %5753 = vmax.xlane.f32.xlu0 %v7524_v52  ;;  %v5686_v40 = vpop.f32.mrb[169].mxu0 }
0x1778   :  { %5749 = vmax.xlane.f32.xlu1 %v5686_v40  ;;  %v7525_v27 = vpop.f32.mrb[170].mxu0 }
0x1779   :  { %v5689_v38 = vpop.f32.mrb[171].mxu0 }
0x177b   :  { %5751 = vmax.xlane.f32.xlu0 %v5689_v38 }
0x177c   :  { %5755 = vmax.xlane.f32.xlu1 %v7525_v27 }
0x177e   :  { %v7528_v36 = vpop.f32.mrb[172].mxu0 }
0x177f   :  { %5761 = vmax.xlane.f32.xlu0 %v7528_v36  ;;  %v5702_v39 = vpop.f32.mrb[173].mxu0 }
0x1780   :  { %v7529_v10 = vpop.f32.mrb[174].mxu0 }
0x1781   :  { %5763 = vmax.xlane.f32.xlu1 %v7529_v10  ;;  %v5705_v57 = vpop.f32.mrb[175].mxu0 }
0x1783   :  { %5757 = vmax.xlane.f32.xlu0 %v5702_v39 }
0x1785   :  { %5759 = vmax.xlane.f32.xlu1 %v5705_v57 }
0x1786   :  { %v11067_v47 = vpop.f32.mrb[176].mxu0 }
0x1787   :  { %5769 = vmax.xlane.f32.xlu0 %v11067_v47  ;;  %v11070_v16 = vpop.f32.mrb[177].mxu0 }
0x1788   :  { %v11072_v29 = vpop.f32.mrb[178].mxu0 }
0x1789   :  { %5771 = vmax.xlane.f32.xlu1 %v11072_v29  ;;  %v11075_v1 = vpop.f32.mrb[179].mxu0 }
0x178b   :  { %5765 = vmax.xlane.f32.xlu0 %v11070_v16 }
0x178d   :  { %5767 = vmax.xlane.f32.xlu1 %v11075_v1 }
0x178e   :  { %v11079_v35 = vpop.f32.mrb[180].mxu0 }
0x178f   :  { %5777 = vmax.xlane.f32.xlu0 %v11079_v35  ;;  %v11082_v0 = vpop.f32.mrb[181].mxu0 }
0x1790   :  { %v11084_v19 = vpop.f32.mrb[182].mxu0 }
0x1791   :  { %v11086_v60 = vpop.f32.mrb[183].mxu0 }
0x1793   :  { %5773 = vmax.xlane.f32.xlu0 %v11082_v0 }
0x179e   :  { %5919 = vrot.lane.b32.xlu1 %v10197_v37, %s8415_s23 }
0x17a9   :  { %5917 = vrot.lane.b32.xlu0 %v10200_v61, %s8415_s23 }
0x17c2   :  { %5779 = vmax.xlane.f32.xlu1 %v11084_v19 }
0x17c6   :  { %5775 = vmax.xlane.f32.xlu1 %v11086_v60 }
0x1804   :  { %v5754_v45 = vpop.xlane.xlu0 %5753 }
0x1805   :  { %v5783_v51 = vsub.f32 %v7524_v52, %v5754_v45  ;;  %v5750_v56 = vpop.xlane.xlu1 %5749 }
0x1806   :  { %v5781_v33 = vsub.f32 %v5686_v40, %v5750_v56 }
0x1807   :  { %v5801_v21 = vmul.f32 1.442695, %v5783_v51 }
0x1808   :  { %v5752_v25 = vpop.xlane.xlu0 %5751  ;;  %v5797_v11 = vmul.f32 1.442695, %v5781_v33 }
0x1809   :  { %8264 = vpow2.f32 %v5801_v21  ;;  %v5756_v13 = vpop.xlane.xlu1 %5755  ;;  %v5782_v54 = vsub.f32 %v5689_v38, %v5752_v25 }
0x180a   :  { %v5784_v3 = vsub.f32 %v7525_v27, %v5756_v13  ;;  %8266 = vpow2.f32 %v5797_v11 }
0x180b   :  { %v5799_v49 = vmul.f32 1.442695, %v5782_v54 }
0x180c   :  { %v5803_v2 = vmul.f32 1.442695, %v5784_v3  ;;  %v5762_v37 = vpop.xlane.xlu0 %5761 }
0x180d   :  { %v5787_v32 = vsub.f32 %v7528_v36, %v5762_v37 }
0x180e   :  { %v5764_v61 = vpop.xlane.xlu1 %5763  ;;  %8268 = vpow2.f32 %v5803_v2 }
0x180f   :  { %v5809_v43 = vmul.f32 1.442695, %v5787_v32  ;;  %v5788_v55 = vsub.f32 %v7529_v10, %v5764_v61 }
0x1810   :  { %v5758_v63 = vpop.xlane.xlu0 %5757 }
0x1811   :  { %8270 = vpow2.f32 %v5809_v43  ;;  %v5785_v52 = vsub.f32 %v5702_v39, %v5758_v63  ;;  %v5811_v27 = vmul.f32 1.442695, %v5788_v55 }
0x1812   :  { %v5760_v40 = vpop.xlane.xlu1 %5759  ;;  %8272 = vpow2.f32 %v5799_v49 }
0x1813   :  { %v11095_v45 = vpop.eup %8264  ;;  %v5805_v51 = vmul.f32 1.442695, %v5785_v52  ;;  %v5786_v56 = vsub.f32 %v5705_v57, %v5760_v40 }
0x1814   :  { %v5770_v38 = vpop.xlane.xlu0 %5769  ;;  %5833 = vadd.xlane.f32.xlu1 %v11095_v45  ;;  %v11098_v33 = vpop.eup %8266 }
0x1815   :  { %8274 = vpow2.f32 %v5805_v51  ;;  %v5807_v36 = vmul.f32 1.442695, %v5786_v56  ;;  %v5791_v37 = vsub.f32 %v11067_v47, %v5770_v38 }
0x1816   :  { %8276 = vpow2.f32 %v5811_v27  ;;  %v5772_v2 = vpop.xlane.xlu1 %5771 }
0x1817   :  { %8278 = vpow2.f32 %v5807_v36  ;;  %v5792_v52 = vsub.f32 %v11072_v29, %v5772_v2  ;;  %v5817_v51 = vmul.f32 1.442695, %v5791_v37 }
0x1818   :  { %v5766_v32 = vpop.xlane.xlu0 %5765  ;;  %5829 = vadd.xlane.f32.xlu1 %v11098_v33  ;;  %v11101_v63 = vpop.eup %8268 }
0x1819   :  { %v5789_v3 = vsub.f32 %v11070_v16, %v5766_v32  ;;  %v5819_v56 = vmul.f32 1.442695, %v5792_v52 }
0x181a   :  { %v5768_v10 = vpop.xlane.xlu1 %5767 }
0x181b   :  { %v11103_v43 = vpop.eup %8270  ;;  %v5790_v54 = vsub.f32 %v11075_v1, %v5768_v10  ;;  %v5813_v61 = vmul.f32 1.442695, %v5789_v3 }
0x181c   :  { %v5778_v39 = vpop.xlane.xlu0 %5777  ;;  %5841 = vadd.xlane.f32.xlu0 %v11103_v43  ;;  %5835 = vadd.xlane.f32.xlu1 %v11101_v63  ;;  %v11107_v49 = vpop.eup %8272 }
0x181d   :  { %v5815_v40 = vmul.f32 1.442695, %v5790_v54  ;;  %8280 = vpow2.f32 %v5813_v61 }
0x181e   :  { %v5920_v13 = vpop.permute.xlu1 %5919 }
0x181f   :  { %v11109_v55 = vpop.eup %8274  ;;  %8282 = vpow2.f32 %v5815_v40 }
0x1820   :  { %5837 = vadd.xlane.f32.xlu0 %v11109_v55  ;;  %v5774_v57 = vpop.xlane.xlu0 %5773  ;;  %5831 = vadd.xlane.f32.xlu1 %v11107_v49  ;;  %v11113_v21 = vpop.eup %8276  ;;  %8284 = vpow2.f32 %v5817_v51 }
0x1821   :  { %v11115_v25 = vpop.eup %8278  ;;  %v5793_v27 = vsub.f32 %v11082_v0, %v5774_v57  ;;  %8286 = vpow2.f32 %v5819_v56 }
0x1823   :  { %v5821_v16 = vmul.f32 1.442695, %v5793_v27 }
0x1824   :  { %v5918_v11 = vpop.permute.xlu0 %5917  ;;  %5843 = vadd.xlane.f32.xlu0 %v11113_v21  ;;  %5839 = vadd.xlane.f32.xlu1 %v11115_v25 }
0x1825   :  { %7546 = vmatprep.subr.bf16.mxu1 %v5918_v11  ;;  %8288 = vpow2.f32 %v5821_v16 }
0x1826   :  { %7547 = vmatpush3.bf16.msra.mxu1 %v5918_v11  ;;  %v11534_v11 = vpack.c.bf16 %v10803_v5, %v10797_v12 }
0x1827   :  { %7548 = vmatprep.subr.bf16.mxu1 %v5920_v13  ;;  %v11131_v32 = vpop.eup %8280 }
0x1829   :  { %v11133_v2 = vpop.eup %8282 }
0x182a   :  { %7549 = vmatpush3.bf16.msra.mxu1 %v5920_v13  ;;  %v11535_v13 = vpack.c.bf16 %v10799_v15, %v10795_v41 }
0x1835   :  { %5923 = vrot.lane.b32.xlu1 %v10205_v14, %s8415_s23 }
0x183a   :  { %5921 = vrot.lane.b32.xlu0 %v10208_v17, %s8415_s23  ;;  %v5795_v17 = vsub.f32 %v11079_v35, %v5778_v39  ;;  %v11137_v35 = vpop.eup %8284 }
0x183b   :  { %v11139_v0 = vpop.eup %8286 }
0x183c   :  { %v5825_v38 = vmul.f32 1.442695, %v5795_v17 }
0x184f   :  { %v5780_v14 = vpop.xlane.xlu1 %5779 }
0x1850   :  { %v5796_v1 = vsub.f32 %v11084_v19, %v5780_v14  ;;  %v11143_v19 = vpop.eup %8288 }
0x1852   :  { %v5827_v10 = vmul.f32 1.442695, %v5796_v1 }
0x1853   :  { %v5776_v36 = vpop.xlane.xlu1 %5775 }
0x1854   :  { %v5794_v47 = vsub.f32 %v11086_v60, %v5776_v36 }
0x1856   :  { %v5823_v29 = vmul.f32 1.442695, %v5794_v47 }
0x1858   :  { %8290 = vpow2.f32 %v5823_v29 }
0x1859   :  { %5845 = vadd.xlane.f32.xlu1 %v11131_v32  ;;  %5847 = vadd.xlane.f32.xlu0 %v11133_v2  ;;  %8292 = vpow2.f32 %v5825_v38 }
0x185a   :  { %8294 = vpow2.f32 %v5827_v10 }
0x185d   :  { %5851 = vadd.xlane.f32.xlu1 %v11139_v0  ;;  %5849 = vadd.xlane.f32.xlu0 %v11137_v35 }
0x1861   :  { %5853 = vadd.xlane.f32.xlu0 %v11143_v19 }
0x1862   :  { %v11146_v60 = vpop.eup %8290 }
0x1863   :  { %5855 = vadd.xlane.f32.xlu1 %v11146_v60  ;;  %v11149_v39 = vpop.eup %8292 }
0x1864   :  { %v11152_v57 = vpop.eup %8294 }
0x1865   :  { %5857 = vadd.xlane.f32.xlu0 %v11149_v39 }
0x1867   :  { %5859 = vadd.xlane.f32.xlu1 %v11152_v57 }
0x1878   :  { %5500 = vrot.lane.b32.xlu1 %v5484_v26, %s8407_s5 }
0x187b   :  { %4954 = vrot.lane.b32.xlu0 %v11534_v11, %s8415_s23 }
0x187f   :  { %4956 = vrot.lane.b32.xlu0 %v11535_v13, %s8415_s23 }
0x18a1   :  { %v5834_v3 = vpop.xlane.xlu1 %5833 }
0x18a5   :  { %v5830_v54 = vpop.xlane.xlu1 %5829 }
0x18a9   :  { %v5842_v37 = vpop.xlane.xlu0 %5841  ;;  %v5836_v61 = vpop.xlane.xlu1 %5835 }
0x18aa   :  { %8296 = vrcp.f32 %v5836_v61 }
0x18ab   :  { %8298 = vrcp.f32 %v5830_v54 }
0x18ac   :  { %8300 = vrcp.f32 %v5834_v3 }
0x18ad   :  { %v5838_v52 = vpop.xlane.xlu0 %5837  ;;  %v5832_v40 = vpop.xlane.xlu1 %5831 }
0x18ae   :  { %8302 = vrcp.f32 %v5832_v40 }
0x18af   :  { %8304 = vrcp.f32 %v5838_v52 }
0x18b1   :  { %v5844_v22 = vpop.xlane.xlu0 %5843  ;;  %v5840_v24 = vpop.xlane.xlu1 %5839 }
0x18b2   :  { %8306 = vrcp.f32 %v5840_v24 }
0x18b3   :  { %8308 = vrcp.f32 %v5844_v22 }
0x18b4   :  { %v8297_v5 = vpop.eup %8296  ;;  %8310 = vrcp.f32 %v5842_v37 }
0x18b5   :  { %v5922_v12 = vpop.permute.xlu0 %5921  ;;  %v8299_v41 = vpop.eup %8298  ;;  %v5880_v56 = vmul.f32 %v8297_v5, %v11101_v63 }
0x18b6   :  { %7550 = vmatprep.subr.bf16.mxu1 %v5922_v12  ;;  %v5924_v15 = vpop.permute.xlu1 %5923  ;;  %v8301_v26 = vpop.eup %8300  ;;  %v5877_v27 = vmul.f32 %v8299_v41, %v11098_v33 }
0x18b7   :  { %7551 = vmatpush3.bf16.msra.mxu1 %v5922_v12  ;;  %v5879_v16 = vmul.f32 %v8301_v26, %v11095_v45 }
0x18b8   :  { %7552 = vmatprep.subr.bf16.mxu1 %v5924_v15  ;;  %v8303_v51 = vpop.eup %8302 }
0x18b9   :  { %v5878_v14 = vmul.f32 %v8303_v51, %v11107_v49  ;;  %v8305_v17 = vpop.eup %8304  ;;  %v5894_v47 = vpack.c.bf16 %v5880_v56, %v5879_v16 }
0x18ba   :  { %v5881_v29 = vmul.f32 %v8305_v17, %v11109_v55 }
0x18bb   :  { %7553 = vmatpush3.bf16.msra.mxu1 %v5924_v15  ;;  %v5893_v36 = vpack.c.bf16 %v5878_v14, %v5877_v27 }
0x18bc   :  { %v8307_v1 = vpop.eup %8306 }
0x18bd   :  { %v8309_v38 = vpop.eup %8308  ;;  %7554 = vmatprep.mubr.bf16.mxu1 %v5893_v36  ;;  %v5882_v10 = vmul.f32 %v8307_v1, %v11115_v25 }
0x18be   :  { %7555 = vmatmul.mubr.bf16.vlgmr.msra.gmra.mrb[180].mxu1 %v5894_v47  ;;  %v8311_v11 = vpop.eup %8310  ;;  %v5884_v33 = vmul.f32 %v8309_v38, %v11113_v21 }
0x18bf   :  { %v5895_v63 = vpack.c.bf16 %v5882_v10, %v5881_v29  ;;  %v5883_v49 = vmul.f32 %v8311_v11, %v11103_v43 }
0x18c1   :  { %7558 = vmatprep.mubr.bf16.mxu1 %v5895_v63  ;;  %v5896_v13 = vpack.c.bf16 %v5884_v33, %v5883_v49 }
0x18c6   :  { %7559 = vmatmul.mubr.bf16.gmra.mrb[184].mxu1 %v5896_v13 }
0x18e6   :  { %v5848_v45 = vpop.xlane.xlu0 %5847  ;;  %v5846_v3 = vpop.xlane.xlu1 %5845 }
0x18e7   :  { %8312 = vrcp.f32 %v5848_v45 }
0x18e8   :  { %8314 = vrcp.f32 %v5846_v3  ;;  %v11537_v3 = vpack.c.bf16 %v10811_v44, %v10807_v50  ;;  %v11541_v50 = vpack.c.bf16 %v10823_v18, %v10819_v46  ;;  %v11543_v44 = vld [vmem:[#allocation39_spill] sm:$0xff]  ;;  %v11545_v46 = vpack.c.bf16 %v11063_v42, %v11057_v30  ;;  %v11551_v30 = vld [vmem:[#allocation29_spill] sm:$0xff] }
0x18e9   :  { %v11544_v31 = vpack.c.bf16 %v11542_v7, %v11543_v44 }
0x18ea   :  { %v5850_v54 = vpop.xlane.xlu0 %5849  ;;  %v5852_v37 = vpop.xlane.xlu1 %5851 }
0x18eb   :  { %8316 = vrcp.f32 %v5850_v54 }
0x18ec   :  { %8318 = vrcp.f32 %v5852_v37 }
0x18ee   :  { %v5854_v55 = vpop.xlane.xlu0 %5853 }
0x18ef   :  { %8320 = vrcp.f32 %v5854_v55 }
0x18f0   :  { %v5856_v25 = vpop.xlane.xlu1 %5855 }
0x18f1   :  { %v8313_v61 = vpop.eup %8312  ;;  %8322 = vrcp.f32 %v5856_v25 }
0x18f2   :  { %v8315_v52 = vpop.eup %8314  ;;  %v5858_v21 = vpop.xlane.xlu0 %5857  ;;  %v5886_v40 = vmul.f32 %v8313_v61, %v11133_v2 }
0x18f3   :  { %8324 = vrcp.f32 %v5858_v21  ;;  %v5885_v43 = vmul.f32 %v8315_v52, %v11131_v32  ;;  %v11547_v52 = vld [vmem:[#allocation28_spill] sm:$0xff]  ;;  %v11548_v21 = vld [vmem:[#allocation34_spill] sm:$0xff] }
0x18f4   :  { %v5860_v22 = vpop.xlane.xlu1 %5859 }
0x18f5   :  { %v8317_v24 = vpop.eup %8316  ;;  %8326 = vrcp.f32 %v5860_v22  ;;  %v5897_v12 = vpack.c.bf16 %v5886_v40, %v5885_v43  ;;  %v11549_v40 = vpack.c.bf16 %v11547_v52, %v11548_v21  ;;  %v11550_v22 = vld [vmem:[#allocation33_spill] sm:$0xff]  ;;  %v11557_v52 = vld [vmem:[#allocation15_spill] sm:$0xff] }
0x18f6   :  { %v8319_v5 = vpop.eup %8318  ;;  %v4955_v41 = vpop.permute.xlu0 %4954  ;;  %v5887_v15 = vmul.f32 %v8317_v24, %v11137_v35  ;;  %v11552_v42 = vpack.c.bf16 %v11550_v22, %v11551_v30  ;;  %v2961_v24 = vld [vmem:[%s11351_s8 + $0x20] sm:$0xff]  ;;  %v11558_v22 = vld [vmem:[#allocation18_spill] sm:$0xff] }
0x18f7   :  { %4978 = vst.msk [vmem:[#allocation3] sm:$0xff] %vm1830_vm4, %v4955_v41  ;;  %7562 = vmatprep.mubr.bf16.mxu1 %v5897_v12  ;;  %v5888_v26 = vmul.f32 %v8319_v5, %v11139_v0  ;;  %v2957_v12 = vld [vmem:[%s11351_s8] sm:$0xff]  ;;  %v2963_v5 = vld [vmem:[%s11351_s8 + $0x30] sm:$0xff] }
0x18f8   :  { %v5501_v51 = vpop.permute.xlu1 %5500  ;;  %v2959_v41 = vld [vmem:[%s11351_s8 + $0x10] sm:$0xff] }
0x18f9   :  { %v8321_v56 = vpop.eup %8320  ;;  %5524 = vst.msk [vmem:[#allocation3] sm:$0xff] %vm2377_vm5, %v5501_v51  ;;  %v5898_v2 = vpack.c.bf16 %v5888_v26, %v5887_v15  ;;  %v7804_v15 = vld [vmem:[#allocation7] sm:$0xff]   ;;  %v2967_v26 = vld [vmem:[%s11351_s8 + $0x50] sm:$0xff]  ;;  %v2962_v51 = vld [vmem:[%s11351_s8 + $0x28] sm:$0xff] }
0x18fa   :  { %v4957_v27 = vpop.permute.xlu0 %4956  ;;  %v5889_v14 = vmul.f32 %v8321_v56, %v11143_v19  ;;  %v2969_v56 = vld [vmem:[%s11351_s8 + $0x60] sm:$0xff] }
0x18fb   :  { %v8323_v32 = vpop.eup %8322  ;;  %4979 = vst.msk [vmem:[#allocation3 + $0x8] sm:$0xff] %vm1830_vm4, %v4957_v27  ;;  %7563 = vmatmul.mubr.bf16.gmra.mrb[188].mxu1 %v5898_v2  ;;  %v2964_v2 = vld [vmem:[%s11351_s8 + $0x38] sm:$0xff]  ;;  %v2971_v27 = vld [vmem:[%s11351_s8 + $0x70] sm:$0xff] }
0x18fc   :  { %v5890_v17 = vmul.f32 %v8323_v32, %v11146_v60  ;;  %v2966_v32 = vld [vmem:[%s11351_s8 + $0x48] sm:$0xff] }
0x18fd   :  { %v8325_v35 = vpop.eup %8324 }
0x18fe   :  { %v5899_v16 = vpack.c.bf16 %v5890_v17, %v5889_v14  ;;  %v5891_v0 = vmul.f32 %v8325_v35, %v11149_v39  ;;  %v11536_v39 = vpack.c.bf16 %v11023_v59, %v11019_v62  ;;  %v11539_v62 = vpack.c.bf16 %v11051_v8, %v11045_v53  ;;  %v2968_v14 = vld [vmem:[%s11351_s8 + $0x58] sm:$0xff]  ;;  %v2970_v17 = vld [vmem:[%s11351_s8 + $0x68] sm:$0xff] }
0x18ff   :  { %v8327_v36 = vpop.eup %8326  ;;  %v11540_v59 = vpack.c.bf16 %v11035_v6, %v11031_v4  ;;  %v11546_v4 = vpack.c.bf16 %v11047_v34, %v11043_v28  ;;  %v2958_v28 = vld [vmem:[%s11351_s8 + $0x8] sm:$0xff]  ;;  %v11553_v34 = vpack.c.bf16 %v11059_v48, %v11055_v20  ;;  %v2965_v20 = vld [vmem:[%s11351_s8 + $0x40] sm:$0xff]  ;;  %v2960_v48 = vld [vmem:[%s11351_s8 + $0x18] sm:$0xff] }
0x1900   :  { %7566 = vmatprep.mubr.bf16.mxu1 %v5899_v16  ;;  %v5892_v1 = vmul.f32 %v8327_v36, %v11152_v57  ;;  %v2972_v35 = vld [vmem:[%s11351_s8 + $0x78] sm:$0xff]  ;;  %s8416_s8 = smov [#allocation9]  }
0x1901   :  { %s6365_s12 = sshll.u32 %s8416_s8, 4  ;;  %s6366_s12 = int_to_ptr.vmem [resolvable:$true] %s6365_s12 }
0x1902   :  { %v5900_v47 = vpack.c.bf16 %v5892_v1, %v5891_v0  ;;  %s8375_s10 = scalar_lea.vmem %s6366_s12, 4096  ;;  %p8380_p3 = scmp.lt.s32.totalorder %s6366_s12, %s6366_s12 }
0x1903   :  { %p8376_p2 = scmp.ne.s32.totalorder %s6366_s12, %s8375_s10  ;;  %p8381_p4 = scmp.lt.s32.totalorder %s8375_s10, %s8375_s10 }
0x1904   :  { %7567 = vmatmul.mubr.bf16.gmra.mrb[192].mxu1 %v5900_v47 }
0x1905   :  { %7586 = vmatprep.mubr.bf16.mxu1 %v7804_v15  ;;  %p8382_p5 = por %p8381_p4, %p8380_p3 }
0x1907   :  { %p8383_p6 = pnand %p8382_p5, %p8376_p2 }
0x1991   :  { %v7556_v38 = vpop.f32.mrb[180].mxu1 }
0x1992   :  { %v5967_v29 = vpop.f32.mrb[181].mxu1 }
0x1993   :  { %v7557_v10 = vpop.f32.mrb[182].mxu1 }
0x1994   :  { %v6031_v11 = vpack.c.bf16 %v7557_v10, %v7556_v38  ;;  %v5970_v63 = vpop.f32.mrb[183].mxu1 }
0x1995   :  { %v6030_v33 = vpack.c.bf16 %v5970_v63, %v5967_v29 }
0x1996   :  { %6048 = vrot.lane.b32.xlu0 %v6031_v11, %s8414_s22 }
0x1997   :  { %6046 = vrot.lane.b32.xlu1 %v6030_v33, %s8414_s22 }
0x1999   :  { %v7560_v19 = vpop.f32.mrb[184].mxu1 }
0x199a   :  { %5504 = vrot.lane.b32.xlu0 %v5486_v9, %s8407_s5  ;;  %v5983_v60 = vpop.f32.mrb[185].mxu1 }
0x199b   :  { %5502 = vrot.lane.b32.xlu1 %v11536_v39, %s8407_s5  ;;  %v7561_v57 = vpop.f32.mrb[186].mxu1 }
0x199c   :  { %v6033_v49 = vpack.c.bf16 %v7561_v57, %v7560_v19  ;;  %v5986_v13 = vpop.f32.mrb[187].mxu1 }
0x199d   :  { %v6032_v45 = vpack.c.bf16 %v5986_v13, %v5983_v60 }
0x199e   :  { %4960 = vrot.lane.b32.xlu0 %v11537_v3, %s8415_s23 }
0x199f   :  { %4958 = vrot.lane.b32.xlu1 %v11538_v23, %s8415_s23 }
0x19a2   :  { %6052 = vrot.lane.b32.xlu0 %v6033_v49, %s8414_s22 }
0x19a3   :  { %6050 = vrot.lane.b32.xlu1 %v6032_v45, %s8414_s22 }
0x19a6   :  { %5508 = vrot.lane.b32.xlu0 %v11539_v62, %s8407_s5 }
0x19a7   :  { %5506 = vrot.lane.b32.xlu1 %v11540_v59, %s8407_s5 }
0x19aa   :  { %4964 = vrot.lane.b32.xlu0 %v11541_v50, %s8415_s23 }
0x19ab   :  { %4962 = vrot.lane.b32.xlu1 %v11544_v31, %s8415_s23 }
0x19ce   :  { %v7564_v58 = vpop.f32.mrb[188].mxu1 }
0x19cf   :  { %v5999_v9 = vpop.f32.mrb[189].mxu1 }
0x19d0   :  { %v7565_v54 = vpop.f32.mrb[190].mxu1 }
0x19d1   :  { %v6035_v53 = vpack.c.bf16 %v7565_v54, %v7564_v58  ;;  %v6002_v8 = vpop.f32.mrb[191].mxu1 }
0x19d2   :  { %v6034_v37 = vpack.c.bf16 %v6002_v8, %v5999_v9  ;;  %v11554_v8 = vld [vmem:[#allocation21_spill] sm:$0xff] }
0x19d3   :  { %6056 = vrot.lane.b32.xlu0 %v6035_v53, %s8414_s22 }
0x19d4   :  { %6054 = vrot.lane.b32.xlu1 %v6034_v37, %s8414_s22 }
0x19d7   :  { %5512 = vrot.lane.b32.xlu0 %v11545_v46, %s8407_s5  ;;  %v7568_v18 = vpop.f32.mrb[192].mxu1 }
0x19d8   :  { %5510 = vrot.lane.b32.xlu1 %v11546_v4, %s8407_s5  ;;  %v6015_v6 = vpop.f32.mrb[193].mxu1 }
0x19d9   :  { %v7569_v55 = vpop.f32.mrb[194].mxu1 }
0x19da   :  { %v6037_v25 = vpack.c.bf16 %v7569_v55, %v7568_v18  ;;  %v6018_v61 = vpop.f32.mrb[195].mxu1  ;;  %v11555_v18 = vld [vmem:[#allocation16_spill] sm:$0xff]  ;;  %v11556_v55 = vld [vmem:[#allocation19_spill] sm:$0xff] }
0x19db   :  { %4968 = vrot.lane.b32.xlu0 %v11549_v40, %s8415_s23  ;;  %v6036_v43 = vpack.c.bf16 %v6018_v61, %v6015_v6 }
0x19dc   :  { %4966 = vrot.lane.b32.xlu1 %v11552_v42, %s8415_s23  ;;  %v7806_v42 = vld [vmem:[#allocation7 + $0x10] sm:$0xff]  }
0x19df   :  { %6060 = vrot.lane.b32.xlu0 %v6037_v25, %s8414_s22 }
0x19e0   :  { %6058 = vrot.lane.b32.xlu1 %v6036_v43, %s8414_s22  ;;  %v7805_v43 = vld [vmem:[#allocation7 + $0x8] sm:$0xff]  }
0x19e3   :  { %2980 = vperm.xlu0 %7731, %v2958_v28  }
0x19e4   :  { %5514 = vrot.lane.b32.xlu1 %v11553_v34, %s8407_s5  ;;  %v11559_v34 = vld [vmem:[#allocation25_spill] sm:$0xff] }
0x19e7   :  { %2995 = vperm.xlu0 %7731, %v2961_v24  }
0x19e8   :  { %2975 = vperm.xlu1 %7730, %v2957_v12  }
0x19eb   :  { %3005 = vperm.xlu0 %7731, %v2963_v5  }
0x19ec   :  { %2985 = vperm.xlu1 %7730, %v2959_v41  }
0x19ef   :  { %3015 = vperm.xlu0 %7731, %v2965_v20  }
0x19f0   :  { %2990 = vperm.xlu1 %7730, %v2960_v48  }
0x19f3   :  { %3025 = vperm.xlu0 %7731, %v2967_v26  }
0x19f4   :  { %3000 = vperm.xlu1 %7730, %v2962_v51  }
0x19f7   :  { %3035 = vperm.xlu0 %7731, %v2969_v56  }
0x19f8   :  { %3010 = vperm.xlu1 %7730, %v2964_v2  }
0x19fb   :  { %3045 = vperm.xlu0 %7731, %v2971_v27  }
0x19fc   :  { %3020 = vperm.xlu1 %7730, %v2966_v32  }
0x19ff   :  { %6120 = vperm.xlu0 %7731, %v2957_v12  }
0x1a00   :  { %3030 = vperm.xlu1 %7730, %v2968_v14  }
0x1a03   :  { %6130 = vperm.xlu0 %7731, %v2959_v41  }
0x1a04   :  { %3040 = vperm.xlu1 %7730, %v2970_v17  }
0x1a07   :  { %6140 = vperm.xlu0 %7731, %v2961_v24  }
0x1a08   :  { %3050 = vperm.xlu1 %7730, %v2972_v35   ;;  %v6049_v16 = vpop.permute.xlu0 %6048 }
0x1a09   :  { %v6047_v36 = vpop.permute.xlu1 %6046 }
0x1a0a   :  { %6070 = vst.msk [vmem:[#allocation3] sm:$0xff] %vm2924_vm6, %v6047_v36 }
0x1a0b   :  { %6150 = vperm.xlu0 %7731, %v2963_v5   ;;  %v11560_v5 = vld [vmem:[#allocation22_spill] sm:$0xff] }
0x1a0c   :  { %6125 = vperm.xlu1 %7730, %v2958_v28   ;;  %v5505_v0 = vpop.permute.xlu0 %5504 }
0x1a0d   :  { %v5503_v1 = vpop.permute.xlu1 %5502 }
0x1a0e   :  { %5525 = vst.msk [vmem:[#allocation3 + $0x8] sm:$0xff] %vm2377_vm5, %v5503_v1  ;;  %v11565_v1 = vld [vmem:[#allocation20_spill] sm:$0xff] }
0x1a0f   :  { %6160 = vperm.xlu0 %7731, %v2965_v20   ;;  %6071 = vst.msk [vmem:[#allocation3 + $0x8] sm:$0xff] %vm2924_vm6, %v6049_v16  ;;  %v11564_v16 = vld [vmem:[#allocation17_spill] sm:$0xff] }
0x1a10   :  { %6135 = vperm.xlu1 %7730, %v2960_v48   ;;  %v4961_v47 = vpop.permute.xlu0 %4960  ;;  %v11561_v48 = vld [vmem:[#allocation30_spill] sm:$0xff] }
0x1a11   :  { %4981 = vst.msk [vmem:[#allocation3 + $0x18] sm:$0xff] %vm1830_vm4, %v4961_v47  ;;  %v4959_v38 = vpop.permute.xlu1 %4958  ;;  %v6094_v29 = vld [vmem:[#allocation3] sm:$0xff] }
0x1a12   :  { %4980 = vst.msk [vmem:[#allocation3 + $0x10] sm:$0xff] %vm1830_vm4, %v4959_v38  ;;  %7570 = vmatprep.subr.bf16.mxu1 %v6094_v29 }
0x1a13   :  { %6170 = vperm.xlu0 %7731, %v2967_v26   ;;  %5526 = vst.msk [vmem:[#allocation3 + $0x10] sm:$0xff] %vm2377_vm5, %v5505_v0  ;;  %7571 = vmatpush3.bf16.xpose.msra.mxu1 %v6094_v29  ;;  %v7809_v29 = vld [vmem:[#allocation7 + $0x28] sm:$0xff]  }
0x1a14   :  { %6145 = vperm.xlu1 %7730, %v2962_v51   ;;  %v6053_v10 = vpop.permute.xlu0 %6052  ;;  %v7807_v51 = vld [vmem:[#allocation7 + $0x18] sm:$0xff]  }
0x1a15   :  { %v6051_v11 = vpop.permute.xlu1 %6050 }
0x1a16   :  { %6072 = vst.msk [vmem:[#allocation3 + $0x10] sm:$0xff] %vm2924_vm6, %v6051_v11  ;;  %v6095_v63 = vld [vmem:[#allocation3 + $0x8] sm:$0xff] }
0x1a17   :  { %6180 = vperm.xlu0 %7731, %v2969_v56   ;;  %7572 = vmatprep.subr.bf16.mxu1 %v6095_v63  ;;  %v11562_v56 = vld [vmem:[#allocation35_spill] sm:$0xff] }
0x1a18   :  { %6155 = vperm.xlu1 %7730, %v2964_v2   ;;  %v5509_v33 = vpop.permute.xlu0 %5508 }
0x1a19   :  { %v5507_v19 = vpop.permute.xlu1 %5506 }
0x1a1a   :  { %5527 = vst.msk [vmem:[#allocation3 + $0x18] sm:$0xff] %vm2377_vm5, %v5507_v19  ;;  %v11567_v19 = vld [vmem:[#allocation27_spill] sm:$0xff] }
0x1a1b   :  { %6190 = vperm.xlu0 %7731, %v2971_v27   ;;  %6073 = vst.msk [vmem:[#allocation3 + $0x18] sm:$0xff] %vm2924_vm6, %v6053_v10  ;;  %7573 = vmatpush3.bf16.xpose.msra.mxu1 %v6095_v63  ;;  %v7808_v27 = vld [vmem:[#allocation7 + $0x20] sm:$0xff]   ;;  %v11566_v10 = vld [vmem:[#allocation24_spill] sm:$0xff]  ;;  %v7810_v63 = vld [vmem:[#allocation7 + $0x30] sm:$0xff]  }
0x1a1c   :  { %6165 = vperm.xlu1 %7730, %v2966_v32   ;;  %v4965_v60 = vpop.permute.xlu0 %4964 }
0x1a1d   :  { %4983 = vst.msk [vmem:[#allocation3 + $0x28] sm:$0xff] %vm1830_vm4, %v4965_v60  ;;  %v4963_v39 = vpop.permute.xlu1 %4962  ;;  %v6096_v57 = vld [vmem:[#allocation3 + $0x10] sm:$0xff] }
0x1a1e   :  { %4982 = vst.msk [vmem:[#allocation3 + $0x20] sm:$0xff] %vm1830_vm4, %v4963_v39  ;;  %7574 = vmatprep.subr.bf16.mxu1 %v6096_v57 }
0x1a1f   :  { %5528 = vst.msk [vmem:[#allocation3 + $0x20] sm:$0xff] %vm2377_vm5, %v5509_v33 }
0x1a20   :  { %6175 = vperm.xlu1 %7730, %v2968_v14   ;;  %v11563_v14 = vld [vmem:[#allocation32_spill] sm:$0xff] }
0x1a22   :  { %v6097_v49 = vld [vmem:[#allocation3 + $0x18] sm:$0xff] }
0x1a23   :  { %7575 = vmatpush3.bf16.xpose.msra.mxu1 %v6096_v57  ;;  %v7811_v57 = vld [vmem:[#allocation7 + $0x38] sm:$0xff]  }
0x1a24   :  { %6185 = vperm.xlu1 %7730, %v2970_v17   ;;  %7576 = vmatprep.subr.bf16.mxu1 %v6097_v49 }
0x1a28   :  { %6195 = vperm.xlu1 %7730, %v2972_v35  }
0x1a2b   :  { %7577 = vmatpush3.bf16.xpose.msra.mxu1 %v6097_v49  ;;  %v11568_v49 = vld [vmem:[#allocation13_spill] sm:$0xff] }
0x1a45   :  { %v6057_v13 = vpop.permute.xlu0 %6056 }
0x1a46   :  { %v6055_v45 = vpop.permute.xlu1 %6054 }
0x1a47   :  { %6074 = vst.msk [vmem:[#allocation3 + $0x20] sm:$0xff] %vm2924_vm6, %v6055_v45 }
0x1a49   :  { %v5513_v3 = vpop.permute.xlu0 %5512 }
0x1a4a   :  { %v5511_v23 = vpop.permute.xlu1 %5510 }
0x1a4b   :  { %5529 = vst.msk [vmem:[#allocation3 + $0x28] sm:$0xff] %vm2377_vm5, %v5511_v23 }
0x1a4c   :  { %6075 = vst.msk [vmem:[#allocation3 + $0x28] sm:$0xff] %vm2924_vm6, %v6057_v13 }
0x1a4d   :  { %v4969_v62 = vpop.permute.xlu0 %4968 }
0x1a4e   :  { %4985 = vst.msk [vmem:[#allocation3 + $0x38] sm:$0xff] %vm1830_vm4, %v4969_v62  ;;  %v4967_v59 = vpop.permute.xlu1 %4966  ;;  %v6098_v50 = vld [vmem:[#allocation3 + $0x20] sm:$0xff] }
0x1a4f   :  { %4984 = vst.msk [vmem:[#allocation3 + $0x30] sm:$0xff] %vm1830_vm4, %v4967_v59  ;;  %7578 = vmatprep.subr.bf16.mxu1 %v6098_v50 }
0x1a50   :  { %5530 = vst.msk [vmem:[#allocation3 + $0x30] sm:$0xff] %vm2377_vm5, %v5513_v3  ;;  %7579 = vmatpush3.bf16.xpose.msra.mxu1 %v6098_v50  ;;  %v11569_v3 = vld [vmem:[#allocation23_spill] sm:$0xff] }
0x1a51   :  { %v6061_v58 = vpop.permute.xlu0 %6060 }
0x1a52   :  { %v6059_v7 = vpop.permute.xlu1 %6058 }
0x1a53   :  { %6076 = vst.msk [vmem:[#allocation3 + $0x30] sm:$0xff] %vm2924_vm6, %v6059_v7  ;;  %v6099_v44 = vld [vmem:[#allocation3 + $0x28] sm:$0xff] }
0x1a54   :  { %7580 = vmatprep.subr.bf16.mxu1 %v6099_v44 }
0x1a56   :  { %v5515_v31 = vpop.permute.xlu1 %5514 }
0x1a57   :  { %5531 = vst.msk [vmem:[#allocation3 + $0x38] sm:$0xff] %vm2377_vm5, %v5515_v31 }
0x1a58   :  { %6077 = vst.msk [vmem:[#allocation3 + $0x38] sm:$0xff] %vm2924_vm6, %v6061_v58  ;;  %7581 = vmatpush3.bf16.xpose.msra.mxu1 %v6099_v44 }
0x1a5a   :  { %v6100_v9 = vld [vmem:[#allocation3 + $0x30] sm:$0xff] }
0x1a5b   :  { %7582 = vmatprep.subr.bf16.mxu1 %v6100_v9 }
0x1a5f   :  { %v6101_v54 = vld [vmem:[#allocation3 + $0x38] sm:$0xff] }
0x1a60   :  { %7583 = vmatpush3.bf16.xpose.msra.mxu1 %v6100_v9 }
0x1a61   :  { %7584 = vmatprep.subr.bf16.mxu1 %v6101_v54 }
0x1a62   :  { %v2981_v53 = vpop.permute.xlu0 %2980 }
0x1a63   :  { %v3139_v37 = vadd.f32 %v11554_v8, %v2981_v53 }
0x1a65   :  { %3199 = vst [vmem:[#allocation9 + $0x8] sm:$0xff] %v3139_v37 }
0x1a66   :  { %v2996_v46 = vpop.permute.xlu0 %2995 }
0x1a67   :  { %v3152_v4 = vadd.f32 %v11555_v18, %v2996_v46  ;;  %v2976_v6 = vpop.permute.xlu1 %2975 }
0x1a68   :  { %v3136_v25 = vadd.f32 %v11556_v55, %v2976_v6  ;;  %7585 = vmatpush3.bf16.xpose.msra.mxu1 %v6101_v54 }
0x1a69   :  { %3202 = vst [vmem:[#allocation9 + $0x20] sm:$0xff] %v3152_v4 }
0x1a6a   :  { %3198 = vst [vmem:[#allocation9] sm:$0xff] %v3136_v25  ;;  %v3006_v61 = vpop.permute.xlu0 %3005 }
0x1a6b   :  { %v3160_v21 = vadd.f32 %v11557_v52, %v3006_v61  ;;  %v2986_v40 = vpop.permute.xlu1 %2985 }
0x1a6c   :  { %v3144_v30 = vadd.f32 %v11558_v22, %v2986_v40 }
0x1a6d   :  { %3204 = vst [vmem:[#allocation9 + $0x30] sm:$0xff] %v3160_v21 }
0x1a6e   :  { %3200 = vst [vmem:[#allocation9 + $0x10] sm:$0xff] %v3144_v30  ;;  %v3016_v28 = vpop.permute.xlu0 %3015 }
0x1a6f   :  { %v3168_v24 = vadd.f32 %v11559_v34, %v3016_v28  ;;  %7587 = vmatmul.mubr.bf16.vlgmr.msra.gmra.mrb[196].mxu1 %v7805_v43  ;;  %v2991_v12 = vpop.permute.xlu1 %2990 }
0x1a70   :  { %v3147_v41 = vadd.f32 %v11560_v5, %v2991_v12  ;;  %7590 = vmatprep.mubr.bf16.mxu1 %v7806_v42 }
0x1a71   :  { %3206 = vst [vmem:[#allocation9 + $0x40] sm:$0xff] %v3168_v24 }
0x1a72   :  { %3201 = vst [vmem:[#allocation9 + $0x18] sm:$0xff] %v3147_v41  ;;  %v3026_v20 = vpop.permute.xlu0 %3025 }
0x1a73   :  { %v3176_v15 = vadd.f32 %v11561_v48, %v3026_v20  ;;  %v3001_v26 = vpop.permute.xlu1 %3000 }
0x1a74   :  { %v3155_v2 = vadd.f32 %v11562_v56, %v3001_v26 }
0x1a75   :  { %3208 = vst [vmem:[#allocation9 + $0x50] sm:$0xff] %v3176_v15 }
0x1a76   :  { %3203 = vst [vmem:[#allocation9 + $0x28] sm:$0xff] %v3155_v2  ;;  %v3036_v32 = vpop.permute.xlu0 %3035 }
0x1a77   :  { %v3184_v17 = vadd.f32 %v11563_v14, %v3036_v32  ;;  %7591 = vmatmul.mubr.bf16.gmra.mrb[200].mxu1 %v7807_v51  ;;  %v3011_v35 = vpop.permute.xlu1 %3010 }
0x1a78   :  { %v3163_v36 = vadd.f32 %v11564_v16, %v3011_v35  ;;  %7594 = vmatprep.mubr.bf16.mxu1 %v7808_v27 }
0x1a79   :  { %3210 = vst [vmem:[#allocation9 + $0x60] sm:$0xff] %v3184_v17 }
0x1a7a   :  { %3205 = vst [vmem:[#allocation9 + $0x38] sm:$0xff] %v3163_v36  ;;  %v3046_v0 = vpop.permute.xlu0 %3045 }
0x1a7b   :  { %v3192_v47 = vadd.f32 %v11565_v1, %v3046_v0  ;;  %v3021_v38 = vpop.permute.xlu1 %3020 }
0x1a7c   :  { %v3171_v11 = vadd.f32 %v11566_v10, %v3021_v38 }
0x1a7d   :  { %3212 = vst [vmem:[#allocation9 + $0x70] sm:$0xff] %v3192_v47 }
0x1a7e   :  { %3207 = vst [vmem:[#allocation9 + $0x48] sm:$0xff] %v3171_v11  ;;  %v6121_v62 = vpop.permute.xlu0 %6120 }
0x1a7f   :  { %7595 = vmatmul.mubr.bf16.gmra.mrb[204].mxu1 %v7809_v29  ;;  %v3031_v33 = vpop.permute.xlu1 %3030 }
0x1a80   :  { %v3179_v60 = vadd.f32 %v11567_v19, %v3031_v33  ;;  %7598 = vmatprep.mubr.bf16.mxu1 %v7810_v63 }
0x1a82   :  { %3209 = vst [vmem:[#allocation9 + $0x58] sm:$0xff] %v3179_v60  ;;  %v6131_v50 = vpop.permute.xlu0 %6130 }
0x1a83   :  { %v3041_v39 = vpop.permute.xlu1 %3040 }
0x1a84   :  { %v3187_v13 = vadd.f32 %v11568_v49, %v3041_v39 }
0x1a86   :  { %3211 = vst [vmem:[#allocation9 + $0x68] sm:$0xff] %v3187_v13  ;;  %v6141_v44 = vpop.permute.xlu0 %6140 }
0x1a87   :  { %7599 = vmatmul.mubr.bf16.gmra.mrb[208].mxu1 %v7811_v57  ;;  %v3051_v45 = vpop.permute.xlu1 %3050 }
0x1a88   :  { %v3195_v23 = vadd.f32 %v11569_v3, %v3051_v45 }
0x1a8a   :  { %3213 = vst [vmem:[#allocation9 + $0x78] sm:$0xff] %v3195_v23  ;;  %v6151_v58 = vpop.permute.xlu0 %6150 }
0x1a8b   :  { %v6126_v59 = vpop.permute.xlu1 %6125 }
0x1a8e   :  { %v6161_v55 = vpop.permute.xlu0 %6160 }
0x1a8f   :  { %v6136_v7 = vpop.permute.xlu1 %6135 }
0x1a92   :  { %v6171_v42 = vpop.permute.xlu0 %6170 }
0x1a93   :  { %v6146_v31 = vpop.permute.xlu1 %6145 }
0x1a96   :  { %v6181_v41 = vpop.permute.xlu0 %6180 }
0x1a97   :  { %v6156_v8 = vpop.permute.xlu1 %6155 }
0x1a9a   :  { %v6191_v2 = vpop.permute.xlu0 %6190 }
0x1a9b   :  { %v6166_v25 = vpop.permute.xlu1 %6165 }
0x1a9f   :  { %v6176_v34 = vpop.permute.xlu1 %6175 }
0x1aa3   :  { %v6186_v51 = vpop.permute.xlu1 %6185 }
0x1aa7   :  { %v6196_v17 = vpop.permute.xlu1 %6195 }
0x1b42   :  { %v7588_v9 = vpop.f32.mrb[196].mxu1 }
0x1b43   :  { %v6289_v54 = vadd.f32 %v7588_v9, %v6131_v50  ;;  %v6280_v53 = vpop.f32.mrb[197].mxu1 }
0x1b44   :  { %v6281_v37 = vadd.f32 %v6280_v53, %v6121_v62  ;;  %v7589_v46 = vpop.f32.mrb[198].mxu1 }
0x1b45   :  { %6346 = vst [vmem:[#allocation9 + $0x90] sm:$0xff] %v6289_v54  ;;  %v6292_v18 = vadd.f32 %v7589_v46, %v6136_v7  ;;  %v6283_v4 = vpop.f32.mrb[199].mxu1 }
0x1b46   :  { %6344 = vst [vmem:[#allocation9 + $0x80] sm:$0xff] %v6281_v37  ;;  %v6284_v6 = vadd.f32 %v6283_v4, %v6126_v59 }
0x1b47   :  { %6347 = vst [vmem:[#allocation9 + $0x98] sm:$0xff] %v6292_v18 }
0x1b48   :  { %6345 = vst [vmem:[#allocation9 + $0x88] sm:$0xff] %v6284_v6 }
0x1b4a   :  { %v7592_v61 = vpop.f32.mrb[200].mxu1 }
0x1b4b   :  { %v6305_v52 = vadd.f32 %v7592_v61, %v6151_v58  ;;  %v6296_v21 = vpop.f32.mrb[201].mxu1 }
0x1b4c   :  { %v6297_v40 = vadd.f32 %v6296_v21, %v6141_v44  ;;  %v7593_v43 = vpop.f32.mrb[202].mxu1 }
0x1b4d   :  { %6350 = vst [vmem:[#allocation9 + $0xb0] sm:$0xff] %v6305_v52  ;;  %v6308_v22 = vadd.f32 %v7593_v43, %v6156_v8  ;;  %v6299_v30 = vpop.f32.mrb[203].mxu1 }
0x1b4e   :  { %6348 = vst [vmem:[#allocation9 + $0xa0] sm:$0xff] %v6297_v40  ;;  %v6300_v28 = vadd.f32 %v6299_v30, %v6146_v31 }
0x1b4f   :  { %6351 = vst [vmem:[#allocation9 + $0xb8] sm:$0xff] %v6308_v22 }
0x1b50   :  { %6349 = vst [vmem:[#allocation9 + $0xa8] sm:$0xff] %v6300_v28 }
0x1b52   :  { %v7596_v24 = vpop.f32.mrb[204].mxu1 }
0x1b53   :  { %v6321_v12 = vadd.f32 %v7596_v24, %v6171_v42  ;;  %v6312_v5 = vpop.f32.mrb[205].mxu1 }
0x1b54   :  { %v6313_v20 = vadd.f32 %v6312_v5, %v6161_v55  ;;  %v7597_v48 = vpop.f32.mrb[206].mxu1 }
0x1b55   :  { %6354 = vst [vmem:[#allocation9 + $0xd0] sm:$0xff] %v6321_v12  ;;  %v6324_v15 = vadd.f32 %v7597_v48, %v6176_v34  ;;  %v6315_v26 = vpop.f32.mrb[207].mxu1 }
0x1b56   :  { %6352 = vst [vmem:[#allocation9 + $0xc0] sm:$0xff] %v6313_v20  ;;  %v6316_v56 = vadd.f32 %v6315_v26, %v6166_v25 }
0x1b57   :  { %6355 = vst [vmem:[#allocation9 + $0xd8] sm:$0xff] %v6324_v15 }
0x1b58   :  { %6353 = vst [vmem:[#allocation9 + $0xc8] sm:$0xff] %v6316_v56 }
0x1b5a   :  { %v7600_v27 = vpop.f32.mrb[208].mxu1 }
0x1b5b   :  { %v6337_v32 = vadd.f32 %v7600_v27, %v6191_v2  ;;  %v6328_v14 = vpop.f32.mrb[209].mxu1 }
0x1b5c   :  { %v6329_v35 = vadd.f32 %v6328_v14, %v6181_v41  ;;  %v7601_v16 = vpop.f32.mrb[210].mxu1 }
0x1b5d   :  { %6358 = vst [vmem:[#allocation9 + $0xf0] sm:$0xff] %v6337_v32  ;;  %v6340_v36 = vadd.f32 %v7601_v16, %v6196_v17  ;;  %v6331_v0 = vpop.f32.mrb[211].mxu1 }
0x1b5e   :  { %6356 = vst [vmem:[#allocation9 + $0xe0] sm:$0xff] %v6329_v35  ;;  %v6332_v1 = vadd.f32 %v6331_v0, %v6186_v51 }
0x1b5f   :  { %6359 = vst [vmem:[#allocation9 + $0xf8] sm:$0xff] %v6340_v36 }
0x1b60   :  { %6357 = vst [vmem:[#allocation9 + $0xe8] sm:$0xff] %v6332_v1 }
0x1b61   :  { %8386 = shalt.err (!%p8383_p6)
}
0x1b62   :  { %s8387_s13 = scalar_lea.hbm %s11352_s9, 4096 }
0x1b63   :  { %p8388_p7 = scmp.ne.s32.totalorder %s11352_s9, %s8387_s13  ;;  %p8391_p8 = scmp.lt.u32.totalorder %s8387_s13, %s11352_s9 }
0x1b65   :  { %p8393_p9 = pnand %p8391_p8, %p8388_p7 }
0x1b67   :  { %8396 = shalt.err (!%p8393_p9)
}
0x1b68   :  { %s8417_s16 = smov 128   ;;  %s8418_s17 = smov 8  }
0x1b69   :  { %6371 = dma.vmem_to_hbm [thread:$0]  %s6366_s12, 4096, %s11352_s9, [#allocation6], %s8417_s16, %s8417_s16, %s8418_s17  }
0x1b6a   :  { %8401 = dma.done.wait [#allocation6], 4096  }
0x1b6b   :  { %8402 = vsyncadd [#allocation6], 4294963200 }
0x1b6c   :  { %6375 = vsyncpa [#allocation5], 1 }
0x1b6d   :  { %6376 = vsyncpa [#allocation8], 1 }
0x1b6e   :  { %6377 = vsyncpa [#allocation6], 1 }

</bundles_post_ra>
